<compile_context>
chip_gen: v5e
topology: v5e:2x2
jax: 0.10.0
libtpu: 0.0.40
codegen_flags: <defaults>
</compile_context>

<pallas_src>
import math
from functools import partial

import jax
import jax.numpy as jnp
from jax.experimental import pallas as pl
from jax.experimental.pallas import tpu as pltpu


COMPUTE_DTYPE = jnp.bfloat16          # MXU input dtype; accumulation is always f32.
CFG = [64, 'M', 128, 'M', 256, 'M', 512, 'M']   # VGG-style features (conv always + pool)
NUM_CLASSES = 10
IN_CHANNELS = 3


# ------------------------------- in-kernel helpers ------------------------------- #

def _pool2x2(z, bt, h, w, c):
    """2x2 max-pool.  z: (bt*h*w, c) f32  ->  (bt, h//2, w//2, c) f32."""
    h2, w2 = h // 2, w // 2
    z = z.reshape(bt * h * w2, 2, c)
    z = jnp.maximum(z[:, 0, :], z[:, 1, :])            # pool along W
    z = z.reshape(bt * h2, 2, w2, c)
    z = jnp.maximum(z[:, 0, :, :], z[:, 1, :, :])      # pool along H
    return z.reshape(bt, h2, w2, c)


def _vgg_kernel(*refs, conv_shapes, bt, n_classes):
    """Whole VGG forward for one batch block of `bt` images.

    ref order: x_col, (w,b) per conv, (w,b) per fc, o_ref, pad scratches, col scratches.
    """
    n_conv = len(conv_shapes)
    it = iter(refs)
    x_col_ref = next(it)
    conv_wb = [(next(it), next(it)) for _ in range(n_conv)]
    fc_wb = [(next(it), next(it)) for _ in range(3)]
    o_ref = next(it)
    pads = [next(it) for _ in range(n_conv - 1)]
    cols = [next(it) for _ in range(n_conv - 1)]

    # ---- conv layer 0: pre-packed im2col input, single K=9*cin dot ----
    h, w, cin, cout = conv_shapes[0]
    m = bt * h * w
    w_ref, b_ref = conv_wb[0]
    z = jnp.dot(x_col_ref[...].reshape(m, 9 * cin), w_ref[...],
                preferred_element_type=jnp.float32)
    z = jnp.maximum(z + b_ref[...], 0.0)               # bias + ReLU (f32)
    pooled = _pool2x2(z, bt, h, w, cout)

    # ---- conv layers 1..L-1: VMEM halo pad -> VMEM im2col -> single K=9*cin dot ----
    for l in range(1, n_conv):
        h, w, cin, cout = conv_shapes[l]
        m = bt * h * w
        w_ref, b_ref = conv_wb[l]
        pad_ref, col_ref = pads[l - 1], cols[l - 1]

        pad_ref[...] = jnp.zeros_like(pad_ref)                        # zero halo
        pad_ref[:, 1:h + 1, 1:w + 1, :] = pooled.astype(pad_ref.dtype)
        padv = pad_ref[...]                                           # (bt, h+2, w+2, cin)
        for dh in range(3):                                           # build (m, 9*cin)
            for dw in range(3):
                t = dh * 3 + dw
                col_ref[:, t * cin:(t + 1) * cin] = (
                    padv[:, dh:dh + h, dw:dw + w, :].reshape(m, cin))

        z = jnp.dot(col_ref[...], w_ref[...], preferred_element_type=jnp.float32)
        z = jnp.maximum(z + b_ref[...], 0.0)
        pooled = _pool2x2(z, bt, h, w, cout)

    # ---- classifier (Dropout == identity in eval) + log_softmax ----
    feat = pooled.reshape(bt, -1).astype(COMPUTE_DTYPE)               # (bt, 512)
    (w0, b0), (w1, b1), (w2, b2) = fc_wb
    hdn = jnp.dot(feat, w0[...], preferred_element_type=jnp.float32) + b0[...]
    hdn = jnp.maximum(hdn, 0.0)
    hdn = jnp.dot(hdn.astype(COMPUTE_DTYPE), w1[...],
                  preferred_element_type=jnp.float32) + b1[...]
    hdn = jnp.maximum(hdn, 0.0)
    logits = jnp.dot(hdn.astype(COMPUTE_DTYPE), w2[...],
                     preferred_element_type=jnp.float32) + b2[...]

    mx = jnp.max(logits, axis=-1, keepdims=True)                      # stable log_softmax
    s = logits - mx
    lse = jnp.log(jnp.sum(jnp.exp(s), axis=-1, keepdims=True))
    o_ref[...] = (s - lse).reshape(1, bt, n_classes).astype(o_ref.dtype)


# ------------------------------------ params ------------------------------------ #

def init_params(key, in_channels=IN_CHANNELS):
    params = {'conv': [], 'fc': []}
    cin = in_channels
    for v in CFG:
        if v == 'M':
            continue
        cout = v
        key, k1 = jax.random.split(key)
        # PyTorch init: normal(0, sqrt(2 / (k*k*out_channels))), bias zero.
        std = math.sqrt(2.0 / (3 * 3 * cout))
        wt = std * jax.random.normal(k1, (cout, cin, 3, 3), dtype=jnp.float32)
        # (Cout,Cin,kh,kw) -> (kh,kw,Cin,Cout) -> (9*Cin, Cout); column = (kh*3+kw)*cin + c
        wcol = jnp.transpose(wt, (2, 3, 1, 0)).reshape(9 * cin, cout).astype(COMPUTE_DTYPE)
        b = jnp.zeros((1, cout), dtype=jnp.float32)
        params['conv'].append((wcol, b))
        cin = cout

    # Classifier (cifar branch): 512->512, 512->512, 512->num_classes.
    dims = [(512, 512), (512, 512), (512, NUM_CLASSES)]
    for fan_in, fan_out in dims:
        key, k1, k2 = jax.random.split(key, 3)
        bound = 1.0 / math.sqrt(fan_in)   # deterministic stand-in for torch default init
        wt = jax.random.uniform(k1, (fan_in, fan_out), minval=-bound, maxval=bound,
                                dtype=jnp.float32).astype(COMPUTE_DTYPE)
        b = jax.random.uniform(k2, (1, fan_out), minval=-bound, maxval=bound,
                               dtype=jnp.float32)
        params['fc'].append((wt, b))
    return params


# ------------------------------------ forward ------------------------------------ #

def vgg_forward(params, x_nchw, block_batch=8):
    B, C, H, W = x_nchw.shape

    # Derive per-conv shapes; this fused kernel assumes every conv is followed by 'M'.
    conv_shapes = []
    h, w, cin = H, W, C
    i = 0
    while i < len(CFG):
        v = CFG[i]
        if v == 'M' or not (i + 1 < len(CFG) and CFG[i + 1] == 'M'):
            # TODO(synk): bare 'M' / conv without following maxpool not supported here.
            raise NotImplementedError("fused kernel expects conv always followed by 'M'")
        conv_shapes.append((h, w, cin, v))
        h, w, cin = h // 2, w // 2, v
        i += 2
    assert h == 1 and w == 1 and cin == 512, "cifar classifier expects 512 flat features"

    # Batch blocking: keep >= 2 parallel grid blocks (v7x megacore), cap at block_batch.
    bt = max(1, min(block_batch, B // 2)) if B >= 2 else 1
    n_blocks = -(-B // bt)
    Bp = n_blocks * bt

    x = jnp.transpose(x_nchw, (0, 2, 3, 1)).astype(COMPUTE_DTYPE)   # NHWC, bf16
    if Bp != B:
        x = jnp.pad(x, ((0, Bp - B), (0, 0), (0, 0), (0, 0)))

    # Layer-0 im2col pre-packed at the JAX level (cin=3 is lane-sparse, ~3% of FLOPs).
    H0, W0, cin0, _ = conv_shapes[0]
    xpad = jnp.pad(x, ((0, 0), (1, 1), (1, 1), (0, 0)))
    taps = [xpad[:, dh:dh + H0, dw:dw + W0, :] for dh in range(3) for dw in range(3)]
    x_col = jnp.concatenate(taps, axis=-1).reshape(Bp, H0 * W0, 9 * cin0)

    kernel = partial(_vgg_kernel, conv_shapes=tuple(conv_shapes), bt=bt,
                     n_classes=NUM_CLASSES)

    in_specs = [pl.BlockSpec((bt, H0 * W0, 9 * cin0), lambda n: (n, 0, 0))]
    args = [x_col]
    for wt, b in params['conv'] + params['fc']:          # all weights resident full blocks
        in_specs.append(pl.BlockSpec(wt.shape, lambda n: (0, 0)))
        in_specs.append(pl.BlockSpec(b.shape, lambda n: (0, 0)))
        args += [wt, b]

    scratch = []
    for (hl, wl, cinl, _coutl) in conv_shapes[1:]:       # halo-padded activations
        scratch.append(pltpu.VMEM((bt, hl + 2, wl + 2, cinl), COMPUTE_DTYPE))
    for (hl, wl, cinl, _coutl) in conv_shapes[1:]:       # im2col tiles (M, 9*cin)
        scratch.append(pltpu.VMEM((bt * hl * wl, 9 * cinl), COMPUTE_DTYPE))

    out = pl.pallas_call(
        kernel,
        out_shape=jax.ShapeDtypeStruct((n_blocks, bt, NUM_CLASSES), jnp.float32),
        grid=(n_blocks,),
        in_specs=in_specs,
        out_specs=pl.BlockSpec((1, bt, NUM_CLASSES), lambda n: (n, 0, 0)),
        scratch_shapes=scratch,
        compiler_params=pltpu.CompilerParams(
            dimension_semantics=("parallel",),
        ),
    )(*args)

    return out.reshape(Bp, NUM_CLASSES)[:B]              # F.log_softmax(x, dim=1), f32


if __name__ == "__main__":
    key = jax.random.PRNGKey(0)
    kp, kx = jax.random.split(key)
    params = init_params(kp, in_channels=IN_CHANNELS)
    x = jax.random.normal(kx, (2, IN_CHANNELS, 16, 16), dtype=jnp.float32)  # NCHW

    fwd = jax.jit(lambda inp: vgg_forward(params, inp))
    out = jax.block_until_ready(fwd(x))

    assert out.shape == (2, NUM_CLASSES)
    assert bool(jnp.all(jnp.isfinite(out)))
    print("KERNEL_OK")
</pallas_src>

<mosaic_0001>
module attributes {stable_mosaic.version = 11 : i64} {
  func.func @_vgg_kernel(%arg0: i32, %arg1: memref<1x256x27xbf16, #tpu.memory_space<vmem>>, %arg2: memref<27x64xbf16, #tpu.memory_space<vmem>>, %arg3: memref<1x64xf32, #tpu.memory_space<vmem>>, %arg4: memref<576x128xbf16, #tpu.memory_space<vmem>>, %arg5: memref<1x128xf32, #tpu.memory_space<vmem>>, %arg6: memref<1152x256xbf16, #tpu.memory_space<vmem>>, %arg7: memref<1x256xf32, #tpu.memory_space<vmem>>, %arg8: memref<2304x512xbf16, #tpu.memory_space<vmem>>, %arg9: memref<1x512xf32, #tpu.memory_space<vmem>>, %arg10: memref<512x512xbf16, #tpu.memory_space<vmem>>, %arg11: memref<1x512xf32, #tpu.memory_space<vmem>>, %arg12: memref<512x512xbf16, #tpu.memory_space<vmem>>, %arg13: memref<1x512xf32, #tpu.memory_space<vmem>>, %arg14: memref<512x10xbf16, #tpu.memory_space<vmem>>, %arg15: memref<1x10xf32, #tpu.memory_space<vmem>>, %arg16: memref<1x1x10xf32, #tpu.memory_space<vmem>>, %arg17: memref<1x10x10x64xbf16, #tpu.memory_space<vmem>>, %arg18: memref<1x6x6x128xbf16, #tpu.memory_space<vmem>>, %arg19: memref<1x4x4x256xbf16, #tpu.memory_space<vmem>>, %arg20: memref<64x576xbf16, #tpu.memory_space<vmem>>, %arg21: memref<16x1152xbf16, #tpu.memory_space<vmem>>, %arg22: memref<4x2304xbf16, #tpu.memory_space<vmem>>) attributes {dimension_semantics = [#tpu.dimension_semantics<parallel>], iteration_bounds = array<i64: 2>, scalar_prefetch = 0 : i64, scratch_operands = 6 : i64, tpu.core_type = #tpu.core_type<tc>, window_params = [{transform_indices = @transform_0, window_bounds = array<i64: 1, 256, 27>}, {pipeline_mode = #tpu.pipeline_mode<synchronous>, transform_indices = @transform_1, window_bounds = array<i64: 27, 64>}, {pipeline_mode = #tpu.pipeline_mode<synchronous>, transform_indices = @transform_2, window_bounds = array<i64: 1, 64>}, {pipeline_mode = #tpu.pipeline_mode<synchronous>, transform_indices = @transform_3, window_bounds = array<i64: 576, 128>}, {pipeline_mode = #tpu.pipeline_mode<synchronous>, transform_indices = @transform_4, window_bounds = array<i64: 1, 128>}, {pipeline_mode = #tpu.pipeline_mode<synchronous>, transform_indices = @transform_5, window_bounds = array<i64: 1152, 256>}, {pipeline_mode = #tpu.pipeline_mode<synchronous>, transform_indices = @transform_6, window_bounds = array<i64: 1, 256>}, {pipeline_mode = #tpu.pipeline_mode<synchronous>, transform_indices = @transform_7, window_bounds = array<i64: 2304, 512>}, {pipeline_mode = #tpu.pipeline_mode<synchronous>, transform_indices = @transform_8, window_bounds = array<i64: 1, 512>}, {pipeline_mode = #tpu.pipeline_mode<synchronous>, transform_indices = @transform_9, window_bounds = array<i64: 512, 512>}, {pipeline_mode = #tpu.pipeline_mode<synchronous>, transform_indices = @transform_10, window_bounds = array<i64: 1, 512>}, {pipeline_mode = #tpu.pipeline_mode<synchronous>, transform_indices = @transform_11, window_bounds = array<i64: 512, 512>}, {pipeline_mode = #tpu.pipeline_mode<synchronous>, transform_indices = @transform_12, window_bounds = array<i64: 1, 512>}, {pipeline_mode = #tpu.pipeline_mode<synchronous>, transform_indices = @transform_13, window_bounds = array<i64: 512, 10>}, {pipeline_mode = #tpu.pipeline_mode<synchronous>, transform_indices = @transform_14, window_bounds = array<i64: 1, 10>}, {transform_indices = @transform_15, window_bounds = array<i64: 1, 1, 10>}]} {
    %c0 = arith.constant 0 : index
    %c0_0 = arith.constant 0 : index
    %c0_1 = arith.constant 0 : index
    %0 = vector.load %arg1[%c0, %c0_0, %c0_1] : memref<1x256x27xbf16, #tpu.memory_space<vmem>>, vector<1x256x27xbf16>
    %1 = vector.shape_cast %0 : vector<1x256x27xbf16> to vector<256x27xbf16>
    %c0_2 = arith.constant 0 : index
    %c0_3 = arith.constant 0 : index
    %2 = vector.load %arg2[%c0_2, %c0_3] : memref<27x64xbf16, #tpu.memory_space<vmem>>, vector<27x64xbf16>
    %cst = arith.constant dense<0.000000e+00> : vector<256x64xf32>
    %3 = tpu.matmul %1, %2, %cst {dimension_numbers = #tpu.dot_dimension_numbers<[1], [0], [0], [1], [0, 0, 1, 1], [], []>} : vector<256x27xbf16>, vector<27x64xbf16>, vector<256x64xf32> -> vector<256x64xf32>
    %c0_4 = arith.constant 0 : index
    %c0_5 = arith.constant 0 : index
    %4 = vector.load %arg3[%c0_4, %c0_5] : memref<1x64xf32, #tpu.memory_space<vmem>>, vector<1x64xf32>
    %5 = vector.broadcast %4 : vector<1x64xf32> to vector<256x64xf32>
    %6 = arith.addf %3, %5 : vector<256x64xf32>
    %cst_6 = arith.constant 0.000000e+00 : f32
    %7 = vector.broadcast %cst_6 : f32 to vector<256x64xf32>
    %8 = arith.maximumf %6, %7 : vector<256x64xf32>
    %9 = vector.shape_cast %8 : vector<256x64xf32> to vector<128x2x64xf32>
    %10 = vector.extract_strided_slice %9 {offsets = [0, 0, 0], sizes = [128, 1, 64], strides = [1, 1, 1]} : vector<128x2x64xf32> to vector<128x1x64xf32>
    %11 = vector.shape_cast %10 : vector<128x1x64xf32> to vector<128x64xf32>
    %12 = vector.extract_strided_slice %9 {offsets = [0, 1, 0], sizes = [128, 1, 64], strides = [1, 1, 1]} : vector<128x2x64xf32> to vector<128x1x64xf32>
    %13 = vector.shape_cast %12 : vector<128x1x64xf32> to vector<128x64xf32>
    %14 = arith.maximumf %11, %13 : vector<128x64xf32>
    %15 = vector.shape_cast %14 : vector<128x64xf32> to vector<8x2x8x64xf32>
    %16 = vector.extract_strided_slice %15 {offsets = [0, 0, 0, 0], sizes = [8, 1, 8, 64], strides = [1, 1, 1, 1]} : vector<8x2x8x64xf32> to vector<8x1x8x64xf32>
    %17 = vector.shape_cast %16 : vector<8x1x8x64xf32> to vector<8x8x64xf32>
    %18 = vector.extract_strided_slice %15 {offsets = [0, 1, 0, 0], sizes = [8, 1, 8, 64], strides = [1, 1, 1, 1]} : vector<8x2x8x64xf32> to vector<8x1x8x64xf32>
    %19 = vector.shape_cast %18 : vector<8x1x8x64xf32> to vector<8x8x64xf32>
    %20 = arith.maximumf %17, %19 : vector<8x8x64xf32>
    %21 = vector.shape_cast %20 : vector<8x8x64xf32> to vector<1x8x8x64xf32>
    %cst_7 = arith.constant 0.000000e+00 : bf16
    %22 = vector.broadcast %cst_7 : bf16 to vector<1x10x10x64xbf16>
    %c0_8 = arith.constant 0 : index
    %c0_9 = arith.constant 0 : index
    %c0_10 = arith.constant 0 : index
    %c0_11 = arith.constant 0 : index
    %23 = vector.load %arg17[%c0_8, %c0_9, %c0_10, %c0_11] : memref<1x10x10x64xbf16, #tpu.memory_space<vmem>>, vector<1x10x10x64xbf16>
    tpu.vector_store %arg17[%c0_8, %c0_9, %c0_10, %c0_11], %22 {strides = array<i32>} : memref<1x10x10x64xbf16, #tpu.memory_space<vmem>>, vector<1x10x10x64xbf16>,
    %24 = arith.truncf %21 : vector<1x8x8x64xf32> to vector<1x8x8x64xbf16>
    %c0_12 = arith.constant 0 : index
    %c1 = arith.constant 1 : index
    %c1_13 = arith.constant 1 : index
    %c0_14 = arith.constant 0 : index
    %25 = vector.load %arg17[%c0_12, %c1, %c1_13, %c0_14] : memref<1x10x10x64xbf16, #tpu.memory_space<vmem>>, vector<1x8x8x64xbf16>
    tpu.vector_store %arg17[%c0_12, %c1, %c1_13, %c0_14], %24 {strides = array<i32>} : memref<1x10x10x64xbf16, #tpu.memory_space<vmem>>, vector<1x8x8x64xbf16>,
    %c0_15 = arith.constant 0 : index
    %c0_16 = arith.constant 0 : index
    %c0_17 = arith.constant 0 : index
    %c0_18 = arith.constant 0 : index
    %26 = vector.load %arg17[%c0_15, %c0_16, %c0_17, %c0_18] : memref<1x10x10x64xbf16, #tpu.memory_space<vmem>>, vector<1x10x10x64xbf16>
    %27 = vector.extract_strided_slice %26 {offsets = [0, 0, 0, 0], sizes = [1, 8, 8, 64], strides = [1, 1, 1, 1]} : vector<1x10x10x64xbf16> to vector<1x8x8x64xbf16>
    %28 = vector.shape_cast %27 : vector<1x8x8x64xbf16> to vector<64x64xbf16>
    %c0_19 = arith.constant 0 : index
    %c0_20 = arith.constant 0 : index
    %29 = vector.load %arg20[%c0_19, %c0_20] : memref<64x576xbf16, #tpu.memory_space<vmem>>, vector<64x64xbf16>
    tpu.vector_store %arg20[%c0_19, %c0_20], %28 {strides = array<i32>} : memref<64x576xbf16, #tpu.memory_space<vmem>>, vector<64x64xbf16>,
    %30 = vector.extract_strided_slice %26 {offsets = [0, 0, 1, 0], sizes = [1, 8, 8, 64], strides = [1, 1, 1, 1]} : vector<1x10x10x64xbf16> to vector<1x8x8x64xbf16>
    %31 = vector.shape_cast %30 : vector<1x8x8x64xbf16> to vector<64x64xbf16>
    %c0_21 = arith.constant 0 : index
    %c64 = arith.constant 64 : index
    %32 = vector.load %arg20[%c0_21, %c64] : memref<64x576xbf16, #tpu.memory_space<vmem>>, vector<64x64xbf16>
    tpu.vector_store %arg20[%c0_21, %c64], %31 {strides = array<i32>} : memref<64x576xbf16, #tpu.memory_space<vmem>>, vector<64x64xbf16>,
    %33 = vector.extract_strided_slice %26 {offsets = [0, 0, 2, 0], sizes = [1, 8, 8, 64], strides = [1, 1, 1, 1]} : vector<1x10x10x64xbf16> to vector<1x8x8x64xbf16>
    %34 = vector.shape_cast %33 : vector<1x8x8x64xbf16> to vector<64x64xbf16>
    %c0_22 = arith.constant 0 : index
    %c128 = arith.constant 128 : index
    %35 = vector.load %arg20[%c0_22, %c128] : memref<64x576xbf16, #tpu.memory_space<vmem>>, vector<64x64xbf16>
    tpu.vector_store %arg20[%c0_22, %c128], %34 {strides = array<i32>} : memref<64x576xbf16, #tpu.memory_space<vmem>>, vector<64x64xbf16>,
    %36 = vector.extract_strided_slice %26 {offsets = [0, 1, 0, 0], sizes = [1, 8, 8, 64], strides = [1, 1, 1, 1]} : vector<1x10x10x64xbf16> to vector<1x8x8x64xbf16>
    %37 = vector.shape_cast %36 : vector<1x8x8x64xbf16> to vector<64x64xbf16>
    %c0_23 = arith.constant 0 : index
    %c192 = arith.constant 192 : index
    %38 = vector.load %arg20[%c0_23, %c192] : memref<64x576xbf16, #tpu.memory_space<vmem>>, vector<64x64xbf16>
    tpu.vector_store %arg20[%c0_23, %c192], %37 {strides = array<i32>} : memref<64x576xbf16, #tpu.memory_space<vmem>>, vector<64x64xbf16>,
    %39 = vector.extract_strided_slice %26 {offsets = [0, 1, 1, 0], sizes = [1, 8, 8, 64], strides = [1, 1, 1, 1]} : vector<1x10x10x64xbf16> to vector<1x8x8x64xbf16>
    %40 = vector.shape_cast %39 : vector<1x8x8x64xbf16> to vector<64x64xbf16>
    %c0_24 = arith.constant 0 : index
    %c256 = arith.constant 256 : index
    %41 = vector.load %arg20[%c0_24, %c256] : memref<64x576xbf16, #tpu.memory_space<vmem>>, vector<64x64xbf16>
    tpu.vector_store %arg20[%c0_24, %c256], %40 {strides = array<i32>} : memref<64x576xbf16, #tpu.memory_space<vmem>>, vector<64x64xbf16>,
    %42 = vector.extract_strided_slice %26 {offsets = [0, 1, 2, 0], sizes = [1, 8, 8, 64], strides = [1, 1, 1, 1]} : vector<1x10x10x64xbf16> to vector<1x8x8x64xbf16>
    %43 = vector.shape_cast %42 : vector<1x8x8x64xbf16> to vector<64x64xbf16>
    %c0_25 = arith.constant 0 : index
    %c320 = arith.constant 320 : index
    %44 = vector.load %arg20[%c0_25, %c320] : memref<64x576xbf16, #tpu.memory_space<vmem>>, vector<64x64xbf16>
    tpu.vector_store %arg20[%c0_25, %c320], %43 {strides = array<i32>} : memref<64x576xbf16, #tpu.memory_space<vmem>>, vector<64x64xbf16>,
    %45 = vector.extract_strided_slice %26 {offsets = [0, 2, 0, 0], sizes = [1, 8, 8, 64], strides = [1, 1, 1, 1]} : vector<1x10x10x64xbf16> to vector<1x8x8x64xbf16>
    %46 = vector.shape_cast %45 : vector<1x8x8x64xbf16> to vector<64x64xbf16>
    %c0_26 = arith.constant 0 : index
    %c384 = arith.constant 384 : index
    %47 = vector.load %arg20[%c0_26, %c384] : memref<64x576xbf16, #tpu.memory_space<vmem>>, vector<64x64xbf16>
    tpu.vector_store %arg20[%c0_26, %c384], %46 {strides = array<i32>} : memref<64x576xbf16, #tpu.memory_space<vmem>>, vector<64x64xbf16>,
    %48 = vector.extract_strided_slice %26 {offsets = [0, 2, 1, 0], sizes = [1, 8, 8, 64], strides = [1, 1, 1, 1]} : vector<1x10x10x64xbf16> to vector<1x8x8x64xbf16>
    %49 = vector.shape_cast %48 : vector<1x8x8x64xbf16> to vector<64x64xbf16>
    %c0_27 = arith.constant 0 : index
    %c448 = arith.constant 448 : index
    %50 = vector.load %arg20[%c0_27, %c448] : memref<64x576xbf16, #tpu.memory_space<vmem>>, vector<64x64xbf16>
    tpu.vector_store %arg20[%c0_27, %c448], %49 {strides = array<i32>} : memref<64x576xbf16, #tpu.memory_space<vmem>>, vector<64x64xbf16>,
    %51 = vector.extract_strided_slice %26 {offsets = [0, 2, 2, 0], sizes = [1, 8, 8, 64], strides = [1, 1, 1, 1]} : vector<1x10x10x64xbf16> to vector<1x8x8x64xbf16>
    %52 = vector.shape_cast %51 : vector<1x8x8x64xbf16> to vector<64x64xbf16>
    %c0_28 = arith.constant 0 : index
    %c512 = arith.constant 512 : index
    %53 = vector.load %arg20[%c0_28, %c512] : memref<64x576xbf16, #tpu.memory_space<vmem>>, vector<64x64xbf16>
    tpu.vector_store %arg20[%c0_28, %c512], %52 {strides = array<i32>} : memref<64x576xbf16, #tpu.memory_space<vmem>>, vector<64x64xbf16>,
    %c0_29 = arith.constant 0 : index
    %c0_30 = arith.constant 0 : index
    %54 = vector.load %arg20[%c0_29, %c0_30] : memref<64x576xbf16, #tpu.memory_space<vmem>>, vector<64x576xbf16>
    %c0_31 = arith.constant 0 : index
    %c0_32 = arith.constant 0 : index
    %55 = vector.load %arg4[%c0_31, %c0_32] : memref<576x128xbf16, #tpu.memory_space<vmem>>, vector<576x128xbf16>
    %cst_33 = arith.constant dense<0.000000e+00> : vector<64x128xf32>
    %56 = tpu.matmul %54, %55, %cst_33 {dimension_numbers = #tpu.dot_dimension_numbers<[1], [0], [0], [1], [0, 0, 1, 1], [], []>} : vector<64x576xbf16>, vector<576x128xbf16>, vector<64x128xf32> -> vector<64x128xf32>
    %c0_34 = arith.constant 0 : index
    %c0_35 = arith.constant 0 : index
    %57 = vector.load %arg5[%c0_34, %c0_35] : memref<1x128xf32, #tpu.memory_space<vmem>>, vector<1x128xf32>
    %58 = vector.broadcast %57 : vector<1x128xf32> to vector<64x128xf32>
    %59 = arith.addf %56, %58 : vector<64x128xf32>
    %cst_36 = arith.constant 0.000000e+00 : f32
    %60 = vector.broadcast %cst_36 : f32 to vector<64x128xf32>
    %61 = arith.maximumf %59, %60 : vector<64x128xf32>
    %62 = vector.shape_cast %61 : vector<64x128xf32> to vector<32x2x128xf32>
    %63 = vector.extract_strided_slice %62 {offsets = [0, 0, 0], sizes = [32, 1, 128], strides = [1, 1, 1]} : vector<32x2x128xf32> to vector<32x1x128xf32>
    %64 = vector.shape_cast %63 : vector<32x1x128xf32> to vector<32x128xf32>
    %65 = vector.extract_strided_slice %62 {offsets = [0, 1, 0], sizes = [32, 1, 128], strides = [1, 1, 1]} : vector<32x2x128xf32> to vector<32x1x128xf32>
    %66 = vector.shape_cast %65 : vector<32x1x128xf32> to vector<32x128xf32>
    %67 = arith.maximumf %64, %66 : vector<32x128xf32>
    %68 = vector.shape_cast %67 : vector<32x128xf32> to vector<4x2x4x128xf32>
    %69 = vector.extract_strided_slice %68 {offsets = [0, 0, 0, 0], sizes = [4, 1, 4, 128], strides = [1, 1, 1, 1]} : vector<4x2x4x128xf32> to vector<4x1x4x128xf32>
    %70 = vector.shape_cast %69 : vector<4x1x4x128xf32> to vector<4x4x128xf32>
    %71 = vector.extract_strided_slice %68 {offsets = [0, 1, 0, 0], sizes = [4, 1, 4, 128], strides = [1, 1, 1, 1]} : vector<4x2x4x128xf32> to vector<4x1x4x128xf32>
    %72 = vector.shape_cast %71 : vector<4x1x4x128xf32> to vector<4x4x128xf32>
    %73 = arith.maximumf %70, %72 : vector<4x4x128xf32>
    %74 = vector.shape_cast %73 : vector<4x4x128xf32> to vector<1x4x4x128xf32>
    %cst_37 = arith.constant 0.000000e+00 : bf16
    %75 = vector.broadcast %cst_37 : bf16 to vector<1x6x6x128xbf16>
    %c0_38 = arith.constant 0 : index
    %c0_39 = arith.constant 0 : index
    %c0_40 = arith.constant 0 : index
    %c0_41 = arith.constant 0 : index
    %76 = vector.load %arg18[%c0_38, %c0_39, %c0_40, %c0_41] : memref<1x6x6x128xbf16, #tpu.memory_space<vmem>>, vector<1x6x6x128xbf16>
    tpu.vector_store %arg18[%c0_38, %c0_39, %c0_40, %c0_41], %75 {strides = array<i32>} : memref<1x6x6x128xbf16, #tpu.memory_space<vmem>>, vector<1x6x6x128xbf16>,
    %77 = arith.truncf %74 : vector<1x4x4x128xf32> to vector<1x4x4x128xbf16>
    %c0_42 = arith.constant 0 : index
    %c1_43 = arith.constant 1 : index
    %c1_44 = arith.constant 1 : index
    %c0_45 = arith.constant 0 : index
    %78 = vector.load %arg18[%c0_42, %c1_43, %c1_44, %c0_45] : memref<1x6x6x128xbf16, #tpu.memory_space<vmem>>, vector<1x4x4x128xbf16>
    tpu.vector_store %arg18[%c0_42, %c1_43, %c1_44, %c0_45], %77 {strides = array<i32>} : memref<1x6x6x128xbf16, #tpu.memory_space<vmem>>, vector<1x4x4x128xbf16>,
    %c0_46 = arith.constant 0 : index
    %c0_47 = arith.constant 0 : index
    %c0_48 = arith.constant 0 : index
    %c0_49 = arith.constant 0 : index
    %79 = vector.load %arg18[%c0_46, %c0_47, %c0_48, %c0_49] : memref<1x6x6x128xbf16, #tpu.memory_space<vmem>>, vector<1x6x6x128xbf16>
    %80 = vector.extract_strided_slice %79 {offsets = [0, 0, 0, 0], sizes = [1, 4, 4, 128], strides = [1, 1, 1, 1]} : vector<1x6x6x128xbf16> to vector<1x4x4x128xbf16>
    %81 = vector.shape_cast %80 : vector<1x4x4x128xbf16> to vector<16x128xbf16>
    %c0_50 = arith.constant 0 : index
    %c0_51 = arith.constant 0 : index
    %82 = vector.load %arg21[%c0_50, %c0_51] : memref<16x1152xbf16, #tpu.memory_space<vmem>>, vector<16x128xbf16>
    tpu.vector_store %arg21[%c0_50, %c0_51], %81 {strides = array<i32>} : memref<16x1152xbf16, #tpu.memory_space<vmem>>, vector<16x128xbf16>,
    %83 = vector.extract_strided_slice %79 {offsets = [0, 0, 1, 0], sizes = [1, 4, 4, 128], strides = [1, 1, 1, 1]} : vector<1x6x6x128xbf16> to vector<1x4x4x128xbf16>
    %84 = vector.shape_cast %83 : vector<1x4x4x128xbf16> to vector<16x128xbf16>
    %c0_52 = arith.constant 0 : index
    %c128_53 = arith.constant 128 : index
    %85 = vector.load %arg21[%c0_52, %c128_53] : memref<16x1152xbf16, #tpu.memory_space<vmem>>, vector<16x128xbf16>
    tpu.vector_store %arg21[%c0_52, %c128_53], %84 {strides = array<i32>} : memref<16x1152xbf16, #tpu.memory_space<vmem>>, vector<16x128xbf16>,
    %86 = vector.extract_strided_slice %79 {offsets = [0, 0, 2, 0], sizes = [1, 4, 4, 128], strides = [1, 1, 1, 1]} : vector<1x6x6x128xbf16> to vector<1x4x4x128xbf16>
    %87 = vector.shape_cast %86 : vector<1x4x4x128xbf16> to vector<16x128xbf16>
    %c0_54 = arith.constant 0 : index
    %c256_55 = arith.constant 256 : index
    %88 = vector.load %arg21[%c0_54, %c256_55] : memref<16x1152xbf16, #tpu.memory_space<vmem>>, vector<16x128xbf16>
    tpu.vector_store %arg21[%c0_54, %c256_55], %87 {strides = array<i32>} : memref<16x1152xbf16, #tpu.memory_space<vmem>>, vector<16x128xbf16>,
    %89 = vector.extract_strided_slice %79 {offsets = [0, 1, 0, 0], sizes = [1, 4, 4, 128], strides = [1, 1, 1, 1]} : vector<1x6x6x128xbf16> to vector<1x4x4x128xbf16>
    %90 = vector.shape_cast %89 : vector<1x4x4x128xbf16> to vector<16x128xbf16>
    %c0_56 = arith.constant 0 : index
    %c384_57 = arith.constant 384 : index
    %91 = vector.load %arg21[%c0_56, %c384_57] : memref<16x1152xbf16, #tpu.memory_space<vmem>>, vector<16x128xbf16>
    tpu.vector_store %arg21[%c0_56, %c384_57], %90 {strides = array<i32>} : memref<16x1152xbf16, #tpu.memory_space<vmem>>, vector<16x128xbf16>,
    %92 = vector.extract_strided_slice %79 {offsets = [0, 1, 1, 0], sizes = [1, 4, 4, 128], strides = [1, 1, 1, 1]} : vector<1x6x6x128xbf16> to vector<1x4x4x128xbf16>
    %93 = vector.shape_cast %92 : vector<1x4x4x128xbf16> to vector<16x128xbf16>
    %c0_58 = arith.constant 0 : index
    %c512_59 = arith.constant 512 : index
    %94 = vector.load %arg21[%c0_58, %c512_59] : memref<16x1152xbf16, #tpu.memory_space<vmem>>, vector<16x128xbf16>
    tpu.vector_store %arg21[%c0_58, %c512_59], %93 {strides = array<i32>} : memref<16x1152xbf16, #tpu.memory_space<vmem>>, vector<16x128xbf16>,
    %95 = vector.extract_strided_slice %79 {offsets = [0, 1, 2, 0], sizes = [1, 4, 4, 128], strides = [1, 1, 1, 1]} : vector<1x6x6x128xbf16> to vector<1x4x4x128xbf16>
    %96 = vector.shape_cast %95 : vector<1x4x4x128xbf16> to vector<16x128xbf16>
    %c0_60 = arith.constant 0 : index
    %c640 = arith.constant 640 : index
    %97 = vector.load %arg21[%c0_60, %c640] : memref<16x1152xbf16, #tpu.memory_space<vmem>>, vector<16x128xbf16>
    tpu.vector_store %arg21[%c0_60, %c640], %96 {strides = array<i32>} : memref<16x1152xbf16, #tpu.memory_space<vmem>>, vector<16x128xbf16>,
    %98 = vector.extract_strided_slice %79 {offsets = [0, 2, 0, 0], sizes = [1, 4, 4, 128], strides = [1, 1, 1, 1]} : vector<1x6x6x128xbf16> to vector<1x4x4x128xbf16>
    %99 = vector.shape_cast %98 : vector<1x4x4x128xbf16> to vector<16x128xbf16>
    %c0_61 = arith.constant 0 : index
    %c768 = arith.constant 768 : index
    %100 = vector.load %arg21[%c0_61, %c768] : memref<16x1152xbf16, #tpu.memory_space<vmem>>, vector<16x128xbf16>
    tpu.vector_store %arg21[%c0_61, %c768], %99 {strides = array<i32>} : memref<16x1152xbf16, #tpu.memory_space<vmem>>, vector<16x128xbf16>,
    %101 = vector.extract_strided_slice %79 {offsets = [0, 2, 1, 0], sizes = [1, 4, 4, 128], strides = [1, 1, 1, 1]} : vector<1x6x6x128xbf16> to vector<1x4x4x128xbf16>
    %102 = vector.shape_cast %101 : vector<1x4x4x128xbf16> to vector<16x128xbf16>
    %c0_62 = arith.constant 0 : index
    %c896 = arith.constant 896 : index
    %103 = vector.load %arg21[%c0_62, %c896] : memref<16x1152xbf16, #tpu.memory_space<vmem>>, vector<16x128xbf16>
    tpu.vector_store %arg21[%c0_62, %c896], %102 {strides = array<i32>} : memref<16x1152xbf16, #tpu.memory_space<vmem>>, vector<16x128xbf16>,
    %104 = vector.extract_strided_slice %79 {offsets = [0, 2, 2, 0], sizes = [1, 4, 4, 128], strides = [1, 1, 1, 1]} : vector<1x6x6x128xbf16> to vector<1x4x4x128xbf16>
    %105 = vector.shape_cast %104 : vector<1x4x4x128xbf16> to vector<16x128xbf16>
    %c0_63 = arith.constant 0 : index
    %c1024 = arith.constant 1024 : index
    %106 = vector.load %arg21[%c0_63, %c1024] : memref<16x1152xbf16, #tpu.memory_space<vmem>>, vector<16x128xbf16>
    tpu.vector_store %arg21[%c0_63, %c1024], %105 {strides = array<i32>} : memref<16x1152xbf16, #tpu.memory_space<vmem>>, vector<16x128xbf16>,
    %c0_64 = arith.constant 0 : index
    %c0_65 = arith.constant 0 : index
    %107 = vector.load %arg21[%c0_64, %c0_65] : memref<16x1152xbf16, #tpu.memory_space<vmem>>, vector<16x1152xbf16>
    %c0_66 = arith.constant 0 : index
    %c0_67 = arith.constant 0 : index
    %108 = vector.load %arg6[%c0_66, %c0_67] : memref<1152x256xbf16, #tpu.memory_space<vmem>>, vector<1152x256xbf16>
    %cst_68 = arith.constant dense<0.000000e+00> : vector<16x256xf32>
    %109 = tpu.matmul %107, %108, %cst_68 {dimension_numbers = #tpu.dot_dimension_numbers<[1], [0], [0], [1], [0, 0, 1, 1], [], []>} : vector<16x1152xbf16>, vector<1152x256xbf16>, vector<16x256xf32> -> vector<16x256xf32>
    %c0_69 = arith.constant 0 : index
    %c0_70 = arith.constant 0 : index
    %110 = vector.load %arg7[%c0_69, %c0_70] : memref<1x256xf32, #tpu.memory_space<vmem>>, vector<1x256xf32>
    %111 = vector.broadcast %110 : vector<1x256xf32> to vector<16x256xf32>
    %112 = arith.addf %109, %111 : vector<16x256xf32>
    %cst_71 = arith.constant 0.000000e+00 : f32
    %113 = vector.broadcast %cst_71 : f32 to vector<16x256xf32>
    %114 = arith.maximumf %112, %113 : vector<16x256xf32>
    %115 = vector.shape_cast %114 : vector<16x256xf32> to vector<8x2x256xf32>
    %116 = vector.extract_strided_slice %115 {offsets = [0, 0, 0], sizes = [8, 1, 256], strides = [1, 1, 1]} : vector<8x2x256xf32> to vector<8x1x256xf32>
    %117 = vector.shape_cast %116 : vector<8x1x256xf32> to vector<8x256xf32>
    %118 = vector.extract_strided_slice %115 {offsets = [0, 1, 0], sizes = [8, 1, 256], strides = [1, 1, 1]} : vector<8x2x256xf32> to vector<8x1x256xf32>
    %119 = vector.shape_cast %118 : vector<8x1x256xf32> to vector<8x256xf32>
    %120 = arith.maximumf %117, %119 : vector<8x256xf32>
    %121 = vector.shape_cast %120 : vector<8x256xf32> to vector<2x2x2x256xf32>
    %122 = vector.extract_strided_slice %121 {offsets = [0, 0, 0, 0], sizes = [2, 1, 2, 256], strides = [1, 1, 1, 1]} : vector<2x2x2x256xf32> to vector<2x1x2x256xf32>
    %123 = vector.shape_cast %122 : vector<2x1x2x256xf32> to vector<2x2x256xf32>
    %124 = vector.extract_strided_slice %121 {offsets = [0, 1, 0, 0], sizes = [2, 1, 2, 256], strides = [1, 1, 1, 1]} : vector<2x2x2x256xf32> to vector<2x1x2x256xf32>
    %125 = vector.shape_cast %124 : vector<2x1x2x256xf32> to vector<2x2x256xf32>
    %126 = arith.maximumf %123, %125 : vector<2x2x256xf32>
    %127 = vector.shape_cast %126 : vector<2x2x256xf32> to vector<1x2x2x256xf32>
    %cst_72 = arith.constant 0.000000e+00 : bf16
    %128 = vector.broadcast %cst_72 : bf16 to vector<1x4x4x256xbf16>
    %c0_73 = arith.constant 0 : index
    %c0_74 = arith.constant 0 : index
    %c0_75 = arith.constant 0 : index
    %c0_76 = arith.constant 0 : index
    %129 = vector.load %arg19[%c0_73, %c0_74, %c0_75, %c0_76] : memref<1x4x4x256xbf16, #tpu.memory_space<vmem>>, vector<1x4x4x256xbf16>
    tpu.vector_store %arg19[%c0_73, %c0_74, %c0_75, %c0_76], %128 {strides = array<i32>} : memref<1x4x4x256xbf16, #tpu.memory_space<vmem>>, vector<1x4x4x256xbf16>,
    %130 = arith.truncf %127 : vector<1x2x2x256xf32> to vector<1x2x2x256xbf16>
    %c0_77 = arith.constant 0 : index
    %c1_78 = arith.constant 1 : index
    %c1_79 = arith.constant 1 : index
    %c0_80 = arith.constant 0 : index
    %131 = vector.load %arg19[%c0_77, %c1_78, %c1_79, %c0_80] : memref<1x4x4x256xbf16, #tpu.memory_space<vmem>>, vector<1x2x2x256xbf16>
    tpu.vector_store %arg19[%c0_77, %c1_78, %c1_79, %c0_80], %130 {strides = array<i32>} : memref<1x4x4x256xbf16, #tpu.memory_space<vmem>>, vector<1x2x2x256xbf16>,
    %c0_81 = arith.constant 0 : index
    %c0_82 = arith.constant 0 : index
    %c0_83 = arith.constant 0 : index
    %c0_84 = arith.constant 0 : index
    %132 = vector.load %arg19[%c0_81, %c0_82, %c0_83, %c0_84] : memref<1x4x4x256xbf16, #tpu.memory_space<vmem>>, vector<1x4x4x256xbf16>
    %133 = vector.extract_strided_slice %132 {offsets = [0, 0, 0, 0], sizes = [1, 2, 2, 256], strides = [1, 1, 1, 1]} : vector<1x4x4x256xbf16> to vector<1x2x2x256xbf16>
    %134 = vector.shape_cast %133 : vector<1x2x2x256xbf16> to vector<4x256xbf16>
    %c0_85 = arith.constant 0 : index
    %c0_86 = arith.constant 0 : index
    %135 = vector.load %arg22[%c0_85, %c0_86] : memref<4x2304xbf16, #tpu.memory_space<vmem>>, vector<4x256xbf16>
    tpu.vector_store %arg22[%c0_85, %c0_86], %134 {strides = array<i32>} : memref<4x2304xbf16, #tpu.memory_space<vmem>>, vector<4x256xbf16>,
    %136 = vector.extract_strided_slice %132 {offsets = [0, 0, 1, 0], sizes = [1, 2, 2, 256], strides = [1, 1, 1, 1]} : vector<1x4x4x256xbf16> to vector<1x2x2x256xbf16>
    %137 = vector.shape_cast %136 : vector<1x2x2x256xbf16> to vector<4x256xbf16>
    %c0_87 = arith.constant 0 : index
    %c256_88 = arith.constant 256 : index
    %138 = vector.load %arg22[%c0_87, %c256_88] : memref<4x2304xbf16, #tpu.memory_space<vmem>>, vector<4x256xbf16>
    tpu.vector_store %arg22[%c0_87, %c256_88], %137 {strides = array<i32>} : memref<4x2304xbf16, #tpu.memory_space<vmem>>, vector<4x256xbf16>,
    %139 = vector.extract_strided_slice %132 {offsets = [0, 0, 2, 0], sizes = [1, 2, 2, 256], strides = [1, 1, 1, 1]} : vector<1x4x4x256xbf16> to vector<1x2x2x256xbf16>
    %140 = vector.shape_cast %139 : vector<1x2x2x256xbf16> to vector<4x256xbf16>
    %c0_89 = arith.constant 0 : index
    %c512_90 = arith.constant 512 : index
    %141 = vector.load %arg22[%c0_89, %c512_90] : memref<4x2304xbf16, #tpu.memory_space<vmem>>, vector<4x256xbf16>
    tpu.vector_store %arg22[%c0_89, %c512_90], %140 {strides = array<i32>} : memref<4x2304xbf16, #tpu.memory_space<vmem>>, vector<4x256xbf16>,
    %142 = vector.extract_strided_slice %132 {offsets = [0, 1, 0, 0], sizes = [1, 2, 2, 256], strides = [1, 1, 1, 1]} : vector<1x4x4x256xbf16> to vector<1x2x2x256xbf16>
    %143 = vector.shape_cast %142 : vector<1x2x2x256xbf16> to vector<4x256xbf16>
    %c0_91 = arith.constant 0 : index
    %c768_92 = arith.constant 768 : index
    %144 = vector.load %arg22[%c0_91, %c768_92] : memref<4x2304xbf16, #tpu.memory_space<vmem>>, vector<4x256xbf16>
    tpu.vector_store %arg22[%c0_91, %c768_92], %143 {strides = array<i32>} : memref<4x2304xbf16, #tpu.memory_space<vmem>>, vector<4x256xbf16>,
    %145 = vector.extract_strided_slice %132 {offsets = [0, 1, 1, 0], sizes = [1, 2, 2, 256], strides = [1, 1, 1, 1]} : vector<1x4x4x256xbf16> to vector<1x2x2x256xbf16>
    %146 = vector.shape_cast %145 : vector<1x2x2x256xbf16> to vector<4x256xbf16>
    %c0_93 = arith.constant 0 : index
    %c1024_94 = arith.constant 1024 : index
    %147 = vector.load %arg22[%c0_93, %c1024_94] : memref<4x2304xbf16, #tpu.memory_space<vmem>>, vector<4x256xbf16>
    tpu.vector_store %arg22[%c0_93, %c1024_94], %146 {strides = array<i32>} : memref<4x2304xbf16, #tpu.memory_space<vmem>>, vector<4x256xbf16>,
    %148 = vector.extract_strided_slice %132 {offsets = [0, 1, 2, 0], sizes = [1, 2, 2, 256], strides = [1, 1, 1, 1]} : vector<1x4x4x256xbf16> to vector<1x2x2x256xbf16>
    %149 = vector.shape_cast %148 : vector<1x2x2x256xbf16> to vector<4x256xbf16>
    %c0_95 = arith.constant 0 : index
    %c1280 = arith.constant 1280 : index
    %150 = vector.load %arg22[%c0_95, %c1280] : memref<4x2304xbf16, #tpu.memory_space<vmem>>, vector<4x256xbf16>
    tpu.vector_store %arg22[%c0_95, %c1280], %149 {strides = array<i32>} : memref<4x2304xbf16, #tpu.memory_space<vmem>>, vector<4x256xbf16>,
    %151 = vector.extract_strided_slice %132 {offsets = [0, 2, 0, 0], sizes = [1, 2, 2, 256], strides = [1, 1, 1, 1]} : vector<1x4x4x256xbf16> to vector<1x2x2x256xbf16>
    %152 = vector.shape_cast %151 : vector<1x2x2x256xbf16> to vector<4x256xbf16>
    %c0_96 = arith.constant 0 : index
    %c1536 = arith.constant 1536 : index
    %153 = vector.load %arg22[%c0_96, %c1536] : memref<4x2304xbf16, #tpu.memory_space<vmem>>, vector<4x256xbf16>
    tpu.vector_store %arg22[%c0_96, %c1536], %152 {strides = array<i32>} : memref<4x2304xbf16, #tpu.memory_space<vmem>>, vector<4x256xbf16>,
    %154 = vector.extract_strided_slice %132 {offsets = [0, 2, 1, 0], sizes = [1, 2, 2, 256], strides = [1, 1, 1, 1]} : vector<1x4x4x256xbf16> to vector<1x2x2x256xbf16>
    %155 = vector.shape_cast %154 : vector<1x2x2x256xbf16> to vector<4x256xbf16>
    %c0_97 = arith.constant 0 : index
    %c1792 = arith.constant 1792 : index
    %156 = vector.load %arg22[%c0_97, %c1792] : memref<4x2304xbf16, #tpu.memory_space<vmem>>, vector<4x256xbf16>
    tpu.vector_store %arg22[%c0_97, %c1792], %155 {strides = array<i32>} : memref<4x2304xbf16, #tpu.memory_space<vmem>>, vector<4x256xbf16>,
    %157 = vector.extract_strided_slice %132 {offsets = [0, 2, 2, 0], sizes = [1, 2, 2, 256], strides = [1, 1, 1, 1]} : vector<1x4x4x256xbf16> to vector<1x2x2x256xbf16>
    %158 = vector.shape_cast %157 : vector<1x2x2x256xbf16> to vector<4x256xbf16>
    %c0_98 = arith.constant 0 : index
    %c2048 = arith.constant 2048 : index
    %159 = vector.load %arg22[%c0_98, %c2048] : memref<4x2304xbf16, #tpu.memory_space<vmem>>, vector<4x256xbf16>
    tpu.vector_store %arg22[%c0_98, %c2048], %158 {strides = array<i32>} : memref<4x2304xbf16, #tpu.memory_space<vmem>>, vector<4x256xbf16>,
    %c0_99 = arith.constant 0 : index
    %c0_100 = arith.constant 0 : index
    %160 = vector.load %arg22[%c0_99, %c0_100] : memref<4x2304xbf16, #tpu.memory_space<vmem>>, vector<4x2304xbf16>
    %c0_101 = arith.constant 0 : index
    %c0_102 = arith.constant 0 : index
    %161 = vector.load %arg8[%c0_101, %c0_102] : memref<2304x512xbf16, #tpu.memory_space<vmem>>, vector<2304x512xbf16>
    %cst_103 = arith.constant dense<0.000000e+00> : vector<4x512xf32>
    %162 = tpu.matmul %160, %161, %cst_103 {dimension_numbers = #tpu.dot_dimension_numbers<[1], [0], [0], [1], [0, 0, 1, 1], [], []>} : vector<4x2304xbf16>, vector<2304x512xbf16>, vector<4x512xf32> -> vector<4x512xf32>
    %c0_104 = arith.constant 0 : index
    %c0_105 = arith.constant 0 : index
    %163 = vector.load %arg9[%c0_104, %c0_105] : memref<1x512xf32, #tpu.memory_space<vmem>>, vector<1x512xf32>
    %164 = vector.broadcast %163 : vector<1x512xf32> to vector<4x512xf32>
    %165 = arith.addf %162, %164 : vector<4x512xf32>
    %cst_106 = arith.constant 0.000000e+00 : f32
    %166 = vector.broadcast %cst_106 : f32 to vector<4x512xf32>
    %167 = arith.maximumf %165, %166 : vector<4x512xf32>
    %168 = vector.shape_cast %167 : vector<4x512xf32> to vector<2x2x512xf32>
    %169 = vector.extract_strided_slice %168 {offsets = [0, 0, 0], sizes = [2, 1, 512], strides = [1, 1, 1]} : vector<2x2x512xf32> to vector<2x1x512xf32>
    %170 = vector.shape_cast %169 : vector<2x1x512xf32> to vector<2x512xf32>
    %171 = vector.extract_strided_slice %168 {offsets = [0, 1, 0], sizes = [2, 1, 512], strides = [1, 1, 1]} : vector<2x2x512xf32> to vector<2x1x512xf32>
    %172 = vector.shape_cast %171 : vector<2x1x512xf32> to vector<2x512xf32>
    %173 = arith.maximumf %170, %172 : vector<2x512xf32>
    %174 = vector.shape_cast %173 : vector<2x512xf32> to vector<1x2x1x512xf32>
    %175 = vector.extract_strided_slice %174 {offsets = [0, 0, 0, 0], sizes = [1, 1, 1, 512], strides = [1, 1, 1, 1]} : vector<1x2x1x512xf32> to vector<1x1x1x512xf32>
    %176 = vector.shape_cast %175 : vector<1x1x1x512xf32> to vector<1x1x512xf32>
    %177 = vector.extract_strided_slice %174 {offsets = [0, 1, 0, 0], sizes = [1, 1, 1, 512], strides = [1, 1, 1, 1]} : vector<1x2x1x512xf32> to vector<1x1x1x512xf32>
    %178 = vector.shape_cast %177 : vector<1x1x1x512xf32> to vector<1x1x512xf32>
    %179 = arith.maximumf %176, %178 : vector<1x1x512xf32>
    %180 = vector.shape_cast %179 : vector<1x1x512xf32> to vector<1x1x1x512xf32>
    %181 = vector.shape_cast %180 : vector<1x1x1x512xf32> to vector<1x512xf32>
    %182 = arith.truncf %181 : vector<1x512xf32> to vector<1x512xbf16>
    %c0_107 = arith.constant 0 : index
    %c0_108 = arith.constant 0 : index
    %183 = vector.load %arg10[%c0_107, %c0_108] : memref<512x512xbf16, #tpu.memory_space<vmem>>, vector<512x512xbf16>
    %cst_109 = arith.constant dense<0.000000e+00> : vector<1x512xf32>
    %184 = tpu.matmul %182, %183, %cst_109 {dimension_numbers = #tpu.dot_dimension_numbers<[1], [0], [0], [1], [0, 0, 1, 1], [], []>} : vector<1x512xbf16>, vector<512x512xbf16>, vector<1x512xf32> -> vector<1x512xf32>
    %c0_110 = arith.constant 0 : index
    %c0_111 = arith.constant 0 : index
    %185 = vector.load %arg11[%c0_110, %c0_111] : memref<1x512xf32, #tpu.memory_space<vmem>>, vector<1x512xf32>
    %186 = arith.addf %184, %185 : vector<1x512xf32>
    %cst_112 = arith.constant 0.000000e+00 : f32
    %187 = vector.broadcast %cst_112 : f32 to vector<1x512xf32>
    %188 = arith.maximumf %186, %187 : vector<1x512xf32>
    %189 = arith.truncf %188 : vector<1x512xf32> to vector<1x512xbf16>
    %c0_113 = arith.constant 0 : index
    %c0_114 = arith.constant 0 : index
    %190 = vector.load %arg12[%c0_113, %c0_114] : memref<512x512xbf16, #tpu.memory_space<vmem>>, vector<512x512xbf16>
    %cst_115 = arith.constant dense<0.000000e+00> : vector<1x512xf32>
    %191 = tpu.matmul %189, %190, %cst_115 {dimension_numbers = #tpu.dot_dimension_numbers<[1], [0], [0], [1], [0, 0, 1, 1], [], []>} : vector<1x512xbf16>, vector<512x512xbf16>, vector<1x512xf32> -> vector<1x512xf32>
    %c0_116 = arith.constant 0 : index
    %c0_117 = arith.constant 0 : index
    %192 = vector.load %arg13[%c0_116, %c0_117] : memref<1x512xf32, #tpu.memory_space<vmem>>, vector<1x512xf32>
    %193 = arith.addf %191, %192 : vector<1x512xf32>
    %cst_118 = arith.constant 0.000000e+00 : f32
    %194 = vector.broadcast %cst_118 : f32 to vector<1x512xf32>
    %195 = arith.maximumf %193, %194 : vector<1x512xf32>
    %196 = arith.truncf %195 : vector<1x512xf32> to vector<1x512xbf16>
    %c0_119 = arith.constant 0 : index
    %c0_120 = arith.constant 0 : index
    %197 = vector.load %arg14[%c0_119, %c0_120] : memref<512x10xbf16, #tpu.memory_space<vmem>>, vector<512x10xbf16>
    %cst_121 = arith.constant dense<0.000000e+00> : vector<1x10xf32>
    %198 = tpu.matmul %196, %197, %cst_121 {dimension_numbers = #tpu.dot_dimension_numbers<[1], [0], [0], [1], [0, 0, 1, 1], [], []>} : vector<1x512xbf16>, vector<512x10xbf16>, vector<1x10xf32> -> vector<1x10xf32>
    %c0_122 = arith.constant 0 : index
    %c0_123 = arith.constant 0 : index
    %199 = vector.load %arg15[%c0_122, %c0_123] : memref<1x10xf32, #tpu.memory_space<vmem>>, vector<1x10xf32>
    %200 = arith.addf %198, %199 : vector<1x10xf32>
    %cst_124 = arith.constant dense<0xFF800000> : vector<1xf32>
    %201 = vector.multi_reduction <maximumf>, %200, %cst_124 [1] : vector<1x10xf32> to vector<1xf32>
    %202 = vector.shape_cast %201 : vector<1xf32> to vector<1x1xf32>
    %203 = vector.broadcast %202 : vector<1x1xf32> to vector<1x10xf32>
    %204 = arith.subf %200, %203 : vector<1x10xf32>
    %205 = math.exp %204 : vector<1x10xf32>
    %cst_125 = arith.constant dense<0.000000e+00> : vector<1xf32>
    %206 = vector.multi_reduction <add>, %205, %cst_125 [1] : vector<1x10xf32> to vector<1xf32>
    %207 = vector.shape_cast %206 : vector<1xf32> to vector<1x1xf32>
    %208 = math.log %207 : vector<1x1xf32>
    %209 = vector.broadcast %208 : vector<1x1xf32> to vector<1x10xf32>
    %210 = arith.subf %204, %209 : vector<1x10xf32>
    %211 = vector.shape_cast %210 : vector<1x10xf32> to vector<1x1x10xf32>
    %c0_126 = arith.constant 0 : index
    %c0_127 = arith.constant 0 : index
    %c0_128 = arith.constant 0 : index
    %212 = vector.load %arg16[%c0_126, %c0_127, %c0_128] : memref<1x1x10xf32, #tpu.memory_space<vmem>>, vector<1x1x10xf32>
    tpu.vector_store %arg16[%c0_126, %c0_127, %c0_128], %211 {strides = array<i32>} : memref<1x1x10xf32, #tpu.memory_space<vmem>>, vector<1x1x10xf32>,
    return
  }
  func.func @transform_0(%arg0: i32) -> (i32, i32, i32) {
    %c0_i32 = arith.constant 0 : i32
    %c0_i32_0 = arith.constant 0 : i32
    %c0_i32_1 = arith.constant 0 : i32
    return %arg0, %c0_i32, %c0_i32_0 : i32, i32, i32
  }
  func.func @transform_1(%arg0: i32) -> (i32, i32) {
    %c0_i32 = arith.constant 0 : i32
    %c0_i32_0 = arith.constant 0 : i32
    %c0_i32_1 = arith.constant 0 : i32
    return %c0_i32, %c0_i32_0 : i32, i32
  }
  func.func @transform_2(%arg0: i32) -> (i32, i32) {
    %c0_i32 = arith.constant 0 : i32
    %c0_i32_0 = arith.constant 0 : i32
    %c0_i32_1 = arith.constant 0 : i32
    return %c0_i32, %c0_i32_0 : i32, i32
  }
  func.func @transform_3(%arg0: i32) -> (i32, i32) {
    %c0_i32 = arith.constant 0 : i32
    %c0_i32_0 = arith.constant 0 : i32
    %c0_i32_1 = arith.constant 0 : i32
    return %c0_i32, %c0_i32_0 : i32, i32
  }
  func.func @transform_4(%arg0: i32) -> (i32, i32) {
    %c0_i32 = arith.constant 0 : i32
    %c0_i32_0 = arith.constant 0 : i32
    %c0_i32_1 = arith.constant 0 : i32
    return %c0_i32, %c0_i32_0 : i32, i32
  }
  func.func @transform_5(%arg0: i32) -> (i32, i32) {
    %c0_i32 = arith.constant 0 : i32
    %c0_i32_0 = arith.constant 0 : i32
    %c0_i32_1 = arith.constant 0 : i32
    return %c0_i32, %c0_i32_0 : i32, i32
  }
  func.func @transform_6(%arg0: i32) -> (i32, i32) {
    %c0_i32 = arith.constant 0 : i32
    %c0_i32_0 = arith.constant 0 : i32
    %c0_i32_1 = arith.constant 0 : i32
    return %c0_i32, %c0_i32_0 : i32, i32
  }
  func.func @transform_7(%arg0: i32) -> (i32, i32) {
    %c0_i32 = arith.constant 0 : i32
    %c0_i32_0 = arith.constant 0 : i32
    %c0_i32_1 = arith.constant 0 : i32
    return %c0_i32, %c0_i32_0 : i32, i32
  }
  func.func @transform_8(%arg0: i32) -> (i32, i32) {
    %c0_i32 = arith.constant 0 : i32
    %c0_i32_0 = arith.constant 0 : i32
    %c0_i32_1 = arith.constant 0 : i32
    return %c0_i32, %c0_i32_0 : i32, i32
  }
  func.func @transform_9(%arg0: i32) -> (i32, i32) {
    %c0_i32 = arith.constant 0 : i32
    %c0_i32_0 = arith.constant 0 : i32
    %c0_i32_1 = arith.constant 0 : i32
    return %c0_i32, %c0_i32_0 : i32, i32
  }
  func.func @transform_10(%arg0: i32) -> (i32, i32) {
    %c0_i32 = arith.constant 0 : i32
    %c0_i32_0 = arith.constant 0 : i32
    %c0_i32_1 = arith.constant 0 : i32
    return %c0_i32, %c0_i32_0 : i32, i32
  }
  func.func @transform_11(%arg0: i32) -> (i32, i32) {
    %c0_i32 = arith.constant 0 : i32
    %c0_i32_0 = arith.constant 0 : i32
    %c0_i32_1 = arith.constant 0 : i32
    return %c0_i32, %c0_i32_0 : i32, i32
  }
  func.func @transform_12(%arg0: i32) -> (i32, i32) {
    %c0_i32 = arith.constant 0 : i32
    %c0_i32_0 = arith.constant 0 : i32
    %c0_i32_1 = arith.constant 0 : i32
    return %c0_i32, %c0_i32_0 : i32, i32
  }
  func.func @transform_13(%arg0: i32) -> (i32, i32) {
    %c0_i32 = arith.constant 0 : i32
    %c0_i32_0 = arith.constant 0 : i32
    %c0_i32_1 = arith.constant 0 : i32
    return %c0_i32, %c0_i32_0 : i32, i32
  }
  func.func @transform_14(%arg0: i32) -> (i32, i32) {
    %c0_i32 = arith.constant 0 : i32
    %c0_i32_0 = arith.constant 0 : i32
    %c0_i32_1 = arith.constant 0 : i32
    return %c0_i32, %c0_i32_0 : i32, i32
  }
  func.func @transform_15(%arg0: i32) -> (i32, i32, i32) {
    %c0_i32 = arith.constant 0 : i32
    %c0_i32_0 = arith.constant 0 : i32
    %c0_i32_1 = arith.constant 0 : i32
    return %arg0, %c0_i32, %c0_i32_0 : i32, i32, i32
  }
}

</mosaic_0001>

<bundles_post_ra>
// kernel: _lambda_.1
= control target key start
LH: loop header
LB: loop body
LE: loop exit
PB: predicated region body
PF: predicated region fallthrough
CT: control target
= control target key end

     0   :  { %s20108_s0 = inlined_call_operand.vmem [shape: bf16[2,256,27], index: 0, kind: input, shape index: {}]   ;;  %s20109_s1 = inlined_call_operand.hbm [shape: bf16[27,64], index: 1, kind: input, shape index: {}]   ;;  %s20110_s2 = inlined_call_operand.vmem [shape: f32[1,64], index: 2, kind: input, shape index: {}]   ;;  %s20111_s3 = inlined_call_operand.hbm [shape: bf16[576,128], index: 3, kind: input, shape index: {}]   ;;  %s20112_s4 = inlined_call_operand.vmem [shape: f32[1,128], index: 4, kind: input, shape index: {}]   ;;  %s20113_s5 = inlined_call_operand.hbm [shape: bf16[1152,256], index: 5, kind: input, shape index: {}]   ;;  %s20114_s6 = inlined_call_operand.vmem [shape: f32[1,256], index: 6, kind: input, shape index: {}]   ;;  %s20115_s7 = inlined_call_operand.hbm [shape: bf16[2304,512], index: 7, kind: input, shape index: {}]   ;;  %s20116_s8 = inlined_call_operand.vmem [shape: f32[1,512], index: 8, kind: input, shape index: {}]   ;;  %s20117_s9 = inlined_call_operand.hbm [shape: bf16[512,512], index: 9, kind: input, shape index: {}]   ;;  %s20118_s10 = inlined_call_operand.hbm [shape: f32[1,512], index: 10, kind: input, shape index: {}]   ;;  %s20119_s11 = inlined_call_operand.hbm [shape: bf16[512,512], index: 11, kind: input, shape index: {}]   ;;  %s20120_s12 = inlined_call_operand.hbm [shape: f32[1,512], index: 12, kind: input, shape index: {}]   ;;  %s20121_s13 = inlined_call_operand.hbm [shape: bf16[512,10], index: 13, kind: input, shape index: {}]   ;;  %s20122_s14 = inlined_call_operand.hbm [shape: f32[1,10], index: 14, kind: input, shape index: {}]   ;;  %s20123_s15 = inlined_call_operand.hbm [shape: f32[2,1,10], index: 15, kind: output, shape index: {}]  }
   0x1   :  { %20144 = sst [smem:[#allocation41_spill]] %s20109_s1 }
   0x2   :  { %20145 = sst [smem:[#allocation42_spill]] %s20111_s3 }
   0x3   :  { %20146 = sst [smem:[#allocation43_spill]] %s20115_s7 }
   0x4   :  { %20147 = sst [smem:[#allocation44_spill]] %s20123_s15 }
   0x5   :  { %20 = vsyncpa [#allocation9], 0 }
   0x6   :  { %21 = vsyncpa [#allocation12], 0 }
   0x7   :  { %22 = vsyncpa [#allocation15], 0 }
   0x8   :  { %23 = vsyncpa [#allocation18], 0 }
   0x9   :  { %24 = vsyncpa [#allocation21], 0 }
   0xa   :  { %25 = vsyncpa [#allocation24], 0 }
   0xb   :  { %26 = vsyncpa [#allocation10], 0 }
   0xc   :  { %28 = vsyncpa [#allocation10 + $0x1], 0  ;;  %s18642_s18 = smov 0   ;;  %s18644_s19 = smov 0  }
   0xd   :  { %s18646_s20 = smov 0   ;;  %s18648_s21 = smov 0  }
   0xe LB: > { %20148 = sst [smem:[#allocation33_spill]] %s18529_s18  ;;  %s18663_s22 = sadd.s32 4294967295, %s18541_s21   ;;  %s18541_s21 = sphi %s18648_s21, %s20202_s21   ;;  %s18537_s20 = sphi %s18646_s20, %s20205_s20   ;;  %s18533_s19 = sphi %s18644_s19, %s20204_s19   ;;  %s18529_s18 = sphi %s18642_s18, %s20203_s18  }
   0xf   : > { %20149 = sst [smem:[#allocation34_spill]] %s18533_s19  ;;  %s12285_s23 = sadd.s32 4294967294, %s18541_s21  }
  0x10   : > { %20150 = sst [smem:[#allocation35_spill]] %s18537_s20  ;;  %s18667_s24 = sadd.s32 1, %s18541_s21  }
  0x11   : > { %20151 = sst [smem:[#allocation36_spill]] %s18541_s21  ;;  %s361_s25 = sadd.s32 1, %s18537_s20 }
  0x12   : > { %20152 = sst [smem:[#allocation37_spill]] %s18667_s24  ;;  %s358_s26 = ssub.s32 %s18541_s21, %s18667_s24 }
  0x13   : > { %p371_p0 = scmp.ne.s32.totalorder %s18537_s20, %s18533_s19  ;;  %p359_p1 = scmp.eq.s32.totalorder %s358_s26, 0 }
  0x14   : > { %p372_p2 = scmp.eq.s32.totalorder %s18663_s22, 1  ;;  %p377_p3 = scmp.ne.s32.totalorder %s18533_s19, %s18529_s18 }
  0x15   : > { %p378_p4 = scmp.eq.s32.totalorder %s12285_s23, 1  ;;  %p12286_p7 = scmp.ge.s32.totalorder %s18541_s21, 1 }
  0x16   : > { %s18678_s27 = scalar_select %p359_p1, %s18537_s20, %s361_s25  }
  0x17   : > { %p18680_p5 = por %p372_p2, %p371_p0  ;;  %p18684_p6 = por %p378_p4, %p377_p3 }
  0x18   : > { %20153 = sst [smem:[#allocation38_spill]] %s18678_s27  ;;  %p385_p8 = scmp.lt.s32.totalorder %s18541_s21, 3 }
  0x19   : > { %s20154_s28 = scalar_select %p18680_p5, 1, 0 }
  0x1a   : > { %s20156_s29 = scalar_select %p18684_p6, 1, 0 }
  0x1b   : > { %20155 = sst [smem:[#allocation39_spill]] %s20154_s28  ;;  %p18056_p9 = scmp.eq.s32.totalorder %s18663_s22, 0 }
  0x1c   : > { %20157 = sst [smem:[#allocation40_spill]] %s20156_s29  ;;  %p18691_p10 = pnand %p12286_p7, %p385_p8 }
  0x1d   : > { %s20159_s3 = sld [smem:[#allocation42_spill]]  ;;  %s18543_s24 = smov [#allocation11]  }
  0x1e   : > { %p18021_p11 = pneg %p18691_p10  ;;  %s20160_s7 = sld [smem:[#allocation43_spill]] }
  0x1f   : > { %s415_s29 = sshll.u32 %s18543_s24, 4  ;;  %s20133_s16 = smov 64   ;;  %s416_s29 = int_to_ptr.vmem [resolvable:$true] %s415_s29 }
  0x20   : > { %p18705_p12 = pnand %p18056_p9, %p18021_p11  ;;  %s20135_s17 = smov 4  }
  0x21   : > { %s18546_s25 = smov [#allocation14]   ;;  %s479_s21 = sshll.u32 %s20118_s10, 4  ;;  %s480_s21 = int_to_ptr.hbm [resolvable:$true] %s479_s21 }
  0x22   : > { %s449_s26 = sshll.u32 %s18546_s25, 4  ;;  %s18549_s28 = smov [#allocation17]   ;;  %s450_s26 = int_to_ptr.vmem [resolvable:$true] %s449_s26 }
  0x23   : > { %s413_s23 = sshll.u32 %s20159_s3, 4  ;;  %s20138_s3 = smov 256   ;;  %s414_s23 = int_to_ptr.hbm [resolvable:$true] %s413_s23 }
  0x24   : > { %s447_s27 = sshll.u32 %s20160_s7, 4  ;;  %s20140_s7 = smov 16   ;;  %s448_s27 = int_to_ptr.hbm [resolvable:$true] %s447_s27 }
  0x25   : > { %18027 = dma.hbm_to_vmem [thread:$0]  (!%p18705_p12), %s414_s23, 4608, %s416_s29, [#allocation12], %s20133_s16, %s20133_s16, %s20135_s17  }
  0x26   : > { %18033 = dma.hbm_to_vmem [thread:$0]  (!%p18705_p12), %s448_s27, 73728, %s450_s26, [#allocation15], %s20138_s3, %s20138_s3, %s20140_s7  }
  0x27   : > { %s481_s15 = sshll.u32 %s18549_s28, 4  ;;  %s505_s25 = sshll.u32 %s20120_s12, 4  ;;  %s482_s15 = int_to_ptr.vmem [resolvable:$true] %s481_s15  ;;  %s506_s25 = int_to_ptr.hbm [resolvable:$true] %s505_s25 }
  0x28   : > { %18039 = dma.hbm_to_vmem [thread:$0]  (!%p18705_p12), %s480_s21, 64, %s482_s15, [#allocation18]  }
  0x29   : > { %s18550_s16 = smov [#allocation20]   ;;  %s20162_s1 = sld [smem:[#allocation41_spill]] }
  0x2a   : > { %s507_s17 = sshll.u32 %s18550_s16, 4  ;;  %s430_s24 = sshll.u32 %s20113_s5, 4  ;;  %s508_s17 = int_to_ptr.vmem [resolvable:$true] %s507_s17  ;;  %s431_s24 = int_to_ptr.hbm [resolvable:$true] %s430_s24 }
  0x2b   : > { %18045 = dma.hbm_to_vmem [thread:$0]  (!%p18705_p12), %s506_s25, 64, %s508_s17, [#allocation21]  }
  0x2c   : > { %s18551_s29 = smov [#allocation8]   ;;  %s20163_s15 = smov 4  }
  0x2d   : > { %s398_s23 = sshll.u32 %s18551_s29, 4  ;;  %s20164_s21 = smov 64   ;;  %s399_s23 = int_to_ptr.vmem [resolvable:$true] %s398_s23 }
  0x2e   : > { %s18552_s19 = smov [#allocation13]   ;;  %s18553_s27 = smov 128  }
  0x2f   : > { %s396_s18 = sshll.u32 %s20162_s1, 4  ;;  %s432_s16 = sshll.u32 %s18552_s19, 4  ;;  %s397_s18 = int_to_ptr.hbm [resolvable:$true] %s396_s18  ;;  %s433_s16 = int_to_ptr.vmem [resolvable:$true] %s432_s16 }
  0x30   : > { %18024 = dma.hbm_to_vmem [thread:$0]  (!%p18705_p12), %s397_s18, 256, %s399_s23, [#allocation9], %s20164_s21, %s20164_s21, %s20163_s15  }
  0x31   : > { %s18554_s17 = smov 8   ;;  %s464_s26 = sshll.u32 %s20117_s9, 4  ;;  %s465_s26 = int_to_ptr.hbm [resolvable:$true] %s464_s26 }
  0x32   : > { %18030 = dma.hbm_to_vmem [thread:$0]  (!%p18705_p12), %s431_s24, 18432, %s433_s16, [#allocation12], %s18553_s27, %s18553_s27, %s18554_s17  }
  0x33   : > { %s18555_s29 = smov [#allocation16]   ;;  %s490_s18 = sshll.u32 %s20119_s11, 4  ;;  %s491_s18 = int_to_ptr.hbm [resolvable:$true] %s490_s18 }
  0x34   : > { %s466_s3 = sshll.u32 %s18555_s29, 4  ;;  %s20165_s23 = smov 16   ;;  %s467_s3 = int_to_ptr.vmem [resolvable:$true] %s466_s3 }
  0x35   : > { %s20166_s19 = smov 256   ;;  %s18556_s24 = smov [#allocation19]  }
  0x36   : > { %18036 = dma.hbm_to_vmem [thread:$0]  (!%p18705_p12), %s465_s26, 16384, %s467_s3, [#allocation15], %s20166_s19, %s20166_s19, %s20165_s23  }
  0x37   : > { %s492_s16 = sshll.u32 %s18556_s24, 4  ;;  %s516_s25 = sshll.u32 %s20121_s13, 4  ;;  %s493_s16 = int_to_ptr.vmem [resolvable:$true] %s492_s16  ;;  %s517_s25 = int_to_ptr.hbm [resolvable:$true] %s516_s25 }
  0x38   : > { %18042 = dma.hbm_to_vmem [thread:$0]  (!%p18705_p12), %s491_s18, 16384, %s493_s16, [#allocation18], %s20166_s19, %s20166_s19, %s20165_s23  }
  0x39   : > { %s531_s28 = sshll.u32 %s20122_s14, 4  ;;  %s18557_s3 = smov [#allocation22]   ;;  %s532_s28 = int_to_ptr.hbm [resolvable:$true] %s531_s28 }
  0x3a   : > { %s518_s26 = sshll.u32 %s18557_s3, 4  ;;  %s18558_s29 = smov [#allocation23]   ;;  %s519_s26 = int_to_ptr.vmem [resolvable:$true] %s518_s26 }
  0x3b   : > { %18048 = dma.hbm_to_vmem [thread:$0]  (!%p18705_p12), %s517_s25, 4096, %s519_s26, [#allocation21], %s20164_s21, %s20164_s21, %s20163_s15  }
  0x3c   : > { %s533_s24 = sshll.u32 %s18558_s29, 4  ;;  %554 = sbr.rel (%p18691_p10) target bundleno = 2803 (0xaf3), region = 80  ;;  %s534_s24 = int_to_ptr.vmem [resolvable:$true] %s533_s24 }
  0x3d   : > { %18051 = dma.hbm_to_vmem [thread:$0]  (!%p18705_p12), %s532_s28, 16, %s534_s24, [#allocation24]  }
  0x41   : > { %18500 = dma.done.wait (%p18056_p9), [#allocation9], 256  }
  0x42   : > { %18502 = vsyncadd (%p18056_p9), [#allocation9], 4294967040 }
  0x43   : > { %18504 = dma.done.wait (%p18056_p9), [#allocation12], 23040  }
  0x44   : > { %18506 = vsyncadd (%p18056_p9), [#allocation12], 4294944256 }
  0x45   : > { %18508 = dma.done.wait (%p18056_p9), [#allocation15], 90112  }
  0x46   : > { %18510 = vsyncadd (%p18056_p9), [#allocation15], 4294877184 }
  0x47   : > { %18512 = dma.done.wait (%p18056_p9), [#allocation18], 16448  }
  0x48   : > { %18514 = vsyncadd (%p18056_p9), [#allocation18], 4294950848 }
  0x49   : > { %18516 = dma.done.wait (%p18056_p9), [#allocation21], 4160  }
  0x4a   : > { %18518 = vsyncadd (%p18056_p9), [#allocation21], 4294963136 }
  0x4b   : > { %18520 = dma.done.wait (%p18056_p9), [#allocation24], 16  }
  0x4c   : > { %18522 = vsyncadd (%p18056_p9), [#allocation24], 4294967280  ;;  %vm833_vm0 = vcmask 1044480   ;;  %p647_p13 = scmp.lt.s32.totalorder %s18663_s22, 1  ;;  %vm20142_vm1 = vcmask 1045504   ;;  %v18559_v0 = vmov 65535  }
  0x4d   : > { %v835_v1 = vsel %vm833_vm0, 4294967295, %v18559_v0  ;;  %v12381_v2 = vld [vmem:[#allocation8 + $0x8] sm:$0xf]  ;;  %v16905_v3 = vld [vmem:[#allocation8 + $0x8] sm:$0x30]  ;;  %v16904_v7 = vld [vmem:[#allocation8] sm:$0xff] }
  0x4e   : > { %s648_s20 = scalar_select %p647_p13, %s18663_s22, 1  ;;  %v836_v4 = vsel %vm20142_vm1, %v835_v1, 0  ;;  %v12382_v5 = vor.u32 %v16905_v3, %v12381_v2  ;;  %vm784_vm2 = vcmask 220160   ;;  %v18825_v18 = vld [vmem:[%s20110_s2] ss:$0 sm:$0xff]  ;;  %vm1763_vm3 = vcmask 516096  }
  0x4f   : > { %v18560_v19 = vmov 0   ;;  %vm1761_vm4 = vcmask 519168   ;;  %vm1977_vm5 = vcmask 1042434   ;;  %vm1980_vm6 = vcmask 1043459   ;;  %s18561_s16 = smov 64   ;;  %s20195_s15 = sld [smem:[#allocation34_spill]] }
  0x50   : > { %s16887_s30 = sshll.u32 %s648_s20, 7  ;;  %v838_v6 = vand.u32 %v12382_v5, %v836_v4  ;;  %1766 = vst.msk [vmem:[#allocation2 + $0xc] sm:$0x1] %vm1763_vm3, %v18560_v19  ;;  %vm1983_vm7 = vcmask 1044484   ;;  %vm2125_vm8 = vsmask.f32 256 }
  0x51   : > { %s18803_s18 = scalar_lea.vmem %s20108_s0, %s16887_s30  ;;  %3349 = vst [vmem:[#allocation3] sm:$0x7] %v18560_v19  ;;  %vm1986_vm9 = vcmask 1045509   ;;  %vm1989_vm10 = vcmask 1046534   ;;  %vm1992_vm11 = vcmask 1047559   ;;  %vm18904_vm13 = vmand %vm1763_vm3, %vm2125_vm8  ;;  %s20196_s19 = sld [smem:[#allocation44_spill]] }
  0x52   : > { %846 = vmatpush.bf16.msra.mxu0 %v838_v6  ;;  %v16888_v8 = vld [vmem:[%s18803_s18] sm:$0xff]  ;;  %v16889_v9 = vld [vmem:[%s18803_s18 + $0x8] sm:$0xff]  ;;  %v16890_v10 = vld [vmem:[%s18803_s18 + $0x10] sm:$0xff]  ;;  %3354 = vst [vmem:[#allocation3 + $0x14] sm:$0x7] %v18560_v19 }
  0x53   : > { %v16891_v11 = vld [vmem:[%s18803_s18 + $0x18] sm:$0xff]  ;;  %v16892_v12 = vld [vmem:[%s18803_s18 + $0x20] sm:$0xff]  ;;  %v16893_v13 = vld [vmem:[%s18803_s18 + $0x28] sm:$0xff]  ;;  %1765 = vst.msk [vmem:[#allocation2 + $0x8] sm:$0xf] %vm1761_vm4, %v18560_v19 }
  0x54   : > { %v16894_v14 = vld [vmem:[%s18803_s18 + $0x30] sm:$0xff]  ;;  %v16895_v15 = vld [vmem:[%s18803_s18 + $0x38] sm:$0xff]  ;;  %v16896_v16 = vld [vmem:[%s18803_s18 + $0x40] sm:$0xff]  ;;  %5008 = vst [vmem:[#allocation4] sm:$0xf] %v18560_v19 }
  0x55   : > { %5011 = vst [vmem:[#allocation4 + $0xc] sm:$0xf] %v18560_v19  ;;  %v16897_v26 = vld [vmem:[%s18803_s18 + $0x48] sm:$0xff]  ;;  %vm2119_vm12 = vsmask.f32 7938  ;;  %s645_s21 = sand.u32 1, %s20195_s15  }
  0x56   : > { %847 = vmatpush.bf16.msra.mxu0 %v16904_v7  ;;  %1762 = vst.msk [vmem:[#allocation2] sm:$0xf] %vm1761_vm4, %v18560_v19  ;;  %vm18915_vm14 = vmand %vm1761_vm4, %vm2119_vm12  ;;  %vm2200_vm15 = vsmask.f32 3328  ;;  %vm2201_vm0 = vsmask.f32 7440 }
  0x57   : > { %1764 = vst.msk [vmem:[#allocation2 + $0x4] sm:$0x1] %vm1763_vm3, %v18560_v19  ;;  %vm2364_vm12 = vcmask 1042432   ;;  %s12128_s17 = scalar_lea.hbm %s20196_s19, %s18663_s22  ;;  %s646_s25 = scalar_lea.vmem [#allocation25], %s645_s21 }
  0x58   : > { %1767 = vst.msk [vmem:[#allocation2 + $0x10] sm:$0xf] %vm1761_vm4, %v18560_v19  ;;  %v18854_v30 = vld [vmem:[#allocation3] sm:$0x7]  ;;  %s12130_s1 = sshll.u32 %s646_s25, 4  ;;  %s12132_s7 = sshll.u32 %s12128_s17, 4  ;;  %s12131_s1 = int_to_ptr.vmem [resolvable:$true] %s12130_s1  ;;  %s12133_s7 = int_to_ptr.hbm [resolvable:$true] %s12132_s7 }
  0x59   : > { %12383 = vmatmul.msk.bf16.vlgmr.msra.gmra.mxu0 %vm784_vm2, %v16888_v8  ;;  %1768 = vst.msk [vmem:[#allocation2 + $0x14] sm:$0x1] %vm1763_vm3, %v18560_v19  ;;  %s12120_s28 = scalar_lea.sflag [#allocation10], %s645_s21  ;;  %s18469_s3 = sshra.s32 %s12133_s7, 4  ;;  %s18470_s3 = int_to_ptr.hbm [resolvable:$true] %s18469_s3 }
  0x5a   : > { %1769 = vst.msk [vmem:[#allocation2 + $0x18] sm:$0xf] %vm1761_vm4, %v18560_v19  ;;  %s18471_s26 = scalar_lea.hbm %s18470_s3, 1 }
  0x5b   : > { %1770 = vst.msk [vmem:[#allocation2 + $0x1c] sm:$0x1] %vm1763_vm3, %v18560_v19  ;;  %p18472_p0 = scmp.ne.s32.totalorder %s18470_s3, %s18471_s26 }
  0x5c   : > { %1771 = vst.msk [vmem:[#allocation2 + $0x20] sm:$0xf] %vm1761_vm4, %v18560_v19 }
  0x5d   : > { %3461 = vst [vmem:[#allocation1] ss:$2 sm:$0xff] %v18854_v30  ;;  %p18473_p1 = pnand %p18472_p0, %p18680_p5 }
  0x5e   : > { %1772 = vst.msk [vmem:[#allocation2 + $0x24] sm:$0x1] %vm1763_vm3, %v18560_v19 }
  0x5f   : > { %1773 = vst.msk [vmem:[#allocation2 + $0x28] sm:$0xf] %vm1761_vm4, %v18560_v19  ;;  %p18474_p2 = pneg %p18473_p1 }
  0x60   : > { %1774 = vst.msk [vmem:[#allocation2 + $0x2c] sm:$0x1] %vm1763_vm3, %v18560_v19 }
  0x61   : > { %1775 = vst.msk [vmem:[#allocation2 + $0x30] sm:$0xf] %vm1761_vm4, %v18560_v19 }
  0x62   : > { %1776 = vst.msk [vmem:[#allocation2 + $0x34] sm:$0x1] %vm1763_vm3, %v18560_v19 }
  0x63   : > { %1777 = vst.msk [vmem:[#allocation2 + $0x38] sm:$0xf] %vm1761_vm4, %v18560_v19 }
  0x64   : > { %1778 = vst.msk [vmem:[#allocation2 + $0x3c] sm:$0x1] %vm1763_vm3, %v18560_v19 }
  0x65   : > { %1779 = vst.msk [vmem:[#allocation2 + $0x40] sm:$0xf] %vm1761_vm4, %v18560_v19 }
  0x66   : > { %1780 = vst.msk [vmem:[#allocation2 + $0x44] sm:$0x1] %vm1763_vm3, %v18560_v19 }
  0x67   : > { %1781 = vst.msk [vmem:[#allocation2 + $0x48] sm:$0xf] %vm1761_vm4, %v18560_v19 }
  0x68   : > { %1782 = vst.msk [vmem:[#allocation2 + $0x4c] sm:$0x1] %vm1763_vm3, %v18560_v19  ;;  %vm18945_vm3 = vmor %vm2200_vm15, %vm2201_vm0  ;;  %vm2365_vm15 = vcmask 1046532  }
  0x69   : > { %12384 = vmatmul.msk.bf16.gmra.mxu0 %vm784_vm2, %v16889_v9  ;;  %3350 = vst [vmem:[#allocation3 + $0x4] sm:$0x7] %v18560_v19  ;;  %vm18974_vm0 = vmor %vm2364_vm12, %vm2365_vm15  ;;  %vm3512_vm15 = vsmask.f32 7448 }
  0x6a   : > { %3351 = vst [vmem:[#allocation3 + $0x8] sm:$0x7] %v18560_v19 }
  0x6b   : > { %3352 = vst [vmem:[#allocation3 + $0xc] sm:$0x7] %v18560_v19 }
  0x6c   : > { %3353 = vst [vmem:[#allocation3 + $0x10] sm:$0x7] %v18560_v19 }
  0x6d   : > { %5009 = vst [vmem:[#allocation4 + $0x4] sm:$0xf] %v18560_v19 }
  0x6e   : > { %5010 = vst [vmem:[#allocation4 + $0x8] sm:$0xf] %v18560_v19 }
  0x79   : > { %12385 = vmatmul.msk.bf16.gmra.mxu0 %vm784_vm2, %v16890_v10 }
  0x89   : > { %12386 = vmatmul.msk.bf16.gmra.mxu0 %vm784_vm2, %v16891_v11 }
  0x99   : > { %12387 = vmatmul.msk.bf16.gmra.mxu0 %vm784_vm2, %v16892_v12 }
  0xa9   : > { %12388 = vmatmul.msk.bf16.gmra.mxu0 %vm784_vm2, %v16893_v13 }
  0xb9   : > { %12389 = vmatmul.msk.bf16.gmra.mxu0 %vm784_vm2, %v16894_v14 }
  0xc9   : > { %12390 = vmatmul.msk.bf16.gmra.mxu0 %vm784_vm2, %v16895_v15  ;;  %v16898_v15 = vld [vmem:[%s18803_s18 + $0x50] sm:$0xff] }
  0xd6   : > { %v849_v17 = vpop.f32.mrf.mxu0 }
  0xd7   : > { %v850_v20 = vadd.f32 %v18825_v18, %v849_v17 }
  0xd9   : > { %12391 = vmatmul.msk.bf16.gmra.mxu0 %vm784_vm2, %v16896_v16  ;;  %v929_v22 = vmax.f32 %v850_v20, 0.0 }
  0xdb   : > { %v993_v23 = vrot.slane %v929_v22, 2  ;;  %v994_v24 = vrot.slane %v929_v22, 4  ;;  %v995_v27 = vrot.slane %v929_v22, 6  ;;  %v12399_v31 = vrot.slane %v929_v22, 9 }
  0xdd   : > { %v12400_v32 = vrot.slane %v993_v23, 9  ;;  %v12401_v33 = vrot.slane %v994_v24, 9  ;;  %v12402_v36 = vrot.slane %v995_v27, 9  ;;  %v1569_v41 = vmax.f32 %v929_v22, %v12399_v31 }
  0xde   : > { %v851_v21 = vpop.f32.mrf.mxu0 }
  0xdf   : > { %v852_v25 = vadd.f32 %v18825_v18, %v851_v21  ;;  %v1570_v42 = vmax.f32 %v993_v23, %v12400_v32  ;;  %v1571_v43 = vmax.f32 %v994_v24, %v12401_v33  ;;  %v1572_v49 = vmax.f32 %v995_v27, %v12402_v36 }
  0xe1   : > { %v18856_v34 = vmax.f32 %v852_v25, 0.0 }
  0xe3   : > { %v996_v44 = vrot.slane %v18856_v34, 2  ;;  %v997_v50 = vrot.slane %v18856_v34, 4  ;;  %v998_v51 = vrot.slane %v18856_v34, 6  ;;  %v12403_v52 = vrot.slane %v18856_v34, 9 }
  0xe5   : > { %v12404_v58 = vrot.slane %v996_v44, 9  ;;  %v12405_v0 = vrot.slane %v997_v50, 9  ;;  %v12406_v1 = vrot.slane %v998_v51, 9  ;;  %v1573_v3 = vmax.f32 %v18856_v34, %v12403_v52 }
  0xe6   : > { %v854_v28 = vpop.f32.mrf.mxu0 }
  0xe7   : > { %v855_v29 = vadd.f32 %v18825_v18, %v854_v28  ;;  %v1574_v11 = vmax.f32 %v996_v44, %v12404_v58  ;;  %v1575_v23 = vmax.f32 %v997_v50, %v12405_v0  ;;  %v1576_v24 = vmax.f32 %v998_v51, %v12406_v1  ;;  %v2127_v51 = vld [vmem:[#allocation2 + $0xc] sm:$0x1] }
  0xe9   : > { %v931_v35 = vmax.f32 %v855_v29, 0.0  ;;  %12392 = vmatmul.msk.bf16.gmra.mxu0 %vm784_vm2, %v16897_v26 }
  0xeb   : > { %v999_v37 = vrot.slane %v931_v35, 2  ;;  %v1000_v38 = vrot.slane %v931_v35, 4  ;;  %v1001_v39 = vrot.slane %v931_v35, 6  ;;  %v12407_v40 = vrot.slane %v931_v35, 9 }
  0xed   : > { %v12408_v45 = vrot.slane %v999_v37, 9  ;;  %v12409_v46 = vrot.slane %v1000_v38, 9  ;;  %v12410_v47 = vrot.slane %v1001_v39, 9  ;;  %v1577_v48 = vmax.f32 %v931_v35, %v12407_v40 }
  0xee   : > { %v856_v53 = vpop.f32.mrf.mxu0 }
  0xef   : > { %v1578_v54 = vmax.f32 %v999_v37, %v12408_v45  ;;  %v1579_v55 = vmax.f32 %v1000_v38, %v12409_v46  ;;  %v1580_v56 = vmax.f32 %v1001_v39, %v12410_v47  ;;  %v1697_v57 = vmax.f32 %v1569_v41, %v1577_v48  ;;  %v18897_v39 = vld [vmem:[#allocation2] sm:$0xf] }
  0xf0   : > { %v857_v59 = vadd.f32 %v18825_v18, %v856_v53  ;;  %2192 = vst.msk [vmem:[#allocation5] sm:$0xf] %vm1761_vm4, %v18897_v39 }
  0xf1   : > { %v1698_v60 = vmax.f32 %v1570_v42, %v1578_v54  ;;  %v1699_v61 = vmax.f32 %v1571_v43, %v1579_v55  ;;  %v1700_v62 = vmax.f32 %v1572_v49, %v1580_v56  ;;  %v1783_v63 = vpack.c.bf16 %v1697_v57, %v1697_v57 }
  0xf2   : > { %v932_v2 = vmax.f32 %v857_v59, 0.0 }
  0xf3   : > { %v1784_v4 = vpack.c.bf16 %v1698_v60, %v1698_v60  ;;  %v1785_v5 = vpack.c.bf16 %v1699_v61, %v1699_v61  ;;  %v1911_v6 = vunpack.c.l.b16 %v1783_v63  ;;  %v1786_v12 = vpack.c.bf16 %v1700_v62, %v1700_v62  ;;  %v2121_v61 = vld [vmem:[#allocation2 + $0x8] sm:$0xf]  ;;  %v16899_v63 = vld [vmem:[%s18803_s18 + $0x58] sm:$0xff] }
  0xf4   : > { %v1002_v7 = vrot.slane %v932_v2, 2  ;;  %v1003_v8 = vrot.slane %v932_v2, 4  ;;  %v1004_v9 = vrot.slane %v932_v2, 6  ;;  %v12411_v10 = vrot.slane %v932_v2, 9 }
  0xf5   : > { %v1912_v13 = vunpack.c.l.b16 %v1784_v4  ;;  %v1913_v14 = vunpack.c.l.b16 %v1785_v5  ;;  %v1975_v25 = vrot.slane %v1911_v6, 7  ;;  %v1914_v32 = vunpack.c.l.b16 %v1786_v12 }
  0xf6   : > { %v12412_v16 = vrot.slane %v1002_v7, 9  ;;  %v12413_v17 = vrot.slane %v1003_v8, 9  ;;  %v12414_v20 = vrot.slane %v1004_v9, 9  ;;  %v1581_v21 = vmax.f32 %v932_v2, %v12411_v10  ;;  %v859_v22 = vpop.f32.mrf.mxu0 }
  0xf7   : > { %v1976_v26 = vrot.slane %v1912_v13, 6  ;;  %v1979_v33 = vrot.slane %v1913_v14, 5  ;;  %v1982_v45 = vrot.slane %v1914_v32, 4  ;;  %v860_v2 = vadd.f32 %v18825_v18, %v859_v22 }
  0xf8   : > { %v1582_v27 = vmax.f32 %v1002_v7, %v12412_v16  ;;  %v1583_v28 = vmax.f32 %v1003_v8, %v12413_v17  ;;  %v1584_v29 = vmax.f32 %v1004_v9, %v12414_v20  ;;  %v1701_v31 = vmax.f32 %v1573_v3, %v1581_v21 }
  0xf9   : > { %12393 = vmatmul.msk.bf16.gmra.mxu0 %vm784_vm2, %v16898_v15  ;;  %v1978_v34 = vsel %vm1977_vm5, %v1976_v26, %v1975_v25  ;;  %v933_v5 = vmax.f32 %v860_v2, 0.0 }
  0xfa   : > { %v1702_v35 = vmax.f32 %v1574_v11, %v1582_v27  ;;  %v1703_v36 = vmax.f32 %v1575_v23, %v1583_v28  ;;  %v1704_v37 = vmax.f32 %v1576_v24, %v1584_v29  ;;  %v1787_v38 = vpack.c.bf16 %v1701_v31, %v1701_v31 }
  0xfb   : > { %v1981_v43 = vsel %vm1980_vm6, %v1979_v33, %v1978_v34  ;;  %v1005_v7 = vrot.slane %v933_v5, 2  ;;  %v1006_v8 = vrot.slane %v933_v5, 4  ;;  %v1007_v9 = vrot.slane %v933_v5, 6 }
  0xfc   : > { %v1788_v40 = vpack.c.bf16 %v1702_v35, %v1702_v35  ;;  %v1789_v41 = vpack.c.bf16 %v1703_v36, %v1703_v36  ;;  %v1790_v42 = vpack.c.bf16 %v1704_v37, %v1704_v37  ;;  %v1915_v44 = vunpack.c.l.b16 %v1787_v38 }
  0xfd   : > { %v1984_v52 = vsel %vm1983_vm7, %v1982_v45, %v1981_v43  ;;  %v12415_v11 = vrot.slane %v933_v5, 9  ;;  %v12416_v12 = vrot.slane %v1005_v7, 9  ;;  %v12417_v13 = vrot.slane %v1006_v8, 9 }
  0xfe   : > { %v1916_v46 = vunpack.c.l.b16 %v1788_v40  ;;  %v1917_v47 = vunpack.c.l.b16 %v1789_v41  ;;  %v1918_v48 = vunpack.c.l.b16 %v1790_v42  ;;  %v861_v49 = vpop.f32.mrf.mxu0  ;;  %v1985_v19 = vrot.slane %v1915_v44, 3  ;;  %v18933_v41 = vld [vmem:[#allocation2 + $0x4] sm:$0x1] }
  0xff   : > { %v862_v3 = vadd.f32 %v18825_v18, %v861_v49  ;;  %v12418_v15 = vrot.slane %v1007_v9, 9  ;;  %v1585_v23 = vmax.f32 %v933_v5, %v12415_v11  ;;  %v1586_v24 = vmax.f32 %v1005_v7, %v12416_v12 }
 0x100   : > { %v1988_v53 = vrot.slane %v1916_v46, 2  ;;  %v1991_v54 = vrot.slane %v1917_v47, 1  ;;  %v2086_v55 = vpack.c.b16 %v1918_v48, %v1918_v48  ;;  %v1987_v56 = vsel %vm1986_vm9, %v1985_v19, %v1984_v52  ;;  %v16900_v19 = vld [vmem:[%s18803_s18 + $0x60] sm:$0xff] }
 0x101   : > { %v934_v6 = vmax.f32 %v862_v3, 0.0  ;;  %v1587_v27 = vmax.f32 %v1006_v8, %v12417_v13  ;;  %v1588_v32 = vmax.f32 %v1007_v9, %v12418_v15  ;;  %v2204_v49 = vshrl.u32 %v18897_v39, 16 }
 0x102   : > { %v1990_v57 = vsel %vm1989_vm10, %v1988_v53, %v1987_v56  ;;  %v2128_v58 = vsel %vm18904_vm13, %v2086_v55, %v2127_v51  ;;  %v2207_v53 = vshll.u32 %v18897_v39, 16 }
 0x103   : > { %v1993_v59 = vsel %vm1992_vm11, %v1991_v54, %v1990_v57  ;;  %2129 = vst [vmem:[#allocation2 + $0xc] sm:$0x1] %v2128_v58  ;;  %v1008_v14 = vrot.slane %v934_v6, 2  ;;  %v1009_v16 = vrot.slane %v934_v6, 4  ;;  %v1010_v17 = vrot.slane %v934_v6, 6 }
 0x104   : > { %v2085_v62 = vpack.c.b16 %v1993_v59, %v1993_v59  ;;  %v12419_v22 = vrot.slane %v934_v6, 9  ;;  %v2213_v54 = vshll.u32 %v18933_v41, 16 }
 0x105   : > { %v12420_v25 = vrot.slane %v1008_v14, 9  ;;  %v12421_v26 = vrot.slane %v1009_v16, 9  ;;  %v12422_v28 = vrot.slane %v1010_v17, 9 }
 0x106   : > { %v2122_v0 = vsel %vm18915_vm14, %v2085_v62, %v2121_v61  ;;  %v864_v1 = vpop.f32.mrf.mxu0  ;;  %v1589_v33 = vmax.f32 %v934_v6, %v12419_v22 }
 0x107   : > { %2123 = vst [vmem:[#allocation2 + $0x8] sm:$0xf] %v2122_v0  ;;  %v865_v4 = vadd.f32 %v18825_v18, %v864_v1  ;;  %v1590_v36 = vmax.f32 %v1008_v14, %v12420_v25  ;;  %v1591_v42 = vmax.f32 %v1009_v16, %v12421_v26  ;;  %v1592_v43 = vmax.f32 %v1010_v17, %v12422_v28 }
 0x108   : > { %v2206_v26 = vrot.slane %v2204_v49, 4 }
 0x109   : > { %12394 = vmatmul.msk.bf16.gmra.mxu0 %vm784_vm2, %v16899_v63  ;;  %v935_v10 = vmax.f32 %v865_v4, 0.0 }
 0x10b   : > { %v1011_v29 = vrot.slane %v935_v10, 2  ;;  %v1012_v31 = vrot.slane %v935_v10, 4  ;;  %v1013_v34 = vrot.slane %v935_v10, 6  ;;  %v12423_v35 = vrot.slane %v935_v10, 9 }
 0x10d   : > { %v12424_v37 = vrot.slane %v1011_v29, 9  ;;  %v12425_v38 = vrot.slane %v1012_v31, 9  ;;  %v12426_v44 = vrot.slane %v1013_v34, 9  ;;  %v1593_v45 = vmax.f32 %v935_v10, %v12423_v35 }
 0x10e   : > { %v866_v20 = vpop.f32.mrf.mxu0  ;;  %v18926_v21 = vld [vmem:[#allocation2 + $0x8] sm:$0xf] }
 0x10f   : > { %2416 = vrot.lane.b32.xlu0 %v18926_v21, %s18561_s16  ;;  %2193 = vst.msk [vmem:[#allocation5 + $0x14] sm:$0xf] %vm1761_vm4, %v18926_v21  ;;  %v867_v40 = vadd.f32 %v18825_v18, %v866_v20  ;;  %v1594_v46 = vmax.f32 %v1011_v29, %v12424_v37  ;;  %v1595_v47 = vmax.f32 %v1012_v31, %v12425_v38 }
 0x110   : > { %v1596_v51 = vmax.f32 %v1013_v34, %v12426_v44  ;;  %v1705_v52 = vmax.f32 %v1585_v23, %v1593_v45 }
 0x111   : > { %v936_v48 = vmax.f32 %v867_v40, 0.0  ;;  %v1706_v56 = vmax.f32 %v1586_v24, %v1594_v46  ;;  %v1707_v57 = vmax.f32 %v1587_v27, %v1595_v47  ;;  %v2133_v46 = vld [vmem:[#allocation2 + $0x14] sm:$0x1] }
 0x112   : > { %v1708_v61 = vmax.f32 %v1588_v32, %v1596_v51  ;;  %v1791_v62 = vpack.c.bf16 %v1705_v52, %v1705_v52  ;;  %v2209_v32 = vrot.slane %v2207_v53, 5  ;;  %v2175_v52 = vld [vmem:[#allocation2 + $0xc] sm:$0x1]  ;;  %v2218_v53 = vshrl.u32 %v18926_v21, 16 }
 0x113   : > { %v1014_v58 = vrot.slane %v936_v48, 2  ;;  %v1015_v59 = vrot.slane %v936_v48, 4  ;;  %v1016_v63 = vrot.slane %v936_v48, 6  ;;  %v12427_v0 = vrot.slane %v936_v48, 9 }
 0x114   : > { %v1792_v1 = vpack.c.bf16 %v1706_v56, %v1706_v56  ;;  %v1793_v2 = vpack.c.bf16 %v1707_v57, %v1707_v57  ;;  %v1794_v5 = vpack.c.bf16 %v1708_v61, %v1708_v61  ;;  %v1919_v6 = vunpack.c.l.b16 %v1791_v62 }
 0x115   : > { %v12428_v3 = vrot.slane %v1014_v58, 9  ;;  %v12429_v4 = vrot.slane %v1015_v59, 9  ;;  %v12430_v7 = vrot.slane %v1016_v63, 9  ;;  %v1597_v8 = vmax.f32 %v936_v48, %v12427_v0  ;;  %v2130_v0 = vld [vmem:[#allocation2 + $0x10] sm:$0xf] }
 0x116   : > { %v869_v55 = vpop.f32.mrf.mxu0  ;;  %v1920_v9 = vunpack.c.l.b16 %v1792_v1  ;;  %v1921_v10 = vunpack.c.l.b16 %v1793_v2  ;;  %v1922_v13 = vunpack.c.l.b16 %v1794_v5  ;;  %v1994_v14 = vrot.slane %v1919_v6, 7 }
 0x117   : > { %v1598_v11 = vmax.f32 %v1014_v58, %v12428_v3  ;;  %v1599_v12 = vmax.f32 %v1015_v59, %v12429_v4  ;;  %v1600_v15 = vmax.f32 %v1016_v63, %v12430_v7  ;;  %v1709_v16 = vmax.f32 %v1589_v33, %v1597_v8 }
 0x118   : > { %v1995_v17 = vrot.slane %v1920_v9, 6  ;;  %v1997_v20 = vrot.slane %v1921_v10, 5  ;;  %v1999_v35 = vrot.slane %v1922_v13, 4  ;;  %v2210_v44 = vor.u32 %v2209_v32, %v2206_v26 }
 0x119   : > { %12395 = vmatmul.msk.bf16.gmra.mxu0 %vm784_vm2, %v16900_v19  ;;  %v1710_v22 = vmax.f32 %v1590_v36, %v1598_v11  ;;  %v1711_v23 = vmax.f32 %v1591_v42, %v1599_v12  ;;  %v1712_v24 = vmax.f32 %v1592_v43, %v1600_v15  ;;  %v1795_v25 = vpack.c.bf16 %v1709_v16, %v1709_v16 }
 0x11a   : > { %v1996_v28 = vsel %vm1977_vm5, %v1995_v17, %v1994_v14  ;;  %v2215_v36 = vrot.slane %v2213_v54, 5  ;;  %v870_v48 = vadd.f32 %v18825_v18, %v869_v55  ;;  %v2211_v51 = vrot.slane %v2210_v44, 4  ;;  %v16901_v55 = vld [vmem:[%s18803_s18 + $0x68] sm:$0xff] }
 0x11b   : > { %v1796_v29 = vpack.c.bf16 %v1710_v22, %v1710_v22  ;;  %v1797_v31 = vpack.c.bf16 %v1711_v23, %v1711_v23  ;;  %v1998_v34 = vsel %vm1980_vm6, %v1997_v20, %v1996_v28  ;;  %v1798_v37 = vpack.c.bf16 %v1712_v24, %v1712_v24 }
 0x11c   : > { %v1923_v38 = vunpack.c.l.b16 %v1795_v25  ;;  %v2000_v42 = vsel %vm1983_vm7, %v1999_v35, %v1998_v34  ;;  %v18952_v57 = vmax.f32 %v870_v48, 0.0  ;;  %v2221_v58 = vshll.u32 %v18926_v21, 16 }
 0x11d   : > { %v1924_v33 = vunpack.c.l.b16 %v1796_v29  ;;  %v1925_v40 = vunpack.c.l.b16 %v1797_v31  ;;  %v1926_v43 = vunpack.c.l.b16 %v1798_v37  ;;  %v2216_v61 = vsel %vm18945_vm3, %v2211_v51, %v2215_v36 }
 0x11e   : > { %v871_v27 = vpop.f32.mrf.mxu0  ;;  %v2001_v45 = vrot.slane %v1923_v38, 3  ;;  %v2220_v62 = vrot.slane %v2218_v53, 4  ;;  %2315 = vrot.lane.b32.xlu1 %v2216_v61, %s18561_s16  ;;  %v1017_v2 = vrot.slane %v18952_v57, 2  ;;  %v2227_v3 = vshll.u32 %v2175_v52, 16 }
 0x11f   : > { %v2003_v49 = vrot.slane %v1924_v33, 2  ;;  %v2005_v19 = vrot.slane %v1925_v40, 1  ;;  %v2088_v56 = vpack.c.b16 %v1926_v43, %v1926_v43  ;;  %v2223_v6 = vrot.slane %v2221_v58, 5 }
 0x120   : > { %v2002_v54 = vsel %vm1986_vm9, %v2001_v45, %v2000_v42  ;;  %v12528_v7 = vrot.slane %v18926_v21, 9  ;;  %v1018_v8 = vrot.slane %v18952_v57, 4  ;;  %v1019_v9 = vrot.slane %v18952_v57, 6 }
 0x121   : > { %v2004_v59 = vsel %vm1989_vm10, %v2003_v49, %v2002_v54  ;;  %v2134_v1 = vsel %vm18904_vm13, %v2088_v56, %v2133_v46  ;;  %v12431_v11 = vrot.slane %v18952_v57, 9  ;;  %v12432_v12 = vrot.slane %v1017_v2, 9 }
 0x122   : > { %v2006_v63 = vsel %vm1992_vm11, %v2005_v19, %v2004_v59  ;;  %2135 = vst [vmem:[#allocation2 + $0x14] sm:$0x1] %v2134_v1  ;;  %v2224_v13 = vor.u32 %v2223_v6, %v2220_v62  ;;  %v2229_v14 = vrot.slane %v2227_v3, 5  ;;  %v872_v15 = vadd.f32 %v18825_v18, %v871_v27 }
 0x123   : > { %v2087_v5 = vpack.c.b16 %v2006_v63, %v2006_v63  ;;  %v2373_v17 = vrot.slane %v2175_v52, 5  ;;  %v12433_v20 = vrot.slane %v1018_v8, 9  ;;  %v12434_v22 = vrot.slane %v1019_v9, 9 }
 0x124   : > { %v2225_v21 = vrot.slane %v2224_v13, 4  ;;  %v938_v23 = vmax.f32 %v872_v15, 0.0  ;;  %v1601_v26 = vmax.f32 %v18952_v57, %v12431_v11  ;;  %v1602_v28 = vmax.f32 %v1017_v2, %v12432_v12 }
 0x125   : > { %v2131_v10 = vsel %vm18915_vm14, %v2087_v5, %v2130_v0  ;;  %v18983_v29 = vsel %vm18974_vm0, %v12528_v7, %v2373_v17  ;;  %v1603_v36 = vmax.f32 %v1018_v8, %v12433_v20  ;;  %v1604_v52 = vmax.f32 %v1019_v9, %v12434_v22  ;;  %v16902_v5 = vld [vmem:[%s18803_s18 + $0x70] sm:$0xff] }
 0x126   : > { %v874_v4 = vpop.f32.mrf.mxu0  ;;  %2132 = vst [vmem:[#allocation2 + $0x10] sm:$0xf] %v2131_v10  ;;  %v2230_v27 = vsel %vm18945_vm3, %v2225_v21, %v2229_v14  ;;  %v1020_v31 = vrot.slane %v938_v23, 2  ;;  %v1021_v32 = vrot.slane %v938_v23, 4  ;;  %v1022_v34 = vrot.slane %v938_v23, 6 }
 0x127   : > { %v875_v16 = vadd.f32 %v18825_v18, %v874_v4  ;;  %2317 = vrot.lane.b32.xlu1 %v2230_v27, %s18561_s16  ;;  %2470 = vst.msk [vmem:[#allocation5 + $0x8] sm:$0xf] %vm1761_vm4, %v2230_v27  ;;  %v12435_v35 = vrot.slane %v938_v23, 9 }
 0x128   : > { %v12436_v42 = vrot.slane %v1020_v31, 9  ;;  %v12437_v43 = vrot.slane %v1021_v32, 9  ;;  %v12438_v45 = vrot.slane %v1022_v34, 9  ;;  %2408 = vst.msk [vmem:[#allocation5 + $0x18] sm:$0xf] %vm1761_vm4, %v18983_v29 }
 0x129   : > { %12396 = vmatmul.msk.bf16.gmra.mxu0 %vm784_vm2, %v16901_v55  ;;  %v939_v24 = vmax.f32 %v875_v16, 0.0  ;;  %v1605_v53 = vmax.f32 %v938_v23, %v12435_v35 }
 0x12a   : > { %v1606_v54 = vmax.f32 %v1020_v31, %v12436_v42  ;;  %v1607_v62 = vmax.f32 %v1021_v32, %v12437_v43  ;;  %v1608_v55 = vmax.f32 %v1022_v34, %v12438_v45 }
 0x12b   : > { %v1023_v38 = vrot.slane %v939_v24, 2  ;;  %v1024_v33 = vrot.slane %v939_v24, 4  ;;  %v1025_v40 = vrot.slane %v939_v24, 6  ;;  %v12439_v44 = vrot.slane %v939_v24, 9 }
 0x12d   : > { %v12440_v46 = vrot.slane %v1023_v38, 9  ;;  %v12441_v48 = vrot.slane %v1024_v33, 9  ;;  %v12442_v49 = vrot.slane %v1025_v40, 9  ;;  %v1609_v19 = vmax.f32 %v939_v24, %v12439_v44  ;;  %v18989_v51 = vld [vmem:[#allocation2 + $0x10] sm:$0xf] }
 0x12e   : > { %v876_v37 = vpop.f32.mrf.mxu0  ;;  %2418 = vrot.lane.b32.xlu0 %v18989_v51, %s18561_s16  ;;  %2194 = vst.msk [vmem:[#allocation5 + $0x28] sm:$0xf] %vm1761_vm4, %v18989_v51  ;;  %v2232_v0 = vshrl.u32 %v18989_v51, 16  ;;  %v2235_v24 = vshll.u32 %v18989_v51, 16 }
 0x12f   : > { %v877_v56 = vadd.f32 %v18825_v18, %v876_v37  ;;  %v1610_v57 = vmax.f32 %v1023_v38, %v12440_v46  ;;  %v1611_v58 = vmax.f32 %v1024_v33, %v12441_v48  ;;  %v1612_v59 = vmax.f32 %v1025_v40, %v12442_v49  ;;  %2515 = vst.msk [vmem:[#allocation5 + $0xc] sm:$0xf] %vm1761_vm4, %v18989_v51  ;;  %v2177_v48 = vld [vmem:[#allocation2 + $0x14] sm:$0x1] }
 0x130   : > { %v1713_v61 = vmax.f32 %v1601_v26, %v1609_v19 }
 0x131   : > { %v940_v63 = vmax.f32 %v877_v56, 0.0  ;;  %v1714_v1 = vmax.f32 %v1602_v28, %v1610_v57  ;;  %v1715_v2 = vmax.f32 %v1603_v36, %v1611_v58  ;;  %v1716_v3 = vmax.f32 %v1604_v52, %v1612_v59 }
 0x132   : > { %v1799_v4 = vpack.c.bf16 %v1713_v61, %v1713_v61  ;;  %v2234_v56 = vrot.slane %v2232_v0, 4  ;;  %v2237_v59 = vrot.slane %v2235_v24, 5 }
 0x133   : > { %v1026_v6 = vrot.slane %v940_v63, 2  ;;  %v1027_v7 = vrot.slane %v940_v63, 4  ;;  %v1028_v8 = vrot.slane %v940_v63, 6  ;;  %v12443_v9 = vrot.slane %v940_v63, 9 }
 0x134   : > { %v1800_v11 = vpack.c.bf16 %v1714_v1, %v1714_v1  ;;  %v1801_v12 = vpack.c.bf16 %v1715_v2, %v1715_v2  ;;  %v1802_v13 = vpack.c.bf16 %v1716_v3, %v1716_v3  ;;  %v1927_v14 = vunpack.c.l.b16 %v1799_v4 }
 0x135   : > { %v12444_v15 = vrot.slane %v1026_v6, 9  ;;  %v12445_v16 = vrot.slane %v1027_v7, 9  ;;  %v12446_v21 = vrot.slane %v1028_v8, 9  ;;  %v1613_v17 = vmax.f32 %v940_v63, %v12443_v9 }
 0x136   : > { %v879_v10 = vpop.f32.mrf.mxu0  ;;  %v1928_v20 = vunpack.c.l.b16 %v1800_v11  ;;  %v1929_v22 = vunpack.c.l.b16 %v1801_v12  ;;  %v1930_v23 = vunpack.c.l.b16 %v1802_v13  ;;  %v2007_v32 = vrot.slane %v1927_v14, 7  ;;  %v16903_v12 = vld [vmem:[%s18803_s18 + $0x78] sm:$0xff] }
 0x137   : > { %v1614_v26 = vmax.f32 %v1026_v6, %v12444_v15  ;;  %v1615_v28 = vmax.f32 %v1027_v7, %v12445_v16  ;;  %v1616_v27 = vmax.f32 %v1028_v8, %v12446_v21  ;;  %v1717_v31 = vmax.f32 %v1605_v53, %v1613_v17  ;;  %v2136_v6 = vld [vmem:[#allocation2 + $0x18] sm:$0xf] }
 0x138   : > { %v2008_v34 = vrot.slane %v1928_v20, 6  ;;  %v2010_v35 = vrot.slane %v1929_v22, 5  ;;  %v880_v37 = vadd.f32 %v18825_v18, %v879_v10  ;;  %v2012_v42 = vrot.slane %v1930_v23, 4 }
 0x139   : > { %12397 = vmatmul.msk.bf16.gmra.mxu0 %vm784_vm2, %v16902_v5  ;;  %v1718_v38 = vmax.f32 %v1606_v54, %v1614_v26  ;;  %v1719_v33 = vmax.f32 %v1607_v62, %v1615_v28  ;;  %v1720_v40 = vmax.f32 %v1608_v55, %v1616_v27  ;;  %v1803_v44 = vpack.c.bf16 %v1717_v31, %v1717_v31  ;;  %v2139_v62 = vld [vmem:[#allocation2 + $0x1c] sm:$0x1] }
 0x13a   : > { %v2009_v36 = vsel %vm1977_vm5, %v2008_v34, %v2007_v32  ;;  %v19005_v53 = vmax.f32 %v880_v37, 0.0  ;;  %v2241_v55 = vshll.u32 %v2177_v48, 16  ;;  %v2238_v8 = vor.u32 %v2237_v59, %v2234_v56 }
 0x13b   : > { %v1804_v43 = vpack.c.bf16 %v1718_v38, %v1718_v38  ;;  %v1805_v45 = vpack.c.bf16 %v1719_v33, %v1719_v33  ;;  %v1806_v46 = vpack.c.bf16 %v1720_v40, %v1720_v40  ;;  %v2011_v19 = vsel %vm1980_vm6, %v2010_v35, %v2009_v36 }
 0x13c   : > { %v1931_v52 = vunpack.c.l.b16 %v1803_v44  ;;  %v2013_v63 = vsel %vm1983_vm7, %v2012_v42, %v2011_v19  ;;  %v1029_v7 = vrot.slane %v19005_v53, 2  ;;  %v1030_v10 = vrot.slane %v19005_v53, 4 }
 0x13d   : > { %v1932_v57 = vunpack.c.l.b16 %v1804_v43  ;;  %v1933_v58 = vunpack.c.l.b16 %v1805_v45  ;;  %v1934_v54 = vunpack.c.l.b16 %v1806_v46  ;;  %v12529_v13 = vrot.slane %v18989_v51, 9 }
 0x13e   : > { %v881_v49 = vpop.f32.mrf.mxu0  ;;  %v2014_v61 = vrot.slane %v1931_v52, 3  ;;  %v2239_v15 = vrot.slane %v2238_v8, 4  ;;  %v2243_v16 = vrot.slane %v2241_v55, 5  ;;  %v2377_v17 = vrot.slane %v2177_v48, 5 }
 0x13f   : > { %v2016_v1 = vrot.slane %v1932_v57, 2  ;;  %v2018_v2 = vrot.slane %v1933_v58, 1  ;;  %v2090_v3 = vpack.c.b16 %v1934_v54, %v1934_v54  ;;  %v882_v11 = vadd.f32 %v18825_v18, %v881_v49 }
 0x140   : > { %v2015_v4 = vsel %vm1986_vm9, %v2014_v61, %v2013_v63  ;;  %v1031_v20 = vrot.slane %v19005_v53, 6  ;;  %v12447_v22 = vrot.slane %v19005_v53, 9  ;;  %v12448_v28 = vrot.slane %v1029_v7, 9 }
 0x141   : > { %v2017_v5 = vsel %vm1989_vm10, %v2016_v1, %v2015_v4  ;;  %v2140_v0 = vsel %vm18904_vm13, %v2090_v3, %v2139_v62  ;;  %v942_v23 = vmax.f32 %v882_v11, 0.0  ;;  %v2244_v27 = vsel %vm18945_vm3, %v2239_v15, %v2243_v16 }
 0x142   : > { %v2019_v9 = vsel %vm1992_vm11, %v2018_v2, %v2017_v5  ;;  %2141 = vst [vmem:[#allocation2 + $0x1c] sm:$0x1] %v2140_v0  ;;  %v19027_v51 = vsel %vm18974_vm0, %v12529_v13, %v2377_v17  ;;  %v12449_v31 = vrot.slane %v1030_v10, 9  ;;  %2319 = vrot.lane.b32.xlu0 %v2244_v27, %s18561_s16  ;;  %v12450_v38 = vrot.slane %v1031_v20, 9 }
 0x143   : > { %v2089_v14 = vpack.c.b16 %v2019_v9, %v2019_v9  ;;  %v1032_v32 = vrot.slane %v942_v23, 2  ;;  %v1033_v34 = vrot.slane %v942_v23, 4  ;;  %v1034_v35 = vrot.slane %v942_v23, 6  ;;  %2471 = vst.msk [vmem:[#allocation5 + $0x1c] sm:$0xf] %vm1761_vm4, %v2244_v27 }
 0x144   : > { %v1617_v33 = vmax.f32 %v19005_v53, %v12447_v22  ;;  %v12451_v40 = vrot.slane %v942_v23, 9  ;;  %2409 = vst.msk [vmem:[#allocation5 + $0x2c] sm:$0xf] %vm1761_vm4, %v19027_v51  ;;  %v1618_v46 = vmax.f32 %v1029_v7, %v12448_v28  ;;  %v1619_v48 = vmax.f32 %v1030_v10, %v12449_v31 }
 0x145   : > { %v2137_v26 = vsel %vm18915_vm14, %v2089_v14, %v2136_v6  ;;  %v12452_v44 = vrot.slane %v1032_v32, 9  ;;  %v12453_v49 = vrot.slane %v1033_v34, 9  ;;  %v12454_v19 = vrot.slane %v1034_v35, 9  ;;  %2559 = vst.msk [vmem:[#allocation5 + $0x10] sm:$0xf] %vm1761_vm4, %v19027_v51 }
 0x146   : > { %v884_v21 = vpop.f32.mrf.mxu0  ;;  %2138 = vst [vmem:[#allocation2 + $0x18] sm:$0xf] %v2137_v26  ;;  %v1620_v54 = vmax.f32 %v1031_v20, %v12450_v38  ;;  %v1621_v59 = vmax.f32 %v942_v23, %v12451_v40 }
 0x147   : > { %v885_v24 = vadd.f32 %v18825_v18, %v884_v21  ;;  %v1622_v61 = vmax.f32 %v1032_v32, %v12452_v44  ;;  %v1623_v4 = vmax.f32 %v1033_v34, %v12453_v49  ;;  %v1624_v5 = vmax.f32 %v1034_v35, %v12454_v19 }
 0x149   : > { %12398 = vmatmul.msk.bf16.gmra.mxu0 %vm784_vm2, %v16903_v12  ;;  %v943_v37 = vmax.f32 %v885_v24, 0.0  ;;  %vm2339_vm2 = vcmask 1043968  }
 0x14b   : > { %v1035_v36 = vrot.slane %v943_v37, 2  ;;  %v1036_v42 = vrot.slane %v943_v37, 4  ;;  %v1037_v43 = vrot.slane %v943_v37, 6  ;;  %v12455_v45 = vrot.slane %v943_v37, 9 }
 0x14d   : > { %v12456_v52 = vrot.slane %v1035_v36, 9  ;;  %v12457_v56 = vrot.slane %v1036_v42, 9  ;;  %v12458_v57 = vrot.slane %v1037_v43, 9  ;;  %v1625_v53 = vmax.f32 %v943_v37, %v12455_v45  ;;  %v19038_v3 = vld [vmem:[#allocation2 + $0x18] sm:$0xf] }
 0x14e   : > { %v886_v58 = vpop.f32.mrf.mxu0  ;;  %2420 = vrot.lane.b32.xlu2 %v19038_v3, %s18561_s16  ;;  %2195 = vst.msk [vmem:[#allocation5 + $0x3c] sm:$0xf] %vm1761_vm4, %v19038_v3  ;;  %v2246_v0 = vshrl.u32 %v19038_v3, 16  ;;  %v2249_v32 = vshll.u32 %v19038_v3, 16 }
 0x14f   : > { %v887_v62 = vadd.f32 %v18825_v18, %v886_v58  ;;  %v1626_v55 = vmax.f32 %v1035_v36, %v12456_v52  ;;  %v1627_v63 = vmax.f32 %v1036_v42, %v12457_v56  ;;  %v1628_v1 = vmax.f32 %v1037_v43, %v12458_v57  ;;  %2516 = vst.msk [vmem:[#allocation5 + $0x20] sm:$0xf] %vm1761_vm4, %v19038_v3  ;;  %v2179_v57 = vld [vmem:[#allocation2 + $0x1c] sm:$0x1] }
 0x150   : > { %v1721_v2 = vmax.f32 %v1617_v33, %v1625_v53 }
 0x151   : > { %v944_v6 = vmax.f32 %v887_v62, 0.0  ;;  %v1722_v7 = vmax.f32 %v1618_v46, %v1626_v55  ;;  %v1723_v8 = vmax.f32 %v1619_v48, %v1627_v63  ;;  %v1724_v9 = vmax.f32 %v1620_v54, %v1628_v1  ;;  %v2145_v1 = vld [vmem:[#allocation2 + $0x24] sm:$0x1] }
 0x152   : > { %v1807_v10 = vpack.c.bf16 %v1721_v2, %v1721_v2  ;;  %v2255_v2 = vshll.u32 %v2179_v57, 16 }
 0x153   : > { %v1038_v11 = vrot.slane %v944_v6, 2  ;;  %v1039_v12 = vrot.slane %v944_v6, 4  ;;  %v1040_v13 = vrot.slane %v944_v6, 6  ;;  %v12459_v14 = vrot.slane %v944_v6, 9 }
 0x154   : > { %v1808_v15 = vpack.c.bf16 %v1722_v7, %v1722_v7  ;;  %v1809_v16 = vpack.c.bf16 %v1723_v8, %v1723_v8  ;;  %v1810_v21 = vpack.c.bf16 %v1724_v9, %v1724_v9  ;;  %v1935_v17 = vunpack.c.l.b16 %v1807_v10 }
 0x155   : > { %v12460_v20 = vrot.slane %v1038_v11, 9  ;;  %v12461_v22 = vrot.slane %v1039_v12, 9  ;;  %v12462_v23 = vrot.slane %v1040_v13, 9  ;;  %v1629_v24 = vmax.f32 %v944_v6, %v12459_v14 }
 0x156   : > { %v1936_v26 = vunpack.c.l.b16 %v1808_v15  ;;  %v1937_v28 = vunpack.c.l.b16 %v1809_v16  ;;  %v1938_v27 = vunpack.c.l.b16 %v1810_v21  ;;  %v889_v31 = vpop.f32.mrf.mxu0  ;;  %v2020_v33 = vrot.slane %v1935_v17, 7  ;;  %v2142_v21 = vld [vmem:[#allocation2 + $0x20] sm:$0xf]  ;;  %v19061_v17 = vld [vmem:[%s20110_s2] ss:$0 sm:$0xff] }
 0x157   : > { %v1630_v34 = vmax.f32 %v1038_v11, %v12460_v20  ;;  %v1631_v35 = vmax.f32 %v1039_v12, %v12461_v22  ;;  %v1632_v37 = vmax.f32 %v1040_v13, %v12462_v23  ;;  %v1725_v38 = vmax.f32 %v1621_v59, %v1629_v24 }
 0x158   : > { %v2021_v40 = vrot.slane %v1936_v26, 6  ;;  %v2023_v44 = vrot.slane %v1937_v28, 5  ;;  %v890_v36 = vadd.f32 %v18825_v18, %v889_v31  ;;  %v2025_v49 = vrot.slane %v1938_v27, 4 }
 0x159   : > { %v1726_v42 = vmax.f32 %v1622_v61, %v1630_v34  ;;  %v1727_v43 = vmax.f32 %v1623_v4, %v1631_v35  ;;  %v1728_v45 = vmax.f32 %v1624_v5, %v1632_v37  ;;  %v1811_v46 = vpack.c.bf16 %v1725_v38, %v1725_v38 }
 0x15a   : > { %v2022_v48 = vsel %vm1977_vm5, %v2021_v40, %v2020_v33  ;;  %v945_v54 = vmax.f32 %v890_v36, 0.0  ;;  %v2248_v59 = vrot.slane %v2246_v0, 4  ;;  %v2251_v18 = vrot.slane %v2249_v32, 5  ;;  %v16933_v40 = vld [vmem:[#allocation11 + $0x38] sm:$0xff] }
 0x15b   : > { %v1812_v19 = vpack.c.bf16 %v1726_v42, %v1726_v42  ;;  %v1813_v52 = vpack.c.bf16 %v1727_v43, %v1727_v43  ;;  %v1814_v56 = vpack.c.bf16 %v1728_v45, %v1728_v45  ;;  %v2024_v53 = vsel %vm1980_vm6, %v2023_v44, %v2022_v48  ;;  %2996 = vmatpush.bf16.msra.mxu1 %v16933_v40  ;;  %v16932_v43 = vld [vmem:[#allocation11 + $0x30] sm:$0xff] }
 0x15c   : > { %v1939_v58 = vunpack.c.l.b16 %v1811_v46  ;;  %v12530_v5 = vrot.slane %v19038_v3, 9  ;;  %v2026_v6 = vsel %vm1983_vm7, %v2025_v49, %v2024_v53  ;;  %v1041_v11 = vrot.slane %v945_v54, 2 }
 0x15d   : > { %v1940_v62 = vunpack.c.l.b16 %v1812_v19  ;;  %v1941_v55 = vunpack.c.l.b16 %v1813_v52  ;;  %v1942_v63 = vunpack.c.l.b16 %v1814_v56  ;;  %v2381_v12 = vrot.slane %v2179_v57, 5 }
 0x15e   : > { %v2027_v61 = vrot.slane %v1939_v58, 3  ;;  %v891_v4 = vpop.f32.mrf.mxu0  ;;  %v1042_v14 = vrot.slane %v945_v54, 4  ;;  %v2252_v15 = vor.u32 %v2251_v18, %v2248_v59  ;;  %v1043_v3 = vrot.slane %v945_v54, 6 }
 0x15f   : > { %v2029_v7 = vrot.slane %v1940_v62, 2  ;;  %v2031_v8 = vrot.slane %v1941_v55, 1  ;;  %v2092_v9 = vpack.c.b16 %v1942_v63, %v1942_v63  ;;  %v892_v20 = vadd.f32 %v19061_v17, %v891_v4  ;;  %2997 = vmatpush.bf16.msra.mxu1 %v16932_v43 }
 0x160   : > { %v2028_v10 = vsel %vm1986_vm9, %v2027_v61, %v2026_v6  ;;  %v19066_v22 = vsel %vm18974_vm0, %v12530_v5, %v2381_v12  ;;  %v2253_v24 = vrot.slane %v2252_v15, 4  ;;  %v2257_v26 = vrot.slane %v2255_v2, 5 }
 0x161   : > { %v2030_v0 = vsel %vm1989_vm10, %v2029_v7, %v2028_v10  ;;  %v2146_v13 = vsel %vm18904_vm13, %v2092_v9, %v2145_v1  ;;  %2410 = vst.msk [vmem:[#allocation5 + $0x40] sm:$0xf] %vm1761_vm4, %v19066_v22  ;;  %v12463_v27 = vrot.slane %v945_v54, 9  ;;  %v12464_v32 = vrot.slane %v1041_v11, 9  ;;  %v16931_v1 = vld [vmem:[#allocation11 + $0x28] sm:$0xff] }
 0x162   : > { %v2032_v16 = vsel %vm1992_vm11, %v2031_v8, %v2030_v0  ;;  %2147 = vst [vmem:[#allocation2 + $0x24] sm:$0x1] %v2146_v13  ;;  %v2258_v31 = vsel %vm18945_vm3, %v2253_v24, %v2257_v26  ;;  %v12465_v34 = vrot.slane %v1042_v14, 9  ;;  %v12466_v35 = vrot.slane %v1043_v3, 9 }
 0x163   : > { %v2091_v23 = vpack.c.b16 %v2032_v16, %v2032_v16  ;;  %2560 = vst.msk [vmem:[#allocation5 + $0x24] sm:$0xf] %vm1761_vm4, %v19066_v22  ;;  %2321 = vrot.lane.b32.xlu1 %v2258_v31, %s18561_s16  ;;  %v19077_v37 = vmax.f32 %v892_v20, 0.0  ;;  %v2369_v44 = vrot.slane %v18933_v41, 5  ;;  %v1633_v36 = vmax.f32 %v945_v54, %v12463_v27  ;;  %2998 = vmatpush.bf16.msra.mxu1 %v16931_v1  ;;  %v16930_v20 = vld [vmem:[#allocation11 + $0x20] sm:$0xff] }
 0x164   : > { %2472 = vst.msk [vmem:[#allocation5 + $0x30] sm:$0xf] %vm1761_vm4, %v2258_v31  ;;  %v12527_v45 = vrot.slane %v18897_v39, 9  ;;  %v1634_v46 = vmax.f32 %v1041_v11, %v12464_v32  ;;  %v1635_v48 = vmax.f32 %v1042_v14, %v12465_v34  ;;  %v1636_v49 = vmax.f32 %v1043_v3, %v12466_v35 }
 0x165   : > { %v2143_v28 = vsel %vm18915_vm14, %v2091_v23, %v2142_v21  ;;  %v1044_v19 = vrot.slane %v19077_v37, 2  ;;  %v1045_v59 = vrot.slane %v19077_v37, 4  ;;  %v1046_v41 = vrot.slane %v19077_v37, 6 }
 0x166   : > { %2144 = vst [vmem:[#allocation2 + $0x20] sm:$0xf] %v2143_v28  ;;  %v894_v38 = vpop.f32.mrf.mxu0  ;;  %v12467_v54 = vrot.slane %v19077_v37, 9  ;;  %v2370_v39 = vsel %vm18974_vm0, %v12527_v45, %v2369_v44 }
 0x167   : > { %v895_v33 = vadd.f32 %v19061_v17, %v894_v38  ;;  %v12468_v2 = vrot.slane %v1044_v19, 9  ;;  %v12469_v12 = vrot.slane %v1045_v59, 9  ;;  %2407 = vst.msk [vmem:[#allocation5 + $0x4] sm:$0xf] %vm1761_vm4, %v2370_v39  ;;  %v12470_v23 = vrot.slane %v1046_v41, 9  ;;  %2999 = vmatpush.bf16.msra.mxu1 %v16930_v20 }
 0x168   : > { %v1637_v24 = vmax.f32 %v19077_v37, %v12467_v54 }
 0x169   : > { %v947_v42 = vmax.f32 %v895_v33, 0.0  ;;  %v19084_v58 = vld [vmem:[#allocation2 + $0x24] sm:$0x1]  ;;  %v1638_v26 = vmax.f32 %v1044_v19, %v12468_v2  ;;  %v1639_v19 = vmax.f32 %v1045_v59, %v12469_v12 }
 0x16a   : > { %v2385_v7 = vrot.slane %v19084_v58, 5  ;;  %v2269_v59 = vshll.u32 %v19084_v58, 16 }
 0x16b   : > { %v1047_v52 = vrot.slane %v947_v42, 2  ;;  %v1048_v56 = vrot.slane %v947_v42, 4  ;;  %v1049_v57 = vrot.slane %v947_v42, 6  ;;  %v12471_v53 = vrot.slane %v947_v42, 9 }
 0x16d   : > { %v12472_v62 = vrot.slane %v1047_v52, 9  ;;  %v12473_v55 = vrot.slane %v1048_v56, 9  ;;  %v12474_v63 = vrot.slane %v1049_v57, 9  ;;  %v1641_v18 = vmax.f32 %v947_v42, %v12471_v53  ;;  %v2180_v61 = vld [vmem:[#allocation2 + $0x20] sm:$0xf] }
 0x16e   : > { %v896_v4 = vpop.f32.mrf.mxu0  ;;  %2422 = vrot.lane.b32.xlu2 %v2180_v61, %s18561_s16  ;;  %2196 = vst.msk [vmem:[#allocation5 + $0x50] sm:$0xf] %vm1761_vm4, %v2180_v61  ;;  %v2260_v5 = vshrl.u32 %v2180_v61, 16  ;;  %v12531_v6 = vrot.slane %v2180_v61, 9  ;;  %v2263_v13 = vshll.u32 %v2180_v61, 16 }
 0x16f   : > { %v1642_v8 = vmax.f32 %v1047_v52, %v12472_v62  ;;  %v1643_v9 = vmax.f32 %v1048_v56, %v12473_v55  ;;  %v1644_v10 = vmax.f32 %v1049_v57, %v12474_v63  ;;  %v1729_v11 = vmax.f32 %v1633_v36, %v1641_v18  ;;  %2517 = vst.msk [vmem:[#allocation5 + $0x34] sm:$0xf] %vm1761_vm4, %v2180_v61  ;;  %v16929_v61 = vld [vmem:[#allocation11 + $0x18] sm:$0xff] }
 0x170   : > { %v897_v0 = vadd.f32 %v19061_v17, %v896_v4  ;;  %v19099_v14 = vsel %vm18974_vm0, %v12531_v6, %v2385_v7  ;;  %v2262_v34 = vrot.slane %v2260_v5, 4  ;;  %v2265_v37 = vrot.slane %v2263_v13, 5  ;;  %3000 = vmatpush.bf16.msra.mxu1 %v16929_v61 }
 0x171   : > { %v1730_v15 = vmax.f32 %v1634_v46, %v1642_v8  ;;  %v1731_v16 = vmax.f32 %v1635_v48, %v1643_v9  ;;  %v1732_v21 = vmax.f32 %v1636_v49, %v1644_v10  ;;  %v1815_v3 = vpack.c.bf16 %v1729_v11, %v1729_v11  ;;  %2411 = vst.msk [vmem:[#allocation5 + $0x54] sm:$0xf] %vm1761_vm4, %v19099_v14  ;;  %v16928_v10 = vld [vmem:[#allocation11 + $0x10] sm:$0xff] }
 0x172   : > { %v948_v28 = vmax.f32 %v897_v0, 0.0  ;;  %2561 = vst.msk [vmem:[#allocation5 + $0x38] sm:$0xf] %vm1761_vm4, %v19099_v14  ;;  %v1640_v52 = vmax.f32 %v1046_v41, %v12470_v23  ;;  %v2266_v18 = vor.u32 %v2265_v37, %v2262_v34  ;;  %v2151_v23 = vld [vmem:[#allocation2 + $0x2c] sm:$0x1] }
 0x173   : > { %v1816_v27 = vpack.c.bf16 %v1730_v15, %v1730_v15  ;;  %v1817_v31 = vpack.c.bf16 %v1731_v16, %v1731_v16  ;;  %v1943_v32 = vunpack.c.l.b16 %v1815_v3  ;;  %v1818_v44 = vpack.c.bf16 %v1732_v21, %v1732_v21 }
 0x174   : > { %v1050_v35 = vrot.slane %v948_v28, 2  ;;  %v1051_v38 = vrot.slane %v948_v28, 4  ;;  %v1052_v33 = vrot.slane %v948_v28, 6  ;;  %v12475_v40 = vrot.slane %v948_v28, 9  ;;  %3001 = vmatpush.bf16.msra.mxu1 %v16928_v10 }
 0x175   : > { %v1944_v36 = vunpack.c.l.b16 %v1816_v27  ;;  %v1945_v42 = vunpack.c.l.b16 %v1817_v31  ;;  %v2033_v56 = vrot.slane %v1943_v32, 7  ;;  %v1946_v55 = vunpack.c.l.b16 %v1818_v44 }
 0x176   : > { %v12476_v43 = vrot.slane %v1050_v35, 9  ;;  %v12477_v45 = vrot.slane %v1051_v38, 9  ;;  %v12478_v46 = vrot.slane %v1052_v33, 9  ;;  %v1645_v48 = vmax.f32 %v948_v28, %v12475_v40  ;;  %v899_v49 = vpop.f32.mrf.mxu0  ;;  %v16927_v40 = vld [vmem:[#allocation11 + $0x8] sm:$0xff] }
 0x177   : > { %v2034_v57 = vrot.slane %v1944_v36, 6  ;;  %v2036_v63 = vrot.slane %v1945_v42, 5  ;;  %v900_v7 = vadd.f32 %v19061_v17, %v899_v49  ;;  %v2267_v0 = vrot.slane %v2266_v18, 4  ;;  %v2148_v36 = vld [vmem:[#allocation2 + $0x28] sm:$0xf] }
 0x178   : > { %v1646_v53 = vmax.f32 %v1050_v35, %v12476_v43  ;;  %v1647_v54 = vmax.f32 %v1051_v38, %v12477_v45  ;;  %v1648_v39 = vmax.f32 %v1052_v33, %v12478_v46  ;;  %v1733_v62 = vmax.f32 %v1637_v24, %v1645_v48  ;;  %v16941_v33 = vld [vmem:[#allocation11 + $0x78] sm:$0xff]  ;;  %3002 = vmatpush.bf16.msra.mxu1 %v16927_v40 }
 0x179   : > { %v2035_v1 = vsel %vm1977_vm5, %v2034_v57, %v2033_v56  ;;  %v2038_v13 = vrot.slane %v1946_v55, 4  ;;  %v949_v24 = vmax.f32 %v900_v7, 0.0  ;;  %3025 = vmatpush.bf16.msra.mxu2 %v16941_v33 }
 0x17a   : > { %v1734_v2 = vmax.f32 %v1638_v26, %v1646_v53  ;;  %v1735_v4 = vmax.f32 %v1639_v19, %v1647_v54  ;;  %v1736_v5 = vmax.f32 %v1640_v52, %v1648_v39  ;;  %v1819_v6 = vpack.c.bf16 %v1733_v62, %v1733_v62  ;;  %v16940_v53 = vld [vmem:[#allocation11 + $0x70] sm:$0xff]  ;;  %v16926_v54 = vld [vmem:[#allocation11] sm:$0xff] }
 0x17b   : > { %v2037_v11 = vsel %vm1980_vm6, %v2036_v63, %v2035_v1  ;;  %v2271_v26 = vrot.slane %v2269_v59, 5  ;;  %v1053_v43 = vrot.slane %v949_v24, 2  ;;  %v1054_v45 = vrot.slane %v949_v24, 4 }
 0x17c   : > { %v1820_v41 = vpack.c.bf16 %v1734_v2, %v1734_v2  ;;  %v1821_v8 = vpack.c.bf16 %v1735_v4, %v1735_v4  ;;  %v1822_v9 = vpack.c.bf16 %v1736_v5, %v1736_v5  ;;  %v1947_v12 = vunpack.c.l.b16 %v1819_v6  ;;  %3003 = vmatpush.bf16.msra.mxu1 %v16926_v54 }
 0x17d   : > { %v2039_v58 = vsel %vm1983_vm7, %v2038_v13, %v2037_v11  ;;  %v2272_v34 = vsel %vm18945_vm3, %v2267_v0, %v2271_v26  ;;  %v1055_v49 = vrot.slane %v949_v24, 6  ;;  %v12479_v39 = vrot.slane %v949_v24, 9  ;;  %3026 = vmatpush.bf16.msra.mxu2 %v16940_v53 }
 0x17e   : > { %v1948_v15 = vunpack.c.l.b16 %v1820_v41  ;;  %v1949_v16 = vunpack.c.l.b16 %v1821_v8  ;;  %v1950_v21 = vunpack.c.l.b16 %v1822_v9  ;;  %v901_v3 = vpop.f32.mrf.mxu0  ;;  %v2040_v20 = vrot.slane %v1947_v12, 3  ;;  %2473 = vst.msk [vmem:[#allocation5 + $0x44] sm:$0xf] %vm1761_vm4, %v2272_v34  ;;  %2323 = vrot.lane.b32.xlu1 %v2272_v34, %s18561_s16  ;;  %v16939_v8 = vld [vmem:[#allocation11 + $0x68] sm:$0xff] }
 0x17f   : > { %v902_v35 = vadd.f32 %v19061_v17, %v901_v3  ;;  %v12480_v62 = vrot.slane %v1053_v43, 9  ;;  %v12481_v55 = vrot.slane %v1054_v45, 9  ;;  %v12482_v61 = vrot.slane %v1055_v49, 9  ;;  %v16938_v3 = vld [vmem:[#allocation11 + $0x60] sm:$0xff] }
 0x180   : > { %v2042_v28 = vrot.slane %v1948_v15, 2  ;;  %v2044_v27 = vrot.slane %v1949_v16, 1  ;;  %v2094_v31 = vpack.c.b16 %v1950_v21, %v1950_v21  ;;  %v2041_v32 = vsel %vm1986_vm9, %v2040_v20, %v2039_v58 }
 0x181   : > { %v2417_v38 = vpop.permute.xlu0 %2416  ;;  %v950_v46 = vmax.f32 %v902_v35, 0.0  ;;  %v1649_v6 = vmax.f32 %v949_v24, %v12479_v39  ;;  %v1650_v7 = vmax.f32 %v1053_v43, %v12480_v62  ;;  %v1651_v59 = vmax.f32 %v1054_v45, %v12481_v55  ;;  %3027 = vmatpush.bf16.msra.mxu2 %v16939_v8 }
 0x182   : > { %v2043_v44 = vsel %vm1989_vm10, %v2042_v28, %v2041_v32  ;;  %v2152_v42 = vsel %vm18904_vm13, %v2094_v31, %v2151_v23  ;;  %2440 = vst.msk [vmem:[#allocation5 + $0x4] sm:$0xf] %vm2339_vm2, %v2417_v38  ;;  %v1652_v13 = vmax.f32 %v1055_v49, %v12482_v61 }
 0x183   : > { %v2045_v37 = vsel %vm1992_vm11, %v2044_v27, %v2043_v44  ;;  %2153 = vst [vmem:[#allocation2 + $0x2c] sm:$0x1] %v2152_v42  ;;  %v1056_v19 = vrot.slane %v950_v46, 2  ;;  %v1057_v52 = vrot.slane %v950_v46, 4  ;;  %v1058_v63 = vrot.slane %v950_v46, 6 }
 0x184   : > { %v2093_v48 = vpack.c.b16 %v2045_v37, %v2045_v37  ;;  %v12483_v1 = vrot.slane %v950_v46, 9  ;;  %v16937_v37 = vld [vmem:[#allocation11 + $0x58] sm:$0xff] }
 0x185   : > { %v12484_v2 = vrot.slane %v1056_v19, 9  ;;  %v12485_v4 = vrot.slane %v1057_v52, 9  ;;  %v12486_v41 = vrot.slane %v1058_v63, 9  ;;  %3028 = vmatpush.bf16.msra.mxu2 %v16938_v3 }
 0x186   : > { %v2149_v56 = vsel %vm18915_vm14, %v2093_v48, %v2148_v36  ;;  %v904_v57 = vpop.f32.mrf.mxu0  ;;  %v1653_v15 = vmax.f32 %v950_v46, %v12483_v1 }
 0x187   : > { %2150 = vst [vmem:[#allocation2 + $0x28] sm:$0xf] %v2149_v56  ;;  %v905_v18 = vadd.f32 %v19061_v17, %v904_v57  ;;  %v1654_v16 = vmax.f32 %v1056_v19, %v12484_v2  ;;  %v1655_v21 = vmax.f32 %v1057_v52, %v12485_v4  ;;  %v1656_v27 = vmax.f32 %v1058_v63, %v12486_v41 }
 0x189   : > { %v951_v5 = vmax.f32 %v905_v18, 0.0  ;;  %3029 = vmatpush.bf16.msra.mxu2 %v16937_v37 }
 0x18a   : > { %v19125_v0 = vld [vmem:[#allocation2 + $0x2c] sm:$0x1] }
 0x18b   : > { %v1059_v9 = vrot.slane %v951_v5, 2  ;;  %v1060_v10 = vrot.slane %v951_v5, 4  ;;  %v1061_v11 = vrot.slane %v951_v5, 6  ;;  %v12487_v12 = vrot.slane %v951_v5, 9 }
 0x18c   : > { %v2389_v34 = vrot.slane %v19125_v0, 5 }
 0x18d   : > { %v12488_v20 = vrot.slane %v1059_v9, 9  ;;  %v12489_v23 = vrot.slane %v1060_v10, 9  ;;  %v12490_v26 = vrot.slane %v1061_v11, 9  ;;  %v1657_v24 = vmax.f32 %v951_v5, %v12487_v12 }
 0x18e   : > { %v906_v58 = vpop.f32.mrf.mxu0  ;;  %v2182_v28 = vld [vmem:[#allocation2 + $0x28] sm:$0xf] }
 0x18f   : > { %v907_v31 = vadd.f32 %v19061_v17, %v906_v58  ;;  %2424 = vrot.lane.b32.xlu2 %v2182_v28, %s18561_s16  ;;  %2197 = vst.msk [vmem:[#allocation5 + $0x64] sm:$0xf] %vm1761_vm4, %v2182_v28  ;;  %v12532_v32 = vrot.slane %v2182_v28, 9  ;;  %v1658_v35 = vmax.f32 %v1059_v9, %v12488_v20  ;;  %v1659_v38 = vmax.f32 %v1060_v10, %v12489_v23 }
 0x190   : > { %v1660_v33 = vmax.f32 %v1061_v11, %v12490_v26  ;;  %v1737_v40 = vmax.f32 %v1649_v6, %v1657_v24  ;;  %2518 = vst.msk [vmem:[#allocation5 + $0x48] sm:$0xf] %vm1761_vm4, %v2182_v28  ;;  %v2274_v36 = vshrl.u32 %v2182_v28, 16  ;;  %v2277_v42 = vshll.u32 %v2182_v28, 16  ;;  %v2316_v10 = vpop.permute.xlu1 %2315 }
 0x191   : > { %v952_v44 = vmax.f32 %v907_v31, 0.0  ;;  %v19134_v43 = vsel %vm18974_vm0, %v12532_v32, %v2389_v34  ;;  %v1738_v45 = vmax.f32 %v1650_v7, %v1658_v35  ;;  %v1739_v46 = vmax.f32 %v1651_v59, %v1659_v38  ;;  %v16936_v7 = vld [vmem:[#allocation11 + $0x50] sm:$0xff]  ;;  %2340 = vst.msk [vmem:[#allocation5] sm:$0xf] %vm2339_vm2, %v2316_v10  ;;  %v16935_v31 = vld [vmem:[#allocation11 + $0x48] sm:$0xff] }
 0x192   : > { %v1740_v48 = vmax.f32 %v1652_v13, %v1660_v33  ;;  %v1823_v49 = vpack.c.bf16 %v1737_v40, %v1737_v40  ;;  %2412 = vst.msk [vmem:[#allocation5 + $0x68] sm:$0xf] %vm1761_vm4, %v19134_v43  ;;  %v2276_v5 = vrot.slane %v2274_v36, 4  ;;  %v2279_v6 = vrot.slane %v2277_v42, 5  ;;  %3030 = vmatpush.bf16.msra.mxu2 %v16936_v7  ;;  %v2157_v42 = vld [vmem:[#allocation2 + $0x34] sm:$0x1] }
 0x193   : > { %v1062_v19 = vrot.slane %v952_v44, 2  ;;  %v1063_v52 = vrot.slane %v952_v44, 4  ;;  %v1064_v56 = vrot.slane %v952_v44, 6  ;;  %v12491_v57 = vrot.slane %v952_v44, 9  ;;  %2562 = vst.msk [vmem:[#allocation5 + $0x4c] sm:$0xf] %vm1761_vm4, %v19134_v43 }
 0x194   : > { %v1824_v53 = vpack.c.bf16 %v1738_v45, %v1738_v45  ;;  %v1825_v54 = vpack.c.bf16 %v1739_v46, %v1739_v46  ;;  %v1826_v39 = vpack.c.bf16 %v1740_v48, %v1740_v48  ;;  %v1951_v62 = vunpack.c.l.b16 %v1823_v49  ;;  %v16934_v46 = vld [vmem:[#allocation11 + $0x40] sm:$0xff] }
 0x195   : > { %v12492_v55 = vrot.slane %v1062_v19, 9  ;;  %v12493_v63 = vrot.slane %v1063_v52, 9  ;;  %v12494_v18 = vrot.slane %v1064_v56, 9  ;;  %v1661_v61 = vmax.f32 %v952_v44, %v12491_v57 }
 0x196   : > { %v1952_v1 = vunpack.c.l.b16 %v1824_v53  ;;  %v1953_v2 = vunpack.c.l.b16 %v1825_v54  ;;  %v909_v4 = vpop.f32.mrf.mxu0  ;;  %v1954_v11 = vunpack.c.l.b16 %v1826_v39  ;;  %v2046_v12 = vrot.slane %v1951_v62, 7  ;;  %3031 = vmatpush.bf16.msra.mxu2 %v16935_v31 }
 0x197   : > { %v1662_v59 = vmax.f32 %v1062_v19, %v12492_v55  ;;  %v1663_v41 = vmax.f32 %v1063_v52, %v12493_v63  ;;  %v1664_v8 = vmax.f32 %v1064_v56, %v12494_v18  ;;  %v1741_v9 = vmax.f32 %v1653_v15, %v1661_v61  ;;  %v2154_v55 = vld [vmem:[#allocation2 + $0x30] sm:$0xf] }
 0x198   : > { %v2047_v13 = vrot.slane %v1952_v1, 6  ;;  %v2049_v3 = vrot.slane %v1953_v2, 5  ;;  %v910_v28 = vadd.f32 %v19061_v17, %v909_v4  ;;  %v2051_v38 = vrot.slane %v1954_v11, 4 }
 0x199   : > { %v1742_v20 = vmax.f32 %v1654_v16, %v1662_v59  ;;  %v1743_v23 = vmax.f32 %v1655_v21, %v1663_v41  ;;  %v1744_v26 = vmax.f32 %v1656_v27, %v1664_v8  ;;  %v1827_v24 = vpack.c.bf16 %v1741_v9, %v1741_v9  ;;  %v2318_v56 = vpop.permute.xlu1 %2317  ;;  %v12539_v59 = vld [vmem:[#allocation5] sm:$0xf] }
 0x19a   : > { %v2048_v58 = vsel %vm1977_vm5, %v2047_v13, %v2046_v12  ;;  %v2283_v40 = vshll.u32 %v19125_v0, 16  ;;  %v2280_v27 = vor.u32 %v2279_v6, %v2276_v5  ;;  %v953_v37 = vmax.f32 %v910_v28, 0.0  ;;  %2341 = vst.msk [vmem:[#allocation5 + $0x14] sm:$0xf] %vm2339_vm2, %v2318_v56  ;;  %3032 = vmatpush.bf16.msra.mxu2 %v16934_v46 }
 0x19b   : > { %v1828_v32 = vpack.c.bf16 %v1742_v20, %v1742_v20  ;;  %v1829_v34 = vpack.c.bf16 %v1743_v23, %v1743_v23  ;;  %v1830_v15 = vpack.c.bf16 %v1744_v26, %v1744_v26  ;;  %v2050_v35 = vsel %vm1980_vm6, %v2049_v3, %v2048_v58 }
 0x19c   : > { %v1955_v33 = vunpack.c.l.b16 %v1827_v24  ;;  %v2052_v48 = vsel %vm1983_vm7, %v2051_v38, %v2050_v35  ;;  %v2281_v54 = vrot.slane %v2280_v27, 4  ;;  %v2285_v39 = vrot.slane %v2283_v40, 5  ;;  %v16906_v38 = vld [vmem:[#allocation5 + $0x4] sm:$0xf] }
 0x19d   : > { %v1956_v44 = vunpack.c.l.b16 %v1828_v32  ;;  %v1957_v16 = vunpack.c.l.b16 %v1829_v34  ;;  %v1958_v21 = vunpack.c.l.b16 %v1830_v15  ;;  %v1065_v63 = vrot.slane %v953_v37, 2 }
 0x19e   : > { %v2053_v36 = vrot.slane %v1955_v33, 3  ;;  %v911_v45 = vpop.f32.mrf.mxu0  ;;  %v2286_v1 = vsel %vm18945_vm3, %v2281_v54, %v2285_v39  ;;  %v1066_v2 = vrot.slane %v953_v37, 4  ;;  %v1067_v4 = vrot.slane %v953_v37, 6 }
 0x19f   : > { %v2055_v49 = vrot.slane %v1956_v44, 2  ;;  %v2057_v19 = vrot.slane %v1957_v16, 1  ;;  %v2096_v52 = vpack.c.b16 %v1958_v21, %v1958_v21  ;;  %v912_v18 = vadd.f32 %v19061_v17, %v911_v45  ;;  %2474 = vst.msk [vmem:[#allocation5 + $0x58] sm:$0xf] %vm1761_vm4, %v2286_v1  ;;  %2325 = vrot.lane.b32.xlu2 %v2286_v1, %s18561_s16 }
 0x1a0   : > { %v2054_v57 = vsel %vm1986_vm9, %v2053_v36, %v2052_v48  ;;  %v2419_v6 = vpop.permute.xlu0 %2418  ;;  %v12495_v41 = vrot.slane %v953_v37, 9  ;;  %v12496_v8 = vrot.slane %v1065_v63, 9  ;;  %v12497_v12 = vrot.slane %v1066_v2, 9 }
 0x1a1   : > { %v2056_v0 = vsel %vm1989_vm10, %v2055_v49, %v2054_v57  ;;  %v2158_v53 = vsel %vm18904_vm13, %v2096_v52, %v2157_v42  ;;  %v19157_v5 = vmax.f32 %v912_v18, 0.0  ;;  %2441 = vst.msk [vmem:[#allocation5 + $0x18] sm:$0xf] %vm2339_vm2, %v2419_v6  ;;  %v16908_v11 = vld [vmem:[#allocation5 + $0x10] sm:$0xf0]  ;;  %v12498_v13 = vrot.slane %v1067_v4, 9 }
 0x1a2   : > { %v2058_v62 = vsel %vm1992_vm11, %v2057_v19, %v2056_v0  ;;  %2159 = vst [vmem:[#allocation2 + $0x34] sm:$0x1] %v2158_v53  ;;  %v12540_v20 = vor.u32 %v16908_v11, %v12539_v59  ;;  %v1665_v26 = vmax.f32 %v953_v37, %v12495_v41  ;;  %v1666_v24 = vmax.f32 %v1065_v63, %v12496_v8 }
 0x1a3   : > { %v2095_v61 = vpack.c.b16 %v2058_v62, %v2058_v62  ;;  %v1068_v3 = vrot.slane %v19157_v5, 2  ;;  %v1069_v58 = vrot.slane %v19157_v5, 4  ;;  %v1070_v28 = vrot.slane %v19157_v5, 6 }
 0x1a4   : > { %3004 = vmatmul.bf16.vlgmr.msra.gmra.mxu1 %v12540_v20  ;;  %v1667_v40 = vmax.f32 %v1066_v2, %v12497_v12  ;;  %v1668_v44 = vmax.f32 %v1067_v4, %v12498_v13  ;;  %v12499_v16 = vrot.slane %v19157_v5, 9 }
 0x1a5   : > { %v2155_v7 = vsel %vm18915_vm14, %v2095_v61, %v2154_v55  ;;  %v12500_v21 = vrot.slane %v1068_v3, 9  ;;  %v12501_v39 = vrot.slane %v1069_v58, 9  ;;  %v12502_v4 = vrot.slane %v1070_v28, 9 }
 0x1a6   : > { %2156 = vst [vmem:[#allocation2 + $0x30] sm:$0xf] %v2155_v7  ;;  %v914_v9 = vpop.f32.mrf.mxu0  ;;  %v1669_v6 = vmax.f32 %v19157_v5, %v12499_v16 }
 0x1a7   : > { %v915_v10 = vadd.f32 %v19061_v17, %v914_v9  ;;  %v1670_v7 = vmax.f32 %v1068_v3, %v12500_v21 }
 0x1a8   : > { %v2421_v35 = vpop.permute.xlu2 %2420  ;;  %v12541_v27 = vld [vmem:[#allocation5 + $0x14] sm:$0xf0] }
 0x1a9   : > { %v955_v23 = vmax.f32 %v915_v10, 0.0  ;;  %v19166_v33 = vld [vmem:[#allocation2 + $0x34] sm:$0x1]  ;;  %2442 = vst.msk [vmem:[#allocation5 + $0x2c] sm:$0xf] %vm2339_vm2, %v2421_v35  ;;  %v12544_v48 = vor.u32 %v16906_v38, %v12541_v27  ;;  %v1671_v38 = vmax.f32 %v1069_v58, %v12501_v39 }
 0x1aa   : > { %v2393_v56 = vrot.slane %v19166_v33, 5  ;;  %v2297_v5 = vshll.u32 %v19166_v33, 16 }
 0x1ab   : > { %v1071_v31 = vrot.slane %v955_v23, 2  ;;  %v1072_v32 = vrot.slane %v955_v23, 4  ;;  %v1073_v34 = vrot.slane %v955_v23, 6  ;;  %v12503_v15 = vrot.slane %v955_v23, 9  ;;  %3033 = vmatmul.bf16.vlgmr.msra.gmra.mxu2 %v12544_v48 }
 0x1ac   : > { %v2299_v33 = vrot.slane %v2297_v5, 5 }
 0x1ad   : > { %v12504_v36 = vrot.slane %v1071_v31, 9  ;;  %v12505_v42 = vrot.slane %v1072_v32, 9  ;;  %v12506_v37 = vrot.slane %v1073_v34, 9  ;;  %v1673_v45 = vmax.f32 %v955_v23, %v12503_v15  ;;  %v2184_v46 = vld [vmem:[#allocation2 + $0x30] sm:$0xf] }
 0x1ae   : > { %v916_v49 = vpop.f32.mrf.mxu0  ;;  %2426 = vrot.lane.b32.xlu0 %v2184_v46, %s18561_s16  ;;  %2198 = vst.msk [vmem:[#allocation5 + $0x78] sm:$0xf] %vm1761_vm4, %v2184_v46  ;;  %v2288_v19 = vshrl.u32 %v2184_v46, 16  ;;  %v12533_v52 = vrot.slane %v2184_v46, 9  ;;  %v2291_v55 = vshll.u32 %v2184_v46, 16 }
 0x1af   : > { %v1674_v57 = vmax.f32 %v1071_v31, %v12504_v36  ;;  %v1675_v0 = vmax.f32 %v1072_v32, %v12505_v42  ;;  %v1676_v53 = vmax.f32 %v1073_v34, %v12506_v37  ;;  %v1745_v54 = vmax.f32 %v1665_v26, %v1673_v45  ;;  %2519 = vst.msk [vmem:[#allocation5 + $0x5c] sm:$0xf] %vm1761_vm4, %v2184_v46 }
 0x1b0   : > { %v917_v62 = vadd.f32 %v19061_v17, %v916_v49  ;;  %v19179_v63 = vsel %vm18974_vm0, %v12533_v52, %v2393_v56  ;;  %v2290_v10 = vrot.slane %v2288_v19, 4  ;;  %v2293_v31 = vrot.slane %v2291_v55, 5 }
 0x1b1   : > { %v1746_v18 = vmax.f32 %v1666_v24, %v1674_v57  ;;  %v1747_v61 = vmax.f32 %v1667_v40, %v1675_v0  ;;  %v1748_v1 = vmax.f32 %v1668_v44, %v1676_v53  ;;  %v1831_v2 = vpack.c.bf16 %v1745_v54, %v1745_v54  ;;  %2413 = vst.msk [vmem:[#allocation5 + $0x7c] sm:$0xf] %vm1761_vm4, %v19179_v63 }
 0x1b2   : > { %v956_v59 = vmax.f32 %v917_v62, 0.0  ;;  %2563 = vst.msk [vmem:[#allocation5 + $0x60] sm:$0xf] %vm1761_vm4, %v19179_v63  ;;  %v1672_v40 = vmax.f32 %v1070_v28, %v12502_v4  ;;  %v2294_v48 = vor.u32 %v2293_v31, %v2290_v10 }
 0x1b3   : > { %v1832_v41 = vpack.c.bf16 %v1746_v18, %v1746_v18  ;;  %v1833_v8 = vpack.c.bf16 %v1747_v61, %v1747_v61  ;;  %v1959_v9 = vunpack.c.l.b16 %v1831_v2  ;;  %v1834_v23 = vpack.c.bf16 %v1748_v1, %v1748_v1 }
 0x1b4   : > { %v1074_v11 = vrot.slane %v956_v59, 2  ;;  %v1075_v12 = vrot.slane %v956_v59, 4  ;;  %v1076_v13 = vrot.slane %v956_v59, 6  ;;  %v12507_v20 = vrot.slane %v956_v59, 9  ;;  %v2320_v58 = vpop.permute.xlu0 %2319 }
 0x1b5   : > { %v1960_v26 = vunpack.c.l.b16 %v1832_v41  ;;  %v1961_v24 = vunpack.c.l.b16 %v1833_v8  ;;  %v2059_v44 = vrot.slane %v1959_v9, 7  ;;  %v1962_v37 = vunpack.c.l.b16 %v1834_v23  ;;  %2342 = vst.msk [vmem:[#allocation5 + $0x28] sm:$0xf] %vm2339_vm2, %v2320_v58 }
 0x1b6   : > { %v12508_v32 = vrot.slane %v1074_v11, 9  ;;  %v12509_v34 = vrot.slane %v1075_v12, 9  ;;  %v12510_v15 = vrot.slane %v1076_v13, 9  ;;  %v1677_v3 = vmax.f32 %v956_v59, %v12507_v20  ;;  %v919_v35 = vpop.f32.mrf.mxu0  ;;  %2543 = vst.msk [vmem:[#allocation5 + $0xc] sm:$0xf] %vm2339_vm2, %v2320_v58 }
 0x1b7   : > { %v2060_v16 = vrot.slane %v1960_v26, 6  ;;  %v2062_v45 = vrot.slane %v1961_v24, 5  ;;  %v920_v46 = vadd.f32 %v19061_v17, %v919_v35  ;;  %v2064_v39 = vrot.slane %v1962_v37, 4  ;;  %v2160_v20 = vld [vmem:[#allocation2 + $0x38] sm:$0xf] }
 0x1b8   : > { %v1678_v21 = vmax.f32 %v1074_v11, %v12508_v32  ;;  %v1679_v27 = vmax.f32 %v1075_v12, %v12509_v34  ;;  %v1680_v36 = vmax.f32 %v1076_v13, %v12510_v15  ;;  %v1749_v42 = vmax.f32 %v1669_v6, %v1677_v3 }
 0x1b9   : > { %v2061_v49 = vsel %vm1977_vm5, %v2060_v16, %v2059_v44  ;;  %v2295_v55 = vrot.slane %v2294_v48, 4  ;;  %v957_v2 = vmax.f32 %v920_v46, 0.0 }
 0x1ba   : > { %v1750_v19 = vmax.f32 %v1670_v7, %v1678_v21  ;;  %v1751_v52 = vmax.f32 %v1671_v38, %v1679_v27  ;;  %v1752_v56 = vmax.f32 %v1672_v40, %v1680_v36  ;;  %v1835_v57 = vpack.c.bf16 %v1749_v42, %v1749_v42  ;;  %v2163_v7 = vld [vmem:[#allocation2 + $0x3c] sm:$0x1] }
 0x1bb   : > { %v2063_v54 = vsel %vm1980_vm6, %v2062_v45, %v2061_v49  ;;  %v2300_v11 = vsel %vm18945_vm3, %v2295_v55, %v2299_v33  ;;  %v1077_v26 = vrot.slane %v957_v2, 2  ;;  %v1078_v31 = vrot.slane %v957_v2, 4 }
 0x1bc   : > { %v1836_v28 = vpack.c.bf16 %v1750_v19, %v1750_v19  ;;  %v1837_v0 = vpack.c.bf16 %v1751_v52, %v1751_v52  ;;  %v1838_v53 = vpack.c.bf16 %v1752_v56, %v1752_v56  ;;  %v1963_v62 = vunpack.c.l.b16 %v1835_v57  ;;  %2475 = vst.msk [vmem:[#allocation5 + $0x6c] sm:$0xf] %vm1761_vm4, %v2300_v11  ;;  %2327 = vrot.lane.b32.xlu2 %v2300_v11, %s18561_s16 }
 0x1bd   : > { %v2065_v59 = vsel %vm1983_vm7, %v2064_v39, %v2063_v54  ;;  %v1079_v32 = vrot.slane %v957_v2, 6  ;;  %v12511_v44 = vrot.slane %v957_v2, 9  ;;  %v12512_v21 = vrot.slane %v1077_v26, 9 }
 0x1be   : > { %v1964_v18 = vunpack.c.l.b16 %v1836_v28  ;;  %v1965_v61 = vunpack.c.l.b16 %v1837_v0  ;;  %v1966_v1 = vunpack.c.l.b16 %v1838_v53  ;;  %v921_v4 = vpop.f32.mrf.mxu0  ;;  %v2066_v6 = vrot.slane %v1963_v62, 3 }
 0x1bf   : > { %v922_v12 = vadd.f32 %v19061_v17, %v921_v4  ;;  %v12513_v27 = vrot.slane %v1078_v31, 9  ;;  %v12514_v36 = vrot.slane %v1079_v32, 9  ;;  %v1681_v19 = vmax.f32 %v957_v2, %v12511_v44 }
 0x1c0   : > { %v2068_v41 = vrot.slane %v1964_v18, 2  ;;  %v2070_v8 = vrot.slane %v1965_v61, 1  ;;  %v2098_v9 = vpack.c.b16 %v1966_v1, %v1966_v1  ;;  %v2067_v10 = vsel %vm1986_vm9, %v2066_v6, %v2065_v59 }
 0x1c1   : > { %v958_v34 = vmax.f32 %v922_v12, 0.0  ;;  %v1682_v58 = vmax.f32 %v1077_v26, %v12512_v21  ;;  %v1683_v57 = vmax.f32 %v1078_v31, %v12513_v27  ;;  %v1684_v5 = vmax.f32 %v1079_v32, %v12514_v36 }
 0x1c2   : > { %v2069_v13 = vsel %vm1989_vm10, %v2068_v41, %v2067_v10  ;;  %v2164_v23 = vsel %vm18904_vm13, %v2098_v9, %v2163_v7 }
 0x1c3   : > { %v2071_v24 = vsel %vm1992_vm11, %v2070_v8, %v2069_v13  ;;  %2165 = vst [vmem:[#allocation2 + $0x3c] sm:$0x1] %v2164_v23  ;;  %v1080_v3 = vrot.slane %v958_v34, 2  ;;  %v1081_v35 = vrot.slane %v958_v34, 4  ;;  %v1082_v38 = vrot.slane %v958_v34, 6 }
 0x1c4   : > { %v2097_v15 = vpack.c.b16 %v2071_v24, %v2071_v24  ;;  %v12515_v42 = vrot.slane %v958_v34, 9  ;;  %2485 = vrot.lane.b32.xlu2 %v19027_v51, %s18561_s16  ;;  %v16911_v13 = vld [vmem:[#allocation5 + $0x2c] sm:$0xf] }
 0x1c5   : > { %v12516_v46 = vrot.slane %v1080_v3, 9  ;;  %v12517_v48 = vrot.slane %v1081_v35, 9  ;;  %v12518_v49 = vrot.slane %v1082_v38, 9 }
 0x1c6   : > { %v2161_v40 = vsel %vm18915_vm14, %v2097_v15, %v2160_v20  ;;  %v924_v16 = vpop.f32.mrf.mxu0  ;;  %v1685_v28 = vmax.f32 %v958_v34, %v12515_v42 }
 0x1c7   : > { %2162 = vst [vmem:[#allocation2 + $0x38] sm:$0xf] %v2161_v40  ;;  %v925_v37 = vadd.f32 %v19061_v17, %v924_v16  ;;  %v1686_v62 = vmax.f32 %v1080_v3, %v12516_v46  ;;  %v1687_v55 = vmax.f32 %v1081_v35, %v12517_v48  ;;  %v1688_v18 = vmax.f32 %v1082_v38, %v12518_v49 }
 0x1c8   : > { %v2423_v45 = vpop.permute.xlu2 %2422 }
 0x1c9   : > { %2443 = vst.msk [vmem:[#allocation5 + $0x40] sm:$0xf] %vm2339_vm2, %v2423_v45  ;;  %v959_v52 = vmax.f32 %v925_v37, 0.0 }
 0x1ca   : > { %v19215_v56 = vld [vmem:[#allocation2 + $0x3c] sm:$0x1] }
 0x1cb   : > { %v1083_v0 = vrot.slane %v959_v52, 2  ;;  %v1084_v53 = vrot.slane %v959_v52, 4  ;;  %v1085_v54 = vrot.slane %v959_v52, 6  ;;  %v12519_v39 = vrot.slane %v959_v52, 9 }
 0x1cc   : > { %v2311_v61 = vshll.u32 %v19215_v56, 16  ;;  %v2397_v8 = vrot.slane %v19215_v56, 5  ;;  %2491 = vrot.lane.b32.xlu2 %v19134_v43, %s18561_s16 }
 0x1cd   : > { %v12520_v1 = vrot.slane %v1083_v0, 9  ;;  %v12521_v2 = vrot.slane %v1084_v53, 9  ;;  %v12522_v4 = vrot.slane %v1085_v54, 9  ;;  %v1689_v51 = vmax.f32 %v959_v52, %v12519_v39 }
 0x1ce   : > { %v926_v6 = vpop.f32.mrf.mxu0  ;;  %v2186_v7 = vld [vmem:[#allocation2 + $0x38] sm:$0xf] }
 0x1cf   : > { %v927_v33 = vadd.f32 %v19061_v17, %v926_v6  ;;  %2428 = vrot.lane.b32.xlu0 %v2186_v7, %s18561_s16  ;;  %2199 = vst.msk [vmem:[#allocation5 + $0x8c] sm:$0xf] %vm1761_vm4, %v2186_v7  ;;  %v2302_v59 = vshrl.u32 %v2186_v7, 16  ;;  %v2305_v41 = vshll.u32 %v2186_v7, 16  ;;  %v1690_v9 = vmax.f32 %v1083_v0, %v12520_v1 }
 0x1d0   : > { %v1691_v10 = vmax.f32 %v1084_v53, %v12521_v2  ;;  %v1692_v11 = vmax.f32 %v1085_v54, %v12522_v4  ;;  %v1753_v12 = vmax.f32 %v1681_v19, %v1689_v51  ;;  %2520 = vst.msk [vmem:[#allocation5 + $0x70] sm:$0xf] %vm1761_vm4, %v2186_v7  ;;  %v12561_v20 = vld [vmem:[#allocation5 + $0x3c] sm:$0xf0]  ;;  %v12534_v19 = vrot.slane %v2186_v7, 9 }
 0x1d1   : > { %v960_v23 = vmax.f32 %v927_v33, 0.0  ;;  %v12564_v26 = vor.u32 %v16911_v13, %v12561_v20  ;;  %v2304_v24 = vrot.slane %v2302_v59, 4  ;;  %v2307_v17 = vrot.slane %v2305_v41, 5 }
 0x1d2   : > { %v1754_v31 = vmax.f32 %v1682_v58, %v1690_v9  ;;  %v1755_v32 = vmax.f32 %v1683_v57, %v1691_v10  ;;  %v1756_v34 = vmax.f32 %v1684_v5, %v1692_v11  ;;  %v1839_v15 = vpack.c.bf16 %v1753_v12, %v1753_v12  ;;  %v2169_v12 = vld [vmem:[#allocation2 + $0x44] sm:$0x1] }
 0x1d3   : > { %v1086_v3 = vrot.slane %v960_v23, 2  ;;  %v1087_v35 = vrot.slane %v960_v23, 4  ;;  %v1088_v38 = vrot.slane %v960_v23, 6  ;;  %v12523_v40 = vrot.slane %v960_v23, 9  ;;  %3038 = vmatmul.bf16.gmra.mxu2 %v12564_v26 }
 0x1d4   : > { %v1840_v44 = vpack.c.bf16 %v1754_v31, %v1754_v31  ;;  %v1841_v16 = vpack.c.bf16 %v1755_v32, %v1755_v32  ;;  %v1842_v21 = vpack.c.bf16 %v1756_v34, %v1756_v34  ;;  %v1967_v27 = vunpack.c.l.b16 %v1839_v15 }
 0x1d5   : > { %v12524_v36 = vrot.slane %v1086_v3, 9  ;;  %v12525_v42 = vrot.slane %v1087_v35, 9  ;;  %v12526_v37 = vrot.slane %v1088_v38, 9  ;;  %v1693_v45 = vmax.f32 %v960_v23, %v12523_v40  ;;  %v2322_v53 = vpop.permute.xlu1 %2321 }
 0x1d6   : > { %v1968_v46 = vunpack.c.l.b16 %v1840_v44  ;;  %v1969_v48 = vunpack.c.l.b16 %v1841_v16  ;;  %v1970_v49 = vunpack.c.l.b16 %v1842_v21  ;;  %v2072_v57 = vrot.slane %v1967_v27, 7  ;;  %2343 = vst.msk [vmem:[#allocation5 + $0x3c] sm:$0xf] %vm2339_vm2, %v2322_v53  ;;  %v2190_v16 = vld [vmem:[#allocation2 + $0x48] sm:$0xf] }
 0x1d7   : > { %v1694_v52 = vmax.f32 %v1086_v3, %v12524_v36  ;;  %v1695_v56 = vmax.f32 %v1087_v35, %v12525_v42  ;;  %v1696_v43 = vmax.f32 %v1088_v38, %v12526_v37  ;;  %v1757_v58 = vmax.f32 %v1685_v28, %v1693_v45  ;;  %2544 = vst.msk [vmem:[#allocation5 + $0x20] sm:$0xf] %vm2339_vm2, %v2322_v53  ;;  %v2166_v35 = vld [vmem:[#allocation2 + $0x40] sm:$0xf]  ;;  %v2191_v21 = vld [vmem:[#allocation2 + $0x4c] sm:$0x1] }
 0x1d8   : > { %v2073_v5 = vrot.slane %v1968_v46, 6  ;;  %v2075_v0 = vrot.slane %v1969_v48, 5  ;;  %v2308_v54 = vor.u32 %v2307_v17, %v2304_v24  ;;  %v2313_v7 = vrot.slane %v2311_v61, 5  ;;  %v12559_v17 = vld [vmem:[#allocation5 + $0x28] sm:$0xf] }
 0x1d9   : > { %v1758_v39 = vmax.f32 %v1686_v62, %v1694_v52  ;;  %v1759_v1 = vmax.f32 %v1687_v55, %v1695_v56  ;;  %v1760_v2 = vmax.f32 %v1688_v18, %v1696_v43  ;;  %v1843_v4 = vpack.c.bf16 %v1757_v58, %v1757_v58  ;;  %2522 = vst.msk [vmem:[#allocation5 + $0x98] sm:$0xf] %vm1761_vm4, %v2190_v16 }
 0x1da   : > { %v2074_v51 = vsel %vm1977_vm5, %v2073_v5, %v2072_v57  ;;  %v2309_v6 = vrot.slane %v2308_v54, 4  ;;  %v19230_v28 = vsel %vm18974_vm0, %v12534_v19, %v2397_v8  ;;  %v2077_v61 = vrot.slane %v1970_v49, 4 }
 0x1db   : > { %v1844_v33 = vpack.c.bf16 %v1758_v39, %v1758_v39  ;;  %v1845_v59 = vpack.c.bf16 %v1759_v1, %v1759_v1  ;;  %v1846_v41 = vpack.c.bf16 %v1760_v2, %v1760_v2  ;;  %2414 = vst.msk [vmem:[#allocation5 + $0x90] sm:$0xf] %vm1761_vm4, %v19230_v28  ;;  %v2076_v62 = vsel %vm1980_vm6, %v2075_v0, %v2074_v51 }
 0x1dc   : > { %v1971_v55 = vunpack.c.l.b16 %v1843_v4  ;;  %v2314_v18 = vsel %vm18945_vm3, %v2309_v6, %v2313_v7  ;;  %2564 = vst.msk [vmem:[#allocation5 + $0x74] sm:$0xf] %vm1761_vm4, %v19230_v28  ;;  %v2078_v13 = vsel %vm1983_vm7, %v2077_v61, %v2076_v62  ;;  %v12536_v27 = vrot.slane %v2190_v16, 9  ;;  %v19289_v61 = vld [vmem:[%s20112_s4] ss:$0 sm:$0xff] }
 0x1dd   : > { %v1972_v9 = vunpack.c.l.b16 %v1844_v33  ;;  %v1973_v10 = vunpack.c.l.b16 %v1845_v59  ;;  %v1974_v8 = vunpack.c.l.b16 %v1846_v41  ;;  %2476 = vst.msk [vmem:[#allocation5 + $0x80] sm:$0xf] %vm1761_vm4, %v2314_v18  ;;  %2329 = vrot.lane.b32.xlu0 %v2314_v18, %s18561_s16  ;;  %v16913_v31 = vld [vmem:[#allocation5 + $0x38] sm:$0xf0]  ;;  %v2555_v36 = vrot.slane %v2191_v21, 5  ;;  %v16957_v59 = vld [vmem:[#allocation11 + $0xf8] sm:$0xff] }
 0x1de   : > { %v2079_v11 = vrot.slane %v1971_v55, 3  ;;  %v12560_v15 = vor.u32 %v16913_v31, %v12559_v17  ;;  %v2524_v57 = vshrl.u32 %v2190_v16, 16  ;;  %v2527_v5 = vshll.u32 %v2190_v16, 16  ;;  %3083 = vmatpush.bf16.msrb.mxu1 %v16957_v59  ;;  %v16952_v17 = vld [vmem:[#allocation11 + $0xd0] sm:$0xff]  ;;  %v16947_v31 = vld [vmem:[#allocation11 + $0xa8] sm:$0xff] }
 0x1df   : > { %v2081_v20 = vrot.slane %v1972_v9, 2  ;;  %v2083_v23 = vrot.slane %v1973_v10, 1  ;;  %v2100_v26 = vpack.c.b16 %v1974_v8, %v1974_v8  ;;  %v2556_v60 = vsel %vm18974_vm0, %v12536_v27, %v2555_v36  ;;  %v16955_v10 = vld [vmem:[#allocation11 + $0xe8] sm:$0xff]  ;;  %v16944_v16 = vld [vmem:[#allocation11 + $0x90] sm:$0xff] }
 0x1e0   : > { %v2080_v24 = vsel %vm1986_vm9, %v2079_v11, %v2078_v13  ;;  %3009 = vmatmul.bf16.gmra.mxu1 %v12560_v15  ;;  %2566 = vst.msk [vmem:[#allocation5 + $0x9c] sm:$0xf] %vm1761_vm4, %v2556_v60  ;;  %v2526_v53 = vrot.slane %v2524_v57, 4  ;;  %v2529_v54 = vrot.slane %v2527_v5, 5  ;;  %v2533_v39 = vshll.u32 %v2191_v21, 16  ;;  %v16946_v15 = vld [vmem:[#allocation11 + $0xa0] sm:$0xff] }
 0x1e1   : > { %v2082_v32 = vsel %vm1989_vm10, %v2081_v20, %v2080_v24  ;;  %v2170_v34 = vsel %vm18904_vm13, %v2100_v26, %v2169_v12  ;;  %v16954_v12 = vld [vmem:[#allocation11 + $0xe0] sm:$0xff]  ;;  %v16953_v26 = vld [vmem:[#allocation11 + $0xd8] sm:$0xff]  ;;  %v16948_v24 = vld [vmem:[#allocation11 + $0xb0] sm:$0xff]  ;;  %vm3485_vm9 = vcmask 1041408   ;;  %vm3507_vm13 = vsmask.f32 1280 }
 0x1e2   : > { %v2084_v3 = vsel %vm1992_vm11, %v2083_v23, %v2082_v32  ;;  %2171 = vst [vmem:[#allocation2 + $0x44] sm:$0x1] %v2170_v34  ;;  %v2535_v6 = vrot.slane %v2533_v39, 5  ;;  %v16949_v23 = vld [vmem:[#allocation11 + $0xb8] sm:$0xff]  ;;  %v16951_v32 = vld [vmem:[#allocation11 + $0xc8] sm:$0xff]  ;;  %vm3488_vm11 = vcmask 1043458  }
 0x1e3   : > { %v2099_v38 = vpack.c.b16 %v2084_v3, %v2084_v3  ;;  %3054 = vmatpush.bf16.msra.mxu3 %v16949_v23  ;;  %v16950_v3 = vld [vmem:[#allocation11 + $0xc0] sm:$0xff] }
 0x1e5   : > { %v2167_v40 = vsel %vm18915_vm14, %v2099_v38, %v2166_v35  ;;  %2487 = vrot.lane.b32.xlu0 %v19066_v22, %s18561_s16  ;;  %v16961_v35 = vld [vmem:[#allocation11 + $0x118] sm:$0xff]  ;;  %v16960_v38 = vld [vmem:[#allocation11 + $0x110] sm:$0xff]  ;;  %vm3508_vm14 = vsmask.f32 3336 }
 0x1e6   : > { %2168 = vst [vmem:[#allocation2 + $0x40] sm:$0xf] %v2167_v40  ;;  %3116 = vmatpush.bf16.msrb.mxu2 %v16961_v35 }
 0x1e7   : > { %3055 = vmatpush.bf16.msra.mxu3 %v16948_v24  ;;  %v16920_v24 = vld [vmem:[#allocation5 + $0x70] sm:$0xf0] }
 0x1e9   : > { %v2425_v44 = vpop.permute.xlu2 %2424  ;;  %v2189_v50 = vld [vmem:[#allocation2 + $0x44] sm:$0x1] }
 0x1ea   : > { %2444 = vst.msk [vmem:[#allocation5 + $0x54] sm:$0xf] %vm2339_vm2, %v2425_v44  ;;  %v2481_v37 = vrot.slane %v2189_v50, 5  ;;  %v16945_v44 = vld [vmem:[#allocation11 + $0x98] sm:$0xff]  ;;  %3117 = vmatpush.bf16.msrb.mxu2 %v16960_v38 }
 0x1eb   : > { %3056 = vmatpush.bf16.msra.mxu3 %v16947_v31 }
 0x1ed   : > { %2493 = vrot.lane.b32.xlu0 %v19179_v63, %s18561_s16  ;;  %v2188_v42 = vld [vmem:[#allocation2 + $0x40] sm:$0xf]  ;;  %v2458_v63 = vshll.u32 %v2189_v50, 16 }
 0x1ee   : > { %2430 = vrot.lane.b32.xlu1 %v2188_v42, %s18561_s16  ;;  %2521 = vst.msk [vmem:[#allocation5 + $0x84] sm:$0xf] %vm1761_vm4, %v2188_v42  ;;  %v12535_v22 = vrot.slane %v2188_v42, 9  ;;  %v2449_v45 = vshrl.u32 %v2188_v42, 16  ;;  %v2452_v46 = vshll.u32 %v2188_v42, 16  ;;  %v16943_v42 = vld [vmem:[#allocation11 + $0x88] sm:$0xff] }
 0x1ef   : > { %v2460_v58 = vrot.slane %v2458_v63, 5  ;;  %3057 = vmatpush.bf16.msra.mxu3 %v16946_v15 }
 0x1f0   : > { %v2482_v48 = vsel %vm18974_vm0, %v12535_v22, %v2481_v37  ;;  %v2451_v49 = vrot.slane %v2449_v45, 4  ;;  %v2454_v19 = vrot.slane %v2452_v46, 5  ;;  %v2324_v56 = vpop.permute.xlu1 %2323  ;;  %v16959_v37 = vld [vmem:[#allocation11 + $0x108] sm:$0xff]  ;;  %v16942_v45 = vld [vmem:[#allocation11 + $0x80] sm:$0xff]  ;;  %vm3440_vm0 = vsmask.f32 2306 }
 0x1f1   : > { %2565 = vst.msk [vmem:[#allocation5 + $0x88] sm:$0xf] %vm1761_vm4, %v2482_v48  ;;  %2497 = vrot.lane.b32.xlu2 %v2482_v48, %s18561_s16  ;;  %v16916_v62 = vld [vmem:[#allocation5 + $0x54] sm:$0xf]  ;;  %3118 = vmatpush.bf16.msrb.mxu2 %v16959_v37  ;;  %v16958_v46 = vld [vmem:[#allocation11 + $0x100] sm:$0xff] }
 0x1f2   : > { %v2455_v52 = vor.u32 %v2454_v19, %v2451_v49  ;;  %2344 = vst.msk [vmem:[#allocation5 + $0x50] sm:$0xf] %vm2339_vm2, %v2324_v56 }
 0x1f3   : > { %2545 = vst.msk [vmem:[#allocation5 + $0x34] sm:$0xf] %vm2339_vm2, %v2324_v56  ;;  %3058 = vmatpush.bf16.msra.mxu3 %v16945_v44 }
 0x1f4   : > { %v2456_v43 = vrot.slane %v2455_v52, 4 }
 0x1f5   : > { %3119 = vmatpush.bf16.msrb.mxu2 %v16958_v46 }
 0x1f6   : > { %2483 = vrot.lane.b32.xlu1 %v18983_v29, %s18561_s16  ;;  %v2461_v25 = vsel %vm18945_vm3, %v2456_v43, %v2460_v58  ;;  %v2530_v29 = vor.u32 %v2529_v54, %v2526_v53  ;;  %v12549_v43 = vld [vmem:[#allocation5 + $0x1c] sm:$0xf0]  ;;  %v16907_v58 = vld [vmem:[#allocation5 + $0xc] sm:$0xf] }
 0x1f7   : > { %2477 = vst.msk [vmem:[#allocation5 + $0x94] sm:$0xf] %vm1761_vm4, %v2461_v25  ;;  %2537 = vrot.lane.b32.xlu0 %v2461_v25, %s18561_s16  ;;  %3059 = vmatpush.bf16.msra.mxu3 %v16944_v16  ;;  %v12552_v25 = vor.u32 %v16907_v58, %v12549_v43  ;;  %vm2983_vm4 = vcmask 523264   ;;  %v16925_v16 = vld [vmem:[#allocation5 + $0x98] sm:$0xf0] }
 0x1f8   : > { %v2531_v51 = vrot.slane %v2530_v29, 4  ;;  %v12615_v44 = vld [vmem:[#allocation5 + $0x88] sm:$0xf] }
 0x1f9   : > { %v2326_v0 = vpop.permute.xlu2 %2325  ;;  %v12579_v1 = vld [vmem:[#allocation5 + $0x50] sm:$0xf] }
 0x1fa   : > { %2345 = vst.msk [vmem:[#allocation5 + $0x64] sm:$0xf] %vm2339_vm2, %v2326_v0 }
 0x1fb   : > { %2546 = vst.msk [vmem:[#allocation5 + $0x48] sm:$0xf] %vm2339_vm2, %v2326_v0  ;;  %3060 = vmatpush.bf16.msra.mxu3 %v16943_v42 }
 0x1fe   : > { %2489 = vrot.lane.b32.xlu1 %v19099_v14, %s18561_s16  ;;  %v2536_v14 = vsel %vm18945_vm3, %v2531_v51, %v2535_v6  ;;  %v16910_v51 = vld [vmem:[#allocation5 + $0x20] sm:$0xf0]  ;;  %v16912_v6 = vld [vmem:[#allocation5 + $0x34] sm:$0xf]  ;;  %vm3510_vm3 = vsmask.f32 5392 }
 0x1ff   : > { %3061 = vmatpush.bf16.msra.mxu3 %v16942_v45 }
 0x201   : > { %v16918_v2 = vld [vmem:[#allocation5 + $0x60] sm:$0xf0] }
 0x202   : > { %v12580_v4 = vor.u32 %v16918_v2, %v12579_v1 }
 0x204   : > { %3014 = vmatmul.bf16.gmra.mxu1 %v12580_v4  ;;  %v12569_v4 = vld [vmem:[#allocation5 + $0x44] sm:$0xf0] }
 0x206   : > { %2495 = vrot.lane.b32.xlu1 %v19230_v28, %s18561_s16  ;;  %v16956_v28 = vld [vmem:[#allocation11 + $0xf0] sm:$0xff] }
 0x207   : > { %3084 = vmatpush.bf16.msrb.mxu1 %v16956_v28 }
 0x20b   : > { %3085 = vmatpush.bf16.msrb.mxu1 %v16955_v10 }
 0x20e   : > { %2539 = vrot.lane.b32.xlu1 %v2536_v14, %s18561_s16  ;;  %v12572_v14 = vor.u32 %v16912_v6, %v12569_v4  ;;  %s20197_s16 = smov %s20196_s19 }
 0x20f   : > { %3086 = vmatpush.bf16.msrb.mxu1 %v16954_v12  ;;  %s18475_s24 = scalar_lea.hbm %s20197_s16, 2  ;;  %p18476_p3 = scmp.lt.s32.totalorder %s18470_s3, %s20197_s16 }
 0x210   : > { %p18477_p4 = scmp.lt.s32.totalorder %s18475_s24, %s18471_s26 }
 0x212   : > { %p18478_p7 = por %p18477_p4, %p18476_p3 }
 0x213   : > { %3087 = vmatpush.bf16.msrb.mxu1 %v16953_v26 }
 0x214   : > { %p18479_p8 = pnand %p18478_p7, %p18474_p2 }
 0x216   : > { %v2328_v7 = vpop.permute.xlu2 %2327 }
 0x217   : > { %2346 = vst.msk [vmem:[#allocation5 + $0x78] sm:$0xf] %vm2339_vm2, %v2328_v7  ;;  %3088 = vmatpush.bf16.msrb.mxu1 %v16952_v17 }
 0x218   : > { %2547 = vst.msk [vmem:[#allocation5 + $0x5c] sm:$0xf] %vm2339_vm2, %v2328_v7 }
 0x21b   : > { %3089 = vmatpush.bf16.msrb.mxu1 %v16951_v32  ;;  %v12595_v32 = vld [vmem:[#allocation5 + $0x60] sm:$0xf] }
 0x21e   : > { %v2486_v41 = vpop.permute.xlu2 %2485  ;;  %v12599_v27 = vld [vmem:[#allocation5 + $0x78] sm:$0xf] }
 0x21f   : > { %2508 = vst.msk [vmem:[#allocation5 + $0x1c] sm:$0xf] %vm2339_vm2, %v2486_v41  ;;  %3090 = vmatpush.bf16.msrb.mxu1 %v16950_v3 }
 0x220   : > { %v2427_v33 = vpop.permute.xlu0 %2426 }
 0x221   : > { %2445 = vst.msk [vmem:[#allocation5 + $0x68] sm:$0xf] %vm2339_vm2, %v2427_v33  ;;  %v3005_v9 = vpop.f32.mrf.mxu1  ;;  %v12555_v33 = vld [vmem:[#allocation5 + $0x10] sm:$0xf] }
 0x222   : > { %v3006_v8 = vadd.f32 %v19289_v61, %v3005_v9  ;;  %v12556_v59 = vor.u32 %v16910_v51, %v12555_v33  ;;  %v16917_v9 = vld [vmem:[#allocation5 + $0x5c] sm:$0xf]  ;;  %v3481_v51 = vrot.slane %v18854_v30, 2 }
 0x226   : > { %v2492_v18 = vpop.permute.xlu2 %2491  ;;  %v16909_v1 = vld [vmem:[#allocation5 + $0x18] sm:$0xf0] }
 0x227   : > { %2511 = vst.msk [vmem:[#allocation5 + $0x58] sm:$0xf] %vm2339_vm2, %v2492_v18  ;;  %v16915_v18 = vld [vmem:[#allocation5 + $0x48] sm:$0xf0] }
 0x228   : > { %v12581_v55 = vld [vmem:[#allocation5 + $0x64] sm:$0xf0] }
 0x229   : > { %v12584_v47 = vor.u32 %v16916_v62, %v12581_v55  ;;  %v19300_v60 = vpop.f32.mrf.mxu1 }
 0x22b   : > { %3043 = vmatmul.bf16.gmra.mxu2 %v12584_v47 }
 0x22e   : > { %v3034_v11 = vpop.f32.mrf.mxu2 }
 0x22f   : > { %v19292_v13 = vadd.f32 %v3034_v11, %v3006_v8  ;;  %v12575_v8 = vld [vmem:[#allocation5 + $0x38] sm:$0xf] }
 0x230   : > { %v12576_v11 = vor.u32 %v16915_v18, %v12575_v8 }
 0x236   : > { %v19298_v21 = vpop.f32.mrf.mxu2 }
 0x241   : > { %v2429_v20 = vpop.permute.xlu0 %2428 }
 0x242   : > { %2446 = vst.msk [vmem:[#allocation5 + $0x7c] sm:$0xf] %vm2339_vm2, %v2429_v20  ;;  %v12587_v20 = vld [vmem:[#allocation5 + $0x58] sm:$0xf] }
 0x249   : > { %v16921_v5 = vld [vmem:[#allocation5 + $0x7c] sm:$0xf] }
 0x24b   : > { %v2498_v34 = vpop.permute.xlu2 %2497 }
 0x24c   : > { %2514 = vst.msk [vmem:[#allocation5 + $0x94] sm:$0xf] %vm2339_vm2, %v2498_v34  ;;  %v12596_v34 = vor.u32 %v16920_v24, %v12595_v32 }
 0x24f   : > { %v2330_v40 = vpop.permute.xlu0 %2329 }
 0x250   : > { %2347 = vst.msk [vmem:[#allocation5 + $0x8c] sm:$0xf] %vm2339_vm2, %v2330_v40 }
 0x251   : > { %2548 = vst.msk [vmem:[#allocation5 + $0x70] sm:$0xf] %vm2339_vm2, %v2330_v40 }
 0x253   : > { %v16924_v3 = vld [vmem:[#allocation5 + $0x90] sm:$0xf0] }
 0x256   : > { %v3039_v48 = vpop.f32.mrf.mxu2 }
 0x257   : > { %v2488_v50 = vpop.permute.xlu0 %2487  ;;  %v16923_v36 = vld [vmem:[#allocation5 + $0x88] sm:$0xf0] }
 0x258   : > { %2509 = vst.msk [vmem:[#allocation5 + $0x30] sm:$0xf] %vm2339_vm2, %v2488_v50  ;;  %v12600_v22 = vor.u32 %v16923_v36, %v12599_v27  ;;  %v12589_v47 = vld [vmem:[#allocation5 + $0x6c] sm:$0xf0]  ;;  %v12616_v50 = vor.u32 %v16925_v16, %v12615_v44 }
 0x259   : > { %v12592_v10 = vor.u32 %v16917_v9, %v12589_v47 }
 0x25a   : > { %3019 = vmatmul.bf16.gmra.mxu1 %v12600_v22 }
 0x25d   : > { %v3010_v19 = vpop.f32.mrf.mxu1 }
 0x25e   : > { %v3011_v52 = vadd.f32 %v19289_v61, %v3010_v19  ;;  %v3041_v40 = vpop.f32.mrf.mxu2 }
 0x25f   : > { %v2494_v49 = vpop.permute.xlu0 %2493  ;;  %v12567_v62 = vld [vmem:[#allocation5 + $0x30] sm:$0xf] }
 0x260   : > { %2512 = vst.msk [vmem:[#allocation5 + $0x6c] sm:$0xf] %vm2339_vm2, %v2494_v49  ;;  %v2431_v63 = vpop.permute.xlu1 %2430  ;;  %v19306_v56 = vadd.f32 %v3039_v48, %v3011_v52 }
 0x261   : > { %2447 = vst.msk [vmem:[#allocation5 + $0x90] sm:$0xf] %vm2339_vm2, %v2431_v63 }
 0x265   : > { %v3012_v38 = vpop.f32.mrf.mxu1 }
 0x267   : > { %v16919_v12 = vld [vmem:[#allocation5 + $0x68] sm:$0xf0] }
 0x268   : > { %v2484_v57 = vpop.permute.xlu1 %2483  ;;  %v12601_v0 = vld [vmem:[#allocation5 + $0x8c] sm:$0xf0]  ;;  %v12588_v23 = vor.u32 %v16919_v12, %v12587_v20  ;;  %v19344_v20 = vsel %vm3488_vm11, %v18854_v30, %v3481_v51 }
 0x269   : > { %2507 = vst.msk [vmem:[#allocation5 + $0x8] sm:$0xf] %vm2339_vm2, %v2484_v57  ;;  %v2538_v53 = vpop.permute.xlu0 %2537  ;;  %v12604_v54 = vor.u32 %v16921_v5, %v12601_v0  ;;  %v3008_v0 = vadd.f32 %v19289_v61, %v19300_v60 }
 0x26a   : > { %3091 = vmatmul.bf16.vlgmr.msrb.gmra.mxu1 %v12552_v25  ;;  %2549 = vst.msk [vmem:[#allocation5 + $0x84] sm:$0xf] %vm2339_vm2, %v2538_v53 }
 0x26b   : > { %3048 = vmatmul.bf16.gmra.mxu2 %v12604_v54 }
 0x270   : > { %v2490_v29 = vpop.permute.xlu1 %2489  ;;  %v12547_v39 = vld [vmem:[#allocation5 + $0x8] sm:$0xf] }
 0x271   : > { %2510 = vst.msk [vmem:[#allocation5 + $0x44] sm:$0xf] %vm2339_vm2, %v2490_v29  ;;  %v12548_v2 = vor.u32 %v16909_v1, %v12547_v39  ;;  %v16922_v17 = vld [vmem:[#allocation5 + $0x84] sm:$0xf]  ;;  %v3037_v39 = vadd.f32 %v19298_v21, %v3008_v0 }
 0x273   : > { %3062 = vmatmul.bf16.vlgmr.msra.gmra.mxu3 %v12548_v2 }
 0x278   : > { %v2496_v7 = vpop.permute.xlu1 %2495  ;;  %v16914_v41 = vld [vmem:[#allocation5 + $0x40] sm:$0xf0] }
 0x279   : > { %2513 = vst.msk [vmem:[#allocation5 + $0x80] sm:$0xf] %vm2339_vm2, %v2496_v7  ;;  %v12568_v55 = vor.u32 %v16914_v41, %v12567_v62  ;;  %v19339_v62 = vsel %vm3485_vm9, %v18854_v30, %v3481_v51 }
 0x27a   : > { %3096 = vmatmul.bf16.gmra.mxu1 %v12572_v14  ;;  %v3514_v30 = vshrl.u32 %v19339_v62, 16 }
 0x27b   : > { %12761 = vmatmul.msk.bf16.vlgmr.msrb.gmra.mxu2 %vm2983_vm4, %v12556_v59 }
 0x280   : > { %v2540_v28 = vpop.permute.xlu1 %2539  ;;  %v12607_v15 = vld [vmem:[#allocation5 + $0x80] sm:$0xf] }
 0x281   : > { %2550 = vst.msk [vmem:[#allocation5 + $0x98] sm:$0xf] %vm2339_vm2, %v2540_v28  ;;  %v12608_v35 = vor.u32 %v16924_v3, %v12607_v15  ;;  %v3015_v27 = vpop.f32.mrf.mxu1  ;;  %vm19374_vm2 = vmand %vm2364_vm12, %vm3440_vm0 }
 0x282   : > { %v3016_v36 = vadd.f32 %v19289_v61, %v3015_v27 }
 0x283   : > { %3067 = vmatmul.bf16.gmra.mxu3 %v12568_v55  ;;  %v3013_v55 = vadd.f32 %v19289_v61, %v3012_v38 }
 0x288   : > { %v12609_v26 = vld [vmem:[#allocation5 + $0x94] sm:$0xf0] }
 0x289   : > { %v12612_v31 = vor.u32 %v16922_v17, %v12609_v26  ;;  %v19320_v37 = vpop.f32.mrf.mxu1 }
 0x28a   : > { %3101 = vmatmul.bf16.gmra.mxu1 %v12592_v10 }
 0x28b   : > { %12762 = vmatmul.msk.bf16.gmra.mxu2 %vm2983_vm4, %v12576_v11 }
 0x293   : > { %3072 = vmatmul.bf16.gmra.mxu3 %v12588_v23 }
 0x29a   : > { %3106 = vmatmul.bf16.gmra.mxu1 %v12612_v31 }
 0x29b   : > { %12763 = vmatmul.msk.bf16.gmra.mxu2 %vm2983_vm4, %v12596_v34 }
 0x2a3   : > { %3077 = vmatmul.bf16.gmra.mxu3 %v12608_v35 }
 0x2ab   : > { %12764 = vmatmul.msk.bf16.gmra.mxu2 %vm2983_vm4, %v12616_v50  ;;  %vm19380_vm4 = vmor %vm3507_vm13, %vm3508_vm14  ;;  %vm3587_vm14 = vcmask 1040384  }
 0x2ac   : > { %vm3511_vm12 = vmor %vm19380_vm4, %vm3510_vm3 }
 0x2ad   : > { %vm19394_vm13 = vmor %vm3511_vm12, %vm3512_vm15 }
 0x2ae   : > { %v3044_v42 = vpop.f32.mrf.mxu2  ;;  %vm19434_vm3 = vmor %vm3587_vm14, %vm1977_vm5 }
 0x2af   : > { %v19318_v22 = vadd.f32 %v3044_v42, %v3016_v36  ;;  %vm19449_vm15 = vmor %vm19434_vm3, %vm1983_vm7 }
 0x2b0   : > { %vm19463_vm0 = vmor %vm19449_vm15, %vm1989_vm10  ;;  %vm5105_vm10 = vsmask.f32 1282 }
 0x2b1   : > { %vm19714_vm4 = vmand %vm3485_vm9, %vm5105_vm10  ;;  %vm5150_vm10 = vcmask 1041409  }
 0x2b6   : > { %v19322_v46 = vpop.f32.mrf.mxu2 }
 0x2d7   : > { %v3020_v45 = vpop.f32.mrf.mxu1 }
 0x2d8   : > { %v3021_v49 = vadd.f32 %v19289_v61, %v3020_v45 }
 0x2df   : > { %v19324_v48 = vpop.f32.mrf.mxu1 }
 0x2e7   : > { %v3092_v52 = vpop.f32.mrf.mxu1 }
 0x2ee   : > { %v3049_v19 = vpop.f32.mrf.mxu2 }
 0x2ef   : > { %v19327_v63 = vadd.f32 %v3049_v19, %v3021_v49  ;;  %v3094_v57 = vpop.f32.mrf.mxu1 }
 0x2f6   : > { %v19329_v43 = vpop.f32.mrf.mxu2  ;;  %v3063_v58 = vpop.f32.mrf.mxu3 }
 0x2f7   : > { %v3064_v25 = vadd.f32 %v3063_v58, %v19292_v13  ;;  %v3097_v4 = vpop.f32.mrf.mxu1 }
 0x2f9   : > { %v3093_v5 = vadd.f32 %v3092_v52, %v3064_v25 }
 0x2fe   : > { %v3065_v53 = vpop.f32.mrf.mxu3  ;;  %v3121_v54 = vpop.f32.mrf.mxu2 }
 0x2ff   : > { %v3122_v29 = vadd.f32 %v3121_v54, %v3093_v5  ;;  %v3066_v1 = vadd.f32 %v3065_v53, %v3037_v39  ;;  %v3099_v16 = vpop.f32.mrf.mxu1  ;;  %v19352_v39 = vrot.slane %v3514_v30, 6 }
 0x301   : > { %v3141_v2 = vmax.f32 %v3122_v29, 0.0  ;;  %v3095_v14 = vadd.f32 %v3094_v57, %v3066_v1  ;;  %v3491_v57 = vrot.slane %v19344_v20, 2 }
 0x303   : > { %v3157_v13 = vrot.slane %v3141_v2, 2  ;;  %v3158_v33 = vrot.slane %v3141_v2, 4  ;;  %v3159_v59 = vrot.slane %v3141_v2, 6  ;;  %v12765_v28 = vrot.slane %v3141_v2, 9 }
 0x305   : > { %v12766_v47 = vrot.slane %v3157_v13, 9  ;;  %v12767_v18 = vrot.slane %v3158_v33, 9  ;;  %v12768_v9 = vrot.slane %v3159_v59, 9  ;;  %v3301_v23 = vmax.f32 %v3141_v2, %v12765_v28 }
 0x306   : > { %v3068_v6 = vpop.f32.mrf.mxu3  ;;  %v3123_v7 = vpop.f32.mrf.mxu2  ;;  %v12797_v2 = vrot.slane %v19339_v62, 9 }
 0x307   : > { %v3124_v41 = vadd.f32 %v3123_v7, %v3095_v14  ;;  %v3069_v60 = vadd.f32 %v3068_v6, %v19306_v56  ;;  %v3042_v56 = vadd.f32 %v3041_v40, %v3013_v55  ;;  %v3302_v3 = vmax.f32 %v3157_v13, %v12766_v47 }
 0x308   : > { %v3303_v35 = vmax.f32 %v3158_v33, %v12767_v18  ;;  %v3304_v38 = vmax.f32 %v3159_v59, %v12768_v9  ;;  %v3517_v40 = vshll.u32 %v19339_v62, 16  ;;  %v19360_v59 = vshll.u32 %v3491_v57, 16 }
 0x309   : > { %v3142_v21 = vmax.f32 %v3124_v41, 0.0  ;;  %v3098_v26 = vadd.f32 %v3097_v4, %v3069_v60 }
 0x30a   : > { %v19354_v1 = vrot.slane %v3517_v40, 7 }
 0x30b   : > { %v3160_v10 = vrot.slane %v3142_v21, 2  ;;  %v3161_v8 = vrot.slane %v3142_v21, 4  ;;  %v3162_v11 = vrot.slane %v3142_v21, 6  ;;  %v12769_v12 = vrot.slane %v3142_v21, 9 }
 0x30c   : > { %v3520_v9 = vor.u32 %v19354_v1, %v19352_v39 }
 0x30d   : > { %v12770_v24 = vrot.slane %v3160_v10, 9  ;;  %v12771_v17 = vrot.slane %v3161_v8, 9  ;;  %v12772_v31 = vrot.slane %v3162_v11, 9  ;;  %v3305_v32 = vmax.f32 %v3142_v21, %v12769_v12 }
 0x30e   : > { %v3070_v34 = vpop.f32.mrf.mxu3  ;;  %v3126_v15 = vpop.f32.mrf.mxu2 }
 0x30f   : > { %v3127_v44 = vadd.f32 %v3126_v15, %v3098_v26  ;;  %v3306_v50 = vmax.f32 %v3160_v10, %v12770_v24  ;;  %v3307_v27 = vmax.f32 %v3161_v8, %v12771_v17  ;;  %v3308_v36 = vmax.f32 %v3162_v11, %v12772_v31  ;;  %v3102_v11 = vpop.f32.mrf.mxu1  ;;  %v16986_v15 = vld [vmem:[#allocation13 + $0x74] sm:$0xf0] }
 0x310   : > { %v3333_v42 = vmax.f32 %v3301_v23, %v3305_v32  ;;  %v3071_v45 = vadd.f32 %v3070_v34, %v3042_v56  ;;  %v3018_v10 = vadd.f32 %v19289_v61, %v19320_v37  ;;  %v12897_v34 = vld [vmem:[#allocation13 + $0x70] sm:$0xf]  ;;  %v17082_v37 = vld [vmem:[#allocation13 + $0x374] sm:$0xf0] }
 0x311   : > { %v19348_v49 = vmax.f32 %v3127_v44, 0.0  ;;  %v3334_v19 = vmax.f32 %v3302_v3, %v3306_v50  ;;  %v3335_v52 = vmax.f32 %v3303_v35, %v3307_v27  ;;  %v3336_v58 = vmax.f32 %v3304_v38, %v3308_v36 }
 0x312   : > { %v3355_v25 = vpack.c.bf16 %v3333_v42, %v3333_v42  ;;  %v3100_v4 = vadd.f32 %v3099_v16, %v3071_v45  ;;  %v12898_v42 = vor.u32 %v16986_v15, %v12897_v34 }
 0x313   : > { %v3163_v5 = vrot.slane %v19348_v49, 2  ;;  %v3356_v0 = vpack.c.bf16 %v3334_v19, %v3334_v19  ;;  %v3357_v53 = vpack.c.bf16 %v3335_v52, %v3335_v52  ;;  %v3358_v54 = vpack.c.bf16 %v3336_v58, %v3336_v58 }
 0x314   : > { %v3387_v29 = vunpack.c.l.b16 %v3355_v25  ;;  %v3164_v7 = vrot.slane %v19348_v49, 4  ;;  %v3165_v41 = vrot.slane %v19348_v49, 6  ;;  %v12773_v28 = vrot.slane %v19348_v49, 9  ;;  %4687 = vmatpush.bf16.msrb.mxu3 %v12898_v42 }
 0x315   : > { %v3388_v51 = vunpack.c.l.b16 %v3356_v0  ;;  %v3389_v6 = vunpack.c.l.b16 %v3357_v53  ;;  %v3390_v14 = vunpack.c.l.b16 %v3358_v54  ;;  %v12774_v60 = vrot.slane %v3163_v5, 9  ;;  %v12889_v53 = vld [vmem:[#allocation13 + $0x60] sm:$0xf]  ;;  %v16984_v54 = vld [vmem:[#allocation13 + $0x64] sm:$0xf0] }
 0x316   : > { %v3073_v13 = vpop.f32.mrf.mxu3  ;;  %v3128_v33 = vpop.f32.mrf.mxu2  ;;  %v3403_v21 = vrot.slane %v3387_v29, 7  ;;  %v12775_v23 = vrot.slane %v3164_v7, 9  ;;  %v12776_v17 = vrot.slane %v3165_v41, 9  ;;  %v3309_v31 = vmax.f32 %v19348_v49, %v12773_v28 }
 0x317   : > { %v3404_v55 = vrot.slane %v3388_v51, 6  ;;  %v3406_v47 = vrot.slane %v3389_v6, 5  ;;  %v3129_v18 = vadd.f32 %v3128_v33, %v3100_v4  ;;  %v3074_v8 = vadd.f32 %v3073_v13, %v19318_v22  ;;  %v3442_v22 = vld [vmem:[#allocation3 + $0x4] sm:$0x7] }
 0x318   : > { %v3408_v56 = vrot.slane %v3390_v14, 4  ;;  %v3310_v32 = vmax.f32 %v3163_v5, %v12774_v60  ;;  %v3311_v30 = vmax.f32 %v3164_v7, %v12775_v23  ;;  %v3312_v25 = vmax.f32 %v3165_v41, %v12776_v17  ;;  %v13289_v60 = vld [vmem:[#allocation13 + $0x380] sm:$0xf] }
 0x319   : > { %v3405_v12 = vsel %vm1977_vm5, %v3404_v55, %v3403_v21  ;;  %v3144_v26 = vmax.f32 %v3129_v18, 0.0  ;;  %v3103_v36 = vadd.f32 %v3102_v11, %v3074_v8  ;;  %v12890_v4 = vor.u32 %v16984_v54, %v12889_v53  ;;  %v3104_v18 = vpop.f32.mrf.mxu1 }
 0x31a   : > { %v3407_v24 = vsel %vm1980_vm6, %v3406_v47, %v3405_v12  ;;  %v3525_v51 = vrot.slane %v19360_v59, 7  ;;  %v3047_v6 = vadd.f32 %v19322_v46, %v3018_v10  ;;  %v3521_v13 = vrot.slane %v3520_v9, 2 }
 0x31b   : > { %v3409_v3 = vsel %vm1983_vm7, %v3408_v56, %v3407_v24  ;;  %v3166_v35 = vrot.slane %v3144_v26, 2  ;;  %v3167_v38 = vrot.slane %v3144_v26, 4  ;;  %v3168_v44 = vrot.slane %v3144_v26, 6  ;;  %4688 = vmatpush.bf16.msrb.mxu3 %v12890_v4 }
 0x31c   : > { %v3431_v50 = vpack.c.b16 %v3409_v3, %v3409_v3  ;;  %v12777_v27 = vrot.slane %v3144_v26, 9  ;;  %v3023_v46 = vadd.f32 %v19289_v61, %v19324_v48  ;;  %v19404_v11 = vrot.slane %v3491_v57, 7 }
 0x31d   : > { %v12778_v40 = vrot.slane %v3166_v35, 9  ;;  %v12779_v45 = vrot.slane %v3167_v38, 9  ;;  %v12780_v49 = vrot.slane %v3168_v44, 9 }
 0x31e   : > { %v3075_v19 = vpop.f32.mrf.mxu3  ;;  %v3131_v52 = vpop.f32.mrf.mxu2  ;;  %v3443_v58 = vsel %vm19374_vm2, %v3431_v50, %v3442_v22  ;;  %v3313_v5 = vmax.f32 %v3144_v26, %v12777_v27  ;;  %v3526_v26 = vsel %vm19394_vm13, %v3521_v13, %v3525_v51  ;;  %v19411_v24 = vadd.f32 %v19329_v43, %v3023_v46  ;;  %v3445_v51 = vld [vmem:[#allocation3 + $0x8] sm:$0x7] }
 0x31f   : > { %v3132_v0 = vadd.f32 %v3131_v52, %v3103_v36  ;;  %3444 = vst [vmem:[#allocation3 + $0x4] sm:$0x7] %v3443_v58  ;;  %v3314_v29 = vmax.f32 %v3166_v35, %v12778_v40  ;;  %v3315_v39 = vmax.f32 %v3167_v38, %v12779_v45  ;;  %v3316_v1 = vmax.f32 %v3168_v44, %v12780_v49  ;;  %v12873_v35 = vld [vmem:[#allocation13 + $0x40] sm:$0xf] }
 0x320   : > { %v3337_v14 = vmax.f32 %v3309_v31, %v3313_v5  ;;  %v3076_v55 = vadd.f32 %v3075_v19, %v3047_v6  ;;  %v12881_v31 = vld [vmem:[#allocation13 + $0x50] sm:$0xf] }
 0x321   : > { %v19391_v7 = vmax.f32 %v3132_v0, 0.0  ;;  %v3338_v33 = vmax.f32 %v3310_v32, %v3314_v29  ;;  %v3339_v41 = vmax.f32 %v3311_v30, %v3315_v39  ;;  %v3340_v28 = vmax.f32 %v3312_v25, %v3316_v1  ;;  %v16982_v32 = vld [vmem:[#allocation13 + $0x54] sm:$0xf0]  ;;  %v16980_v30 = vld [vmem:[#allocation13 + $0x44] sm:$0xf0] }
 0x322   : > { %v3359_v21 = vpack.c.bf16 %v3337_v14, %v3337_v14  ;;  %v3105_v22 = vadd.f32 %v3104_v18, %v3076_v55  ;;  %v12882_v42 = vor.u32 %v16982_v32, %v12881_v31  ;;  %v12874_v5 = vor.u32 %v16980_v30, %v12873_v35  ;;  %v3107_v14 = vpop.f32.mrf.mxu1 }
 0x323   : > { %v3169_v47 = vrot.slane %v19391_v7, 2  ;;  %v3170_v59 = vrot.slane %v19391_v7, 4  ;;  %v3360_v9 = vpack.c.bf16 %v3338_v33, %v3338_v33  ;;  %v3361_v10 = vpack.c.bf16 %v3339_v41, %v3339_v41 }
 0x324   : > { %v3362_v8 = vpack.c.bf16 %v3340_v28, %v3340_v28  ;;  %v3391_v12 = vunpack.c.l.b16 %v3359_v21  ;;  %v3171_v56 = vrot.slane %v19391_v7, 6  ;;  %v12781_v23 = vrot.slane %v19391_v7, 9  ;;  %4689 = vmatpush.bf16.msrb.mxu3 %v12882_v42  ;;  %v12865_v28 = vld [vmem:[#allocation13 + $0x30] sm:$0xf] }
 0x325   : > { %v3392_v61 = vunpack.c.l.b16 %v3360_v9  ;;  %v3393_v48 = vunpack.c.l.b16 %v3361_v10  ;;  %v12782_v34 = vrot.slane %v3169_v47, 9  ;;  %v12783_v15 = vrot.slane %v3170_v59, 9  ;;  %v16978_v9 = vld [vmem:[#allocation13 + $0x34] sm:$0xf0] }
 0x326   : > { %v3133_v17 = vpop.f32.mrf.mxu2  ;;  %v19413_v20 = vld [vmem:[#allocation3 + $0x4] sm:$0x7]  ;;  %v3394_v57 = vunpack.c.l.b16 %v3362_v8  ;;  %v3078_v3 = vpop.f32.mrf.mxu3  ;;  %v3410_v43 = vrot.slane %v3391_v12, 7  ;;  %v12784_v50 = vrot.slane %v3171_v56, 9  ;;  %v3317_v27 = vmax.f32 %v19391_v7, %v12781_v23 }
 0x327   : > { %3464 = vst [vmem:[#allocation1 + $0x1] ss:$2 sm:$0xff] %v19413_v20  ;;  %v3482_v38 = vrot.slane %v19413_v20, 2  ;;  %v3411_v44 = vrot.slane %v3392_v61, 6  ;;  %v3413_v16 = vrot.slane %v3393_v48, 5  ;;  %v3134_v36 = vadd.f32 %v3133_v17, %v3105_v22 }
 0x328   : > { %v3079_v19 = vadd.f32 %v3078_v3, %v19327_v63  ;;  %v3415_v53 = vrot.slane %v3394_v57, 4  ;;  %v3318_v54 = vmax.f32 %v3169_v47, %v12782_v34  ;;  %v3319_v6 = vmax.f32 %v3170_v59, %v12783_v15  ;;  %4690 = vmatpush.bf16.msrb.mxu3 %v12874_v5  ;;  %v12857_v34 = vld [vmem:[#allocation13 + $0x20] sm:$0xf]  ;;  %v16976_v15 = vld [vmem:[#allocation13 + $0x24] sm:$0xf0] }
 0x329   : > { %v19420_v40 = vsel %vm3485_vm9, %v19413_v20, %v3482_v38  ;;  %v3494_v45 = vsel %vm3488_vm11, %v19413_v20, %v3482_v38  ;;  %v3412_v49 = vsel %vm1977_vm5, %v3411_v44, %v3410_v43  ;;  %v3146_v29 = vmax.f32 %v3134_v36, 0.0 }
 0x32a   : > { %v3496_v52 = vrot.slane %v3494_v45, 2  ;;  %v3527_v58 = vshrl.u32 %v19420_v40, 16  ;;  %v3530_v25 = vshll.u32 %v19420_v40, 16  ;;  %v3414_v0 = vsel %vm1980_vm6, %v3413_v16, %v3412_v49 }
 0x32b   : > { %v3416_v63 = vsel %vm1983_vm7, %v3415_v53, %v3414_v0  ;;  %v3172_v7 = vrot.slane %v3146_v29, 2  ;;  %v3173_v13 = vrot.slane %v3146_v29, 4  ;;  %v3174_v33 = vrot.slane %v3146_v29, 6  ;;  %v17018_v0 = vld [vmem:[#allocation13 + $0x174] sm:$0xf0] }
 0x32c   : > { %v3529_v39 = vrot.slane %v3527_v58, 6  ;;  %v3532_v1 = vrot.slane %v3530_v25, 7  ;;  %v3536_v4 = vshll.u32 %v3496_v52, 16  ;;  %v3432_v46 = vpack.c.b16 %v3416_v63, %v3416_v63  ;;  %v12849_v53 = vld [vmem:[#allocation13 + $0x10] sm:$0xf] }
 0x32d   : > { %v3320_v18 = vmax.f32 %v3171_v56, %v12784_v50  ;;  %v3108_v47 = vadd.f32 %v3107_v14, %v3079_v19  ;;  %v12785_v10 = vrot.slane %v3146_v29, 9  ;;  %v12786_v8 = vrot.slane %v3172_v7, 9  ;;  %v13025_v19 = vld [vmem:[#allocation13 + $0x170] sm:$0xf] }
 0x32e   : > { %v3136_v41 = vpop.f32.mrf.mxu2  ;;  %v3471_v21 = vld.sshfl [vmem:[#allocation1] sm:$0xff pattern:$0x75643120]  ;;  %v3533_v55 = vor.u32 %v3532_v1, %v3529_v39  ;;  %v12787_v12 = vrot.slane %v3173_v13, 9  ;;  %v12788_v59 = vrot.slane %v3174_v33, 9  ;;  %v3538_v61 = vrot.slane %v3536_v4, 7  ;;  %v3080_v36 = vpop.f32.mrf.mxu3 }
 0x32f   : > { %3567 = vst [vmem:[#allocation1] ss:$2 sm:$0xff] %v3526_v26  ;;  %v3446_v48 = vsel %vm19374_vm2, %v3432_v46, %v3445_v51  ;;  %v3137_v17 = vadd.f32 %v3136_v41, %v3108_v47  ;;  %v3321_v56 = vmax.f32 %v3146_v29, %v12785_v10  ;;  %v3322_v26 = vmax.f32 %v3172_v7, %v12786_v8  ;;  %v13017_v4 = vld [vmem:[#allocation13 + $0x160] sm:$0xf]  ;;  %v17016_v7 = vld [vmem:[#allocation13 + $0x164] sm:$0xf0] }
 0x330   : > { %v3534_v23 = vrot.slane %v3533_v55, 2  ;;  %3475 = vst [vmem:[#allocation6] sm:$0xf] %v3471_v21  ;;  %v3323_v32 = vmax.f32 %v3173_v13, %v12787_v12  ;;  %v3324_v57 = vmax.f32 %v3174_v33, %v12788_v59  ;;  %v12798_v22 = vrot.slane %v19420_v40, 9  ;;  %v12841_v13 = vld [vmem:[#allocation13] sm:$0xf] }
 0x331   : > { %3447 = vst [vmem:[#allocation3 + $0x8] sm:$0x7] %v3446_v48  ;;  %v19443_v35 = vmax.f32 %v3137_v17, 0.0  ;;  %v12866_v38 = vor.u32 %v16978_v9, %v12865_v28  ;;  %v3341_v43 = vmax.f32 %v3317_v27, %v3321_v56  ;;  %v3342_v44 = vmax.f32 %v3318_v54, %v3322_v26  ;;  %v16974_v54 = vld [vmem:[#allocation13 + $0x14] sm:$0xf0] }
 0x332   : > { %v19440_v3 = vsel %vm19394_vm13, %v3534_v23, %v3538_v61  ;;  %v3343_v16 = vmax.f32 %v3319_v6, %v3323_v32  ;;  %v3344_v50 = vmax.f32 %v3320_v18, %v3324_v57  ;;  %v3600_v30 = vrot.slane %v3496_v52, 7  ;;  %v16972_v55 = vld [vmem:[#allocation13 + $0x4] sm:$0xf0]  ;;  %v13089_v46 = vld [vmem:[#allocation13 + $0x1f0] sm:$0xf] }
 0x333   : > { %3570 = vst [vmem:[#allocation1 + $0x1] ss:$2 sm:$0xff] %v19440_v3  ;;  %v3175_v40 = vrot.slane %v19443_v35, 2  ;;  %v3176_v45 = vrot.slane %v19443_v35, 4  ;;  %4691 = vmatpush.bf16.msrb.mxu3 %v12866_v38  ;;  %v12858_v49 = vor.u32 %v16976_v15, %v12857_v34  ;;  %v3363_v27 = vpack.c.bf16 %v3341_v43, %v3341_v43  ;;  %v13009_v8 = vld [vmem:[#allocation13 + $0x150] sm:$0xf] }
 0x334   : > { %v3364_v58 = vpack.c.bf16 %v3342_v44, %v3342_v44  ;;  %v3365_v25 = vpack.c.bf16 %v3343_v16, %v3343_v16  ;;  %v3366_v5 = vpack.c.bf16 %v3344_v50, %v3344_v50  ;;  %v3081_v29 = vadd.f32 %v3080_v36, %v19411_v24  ;;  %v17014_v12 = vld [vmem:[#allocation13 + $0x154] sm:$0xf0]  ;;  %v12961_v57 = vld [vmem:[#allocation13 + $0xf0] sm:$0xf]  ;;  %v3448_v50 = vld [vmem:[#allocation3 + $0xc] sm:$0x7] }
 0x335   : > { %v3177_v39 = vrot.slane %v19443_v35, 6  ;;  %v12789_v52 = vrot.slane %v19443_v35, 9  ;;  %v12790_v1 = vrot.slane %v3175_v40, 9  ;;  %v3395_v6 = vunpack.c.l.b16 %v3363_v27  ;;  %v17034_v17 = vld [vmem:[#allocation13 + $0x1f4] sm:$0xf0] }
 0x336   : > { %v3396_v14 = vunpack.c.l.b16 %v3364_v58  ;;  %v3397_v63 = vunpack.c.l.b16 %v3365_v25  ;;  %v19469_v24 = vrot.slane %v3176_v45, 9  ;;  %v3597_v33 = vsel %vm19463_vm0, %v12797_v2, %v19404_v11  ;;  %v3109_v11 = vpop.f32.mrf.mxu1  ;;  %v3138_v23 = vpop.f32.mrf.mxu2  ;;  %v17002_v34 = vld [vmem:[#allocation13 + $0xf4] sm:$0xf0]  ;;  %v17012_v27 = vld [vmem:[#allocation13 + $0x144] sm:$0xf0] }
 0x337   : > { %v3398_v28 = vunpack.c.l.b16 %v3366_v5  ;;  %4692 = vmatpush.bf16.msrb.mxu3 %v12858_v49  ;;  %v13026_v21 = vor.u32 %v17018_v0, %v13025_v19  ;;  %v3417_v47 = vrot.slane %v3395_v6, 7  ;;  %v19482_v2 = vsel %vm19463_vm0, %v12798_v22, %v3600_v30  ;;  %v13001_v30 = vld [vmem:[#allocation13 + $0x140] sm:$0xf]  ;;  %v17032_v25 = vld [vmem:[#allocation13 + $0x1e4] sm:$0xf0] }
 0x338   : > { %v19476_v41 = vld [vmem:[#allocation3 + $0x8] sm:$0x7]  ;;  %v3418_v9 = vrot.slane %v3396_v14, 6  ;;  %v3420_v10 = vrot.slane %v3397_v63, 5  ;;  %v12792_v59 = vrot.slane %v3177_v39, 9  ;;  %v12850_v61 = vor.u32 %v16974_v54, %v12849_v53 }
 0x339   : > { %3467 = vst [vmem:[#allocation1 + $0x10] ss:$2 sm:$0xff] %v19476_v41  ;;  %v3483_v18 = vrot.slane %v19476_v41, 2  ;;  %4715 = vmatpush.bf16.msra.mxu1 %v13026_v21  ;;  %v13018_v48 = vor.u32 %v17016_v7, %v13017_v4  ;;  %v3110_v32 = vadd.f32 %v3109_v11, %v3081_v29  ;;  %v12842_v43 = vor.u32 %v16972_v55, %v12841_v13  ;;  %v13081_v58 = vld [vmem:[#allocation13 + $0x1e0] sm:$0xf] }
 0x33a   : > { %v3577_v62 = vld.sshfl [vmem:[#allocation1] sm:$0xff pattern:$0x75643120]  ;;  %v3419_v26 = vsel %vm1977_vm5, %v3418_v9, %v3417_v47  ;;  %v3422_v16 = vrot.slane %v3398_v28, 4  ;;  %v13090_v42 = vor.u32 %v17034_v17, %v13089_v46  ;;  %v3325_v49 = vmax.f32 %v19443_v35, %v12789_v52  ;;  %v12953_v29 = vld [vmem:[#allocation13 + $0xe0] sm:$0xf] }
 0x33b   : > { %3611 = vst [vmem:[#allocation1] ss:$2 sm:$0xff] %v3597_v33  ;;  %v19488_v31 = vsel %vm3485_vm9, %v19476_v41, %v3483_v18  ;;  %v19492_v56 = vsel %vm3488_vm11, %v19476_v41, %v3483_v18  ;;  %4693 = vmatpush.bf16.msrb.mxu3 %v12850_v61  ;;  %v3421_v44 = vsel %vm1980_vm6, %v3420_v10, %v3419_v26  ;;  %v17000_v4 = vld [vmem:[#allocation13 + $0xe4] sm:$0xf0]  ;;  %v12993_v21 = vld [vmem:[#allocation13 + $0x130] sm:$0xf] }
 0x33c   : > { %3614 = vst [vmem:[#allocation1 + $0x1] ss:$2 sm:$0xff] %v19482_v2  ;;  %v3501_v15 = vrot.slane %v19492_v56, 2  ;;  %v3540_v22 = vshrl.u32 %v19488_v31, 16  ;;  %v3543_v38 = vshll.u32 %v19488_v31, 16  ;;  %v3139_v36 = vadd.f32 %v3138_v23, %v3110_v32  ;;  %4729 = vmatpush.bf16.msra.mxu2 %v13090_v42 }
 0x33d   : > { %3581 = vst [vmem:[#allocation6 + $0x4] sm:$0xf] %v3577_v62  ;;  %4716 = vmatpush.bf16.msra.mxu1 %v13018_v48  ;;  %v13010_v19 = vor.u32 %v17014_v12, %v13009_v8  ;;  %v3423_v5 = vsel %vm1983_vm7, %v3422_v16, %v3421_v44  ;;  %v3326_v0 = vmax.f32 %v3175_v40, %v12790_v1  ;;  %v13073_v40 = vld [vmem:[#allocation13 + $0x1d0] sm:$0xf]  ;;  %v17010_v47 = vld [vmem:[#allocation13 + $0x134] sm:$0xf0] }
 0x33e   : > { %v3148_v53 = vmax.f32 %v3139_v36, 0.0  ;;  %v12962_v54 = vor.u32 %v17002_v34, %v12961_v57  ;;  %v3542_v6 = vrot.slane %v3540_v22, 6  ;;  %v3545_v14 = vrot.slane %v3543_v38, 7  ;;  %v17030_v9 = vld [vmem:[#allocation13 + $0x1d4] sm:$0xf0] }
 0x33f   : > { %v19506_v52 = vshll.u32 %v3501_v15, 16  ;;  %v3433_v63 = vpack.c.b16 %v3423_v5, %v3423_v5  ;;  %4694 = vmatpush.bf16.msrb.mxu3 %v12842_v43  ;;  %v13002_v55 = vor.u32 %v17012_v27, %v13001_v30  ;;  %v13082_v46 = vor.u32 %v17032_v25, %v13081_v58  ;;  %v12945_v10 = vld [vmem:[#allocation13 + $0xd0] sm:$0xf]  ;;  %v16998_v32 = vld [vmem:[#allocation13 + $0xd4] sm:$0xf0] }
 0x340   : > { %v3178_v7 = vrot.slane %v3148_v53, 2  ;;  %v3179_v13 = vrot.slane %v3148_v53, 4  ;;  %v3180_v33 = vrot.slane %v3148_v53, 6  ;;  %v12793_v28 = vrot.slane %v3148_v53, 9  ;;  %v17028_v38 = vld [vmem:[#allocation13 + $0x1c4] sm:$0xf0] }
 0x341   : > { %v3449_v1 = vsel %vm19374_vm2, %v3433_v63, %v3448_v50  ;;  %4717 = vmatpush.bf16.msra.mxu1 %v13010_v19  ;;  %v12954_v18 = vor.u32 %v17000_v4, %v12953_v29  ;;  %v3327_v12 = vmax.f32 %v3176_v45, %v19469_v24  ;;  %v3328_v62 = vmax.f32 %v3177_v39, %v12792_v59  ;;  %v12985_v24 = vld [vmem:[#allocation13 + $0x120] sm:$0xf]  ;;  %v17008_v16 = vld [vmem:[#allocation13 + $0x124] sm:$0xf0]  ;;  %v12977_v5 = vld [vmem:[#allocation13 + $0x110] sm:$0xf] }
 0x342   : > { %3450 = vst [vmem:[#allocation3 + $0xc] sm:$0x7] %v3449_v1  ;;  %v12794_v11 = vrot.slane %v3178_v7, 9  ;;  %v3329_v23 = vmax.f32 %v3148_v53, %v12793_v28  ;;  %v3546_v61 = vor.u32 %v3545_v14, %v3542_v6  ;;  %v12795_v48 = vrot.slane %v3179_v13, 9  ;;  %4730 = vmatpush.bf16.msra.mxu2 %v13082_v46  ;;  %v13065_v59 = vld [vmem:[#allocation13 + $0x1c0] sm:$0xf] }
 0x343   : > { %4701 = vmatpush.bf16.msra.mxu3 %v12962_v54  ;;  %v3621_v8 = vld.sshfl [vmem:[#allocation1] sm:$0xff pattern:$0x75643120]  ;;  %v12796_v17 = vrot.slane %v3180_v33, 9  ;;  %v13074_v26 = vor.u32 %v17030_v9, %v13073_v40  ;;  %v3551_v57 = vrot.slane %v19506_v52, 7  ;;  %v12946_v45 = vor.u32 %v16998_v32, %v12945_v10 }
 0x344   : > { %3627 = vst [vmem:[#allocation1] ss:$2 sm:$0xff] %v19413_v20  ;;  %v3330_v34 = vmax.f32 %v3178_v7, %v12794_v11  ;;  %v3345_v22 = vmax.f32 %v3325_v49, %v3329_v23  ;;  %v3331_v35 = vmax.f32 %v3179_v13, %v12795_v48  ;;  %v12994_v20 = vor.u32 %v17010_v47, %v12993_v21  ;;  %v12937_v50 = vld [vmem:[#allocation13 + $0xc0] sm:$0xf]  ;;  %v16996_v36 = vld [vmem:[#allocation13 + $0xc4] sm:$0xf0] }
 0x345   : > { %3625 = vst [vmem:[#allocation6 + $0x8] sm:$0xf] %v3621_v8  ;;  %v3332_v39 = vmax.f32 %v3180_v33, %v12796_v17  ;;  %4718 = vmatpush.bf16.msra.mxu1 %v13002_v55  ;;  %v3547_v42 = vrot.slane %v3546_v61, 2  ;;  %v13066_v49 = vor.u32 %v17028_v38, %v13065_v59  ;;  %v12938_v25 = vor.u32 %v16996_v36, %v12937_v50  ;;  %v13057_v53 = vld [vmem:[#allocation13 + $0x1b0] sm:$0xf] }
 0x346   : > { %3629 = vst [vmem:[#allocation1 + $0x1] ss:$2 sm:$0xff] %v19476_v41  ;;  %v3346_v43 = vmax.f32 %v3326_v0, %v3330_v34  ;;  %v3367_v44 = vpack.c.bf16 %v3345_v22, %v3345_v22  ;;  %v3347_v30 = vmax.f32 %v3327_v12, %v3331_v35  ;;  %4731 = vmatpush.bf16.msra.mxu2 %v13074_v26  ;;  %v17026_v54 = vld [vmem:[#allocation13 + $0x1b4] sm:$0xf0]  ;;  %v12929_v14 = vld [vmem:[#allocation13 + $0xb0] sm:$0xf] }
 0x347   : > { %4702 = vmatpush.bf16.msra.mxu3 %v12954_v18  ;;  %v3348_v19 = vmax.f32 %v3328_v62, %v3332_v39  ;;  %v12986_v6 = vor.u32 %v17008_v16, %v12985_v24  ;;  %v16994_v52 = vld [vmem:[#allocation13 + $0xb4] sm:$0xf0]  ;;  %v19524_v28 = vsel %vm19394_vm13, %v3547_v42, %v3551_v57  ;;  %v13058_v1 = vor.u32 %v17026_v54, %v13057_v53  ;;  %v13049_v55 = vld [vmem:[#allocation13 + $0x1a0] sm:$0xf]  ;;  %v17024_v46 = vld [vmem:[#allocation13 + $0x1a4] sm:$0xf0] }
 0x348   : > { %v3368_v27 = vpack.c.bf16 %v3346_v43, %v3346_v43  ;;  %v3399_v58 = vunpack.c.l.b16 %v3367_v44  ;;  %v3369_v4 = vpack.c.bf16 %v3347_v30, %v3347_v30  ;;  %v17006_v33 = vld [vmem:[#allocation13 + $0x114] sm:$0xf0]  ;;  %v12921_v18 = vld [vmem:[#allocation13 + $0xa0] sm:$0xf]  ;;  %v12930_v12 = vor.u32 %v16994_v52, %v12929_v14  ;;  %v17004_v11 = vld [vmem:[#allocation13 + $0x104] sm:$0xf0] }
 0x349   : > { %v19518_v29 = vld [vmem:[#allocation3 + $0xc] sm:$0x7]  ;;  %v3370_v0 = vpack.c.bf16 %v3348_v19, %v3348_v19  ;;  %4719 = vmatpush.bf16.msra.mxu1 %v12994_v20  ;;  %v12969_v62 = vld [vmem:[#allocation13 + $0x100] sm:$0xf]  ;;  %v12978_v26 = vor.u32 %v17006_v33, %v12977_v5  ;;  %v13217_v32 = vld [vmem:[#allocation13 + $0x2f0] sm:$0xf]  ;;  %v13050_v22 = vor.u32 %v17024_v46, %v13049_v55 }
 0x34a   : > { %3470 = vst [vmem:[#allocation1 + $0x11] ss:$2 sm:$0xff] %v19518_v29  ;;  %v3484_v63 = vrot.slane %v19518_v29, 2  ;;  %v3400_v7 = vunpack.c.l.b16 %v3368_v27  ;;  %v3424_v13 = vrot.slane %v3399_v58, 7  ;;  %v3401_v21 = vunpack.c.l.b16 %v3369_v4  ;;  %4732 = vmatpush.bf16.msra.mxu2 %v13066_v49  ;;  %v16992_v23 = vld [vmem:[#allocation13 + $0xa4] sm:$0xf0] }
 0x34b   : > { %4703 = vmatpush.bf16.msra.mxu3 %v12946_v45  ;;  %v3402_v40 = vunpack.c.l.b16 %v3370_v0  ;;  %v17066_v45 = vld [vmem:[#allocation13 + $0x2f4] sm:$0xf0]  ;;  %v3451_v59 = vld [vmem:[#allocation3 + $0x10] sm:$0x7]  ;;  %v12922_v43 = vor.u32 %v16992_v23, %v12921_v18  ;;  %v13041_v44 = vld [vmem:[#allocation13 + $0x190] sm:$0xf] }
 0x34c   : > { %v19528_v9 = vsel %vm3485_vm9, %v19518_v29, %v3484_v63  ;;  %v19532_v10 = vsel %vm3488_vm11, %v19518_v29, %v3484_v63  ;;  %v3425_v8 = vrot.slane %v3400_v7, 6  ;;  %v3427_v34 = vrot.slane %v3401_v21, 5  ;;  %v17022_v16 = vld [vmem:[#allocation13 + $0x194] sm:$0xf0]  ;;  %v12913_v50 = vld [vmem:[#allocation13 + $0x90] sm:$0xf] }
 0x34d   : > { %v3635_v47 = vld.sshfl [vmem:[#allocation1] sm:$0xff pattern:$0x75643120]  ;;  %v3506_v61 = vrot.slane %v19532_v10, 2  ;;  %v3553_v48 = vshrl.u32 %v19528_v9, 16  ;;  %v3556_v17 = vshll.u32 %v19528_v9, 16  ;;  %4720 = vmatpush.bf16.msra.mxu1 %v12986_v6  ;;  %v13218_v27 = vor.u32 %v17066_v45, %v13217_v32 }
 0x34e   : > { %3663 = vst [vmem:[#allocation1 + $0x1] ss:$2 sm:$0xff] %v19524_v28  ;;  %v3426_v57 = vsel %vm1977_vm5, %v3425_v8, %v3424_v13  ;;  %v3429_v20 = vrot.slane %v3402_v40, 4  ;;  %4733 = vmatpush.bf16.msra.mxu2 %v13058_v1  ;;  %v16990_v19 = vld [vmem:[#allocation13 + $0x94] sm:$0xf0]  ;;  %v13042_v53 = vor.u32 %v17022_v16, %v13041_v44 }
 0x34f   : > { %4704 = vmatpush.bf16.msra.mxu3 %v12938_v25  ;;  %3639 = vst [vmem:[#allocation6 + $0xc] sm:$0xf] %v3635_v47  ;;  %v3555_v24 = vrot.slane %v3553_v48, 6  ;;  %v3558_v35 = vrot.slane %v3556_v17, 7  ;;  %v3562_v39 = vshll.u32 %v3506_v61, 16  ;;  %v3428_v38 = vsel %vm1980_vm6, %v3427_v34, %v3426_v57 }
 0x350   : > { %3661 = vst [vmem:[#allocation1] ss:$2 sm:$0xff] %v19440_v3  ;;  %v3430_v30 = vsel %vm1983_vm7, %v3429_v20, %v3428_v38  ;;  %v12970_v3 = vor.u32 %v17004_v11, %v12969_v62  ;;  %v13209_v58 = vld [vmem:[#allocation13 + $0x2e0] sm:$0xf]  ;;  %v17064_v54 = vld [vmem:[#allocation13 + $0x2e4] sm:$0xf0]  ;;  %v12914_v0 = vor.u32 %v16990_v19, %v12913_v50 }
 0x351   : > { %v3472_v36 = vld.sshfl [vmem:[#allocation1 + $0x10] sm:$0xff pattern:$0x75643120]  ;;  %v3559_v42 = vor.u32 %v3558_v35, %v3555_v24  ;;  %4721 = vmatpush.bf16.msra.mxu1 %v12978_v26  ;;  %v3434_v49 = vpack.c.b16 %v3430_v30, %v3430_v30  ;;  %v3564_v5 = vrot.slane %v3562_v39, 7  ;;  %v13033_v6 = vld [vmem:[#allocation13 + $0x180] sm:$0xf]  ;;  %v13210_v33 = vor.u32 %v17064_v54, %v13209_v58 }
 0x352   : > { %3573 = vst [vmem:[#allocation1 + $0x10] ss:$2 sm:$0xff] %v19524_v28  ;;  %4734 = vmatpush.bf16.msra.mxu2 %v13050_v22  ;;  %v17020_v14 = vld [vmem:[#allocation13 + $0x184] sm:$0xf0]  ;;  %v12905_v52 = vld [vmem:[#allocation13 + $0x80] sm:$0xf] }
 0x353   : > { %4705 = vmatpush.bf16.msra.mxu3 %v12930_v12  ;;  %v3560_v25 = vrot.slane %v3559_v42, 2  ;;  %3476 = vst [vmem:[#allocation6 + $0x24] sm:$0xf] %v3472_v36  ;;  %v3452_v4 = vsel %vm19374_vm2, %v3434_v49, %v3451_v59  ;;  %v16988_v7 = vld [vmem:[#allocation13 + $0x84] sm:$0xf0]  ;;  %v13034_v40 = vor.u32 %v17020_v14, %v13033_v6  ;;  %v12799_v47 = vrot.slane %v19488_v31, 9 }
 0x354   : > { %3453 = vst [vmem:[#allocation3 + $0x10] sm:$0x7] %v3452_v4  ;;  %v13201_v13 = vld [vmem:[#allocation13 + $0x2d0] sm:$0xf]  ;;  %v17062_v1 = vld [vmem:[#allocation13 + $0x2d4] sm:$0xf0]  ;;  %v12906_v8 = vor.u32 %v16988_v7, %v12905_v52 }
 0x355   : > { %v19549_v63 = vsel %vm19394_vm13, %v3560_v25, %v3564_v5  ;;  %4722 = vmatpush.bf16.msra.mxu1 %v12970_v3  ;;  %v13281_v21 = vld [vmem:[#allocation13 + $0x370] sm:$0xf]  ;;  %v17050_v46 = vld [vmem:[#allocation13 + $0x274] sm:$0xf0]  ;;  %v3604_v62 = vrot.slane %v3501_v15, 7  ;;  %v3608_v11 = vrot.slane %v3506_v61, 7  ;;  %v13202_v17 = vor.u32 %v17062_v1, %v13201_v13 }
 0x356   : > { %3576 = vst [vmem:[#allocation1 + $0x11] ss:$2 sm:$0xff] %v19549_v63  ;;  %4735 = vmatpush.bf16.msra.mxu2 %v13042_v53  ;;  %v13153_v55 = vld [vmem:[#allocation13 + $0x270] sm:$0xf]  ;;  %v13282_v12 = vor.u32 %v17082_v37, %v13281_v21  ;;  %v13273_v23 = vld [vmem:[#allocation13 + $0x360] sm:$0xf] }
 0x357   : > { %4706 = vmatpush.bf16.msra.mxu3 %v12922_v43  ;;  %v19552_v18 = vld [vmem:[#allocation3 + $0x14] sm:$0x7]  ;;  %v17080_v48 = vld [vmem:[#allocation13 + $0x364] sm:$0xf0]  ;;  %v12805_v26 = vld [vmem:[#allocation6] sm:$0xf]  ;;  %v13154_v57 = vor.u32 %v17050_v46, %v13153_v55  ;;  %v19567_v39 = vsel %vm19463_vm0, %v12799_v47, %v3604_v62 }
 0x358   : > { %v13193_v34 = vld [vmem:[#allocation13 + $0x2c0] sm:$0xf]  ;;  %v17060_v31 = vld [vmem:[#allocation13 + $0x2c4] sm:$0xf0]  ;;  %v3709_v56 = vrot.slane %v19552_v18, 2  ;;  %v12800_v15 = vrot.slane %v19528_v9, 9  ;;  %v13274_v61 = vor.u32 %v17080_v48, %v13273_v23 }
 0x359   : > { %4757 = vmatpush.bf16.msrb.mxu1 %v13218_v27  ;;  %v13145_v45 = vld [vmem:[#allocation13 + $0x260] sm:$0xf]  ;;  %v17048_v24 = vld [vmem:[#allocation13 + $0x264] sm:$0xf0]  ;;  %v13265_v35 = vld [vmem:[#allocation13 + $0x350] sm:$0xf]  ;;  %v13194_v9 = vor.u32 %v17060_v31, %v13193_v34 }
 0x35a   : > { %v16966_v32 = vld [vmem:[#allocation6 + $0x20] sm:$0xf0]  ;;  %4736 = vmatpush.bf16.msra.mxu2 %v13034_v40  ;;  %v17078_v38 = vld [vmem:[#allocation13 + $0x354] sm:$0xf0]  ;;  %v19573_v43 = vsel %vm19463_vm0, %v12800_v15, %v3608_v11  ;;  %v13146_v44 = vor.u32 %v17048_v24, %v13145_v45  ;;  %v13185_v16 = vld [vmem:[#allocation13 + $0x2b0] sm:$0xf]  ;;  %v19578_v36 = vsel %vm3488_vm11, %v19552_v18, %v3709_v56  ;;  %v19593_v5 = vsel %vm3485_vm9, %v19552_v18, %v3709_v56 }
 0x35b   : > { %4707 = vmatpush.bf16.msra.mxu3 %v12914_v0  ;;  %v19559_v22 = vor.u32 %v16966_v32, %v12805_v26  ;;  %v19563_v10 = vld [vmem:[#allocation3 + $0x10] sm:$0x7]  ;;  %v17058_v50 = vld [vmem:[#allocation13 + $0x2b4] sm:$0xf0]  ;;  %v13137_v3 = vld [vmem:[#allocation13 + $0x250] sm:$0xf]  ;;  %v13266_v58 = vor.u32 %v17078_v38, %v13265_v35 }
 0x35c   : > { %v3642_v59 = vrot.slane %v19563_v10, 2  ;;  %v17046_v19 = vld [vmem:[#allocation13 + $0x254] sm:$0xf0]  ;;  %v13257_v25 = vld [vmem:[#allocation13 + $0x340] sm:$0xf]  ;;  %v3714_v0 = vrot.slane %v19578_v36, 2  ;;  %v13186_v14 = vor.u32 %v17058_v50, %v13185_v16 }
 0x35d   : > { %4758 = vmatpush.bf16.msrb.mxu1 %v13210_v33  ;;  %v3578_v20 = vld.sshfl [vmem:[#allocation1 + $0x10] sm:$0xff pattern:$0x75643120]  ;;  %4695 = vmatmul.bf16.vlgmr.msrb.gmra.mxu3 %v19559_v22  ;;  %v17076_v53 = vld [vmem:[#allocation13 + $0x344] sm:$0xf0]  ;;  %v13138_v52 = vor.u32 %v17046_v19, %v13137_v3  ;;  %v3715_v40 = vshrl.u32 %v19593_v5, 16 }
 0x35e   : > { %4771 = vmatpush.bf16.msrb.mxu2 %v13282_v12  ;;  %3617 = vst [vmem:[#allocation1 + $0x10] ss:$2 sm:$0xff] %v19567_v39  ;;  %v19583_v42 = vsel %vm3485_vm9, %v19563_v10, %v3642_v59  ;;  %v19587_v30 = vsel %vm3488_vm11, %v19563_v10, %v3642_v59  ;;  %v17065_v54 = vld [vmem:[#allocation13 + $0x2f4] sm:$0xf]  ;;  %v13219_v4 = vld [vmem:[#allocation13 + $0x2f8] sm:$0xf0]  ;;  %v13258_v46 = vor.u32 %v17076_v53, %v13257_v25 }
 0x35f   : > { %4708 = vmatpush.bf16.msra.mxu3 %v12906_v8  ;;  %3620 = vst [vmem:[#allocation1 + $0x11] ss:$2 sm:$0xff] %v19573_v43  ;;  %v3648_v49 = vshrl.u32 %v19583_v42, 16  ;;  %v3651_v27 = vshll.u32 %v19583_v42, 16  ;;  %v3647_v6 = vrot.slane %v19587_v30, 2  ;;  %v13222_v37 = vor.u32 %v17065_v54, %v13219_v4 }
 0x360   : > { %3582 = vst [vmem:[#allocation6 + $0x28] sm:$0xf] %v3578_v20  ;;  %v13177_v7 = vld [vmem:[#allocation13 + $0x2a0] sm:$0xf]  ;;  %v17056_v13 = vld [vmem:[#allocation13 + $0x2a4] sm:$0xf0] }
 0x361   : > { %4759 = vmatpush.bf16.msrb.mxu1 %v13202_v17  ;;  %v13129_v33 = vld [vmem:[#allocation13 + $0x240] sm:$0xf]  ;;  %v17044_v21 = vld [vmem:[#allocation13 + $0x244] sm:$0xf0]  ;;  %v3650_v1 = vrot.slane %v3648_v49, 6  ;;  %v3653_v55 = vrot.slane %v3651_v27, 7  ;;  %4883 = vmatpush.bf16.msrb.mxu0 %v13222_v37  ;;  %v13178_v17 = vor.u32 %v17056_v13, %v13177_v7 }
 0x362   : > { %4772 = vmatpush.bf16.msrb.mxu2 %v13274_v61  ;;  %v13249_v47 = vld [vmem:[#allocation13 + $0x330] sm:$0xf]  ;;  %v17074_v12 = vld [vmem:[#allocation13 + $0x334] sm:$0xf0]  ;;  %v17063_v62 = vld [vmem:[#allocation13 + $0x2e4] sm:$0xf]  ;;  %v13130_v26 = vor.u32 %v17044_v21, %v13129_v33 }
 0x363   : > { %4743 = vmatpush.bf16.msrb.mxu3 %v13154_v57  ;;  %v13169_v8 = vld [vmem:[#allocation13 + $0x290] sm:$0xf]  ;;  %v13211_v11 = vld [vmem:[#allocation13 + $0x2e8] sm:$0xf0]  ;;  %v19600_v48 = vshll.u32 %v3647_v6, 16  ;;  %v13250_v45 = vor.u32 %v17074_v12, %v13249_v47  ;;  %v3654_v35 = vor.u32 %v3653_v55, %v3650_v1  ;;  %v12801_v30 = vrot.slane %v19583_v42, 9 }
 0x364   : > { %v17054_v32 = vld [vmem:[#allocation13 + $0x294] sm:$0xf0]  ;;  %v13214_v57 = vor.u32 %v17063_v62, %v13211_v11  ;;  %v13121_v34 = vld [vmem:[#allocation13 + $0x230] sm:$0xf]  ;;  %v16962_v24 = vld [vmem:[#allocation6 + $0x4] sm:$0xf] }
 0x365   : > { %4760 = vmatpush.bf16.msrb.mxu1 %v13194_v9  ;;  %v17042_v31 = vld [vmem:[#allocation13 + $0x234] sm:$0xf0]  ;;  %v13241_v15 = vld [vmem:[#allocation13 + $0x320] sm:$0xf]  ;;  %v17072_v61 = vld [vmem:[#allocation13 + $0x324] sm:$0xf0]  ;;  %v13170_v20 = vor.u32 %v17054_v32, %v13169_v8 }
 0x366   : > { %4773 = vmatpush.bf16.msrb.mxu2 %v13266_v58  ;;  %v3622_v23 = vld.sshfl [vmem:[#allocation1 + $0x10] sm:$0xff pattern:$0x75643120]  ;;  %4884 = vmatpush.bf16.msrb.mxu0 %v13214_v57  ;;  %v13122_v59 = vor.u32 %v17042_v31, %v13121_v34  ;;  %v13161_v38 = vld [vmem:[#allocation13 + $0x280] sm:$0xf]  ;;  %v13242_v49 = vor.u32 %v17072_v61, %v13241_v15  ;;  %v3655_v7 = vrot.slane %v3654_v35, 2 }
 0x367   : > { %4744 = vmatpush.bf16.msrb.mxu3 %v13146_v44  ;;  %3631 = vst [vmem:[#allocation1 + $0x10] ss:$2 sm:$0xff] %v19518_v29  ;;  %v12807_v56 = vld [vmem:[#allocation6 + $0x24] sm:$0xf0]  ;;  %v17052_v9 = vld [vmem:[#allocation13 + $0x284] sm:$0xf0] }
 0x368   : > { %3626 = vst [vmem:[#allocation6 + $0x2c] sm:$0xf] %v3622_v23  ;;  %v17061_v44 = vld [vmem:[#allocation13 + $0x2d4] sm:$0xf]  ;;  %v19604_v16 = vor.u32 %v16962_v24, %v12807_v56  ;;  %v13113_v50 = vld [vmem:[#allocation13 + $0x220] sm:$0xf]  ;;  %v13162_v13 = vor.u32 %v17052_v9, %v13161_v38 }
 0x369   : > { %4761 = vmatpush.bf16.msrb.mxu1 %v13186_v14  ;;  %3634 = vst [vmem:[#allocation1 + $0x11] ss:$2 sm:$0xff] %v19563_v10  ;;  %v17040_v3 = vld [vmem:[#allocation13 + $0x224] sm:$0xf0]  ;;  %v13203_v19 = vld [vmem:[#allocation13 + $0x2d8] sm:$0xf0] }
 0x36a   : > { %4774 = vmatpush.bf16.msrb.mxu2 %v13258_v46  ;;  %v13409_v27 = vld [vmem:[#allocation13 + $0x470] sm:$0xf]  ;;  %v17114_v58 = vld [vmem:[#allocation13 + $0x474] sm:$0xf0]  ;;  %v13206_v25 = vor.u32 %v17061_v44, %v13203_v19  ;;  %v17059_v4 = vld [vmem:[#allocation13 + $0x2c4] sm:$0xf]  ;;  %v13114_v21 = vor.u32 %v17040_v3, %v13113_v50 }
 0x36b   : > { %4745 = vmatpush.bf16.msrb.mxu3 %v13138_v52  ;;  %v13233_v53 = vld [vmem:[#allocation13 + $0x310] sm:$0xf]  ;;  %v17070_v54 = vld [vmem:[#allocation13 + $0x314] sm:$0xf0]  ;;  %v13195_v14 = vld [vmem:[#allocation13 + $0x2c8] sm:$0xf0]  ;;  %v13410_v62 = vor.u32 %v17114_v58, %v13409_v27 }
 0x36c   : > { %v3718_v52 = vshll.u32 %v19593_v5, 16  ;;  %v12813_v33 = vld [vmem:[#allocation6 + $0x8] sm:$0xf]  ;;  %v13105_v37 = vld [vmem:[#allocation13 + $0x210] sm:$0xf]  ;;  %4885 = vmatpush.bf16.msrb.mxu0 %v13206_v25  ;;  %v13198_v47 = vor.u32 %v17059_v4, %v13195_v14  ;;  %v3659_v8 = vrot.slane %v19600_v48, 7  ;;  %v13234_v11 = vor.u32 %v17070_v54, %v13233_v53 }
 0x36d   : > { %4762 = vmatpush.bf16.msrb.mxu1 %v13178_v17  ;;  %4709 = vmatmul.bf16.vlgmr.msra.gmra.mxu3 %v19604_v16  ;;  %v17038_v55 = vld [vmem:[#allocation13 + $0x214] sm:$0xf0]  ;;  %v13401_v46 = vld [vmem:[#allocation13 + $0x460] sm:$0xf]  ;;  %v17112_v23 = vld [vmem:[#allocation13 + $0x464] sm:$0xf0] }
 0x36e   : > { %4775 = vmatpush.bf16.msrb.mxu2 %v13250_v45  ;;  %v17068_v32 = vld [vmem:[#allocation13 + $0x304] sm:$0xf0]  ;;  %v19613_v57 = vsel %vm19394_vm13, %v3655_v7, %v3659_v8  ;;  %v13106_v34 = vor.u32 %v17038_v55, %v13105_v37  ;;  %v13097_v48 = vld [vmem:[#allocation13 + $0x200] sm:$0xf]  ;;  %v13393_v45 = vld [vmem:[#allocation13 + $0x450] sm:$0xf]  ;;  %v13402_v56 = vor.u32 %v17112_v23, %v13401_v46 }
 0x36f   : > { %4746 = vmatpush.bf16.msrb.mxu3 %v13130_v26  ;;  %v16967_v1 = vld [vmem:[#allocation6 + $0x28] sm:$0xf0]  ;;  %v13225_v26 = vld [vmem:[#allocation13 + $0x300] sm:$0xf]  ;;  %v17036_v31 = vld [vmem:[#allocation13 + $0x204] sm:$0xf0] }
 0x370   : > { %v19609_v12 = vor.u32 %v16967_v1, %v12813_v33  ;;  %v3636_v17 = vld.sshfl [vmem:[#allocation1 + $0x10] sm:$0xff pattern:$0x75643120]  ;;  %4886 = vmatpush.bf16.msrb.mxu0 %v13198_v47  ;;  %v13226_v15 = vor.u32 %v17068_v32, %v13225_v26  ;;  %v13345_v61 = vld [vmem:[#allocation13 + $0x3f0] sm:$0xf]  ;;  %v13098_v3 = vor.u32 %v17036_v31, %v13097_v48  ;;  %v3678_v27 = vrot.slane %v3647_v6, 7 }
 0x371   : > { %4763 = vmatpush.bf16.msrb.mxu1 %v13170_v20  ;;  %3640 = vst [vmem:[#allocation6 + $0x30] sm:$0xf] %v3636_v17  ;;  %v17057_v24 = vld [vmem:[#allocation13 + $0x2b4] sm:$0xf]  ;;  %v17098_v35 = vld [vmem:[#allocation13 + $0x3f4] sm:$0xf0] }
 0x372   : > { %4776 = vmatpush.bf16.msrb.mxu2 %v13242_v49  ;;  %3665 = vst [vmem:[#allocation1 + $0x10] ss:$2 sm:$0xff] %v19549_v63  ;;  %4723 = vmatmul.bf16.vlgmr.msra.gmra.mxu1 %v19609_v12  ;;  %v13187_v20 = vld [vmem:[#allocation13 + $0x2b8] sm:$0xf0]  ;;  %v16985_v38 = vld [vmem:[#allocation13 + $0x74] sm:$0xf]  ;;  %v13346_v58 = vor.u32 %v17098_v35, %v13345_v61  ;;  %v19628_v23 = vsel %vm19463_vm0, %v12801_v30, %v3678_v27 }
 0x373   : > { %4747 = vmatpush.bf16.msrb.mxu3 %v13122_v59  ;;  %3668 = vst [vmem:[#allocation1 + $0x11] ss:$2 sm:$0xff] %v19613_v57  ;;  %v17110_v59 = vld [vmem:[#allocation13 + $0x454] sm:$0xf0]  ;;  %v12899_v9 = vld [vmem:[#allocation13 + $0x78] sm:$0xf0]  ;;  %v13190_v44 = vor.u32 %v17057_v24, %v13187_v20 }
 0x374   : > { %v16963_v50 = vld [vmem:[#allocation6 + $0xc] sm:$0xf]  ;;  %v17055_v19 = vld [vmem:[#allocation13 + $0x2a4] sm:$0xf]  ;;  %v13179_v49 = vld [vmem:[#allocation13 + $0x2a8] sm:$0xf0]  ;;  %v13394_v7 = vor.u32 %v17110_v59, %v13393_v45 }
 0x375   : > { %4764 = vmatpush.bf16.msrb.mxu1 %v13162_v13  ;;  %4887 = vmatpush.bf16.msrb.mxu0 %v13190_v44  ;;  %v13385_v25 = vld [vmem:[#allocation13 + $0x440] sm:$0xf]  ;;  %v17108_v53 = vld [vmem:[#allocation13 + $0x444] sm:$0xf0]  ;;  %v12902_v13 = vor.u32 %v16985_v38, %v12899_v9  ;;  %v16983_v37 = vld [vmem:[#allocation13 + $0x64] sm:$0xf]  ;;  %v13182_v55 = vor.u32 %v17055_v19, %v13179_v49 }
 0x376   : > { %4777 = vmatpush.bf16.msrb.mxu2 %v13234_v11  ;;  %v13337_v54 = vld [vmem:[#allocation13 + $0x3e0] sm:$0xf]  ;;  %v3669_v4 = vld.sshfl [vmem:[#allocation1] sm:$0xff pattern:$0x75643120]  ;;  %v3717_v31 = vrot.slane %v3715_v40, 6 }
 0x377   : > { %4748 = vmatpush.bf16.msrb.mxu3 %v13114_v21  ;;  %v17096_v33 = vld [vmem:[#allocation13 + $0x3e4] sm:$0xf0]  ;;  %3673 = vst [vmem:[#allocation6 + $0x10] sm:$0xf] %v3669_v4  ;;  %v12891_v1 = vld [vmem:[#allocation13 + $0x68] sm:$0xf0] }
 0x378   : > { %v12815_v14 = vld [vmem:[#allocation6 + $0x2c] sm:$0xf0]  ;;  %3680 = vst [vmem:[#allocation1] ss:$2 sm:$0xff] %v19482_v2  ;;  %v13338_v46 = vor.u32 %v17096_v33, %v13337_v54  ;;  %v13377_v47 = vld [vmem:[#allocation13 + $0x430] sm:$0xf]  ;;  %v13386_v2 = vor.u32 %v17108_v53, %v13385_v25  ;;  %v12894_v42 = vor.u32 %v16983_v37, %v12891_v1 }
 0x379   : > { %4799 = vmatpush.bf16.msra.mxu1 %v13410_v62  ;;  %v19620_v21 = vor.u32 %v16963_v50, %v12815_v14  ;;  %3682 = vst [vmem:[#allocation1 + $0x1] ss:$2 sm:$0xff] %v19567_v39  ;;  %v17106_v8 = vld [vmem:[#allocation13 + $0x434] sm:$0xf0]  ;;  %v13329_v62 = vld [vmem:[#allocation13 + $0x3d0] sm:$0xf]  ;;  %4888 = vmatpush.bf16.msrb.mxu0 %v13182_v55 }
 0x37a   : > { %4778 = vmatpush.bf16.msrb.mxu2 %v13226_v15  ;;  %v3670_v6 = vld.sshfl [vmem:[#allocation1 + $0x10] sm:$0xff pattern:$0x75643120]  ;;  %v13171_v26 = vld [vmem:[#allocation13 + $0x298] sm:$0xf0]  ;;  %v3720_v45 = vrot.slane %v3718_v52, 7  ;;  %v13378_v20 = vor.u32 %v17106_v8, %v13377_v47 }
 0x37b   : > { %4749 = vmatpush.bf16.msrb.mxu3 %v13106_v34  ;;  %4737 = vmatmul.bf16.vlgmr.msra.gmra.mxu2 %v19620_v21  ;;  %3674 = vst [vmem:[#allocation6 + $0x34] sm:$0xf] %v3670_v6  ;;  %v17094_v11 = vld [vmem:[#allocation13 + $0x3d4] sm:$0xf0]  ;;  %v17053_v17 = vld [vmem:[#allocation13 + $0x294] sm:$0xf] }
 0x37c   : > { %3684 = vst [vmem:[#allocation1 + $0x10] ss:$2 sm:$0xff] %v19573_v43  ;;  %v16981_v32 = vld [vmem:[#allocation13 + $0x54] sm:$0xf]  ;;  %v12883_v34 = vld [vmem:[#allocation13 + $0x58] sm:$0xf0]  ;;  %v13174_v48 = vor.u32 %v17053_v17, %v13171_v26  ;;  %v13330_v24 = vor.u32 %v17094_v11, %v13329_v62  ;;  %v3721_v27 = vor.u32 %v3720_v45, %v3717_v31 }
 0x37d   : > { %4800 = vmatpush.bf16.msra.mxu1 %v13402_v56  ;;  %3687 = vst [vmem:[#allocation1 + $0x11] ss:$2 sm:$0xff] %v19628_v23  ;;  %v13369_v56 = vld [vmem:[#allocation13 + $0x420] sm:$0xf]  ;;  %v17104_v15 = vld [vmem:[#allocation13 + $0x424] sm:$0xf0]  ;;  %v12886_v59 = vor.u32 %v16981_v32, %v12883_v34 }
 0x37e   : > { %4813 = vmatpush.bf16.msra.mxu2 %v12902_v13  ;;  %v16979_v61 = vld [vmem:[#allocation13 + $0x44] sm:$0xf]  ;;  %v13321_v38 = vld [vmem:[#allocation13 + $0x3c0] sm:$0xf]  ;;  %v17092_v9 = vld [vmem:[#allocation13 + $0x3c4] sm:$0xf0]  ;;  %4889 = vmatpush.bf16.msrb.mxu0 %v13174_v48 }
 0x37f   : > { %4750 = vmatpush.bf16.msrb.mxu3 %v13098_v3  ;;  %v17051_v35 = vld [vmem:[#allocation13 + $0x284] sm:$0xf]  ;;  %v13163_v44 = vld [vmem:[#allocation13 + $0x288] sm:$0xf0]  ;;  %v19638_v50 = vshll.u32 %v3714_v0, 16  ;;  %v13322_v25 = vor.u32 %v17092_v9, %v13321_v38  ;;  %vm20143_vm7 = vcmask 1045508  }
 0x380   : > { %v12875_v40 = vld [vmem:[#allocation13 + $0x48] sm:$0xf0]  ;;  %v13166_v52 = vor.u32 %v17051_v35, %v13163_v44  ;;  %v3688_v3 = vld.sshfl [vmem:[#allocation1] sm:$0xff pattern:$0x75643120] }
 0x381   : > { %4801 = vmatpush.bf16.msra.mxu1 %v13394_v7  ;;  %v12821_v19 = vld [vmem:[#allocation6 + $0x10] sm:$0xf]  ;;  %3692 = vst [vmem:[#allocation6 + $0x14] sm:$0xf] %v3688_v3  ;;  %v13361_v53 = vld [vmem:[#allocation13 + $0x410] sm:$0xf]  ;;  %v13370_v7 = vor.u32 %v17104_v15, %v13369_v56  ;;  %v12878_v13 = vor.u32 %v16979_v61, %v12875_v40 }
 0x382   : > { %4814 = vmatpush.bf16.msra.mxu2 %v12894_v42  ;;  %v16968_v49 = vld [vmem:[#allocation6 + $0x30] sm:$0xf0]  ;;  %3694 = vst [vmem:[#allocation1] ss:$2 sm:$0xff] %v19476_v41  ;;  %v13313_v4 = vld [vmem:[#allocation13 + $0x3b0] sm:$0xf]  ;;  %4890 = vmatpush.bf16.msrb.mxu0 %v13166_v52 }
 0x383   : > { %4785 = vmatpush.bf16.msra.mxu3 %v13346_v58  ;;  %v19640_v58 = vor.u32 %v16968_v49, %v12821_v19  ;;  %v17102_v54 = vld [vmem:[#allocation13 + $0x414] sm:$0xf0]  ;;  %3696 = vst [vmem:[#allocation1 + $0x1] ss:$2 sm:$0xff] %v19518_v29  ;;  %v16977_v37 = vld [vmem:[#allocation13 + $0x34] sm:$0xf] }
 0x384   : > { %v17090_v14 = vld [vmem:[#allocation13 + $0x3b4] sm:$0xf0]  ;;  %v12867_v1 = vld [vmem:[#allocation13 + $0x38] sm:$0xf0]  ;;  %v3722_v41 = vrot.slane %v3721_v27, 2  ;;  %v3726_v55 = vrot.slane %v19638_v50, 7  ;;  %v13362_v6 = vor.u32 %v17102_v54, %v13361_v53 }
 0x385   : > { %4802 = vmatpush.bf16.msra.mxu1 %v13386_v2  ;;  %v3689_v33 = vld.sshfl [vmem:[#allocation1 + $0x10] sm:$0xff pattern:$0x75643120]  ;;  %4751 = vmatmul.bf16.vlgmr.msrb.gmra.mxu3 %v19640_v58  ;;  %v13314_v30 = vor.u32 %v17090_v14, %v13313_v4  ;;  %v13353_v29 = vld [vmem:[#allocation13 + $0x400] sm:$0xf]  ;;  %v12802_v27 = vrot.slane %v19593_v5, 9 }
 0x386   : > { %4815 = vmatpush.bf16.msra.mxu2 %v12886_v59  ;;  %3693 = vst [vmem:[#allocation6 + $0x38] sm:$0xf] %v3689_v33  ;;  %v17100_v47 = vld [vmem:[#allocation13 + $0x404] sm:$0xf0]  ;;  %v16975_v8 = vld [vmem:[#allocation13 + $0x24] sm:$0xf]  ;;  %v3727_v59 = vsel %vm19394_vm13, %v3722_v41, %v3726_v55 }
 0x387   : > { %4786 = vmatpush.bf16.msra.mxu3 %v13338_v46  ;;  %3698 = vst [vmem:[#allocation1 + $0x10] ss:$2 sm:$0xff] %v19563_v10  ;;  %v12870_v46 = vor.u32 %v16977_v37, %v12867_v1  ;;  %v12859_v62 = vld [vmem:[#allocation13 + $0x28] sm:$0xf0]  ;;  %v13305_v11 = vld [vmem:[#allocation13 + $0x3a0] sm:$0xf] }
 0x388   : > { %3701 = vst [vmem:[#allocation1 + $0x11] ss:$2 sm:$0xff] %v19552_v18  ;;  %v17088_v2 = vld [vmem:[#allocation13 + $0x3a4] sm:$0xf0]  ;;  %v16964_v42 = vld [vmem:[#allocation6 + $0x14] sm:$0xf]  ;;  %v13354_v18 = vor.u32 %v17100_v47, %v13353_v29  ;;  %v12862_v31 = vor.u32 %v16975_v8, %v12859_v62 }
 0x389   : > { %4803 = vmatpush.bf16.msra.mxu1 %v13378_v20  ;;  %v17017_v17 = vld [vmem:[#allocation13 + $0x174] sm:$0xf]  ;;  %v13027_v10 = vld [vmem:[#allocation13 + $0x178] sm:$0xf0]  ;;  %v13297_v45 = vld [vmem:[#allocation13 + $0x390] sm:$0xf]  ;;  %v13306_v15 = vor.u32 %v17088_v2, %v13305_v11 }
 0x38a   : > { %4816 = vmatpush.bf16.msra.mxu2 %v12878_v13  ;;  %v3702_v26 = vld.sshfl [vmem:[#allocation1] sm:$0xff pattern:$0x75643120]  ;;  %v16973_v32 = vld [vmem:[#allocation13 + $0x14] sm:$0xf]  ;;  %v13030_v61 = vor.u32 %v17017_v17, %v13027_v10 }
 0x38b   : > { %4787 = vmatpush.bf16.msra.mxu3 %v13330_v24  ;;  %v12851_v34 = vld [vmem:[#allocation13 + $0x18] sm:$0xf0]  ;;  %3706 = vst [vmem:[#allocation6 + $0x18] sm:$0xf] %v3702_v26  ;;  %v17086_v24 = vld [vmem:[#allocation13 + $0x394] sm:$0xf0] }
 0x38c   : > { %3728 = vst [vmem:[#allocation1] ss:$2 sm:$0xff] %v19524_v28  ;;  %v17015_v35 = vld [vmem:[#allocation13 + $0x164] sm:$0xf]  ;;  %v13019_v20 = vld [vmem:[#allocation13 + $0x168] sm:$0xf0]  ;;  %v12854_v9 = vor.u32 %v16973_v32, %v12851_v34  ;;  %v13298_v28 = vor.u32 %v17086_v24, %v13297_v45 }
 0x38d   : > { %4804 = vmatpush.bf16.msra.mxu1 %v13370_v7  ;;  %v12823_v48 = vld [vmem:[#allocation6 + $0x34] sm:$0xf0]  ;;  %3730 = vst [vmem:[#allocation1 + $0x1] ss:$2 sm:$0xff] %v19549_v63  ;;  %v13022_v44 = vor.u32 %v17015_v35, %v13019_v20  ;;  %v16971_v50 = vld [vmem:[#allocation13 + $0x4] sm:$0xf] }
 0x38e   : > { %4817 = vmatpush.bf16.msra.mxu2 %v12870_v46  ;;  %v12826_v56 = vor.u32 %v16964_v42, %v12823_v48  ;;  %v12843_v40 = vld [vmem:[#allocation13 + $0x8] sm:$0xf0]  ;;  %v17084_v52 = vld [vmem:[#allocation13 + $0x384] sm:$0xf0]  ;;  %v17013_v3 = vld [vmem:[#allocation13 + $0x154] sm:$0xf] }
 0x38f   : > { %4788 = vmatpush.bf16.msra.mxu3 %v13322_v25  ;;  %v3703_v38 = vld.sshfl [vmem:[#allocation1 + $0x10] sm:$0xff pattern:$0x75643120]  ;;  %v13011_v19 = vld [vmem:[#allocation13 + $0x158] sm:$0xf0]  ;;  %v3745_v25 = vrot.slane %v3714_v0, 7  ;;  %v13290_v14 = vor.u32 %v17084_v52, %v13289_v60 }
 0x390   : > { %4765 = vmatmul.bf16.vlgmr.msrb.gmra.mxu1 %v12826_v56  ;;  %4891 = vmatmul.bf16.vlgmr.msrb.gmra.mxu0 %v12826_v56  ;;  %3707 = vst [vmem:[#allocation6 + $0x3c] sm:$0xf] %v3703_v38  ;;  %v17033_v63 = vld [vmem:[#allocation13 + $0x1f4] sm:$0xf]  ;;  %v13091_v49 = vld [vmem:[#allocation13 + $0x1f8] sm:$0xf0]  ;;  %v13014_v41 = vor.u32 %v17013_v3, %v13011_v19 }
 0x391   : > { %4805 = vmatpush.bf16.msra.mxu1 %v13362_v6  ;;  %3732 = vst [vmem:[#allocation1 + $0x10] ss:$2 sm:$0xff] %v19613_v57  ;;  %v12846_v57 = vor.u32 %v16971_v50, %v12843_v40  ;;  %v17001_v53 = vld [vmem:[#allocation13 + $0xf4] sm:$0xf]  ;;  %v12963_v54 = vld [vmem:[#allocation13 + $0xf8] sm:$0xf0]  ;;  %v13094_v55 = vor.u32 %v17033_v63, %v13091_v49  ;;  %v3746_v46 = vsel %vm19463_vm0, %v12802_v27, %v3745_v25 }
 0x392   : > { %4818 = vmatpush.bf16.msra.mxu2 %v12862_v31  ;;  %3735 = vst [vmem:[#allocation1 + $0x11] ss:$2 sm:$0xff] %v3727_v59  ;;  %v12829_v4 = vld [vmem:[#allocation6 + $0x18] sm:$0xf]  ;;  %v17011_v13 = vld [vmem:[#allocation13 + $0x144] sm:$0xf]  ;;  %v12966_v36 = vor.u32 %v17001_v53, %v12963_v54 }
 0x393   : > { %4789 = vmatpush.bf16.msra.mxu3 %v13314_v30  ;;  %v13003_v33 = vld [vmem:[#allocation13 + $0x148] sm:$0xf0]  ;;  %v17031_v37 = vld [vmem:[#allocation13 + $0x1e4] sm:$0xf]  ;;  %v12995_v62 = vld [vmem:[#allocation13 + $0x138] sm:$0xf0] }
 0x394   : > { %v3736_v7 = vld.sshfl [vmem:[#allocation1] sm:$0xff pattern:$0x75643120]  ;;  %v13083_v5 = vld [vmem:[#allocation13 + $0x1e8] sm:$0xf0]  ;;  %v13006_v47 = vor.u32 %v17011_v13, %v13003_v33 }
 0x395   : > { %4806 = vmatpush.bf16.msra.mxu1 %v13354_v18  ;;  %3740 = vst [vmem:[#allocation6 + $0x1c] sm:$0xf] %v3736_v7  ;;  %v16999_v0 = vld [vmem:[#allocation13 + $0xe4] sm:$0xf]  ;;  %v12955_v6 = vld [vmem:[#allocation13 + $0xe8] sm:$0xf0]  ;;  %v13086_v8 = vor.u32 %v17031_v37, %v13083_v5 }
 0x396   : > { %4819 = vmatpush.bf16.msra.mxu2 %v12854_v9  ;;  %3747 = vst [vmem:[#allocation1] ss:$2 sm:$0xff] %v19567_v39  ;;  %v17009_v39 = vld [vmem:[#allocation13 + $0x134] sm:$0xf]  ;;  %v12958_v51 = vor.u32 %v16999_v0, %v12955_v6  ;;  %v13075_v2 = vld [vmem:[#allocation13 + $0x1d8] sm:$0xf0] }
 0x397   : > { %4790 = vmatpush.bf16.msra.mxu3 %v13306_v15  ;;  %v16969_v1 = vld [vmem:[#allocation6 + $0x38] sm:$0xf0]  ;;  %3749 = vst [vmem:[#allocation1 + $0x1] ss:$2 sm:$0xff] %v19573_v43  ;;  %v17029_v11 = vld [vmem:[#allocation13 + $0x1d4] sm:$0xf]  ;;  %v12998_v43 = vor.u32 %v17009_v39, %v12995_v62 }
 0x398   : > { %v19656_v30 = vor.u32 %v16969_v1, %v12829_v4  ;;  %v16997_v42 = vld [vmem:[#allocation13 + $0xd4] sm:$0xf]  ;;  %v12947_v17 = vld [vmem:[#allocation13 + $0xd8] sm:$0xf0]  ;;  %v13078_v10 = vor.u32 %v17029_v11, %v13075_v2  ;;  %v17007_v26 = vld [vmem:[#allocation13 + $0x124] sm:$0xf] }
 0x399   : > { %4841 = vmatpush.bf16.msrb.mxu1 %v13030_v61  ;;  %v3737_v29 = vld.sshfl [vmem:[#allocation1 + $0x10] sm:$0xff pattern:$0x75643120]  ;;  %v12987_v32 = vld [vmem:[#allocation13 + $0x128] sm:$0xf0]  ;;  %v12950_v45 = vor.u32 %v16997_v42, %v12947_v17 }
 0x39a   : > { %4820 = vmatpush.bf16.msra.mxu2 %v12846_v57  ;;  %3741 = vst [vmem:[#allocation6 + $0x40] sm:$0xf] %v3737_v29  ;;  %v17027_v34 = vld [vmem:[#allocation13 + $0x1c4] sm:$0xf]  ;;  %v13067_v48 = vld [vmem:[#allocation13 + $0x1c8] sm:$0xf0]  ;;  %v12990_v20 = vor.u32 %v17007_v26, %v12987_v32 }
 0x39b   : > { %4791 = vmatpush.bf16.msra.mxu3 %v13298_v28  ;;  %4779 = vmatmul.bf16.vlgmr.msrb.gmra.mxu2 %v19656_v30  ;;  %3751 = vst [vmem:[#allocation1 + $0x10] ss:$2 sm:$0xff] %v19628_v23  ;;  %v16995_v56 = vld [vmem:[#allocation13 + $0xc4] sm:$0xf]  ;;  %v12939_v15 = vld [vmem:[#allocation13 + $0xc8] sm:$0xf0]  ;;  %v13070_v59 = vor.u32 %v17027_v34, %v13067_v48 }
 0x39c   : > { %3754 = vst [vmem:[#allocation1 + $0x11] ss:$2 sm:$0xff] %v3746_v46  ;;  %v16965_v18 = vld [vmem:[#allocation6 + $0x1c] sm:$0xf]  ;;  %v17005_v61 = vld [vmem:[#allocation13 + $0x114] sm:$0xf] }
 0x39d   : > { %4842 = vmatpush.bf16.msrb.mxu1 %v13022_v44  ;;  %v12979_v38 = vld [vmem:[#allocation13 + $0x118] sm:$0xf0]  ;;  %v17025_v9 = vld [vmem:[#allocation13 + $0x1b4] sm:$0xf]  ;;  %v12942_v44 = vor.u32 %v16995_v56, %v12939_v15  ;;  %v17003_v3 = vld [vmem:[#allocation13 + $0x104] sm:$0xf] }
 0x39e   : > { %4855 = vmatpush.bf16.msrb.mxu2 %v13094_v55  ;;  %v3755_v23 = vld.sshfl [vmem:[#allocation1] sm:$0xff pattern:$0x75643120]  ;;  %v13059_v28 = vld [vmem:[#allocation13 + $0x1b8] sm:$0xf0]  ;;  %v12982_v60 = vor.u32 %v17005_v61, %v12979_v38 }
 0x39f   : > { %4792 = vmatpush.bf16.msra.mxu3 %v13290_v14  ;;  %3759 = vst [vmem:[#allocation6 + $0x20] sm:$0xf] %v3755_v23  ;;  %v16993_v50 = vld [vmem:[#allocation13 + $0xb4] sm:$0xf]  ;;  %v12931_v40 = vld [vmem:[#allocation13 + $0xb8] sm:$0xf0]  ;;  %v13062_v52 = vor.u32 %v17025_v9, %v13059_v28 }
 0x3a0   : > { %v12971_v19 = vld [vmem:[#allocation13 + $0x108] sm:$0xf0]  ;;  %v17023_v63 = vld [vmem:[#allocation13 + $0x1a4] sm:$0xf]  ;;  %v12934_v27 = vor.u32 %v16993_v50, %v12931_v40  ;;  %v17081_v25 = vld [vmem:[#allocation13 + $0x374] sm:$0xf] }
 0x3a1   : > { %4843 = vmatpush.bf16.msrb.mxu1 %v13014_v41  ;;  %v12831_v31 = vld [vmem:[#allocation6 + $0x3c] sm:$0xf0]  ;;  %v13051_v49 = vld [vmem:[#allocation13 + $0x1a8] sm:$0xf0]  ;;  %v13283_v57 = vld [vmem:[#allocation13 + $0x378] sm:$0xf0]  ;;  %v12974_v7 = vor.u32 %v17003_v3, %v12971_v19 }
 0x3a2   : > { %4856 = vmatpush.bf16.msrb.mxu2 %v13086_v8  ;;  %v19664_v24 = vor.u32 %v16965_v18, %v12831_v31  ;;  %v16991_v53 = vld [vmem:[#allocation13 + $0xa4] sm:$0xf]  ;;  %v12923_v54 = vld [vmem:[#allocation13 + $0xa8] sm:$0xf0]  ;;  %v13054_v13 = vor.u32 %v17023_v63, %v13051_v49  ;;  %v13286_v37 = vor.u32 %v17081_v25, %v13283_v57  ;;  %v17021_v1 = vld [vmem:[#allocation13 + $0x194] sm:$0xf] }
 0x3a3   : > { %4827 = vmatpush.bf16.msrb.mxu3 %v12966_v36  ;;  %v3756_v35 = vld.sshfl [vmem:[#allocation1 + $0x10] sm:$0xff pattern:$0x75643120]  ;;  %v13043_v41 = vld [vmem:[#allocation13 + $0x198] sm:$0xf0]  ;;  %v12926_v55 = vor.u32 %v16991_v53, %v12923_v54 }
 0x3a4   : > { %4793 = vmatmul.bf16.vlgmr.msra.gmra.mxu3 %v19664_v24  ;;  %3760 = vst [vmem:[#allocation6 + $0x44] sm:$0xf] %v3756_v35  ;;  %v17079_v5 = vld [vmem:[#allocation13 + $0x364] sm:$0xf]  ;;  %v13275_v36 = vld [vmem:[#allocation13 + $0x368] sm:$0xf0]  ;;  %v13046_v6 = vor.u32 %v17021_v1, %v13043_v41 }
 0x3a5   : > { %4844 = vmatpush.bf16.msrb.mxu1 %v13006_v47  ;;  %v12915_v0 = vld [vmem:[#allocation13 + $0x98] sm:$0xf0]  ;;  %v13278_v46 = vor.u32 %v17079_v5, %v13275_v36  ;;  %v17019_v29 = vld [vmem:[#allocation13 + $0x184] sm:$0xf]  ;;  %v13035_v47 = vld [vmem:[#allocation13 + $0x188] sm:$0xf0] }
 0x3a6   : > { %4857 = vmatpush.bf16.msrb.mxu2 %v13078_v10  ;;  %v12837_v4 = vld [vmem:[#allocation6 + $0x20] sm:$0xf]  ;;  %v17077_v8 = vld [vmem:[#allocation13 + $0x354] sm:$0xf]  ;;  %v13267_v62 = vld [vmem:[#allocation13 + $0x358] sm:$0xf0]  ;;  %v13038_v17 = vor.u32 %v17019_v29, %v13035_v47 }
 0x3a7   : > { %4828 = vmatpush.bf16.msrb.mxu3 %v12958_v51  ;;  %v17097_v51 = vld [vmem:[#allocation13 + $0x3f4] sm:$0xf]  ;;  %v13347_v11 = vld [vmem:[#allocation13 + $0x3f8] sm:$0xf0]  ;;  %v16987_v2 = vld [vmem:[#allocation13 + $0x84] sm:$0xf]  ;;  %v13270_v26 = vor.u32 %v17077_v8, %v13267_v62 }
 0x3a8   : > { %v12907_v42 = vld [vmem:[#allocation13 + $0x88] sm:$0xf0]  ;;  %v13155_v10 = vld [vmem:[#allocation13 + $0x278] sm:$0xf0]  ;;  %v13350_v32 = vor.u32 %v17097_v51, %v13347_v11  ;;  %v17075_v23 = vld [vmem:[#allocation13 + $0x344] sm:$0xf] }
 0x3a9   : > { %4845 = vmatpush.bf16.msrb.mxu1 %v12998_v43  ;;  %v17049_v43 = vld [vmem:[#allocation13 + $0x274] sm:$0xf]  ;;  %v12910_v34 = vor.u32 %v16987_v2, %v12907_v42  ;;  %v13259_v48 = vld [vmem:[#allocation13 + $0x348] sm:$0xf0]  ;;  %v17095_v31 = vld [vmem:[#allocation13 + $0x3e4] sm:$0xf] }
 0x3aa   : > { %4858 = vmatpush.bf16.msrb.mxu2 %v13070_v59  ;;  %v13158_v18 = vor.u32 %v17049_v43, %v13155_v10  ;;  %v17047_v56 = vld [vmem:[#allocation13 + $0x264] sm:$0xf]  ;;  %v13147_v15 = vld [vmem:[#allocation13 + $0x268] sm:$0xf0]  ;;  %v13262_v61 = vor.u32 %v17075_v23, %v13259_v48  ;;  %v13251_v59 = vld [vmem:[#allocation13 + $0x338] sm:$0xf0] }
 0x3ab   : > { %4829 = vmatpush.bf16.msrb.mxu3 %v12950_v45  ;;  %4821 = vmatmul.bf16.vlgmr.msra.gmra.mxu2 %v19559_v22  ;;  %v16970_v14 = vld [vmem:[#allocation6 + $0x40] sm:$0xf0]  ;;  %v16989_v22 = vld [vmem:[#allocation13 + $0x94] sm:$0xf]  ;;  %v13339_v45 = vld [vmem:[#allocation13 + $0x3e8] sm:$0xf0]  ;;  %v13150_v38 = vor.u32 %v17047_v56, %v13147_v15 }
 0x3ac   : > { %v19668_v33 = vor.u32 %v16970_v14, %v12837_v4  ;;  %v12918_v39 = vor.u32 %v16989_v22, %v12915_v0  ;;  %v13342_v35 = vor.u32 %v17095_v31, %v13339_v45  ;;  %v17093_v9 = vld [vmem:[#allocation13 + $0x3d4] sm:$0xf]  ;;  %v13331_v28 = vld [vmem:[#allocation13 + $0x3d8] sm:$0xf0]  ;;  %v13243_v3 = vld [vmem:[#allocation13 + $0x328] sm:$0xf0] }
 0x3ad   : > { %4846 = vmatpush.bf16.msrb.mxu1 %v12990_v20  ;;  %v17073_v20 = vld [vmem:[#allocation13 + $0x334] sm:$0xf]  ;;  %v13139_v50 = vld [vmem:[#allocation13 + $0x258] sm:$0xf0]  ;;  %v17091_v63 = vld [vmem:[#allocation13 + $0x3c4] sm:$0xf] }
 0x3ae   : > { %4859 = vmatpush.bf16.msrb.mxu2 %v13062_v52  ;;  %4807 = vmatmul.bf16.vlgmr.msra.gmra.mxu1 %v19668_v33  ;;  %v13254_v40 = vor.u32 %v17073_v20, %v13251_v59  ;;  %v17071_v52 = vld [vmem:[#allocation13 + $0x324] sm:$0xf]  ;;  %v13323_v49 = vld [vmem:[#allocation13 + $0x3c8] sm:$0xf0]  ;;  %v17069_v53 = vld [vmem:[#allocation13 + $0x314] sm:$0xf] }
 0x3af   : > { %4830 = vmatpush.bf16.msrb.mxu3 %v12942_v44  ;;  %v17045_v44 = vld [vmem:[#allocation13 + $0x254] sm:$0xf]  ;;  %v13246_v25 = vor.u32 %v17071_v52, %v13243_v3  ;;  %v13326_v57 = vor.u32 %v17091_v63, %v13323_v49  ;;  %v13315_v14 = vld [vmem:[#allocation13 + $0x3b8] sm:$0xf0]  ;;  %v17067_v1 = vld [vmem:[#allocation13 + $0x304] sm:$0xf] }
 0x3b0   : > { %v13142_v19 = vor.u32 %v17045_v44, %v13139_v50  ;;  %v17089_v4 = vld [vmem:[#allocation13 + $0x3b4] sm:$0xf]  ;;  %v13227_v41 = vld [vmem:[#allocation13 + $0x308] sm:$0xf0]  ;;  %v17087_v5 = vld [vmem:[#allocation13 + $0x3a4] sm:$0xf] }
 0x3b1   : > { %4847 = vmatpush.bf16.msrb.mxu1 %v12982_v60  ;;  %v13334_v60 = vor.u32 %v17093_v9, %v13331_v28  ;;  %v13307_v36 = vld [vmem:[#allocation13 + $0x3a8] sm:$0xf0]  ;;  %v17039_v22 = vld [vmem:[#allocation13 + $0x224] sm:$0xf]  ;;  %v17085_v47 = vld [vmem:[#allocation13 + $0x394] sm:$0xf] }
 0x3b2   : > { %4860 = vmatpush.bf16.msrb.mxu2 %v13054_v13  ;;  %v13123_v13 = vld [vmem:[#allocation13 + $0x238] sm:$0xf0]  ;;  %v13115_v0 = vld [vmem:[#allocation13 + $0x228] sm:$0xf0]  ;;  %v17083_v2 = vld [vmem:[#allocation13 + $0x384] sm:$0xf] }
 0x3b3   : > { %4831 = vmatpush.bf16.msrb.mxu3 %v12934_v27  ;;  %v13131_v27 = vld [vmem:[#allocation13 + $0x248] sm:$0xf0]  ;;  %v13118_v29 = vor.u32 %v17039_v22, %v13115_v0  ;;  %v13299_v8 = vld [vmem:[#allocation13 + $0x398] sm:$0xf0]  ;;  %v17113_v10 = vld [vmem:[#allocation13 + $0x474] sm:$0xf] }
 0x3b4   : > { %v13107_v62 = vld [vmem:[#allocation13 + $0x218] sm:$0xf0]  ;;  %v13302_v51 = vor.u32 %v17085_v47, %v13299_v8  ;;  %v13291_v42 = vld [vmem:[#allocation13 + $0x388] sm:$0xf0]  ;;  %v17111_v48 = vld [vmem:[#allocation13 + $0x464] sm:$0xf] }
 0x3b5   : > { %4848 = vmatpush.bf16.msrb.mxu1 %v12974_v7  ;;  %v17041_v7 = vld [vmem:[#allocation13 + $0x234] sm:$0xf]  ;;  %v13099_v43 = vld [vmem:[#allocation13 + $0x208] sm:$0xf0]  ;;  %v13395_v56 = vld [vmem:[#allocation13 + $0x458] sm:$0xf0] }
 0x3b6   : > { %4861 = vmatpush.bf16.msrb.mxu2 %v13046_v6  ;;  %v13230_v6 = vor.u32 %v17067_v1, %v13227_v41  ;;  %v17109_v45 = vld [vmem:[#allocation13 + $0x454] sm:$0xf]  ;;  %v17107_v15 = vld [vmem:[#allocation13 + $0x444] sm:$0xf]  ;;  %v13379_v59 = vld [vmem:[#allocation13 + $0x438] sm:$0xf0] }
 0x3b7   : > { %4832 = vmatpush.bf16.msrb.mxu3 %v12926_v55  ;;  %v13126_v55 = vor.u32 %v17041_v7, %v13123_v13  ;;  %v17105_v20 = vld [vmem:[#allocation13 + $0x434] sm:$0xf]  ;;  %v17103_v28 = vld [vmem:[#allocation13 + $0x424] sm:$0xf]  ;;  %v13371_v44 = vld [vmem:[#allocation13 + $0x428] sm:$0xf0] }
 0x3b8   : > { %v13382_v9 = vor.u32 %v17105_v20, %v13379_v59  ;;  %v13374_v50 = vor.u32 %v17103_v28, %v13371_v44  ;;  %v13355_v63 = vld [vmem:[#allocation13 + $0x408] sm:$0xf0]  ;;  %vm5108_vm2 = vsmask.f32 3338  ;;  %vm5162_vm13 = vsmask.f32 1284 }
 0x3b9   : > { %4897 = vmatpush.bf16.msra.mxu1 %v13286_v37  ;;  %v13318_v37 = vor.u32 %v17089_v4, %v13315_v14  ;;  %vm19722_vm12 = vmand %vm3488_vm11, %vm5108_vm2  ;;  %vm5164_vm0 = vsmask.f32 2312 }
 0x3ba   : > { %4862 = vmatpush.bf16.msrb.mxu2 %v13038_v17  ;;  %v17035_v17 = vld [vmem:[#allocation13 + $0x204] sm:$0xf]  ;;  %vm5110_vm3 = vmor %vm19722_vm12, %vm19714_vm4 }
 0x3bb   : > { %4833 = vmatpush.bf16.msrb.mxu3 %v12918_v39  ;;  %v17037_v39 = vld [vmem:[#allocation13 + $0x214] sm:$0xf]  ;;  %vm5163_vm15 = vmor %vm2125_vm8, %vm5162_vm13  ;;  %vm5153_vm8 = vcmask 1042433  }
 0x3bc   : > { %v13110_v11 = vor.u32 %v17037_v39, %v13107_v62  ;;  %vm5165_vm2 = vmor %vm5163_vm15, %vm5164_vm0  ;;  %vm5170_vm15 = vsmask.f32 5396 }
 0x3bd   : > { %4898 = vmatpush.bf16.msra.mxu1 %v13278_v46  ;;  %4863 = vmatmul.bf16.vlgmr.msrb.gmra.mxu2 %v19620_v21  ;;  %v17043_v21 = vld [vmem:[#allocation13 + $0x244] sm:$0xf]  ;;  %v13310_v46 = vor.u32 %v17087_v5, %v13307_v36 }
 0x3be   : > { %4911 = vmatpush.bf16.msra.mxu2 %v13350_v32  ;;  %4849 = vmatmul.bf16.vlgmr.msrb.gmra.mxu1 %v19609_v12  ;;  %v13134_v54 = vor.u32 %v17043_v21, %v13131_v27  ;;  %v13294_v32 = vor.u32 %v17083_v2, %v13291_v42 }
 0x3bf   : > { %4834 = vmatpush.bf16.msrb.mxu3 %v12910_v34  ;;  %v13102_v34 = vor.u32 %v17035_v17, %v13099_v43 }
 0x3c1   : > { %4899 = vmatpush.bf16.msra.mxu1 %v13270_v26  ;;  %v13411_v26 = vld [vmem:[#allocation13 + $0x478] sm:$0xf0] }
 0x3c2   : > { %4835 = vmatmul.bf16.vlgmr.msrb.gmra.mxu3 %v19604_v16  ;;  %4912 = vmatpush.bf16.msra.mxu2 %v13342_v35  ;;  %v13235_v16 = vld [vmem:[#allocation13 + $0x318] sm:$0xf0]  ;;  %v13414_v23 = vor.u32 %v17113_v10, %v13411_v26 }
 0x3c3   : > { %4869 = vmatpush.bf16.msra.mxu3 %v13158_v18  ;;  %v13238_v12 = vor.u32 %v17069_v53, %v13235_v16  ;;  %v13403_v18 = vld [vmem:[#allocation13 + $0x468] sm:$0xf0] }
 0x3c4   : > { %v13406_v31 = vor.u32 %v17111_v48, %v13403_v18 }
 0x3c5   : > { %4900 = vmatpush.bf16.msra.mxu1 %v13262_v61  ;;  %v13387_v61 = vld [vmem:[#allocation13 + $0x448] sm:$0xf0] }
 0x3c6   : > { %4913 = vmatpush.bf16.msra.mxu2 %v13334_v60  ;;  %v13390_v35 = vor.u32 %v17107_v15, %v13387_v61 }
 0x3c7   : > { %4870 = vmatpush.bf16.msra.mxu3 %v13150_v38 }
 0x3c9   : > { %4901 = vmatpush.bf16.msra.mxu1 %v13254_v40  ;;  %v13363_v40 = vld [vmem:[#allocation13 + $0x418] sm:$0xf0] }
 0x3ca   : > { %4914 = vmatpush.bf16.msra.mxu2 %v13326_v57 }
 0x3cb   : > { %4871 = vmatpush.bf16.msra.mxu3 %v13142_v19  ;;  %v17099_v19 = vld [vmem:[#allocation13 + $0x404] sm:$0xf] }
 0x3cc   : > { %v13358_v49 = vor.u32 %v17099_v19, %v13355_v63 }
 0x3cd   : > { %4902 = vmatpush.bf16.msra.mxu1 %v13246_v25 }
 0x3ce   : > { %4915 = vmatpush.bf16.msra.mxu2 %v13318_v37 }
 0x3cf   : > { %4872 = vmatpush.bf16.msra.mxu3 %v13134_v54 }
 0x3d1   : > { %4903 = vmatpush.bf16.msra.mxu1 %v13238_v12 }
 0x3d2   : > { %4916 = vmatpush.bf16.msra.mxu2 %v13310_v46 }
 0x3d3   : > { %4873 = vmatpush.bf16.msra.mxu3 %v13126_v55 }
 0x3d5   : > { %4904 = vmatpush.bf16.msra.mxu1 %v13230_v6 }
 0x3d6   : > { %4917 = vmatpush.bf16.msra.mxu2 %v13302_v51 }
 0x3d7   : > { %4874 = vmatpush.bf16.msra.mxu3 %v13118_v29 }
 0x3d8   : > { %4905 = vmatmul.bf16.vlgmr.msra.gmra.mxu1 %v19656_v30  ;;  %v13398_v30 = vor.u32 %v17109_v45, %v13395_v56 }
 0x3da   : > { %4918 = vmatpush.bf16.msra.mxu2 %v13294_v32 }
 0x3db   : > { %4875 = vmatpush.bf16.msra.mxu3 %v13110_v11 }
 0x3dd   : > { %4919 = vmatmul.bf16.vlgmr.msra.gmra.mxu2 %v19664_v24  ;;  %v17101_v24 = vld [vmem:[#allocation13 + $0x414] sm:$0xf] }
 0x3de   : > { %v13366_v52 = vor.u32 %v17101_v24, %v13363_v40 }
 0x3df   : > { %4876 = vmatpush.bf16.msra.mxu3 %v13102_v34 }
 0x3e0   : > { %v4696_v38 = vpop.f32.mrf.mxu3 }
 0x3e2   : > { %4877 = vmatmul.bf16.vlgmr.msra.gmra.mxu3 %v19640_v58  ;;  %v3915_v58 = vld [vmem:[%s20114_s6] sm:$0x3] }
 0x3e3   : > { %4925 = vmatpush.bf16.msrb.mxu3 %v13414_v23  ;;  %v3917_v3 = vperm.slane %v3915_v58, 0  ;;  %v3918_v6 = vperm.slane %v3915_v58, 1 }
 0x3e5   : > { %v4697_v21 = vadd.f32 %v4696_v38, %v3917_v3 }
 0x3e7   : > { %4926 = vmatpush.bf16.msrb.mxu3 %v13406_v31 }
 0x3e8   : > { %v4698_v60 = vpop.f32.mrf.mxu3 }
 0x3e9   : > { %v4699_v34 = vadd.f32 %v4698_v60, %v3917_v3 }
 0x3eb   : > { %4927 = vmatpush.bf16.msrb.mxu3 %v13398_v30 }
 0x3ef   : > { %4928 = vmatpush.bf16.msrb.mxu3 %v13390_v35  ;;  %v4724_v57 = vpop.f32.mrf.mxu1 }
 0x3f0   : > { %v4710_v27 = vpop.f32.mrf.mxu3 }
 0x3f1   : > { %v4711_v25 = vadd.f32 %v4710_v27, %v4697_v21 }
 0x3f3   : > { %4929 = vmatpush.bf16.msrb.mxu3 %v13382_v9  ;;  %v4725_v11 = vadd.f32 %v4724_v57, %v4711_v25 }
 0x3f7   : > { %4930 = vmatpush.bf16.msrb.mxu3 %v13374_v50  ;;  %v4726_v4 = vpop.f32.mrf.mxu1 }
 0x3f8   : > { %v4712_v53 = vpop.f32.mrf.mxu3 }
 0x3f9   : > { %v4713_v31 = vadd.f32 %v4712_v53, %v4699_v34 }
 0x3fb   : > { %4931 = vmatpush.bf16.msrb.mxu3 %v13366_v52  ;;  %v4727_v20 = vadd.f32 %v4726_v4, %v4713_v31 }
 0x3fe   : > { %v4738_v16 = vpop.f32.mrf.mxu2 }
 0x3ff   : > { %4932 = vmatpush.bf16.msrb.mxu3 %v13358_v49  ;;  %v4739_v43 = vadd.f32 %v4738_v16, %v4725_v11  ;;  %v19688_v11 = vld [vmem:[#allocation4] sm:$0xf] }
 0x402   : > { %4933 = vmatmul.bf16.vlgmr.msrb.gmra.mxu3 %v19668_v33 }
 0x406   : > { %v4740_v14 = vpop.f32.mrf.mxu2 }
 0x407   : > { %v4741_v9 = vadd.f32 %v4740_v14, %v4727_v20 }
 0x408   : > { %v4752_v54 = vpop.f32.mrf.mxu3 }
 0x409   : > { %v4753_v32 = vadd.f32 %v4752_v54, %v4739_v43 }
 0x40d   : > { %v4766_v7 = vpop.f32.mrf.mxu1  ;;  %v4892_v23 = vpop.f32.mrf.mxu0 }
 0x40e   : > { %v4767_v30 = vadd.f32 %v4766_v7, %v4753_v32  ;;  %v5123_v32 = vrot.slane %v19688_v11, 1 }
 0x410   : > { %v4754_v13 = vpop.f32.mrf.mxu3 }
 0x411   : > { %v4755_v24 = vadd.f32 %v4754_v13, %v4741_v9 }
 0x415   : > { %v4768_v1 = vpop.f32.mrf.mxu1  ;;  %v4894_v58 = vpop.f32.mrf.mxu0 }
 0x416   : > { %v4769_v63 = vadd.f32 %v4768_v1, %v4755_v24 }
 0x41e   : > { %v4780_v12 = vpop.f32.mrf.mxu2 }
 0x41f   : > { %v4781_v61 = vadd.f32 %v4780_v12, %v4767_v30 }
 0x426   : > { %v4782_v41 = vpop.f32.mrf.mxu2 }
 0x427   : > { %v4794_v37 = vpop.f32.mrf.mxu3  ;;  %v4783_v25 = vadd.f32 %v4782_v41, %v4769_v63 }
 0x428   : > { %v4795_v38 = vadd.f32 %v4794_v37, %v4781_v61  ;;  %v5124_v61 = vrot.slane %v19688_v11, 2 }
 0x42b   : > { %v4808_v55 = vpop.f32.mrf.mxu1 }
 0x42c   : > { %v4809_v60 = vadd.f32 %v4808_v55, %v4795_v38 }
 0x42e   : > { %v4822_v36 = vpop.f32.mrf.mxu2  ;;  %v4939_v49 = vmax.f32 %v4809_v60, 0.0  ;;  %v5132_v60 = vsel %vm3587_vm14, %v19688_v11, %v5123_v32 }
 0x42f   : > { %v4796_v5 = vpop.f32.mrf.mxu3  ;;  %v4823_v29 = vadd.f32 %v4822_v36, %v3918_v6 }
 0x430   : > { %v4797_v37 = vadd.f32 %v4796_v5, %v4783_v25 }
 0x433   : > { %v19681_v0 = vpop.f32.mrf.mxu1 }
 0x436   : > { %v4824_v33 = vpop.f32.mrf.mxu2 }
 0x437   : > { %v4825_v42 = vadd.f32 %v4824_v33, %v3918_v6 }
 0x43b   : > { %v4850_v47 = vpop.f32.mrf.mxu1 }
 0x440   : > { %v4864_v39 = vpop.f32.mrf.mxu2 }
 0x443   : > { %v4852_v17 = vpop.f32.mrf.mxu1 }
 0x445   : > { %v4836_v22 = vpop.f32.mrf.mxu3 }
 0x446   : > { %v4837_v8 = vadd.f32 %v4836_v22, %v4823_v29 }
 0x448   : > { %v4851_v62 = vadd.f32 %v4850_v47, %v4837_v8  ;;  %v4866_v48 = vpop.f32.mrf.mxu2  ;;  %v4811_v8 = vadd.f32 %v19681_v0, %v4797_v37 }
 0x44a   : > { %v4865_v2 = vadd.f32 %v4864_v39, %v4851_v62 }
 0x44d   : > { %v4838_v46 = vpop.f32.mrf.mxu3 }
 0x44e   : > { %v4839_v26 = vadd.f32 %v4838_v46, %v4825_v42 }
 0x450   : > { %v4853_v45 = vadd.f32 %v4852_v17, %v4839_v26 }
 0x452   : > { %v4867_v59 = vadd.f32 %v4866_v48, %v4853_v45 }
 0x455   : > { %v4906_v15 = vpop.f32.mrf.mxu1 }
 0x45d   : > { %v4908_v21 = vpop.f32.mrf.mxu1 }
 0x460   : > { %v4920_v28 = vpop.f32.mrf.mxu2 }
 0x465   : > { %v4878_v51 = vpop.f32.mrf.mxu3 }
 0x466   : > { %v4879_v10 = vadd.f32 %v4878_v51, %v4865_v2 }
 0x468   : > { %v4893_v18 = vadd.f32 %v4892_v23, %v4879_v10  ;;  %v4922_v1 = vpop.f32.mrf.mxu2  ;;  %v4941_v10 = vmax.f32 %v4811_v8, 0.0  ;;  %v17241_v8 = vld [vmem:[#allocation14 + $0x3ec] sm:$0xf0] }
 0x46a   : > { %v4907_v35 = vadd.f32 %v4906_v15, %v4893_v18 }
 0x46c   : > { %v4921_v50 = vadd.f32 %v4920_v28, %v4907_v35  ;;  %v5125_v35 = vrot.slane %v19688_v11, 3 }
 0x46d   : > { %v4880_v56 = vpop.f32.mrf.mxu3 }
 0x46e   : > { %v4881_v44 = vadd.f32 %v4880_v56, %v4867_v59 }
 0x470   : > { %v4895_v3 = vadd.f32 %v4894_v58, %v4881_v44 }
 0x472   : > { %v4909_v57 = vadd.f32 %v4908_v21, %v4895_v3 }
 0x474   : > { %v4923_v6 = vadd.f32 %v4922_v1, %v4909_v57 }
 0x485   : > { %v4934_v40 = vpop.f32.mrf.mxu3 }
 0x486   : > { %v4935_v52 = vadd.f32 %v4934_v40, %v4921_v50 }
 0x488   : > { %v4940_v19 = vmax.f32 %v4935_v52, 0.0  ;;  %v5135_v52 = vsel %vm1977_vm5, %v5124_v61, %v5125_v35 }
 0x48a   : > { %v4947_v27 = vrot.slane %v4940_v19, 6 }
 0x48c   : > { %v4949_v53 = vsel %vm3485_vm9, %v4939_v49, %v4947_v27  ;;  %v4950_v16 = vsel %vm3488_vm11, %v4939_v49, %v4947_v27  ;;  %v4953_v54 = vsel %vm20143_vm7, %v4939_v49, %v4947_v27  ;;  %v4955_v4 = vsel %vm20142_vm1, %v4947_v27, %v4939_v49 }
 0x48d   : > { %v4951_v14 = vrot.slane %v4950_v16, 2  ;;  %v4954_v7 = vrot.slane %v4953_v54, 4  ;;  %v4956_v13 = vrot.slane %v4955_v4, 6  ;;  %v13415_v12 = vrot.slane %v4949_v53, 9  ;;  %v4936_v47 = vpop.f32.mrf.mxu3 }
 0x48e   : > { %v4937_v39 = vadd.f32 %v4936_v47, %v4923_v6  ;;  %v19709_v49 = vsel %vm3485_vm9, %v5132_v60, %v5135_v52 }
 0x48f   : > { %v13416_v55 = vrot.slane %v4951_v14, 9  ;;  %v13417_v36 = vrot.slane %v4954_v7, 9  ;;  %v13418_v22 = vrot.slane %v4956_v13, 9  ;;  %v4996_v41 = vmax.f32 %v4949_v53, %v13415_v12 }
 0x490   : > { %v4942_v2 = vmax.f32 %v4937_v39, 0.0 }
 0x491   : > { %v4997_v33 = vmax.f32 %v4951_v14, %v13416_v55  ;;  %v4998_v46 = vmax.f32 %v4954_v7, %v13417_v36  ;;  %v4999_v29 = vmax.f32 %v4956_v13, %v13418_v22 }
 0x492   : > { %v4948_v26 = vrot.slane %v4942_v2, 6 }
 0x493   : > { %v5004_v62 = vmax.f32 %v4996_v41, %v4998_v46  ;;  %v5005_v51 = vmax.f32 %v4997_v33, %v4999_v29  ;;  %v13797_v33 = vld [vmem:[#allocation14 + $0x2e0] sm:$0xf] }
 0x494   : > { %v4957_v48 = vsel %vm3485_vm9, %v4941_v10, %v4948_v26  ;;  %v4958_v0 = vsel %vm3488_vm11, %v4941_v10, %v4948_v26  ;;  %v4960_v18 = vsel %vm20143_vm7, %v4941_v10, %v4948_v26  ;;  %v4962_v31 = vsel %vm20142_vm1, %v4948_v26, %v4941_v10 }
 0x495   : > { %v5016_v42 = vperm.slane %v5004_v62, 0  ;;  %v5017_v5 = vperm.slane %v5004_v62, 2  ;;  %v5018_v17 = vperm.slane %v5005_v51, 0  ;;  %v5019_v43 = vperm.slane %v5005_v51, 2  ;;  %v5111_v51 = vld [vmem:[#allocation4 + $0x4] sm:$0xf] }
 0x496   : > { %v4959_v30 = vrot.slane %v4958_v0, 2  ;;  %v4961_v15 = vrot.slane %v4960_v18, 4  ;;  %v4963_v20 = vrot.slane %v4962_v31, 6  ;;  %v13419_v59 = vrot.slane %v4957_v48, 9 }
 0x497   : > { %v5032_v34 = vpack.c.bf16 %v5017_v5, %v5016_v42  ;;  %v5033_v23 = vpack.c.bf16 %v5019_v43, %v5018_v17  ;;  %vm5166_vm1 = vsmask.f32 3340  ;;  %v5151_v0 = vsel %vm5150_vm10, %v19688_v11, %v5123_v32 }
 0x498   : > { %v13420_v28 = vrot.slane %v4959_v30, 9  ;;  %v13421_v44 = vrot.slane %v4961_v15, 9  ;;  %v13422_v50 = vrot.slane %v4963_v20, 9  ;;  %v5000_v24 = vmax.f32 %v4957_v48, %v13419_v59  ;;  %vm5167_vm13 = vmor %vm5165_vm2, %vm5166_vm1 }
 0x499   : > { %v5040_v45 = vrot.slane %v5032_v34, 2  ;;  %v5041_v56 = vrot.slane %v5033_v23, 2  ;;  %v5152_v18 = vsel %vm1980_vm6, %v5124_v61, %v5125_v35  ;;  %vm5168_vm7 = vsmask.f32 4368 }
 0x49a   : > { %v5001_v40 = vmax.f32 %v4959_v30, %v13420_v28  ;;  %v5002_v58 = vmax.f32 %v4961_v15, %v13421_v44  ;;  %v5003_v3 = vmax.f32 %v4963_v20, %v13422_v50  ;;  %v5154_v15 = vsel %vm5153_vm8, %v5151_v0, %v5152_v18  ;;  %vm5169_vm0 = vmor %vm5167_vm13, %vm5168_vm7  ;;  %v5114_v28 = vld [vmem:[#allocation4 + $0x8] sm:$0xf]  ;;  %v13509_v18 = vld [vmem:[#allocation14 + $0xa0] sm:$0xf] }
 0x49b   : > { %v5046_v38 = vsel %vm3485_vm9, %v5032_v34, %v5040_v45  ;;  %v5049_v9 = vsel %vm3485_vm9, %v5033_v23, %v5041_v56  ;;  %vm5171_vm1 = vmor %vm5169_vm0, %vm5170_vm15  ;;  %vm5172_vm7 = vsmask.f32 6424  ;;  %vm5174_vm13 = vsmask.f32 7452 }
 0x49c   : > { %5056 = vst [vmem:[#allocation1] ss:$2 sm:$0xff] %v5046_v38  ;;  %v5006_v19 = vmax.f32 %v5000_v24, %v5002_v58  ;;  %v5007_v63 = vmax.f32 %v5001_v40, %v5003_v3  ;;  %vm5173_vm2 = vmor %vm5171_vm1, %vm5172_vm7 }
 0x49d   : > { %5060 = vst [vmem:[#allocation1 + $0x10] ss:$2 sm:$0xff] %v5049_v9  ;;  %v5156_v9 = vrot.slane %v5154_v15, 1  ;;  %vm19773_vm15 = vmor %vm5173_vm2, %vm5174_vm13  ;;  %v13765_v15 = vld [vmem:[#allocation14 + $0x2a0] sm:$0xf] }
 0x49e   : > { %v5020_v21 = vperm.slane %v5006_v19, 0  ;;  %v5021_v27 = vperm.slane %v5006_v19, 2  ;;  %v5022_v25 = vperm.slane %v5007_v63, 0  ;;  %v5023_v57 = vperm.slane %v5007_v63, 2 }
 0x49f   : > { %v5176_v63 = vshrl.u32 %v19709_v49, 16 }
 0x4a0   : > { %v5034_v16 = vpack.c.bf16 %v5021_v27, %v5020_v21  ;;  %v5035_v7 = vpack.c.bf16 %v5023_v57, %v5022_v25  ;;  %v5181_v21 = vshll.u32 %v5156_v9, 16 }
 0x4a2   : > { %v5042_v37 = vrot.slane %v5034_v16, 2  ;;  %v5043_v36 = vrot.slane %v5035_v7, 2  ;;  %v5183_v57 = vsel %vm19773_vm15, %v5176_v63, %v5181_v21  ;;  %v17229_v63 = vld [vmem:[#allocation14 + $0x38c] sm:$0xf0]  ;;  %v13477_v21 = vld [vmem:[#allocation14 + $0x60] sm:$0xf] }
 0x4a3   : > { %v5057_v53 = vld.sshfl [vmem:[#allocation1] sm:$0xff pattern:$0x75643120] }
 0x4a4   : > { %v5061_v54 = vld.sshfl [vmem:[#allocation1 + $0x10] sm:$0xff pattern:$0x75643120]  ;;  %v5071_v4 = vunpack.c.l.b16 %v5057_v53  ;;  %v5072_v14 = vunpack.c.h.b16 %v5057_v53  ;;  %5144 = vst [vmem:[#allocation1] ss:$2 sm:$0xff] %v19709_v49  ;;  %v5052_v41 = vsel %vm3485_vm9, %v5034_v16, %v5042_v37  ;;  %v5055_v46 = vsel %vm3485_vm9, %v5035_v7, %v5043_v36 }
 0x4a5   : > { %v5073_v13 = vunpack.c.l.b16 %v5061_v54  ;;  %v5074_v12 = vunpack.c.h.b16 %v5061_v54  ;;  %5064 = vst [vmem:[#allocation1 + $0x20] ss:$2 sm:$0xff] %v5052_v41  ;;  %v19789_v7 = vld [vmem:[#allocation4 + $0xc] sm:$0xf]  ;;  %v17145_v36 = vld [vmem:[#allocation14 + $0xec] sm:$0xf0] }
 0x4a6   : > { %v5079_v1 = vrot.slane %v5071_v4, 7  ;;  %v5082_v55 = vrot.slane %v5072_v14, 7  ;;  %5068 = vst [vmem:[#allocation1 + $0x30] ss:$2 sm:$0xff] %v5055_v46  ;;  %v17177_v41 = vld [vmem:[#allocation14 + $0x1ec] sm:$0xf0] }
 0x4a7   : > { %v5080_v22 = vrot.slane %v5073_v13, 6  ;;  %v5083_v6 = vrot.slane %v5074_v12, 6 }
 0x4a9   : > { %v5081_v29 = vsel %vm1977_vm5, %v5080_v22, %v5079_v1  ;;  %v5084_v47 = vsel %vm1977_vm5, %v5083_v6, %v5082_v55  ;;  %v13541_v55 = vld [vmem:[#allocation14 + $0xe0] sm:$0xf] }
 0x4aa   : > { %v5091_v39 = vpack.c.b16 %v5084_v47, %v5081_v29  ;;  %v13669_v22 = vld [vmem:[#allocation14 + $0x1e0] sm:$0xf]  ;;  %v13542_v6 = vor.u32 %v17145_v36, %v13541_v55 }
 0x4ab   : > { %v13670_v46 = vor.u32 %v17177_v41, %v13669_v22  ;;  %v13925_v47 = vld [vmem:[#allocation14 + $0x3e0] sm:$0xf] }
 0x4ac   : > { %v5093_v62 = vrot.slane %v5091_v39, 2  ;;  %v5065_v5 = vld.sshfl [vmem:[#allocation1 + $0x20] sm:$0xff pattern:$0x75643120]  ;;  %8828 = vmatpush.bf16.msra.mxu0 %v13542_v6  ;;  %v13733_v22 = vld [vmem:[#allocation14 + $0x260] sm:$0xf] }
 0x4ad   : > { %v5069_v17 = vld.sshfl [vmem:[#allocation1 + $0x30] sm:$0xff pattern:$0x75643120]  ;;  %v5075_v43 = vunpack.c.l.b16 %v5065_v5  ;;  %v5076_v10 = vunpack.c.h.b16 %v5065_v5  ;;  %8841 = vmatpush.bf16.msrb.mxu1 %v13670_v46  ;;  %v17193_v6 = vld [vmem:[#allocation14 + $0x26c] sm:$0xf0] }
 0x4ae   : > { %v5097_v2 = vsel %vm3485_vm9, %v5091_v39, %v5093_v62  ;;  %v5077_v26 = vunpack.c.l.b16 %v5069_v17  ;;  %v5078_v34 = vunpack.c.h.b16 %v5069_v17  ;;  %v13525_v39 = vld [vmem:[#allocation14 + $0xc0] sm:$0xf]  ;;  %v13926_v62 = vor.u32 %v17241_v8, %v13925_v47 }
 0x4af   : > { %v5112_v42 = vsel %vm5110_vm3, %v5097_v2, %v5111_v51  ;;  %v5085_v23 = vrot.slane %v5075_v43, 7  ;;  %v5088_v48 = vrot.slane %v5076_v10, 7  ;;  %v17141_v51 = vld [vmem:[#allocation14 + $0xcc] sm:$0xf0]  ;;  %v13653_v2 = vld [vmem:[#allocation14 + $0x1c0] sm:$0xf]  ;;  %v13734_v8 = vor.u32 %v17193_v6, %v13733_v22 }
 0x4b0   : > { %5113 = vst [vmem:[#allocation4 + $0x4] sm:$0xf] %v5112_v42  ;;  %v5086_v31 = vrot.slane %v5077_v26, 6  ;;  %v5089_v45 = vrot.slane %v5078_v34, 6  ;;  %v17173_v42 = vld [vmem:[#allocation14 + $0x1cc] sm:$0xf0]  ;;  %v13526_v17 = vor.u32 %v17141_v51, %v13525_v39  ;;  %8867 = vmatpush.bf16.msra.mxu3 %v13926_v62 }
 0x4b1   : > { %v13654_v43 = vor.u32 %v17173_v42, %v13653_v2  ;;  %v13781_v10 = vld [vmem:[#allocation14 + $0x2c0] sm:$0xf]  ;;  %v17205_v26 = vld [vmem:[#allocation14 + $0x2cc] sm:$0xf0] }
 0x4b2   : > { %v5087_v56 = vsel %vm1977_vm5, %v5086_v31, %v5085_v23  ;;  %v5090_v30 = vsel %vm1977_vm5, %v5089_v45, %v5088_v48  ;;  %v13782_v34 = vor.u32 %v17205_v26, %v13781_v10  ;;  %v13909_v23 = vld [vmem:[#allocation14 + $0x3c0] sm:$0xf]  ;;  %v17237_v48 = vld [vmem:[#allocation14 + $0x3cc] sm:$0xf0]  ;;  %8829 = vmatpush.bf16.msra.mxu0 %v13526_v17 }
 0x4b3   : > { %v5092_v20 = vpack.c.b16 %v5090_v30, %v5087_v56  ;;  %v13910_v0 = vor.u32 %v17237_v48, %v13909_v23  ;;  %v17137_v31 = vld [vmem:[#allocation14 + $0xac] sm:$0xf0]  ;;  %v13637_v56 = vld [vmem:[#allocation14 + $0x1a0] sm:$0xf]  ;;  %8842 = vmatpush.bf16.msrb.mxu1 %v13654_v43 }
 0x4b4   : > { %v13510_v45 = vor.u32 %v17137_v31, %v13509_v18  ;;  %v17169_v30 = vld [vmem:[#allocation14 + $0x1ac] sm:$0xf0]  ;;  %v13861_v41 = vld [vmem:[#allocation14 + $0x360] sm:$0xf] }
 0x4b5   : > { %v5094_v38 = vrot.slane %v5092_v20, 2  ;;  %8868 = vmatpush.bf16.msra.mxu3 %v13910_v0  ;;  %v17125_v39 = vld [vmem:[#allocation14 + $0x4c] sm:$0xf0]  ;;  %v13589_v62 = vld [vmem:[#allocation14 + $0x140] sm:$0xf] }
 0x4b6   : > { %8830 = vmatpush.bf16.msra.mxu0 %v13510_v45  ;;  %v17157_v2 = vld [vmem:[#allocation14 + $0x14c] sm:$0xf0]  ;;  %v13717_v42 = vld [vmem:[#allocation14 + $0x240] sm:$0xf] }
 0x4b7   : > { %v19749_v32 = vld [vmem:[#allocation4 + $0x4] sm:$0xf]  ;;  %v5100_v52 = vsel %vm3485_vm9, %v5092_v20, %v5094_v38  ;;  %v13638_v20 = vor.u32 %v17169_v30, %v13637_v56  ;;  %v13845_v17 = vld [vmem:[#allocation14 + $0x340] sm:$0xf]  ;;  %v17221_v43 = vld [vmem:[#allocation14 + $0x34c] sm:$0xf0]  ;;  %v13590_v26 = vor.u32 %v17157_v2, %v13589_v62 }
 0x4b8   : > { %v5126_v59 = vrot.slane %v19749_v32, 1  ;;  %v5127_v61 = vrot.slane %v19749_v32, 2  ;;  %v5128_v35 = vrot.slane %v19749_v32, 3  ;;  %5203 = vst [vmem:[#allocation1 + $0x10] sm:$0xff] %v19749_v32  ;;  %v5115_v3 = vsel %vm5110_vm3, %v5100_v52, %v5114_v28  ;;  %v13493_v28 = vld [vmem:[#allocation14 + $0x80] sm:$0xf] }
 0x4b9   : > { %5116 = vst [vmem:[#allocation4 + $0x8] sm:$0xf] %v5115_v3  ;;  %8843 = vmatpush.bf16.msrb.mxu1 %v13638_v20  ;;  %v13445_v10 = vld [vmem:[#allocation14 + $0x20] sm:$0xf]  ;;  %v17121_v23 = vld [vmem:[#allocation14 + $0x2c] sm:$0xf0]  ;;  %v13846_v18 = vor.u32 %v17221_v43, %v13845_v17 }
 0x4ba   : > { %v5139_v44 = vsel %vm3587_vm14, %v19749_v32, %v5126_v59  ;;  %v5142_v50 = vsel %vm1977_vm5, %v5127_v61, %v5128_v35  ;;  %v5157_v24 = vsel %vm5150_vm10, %v19749_v32, %v5126_v59  ;;  %v5158_v40 = vsel %vm1980_vm6, %v5127_v61, %v5128_v35  ;;  %v17201_v59 = vld [vmem:[#allocation14 + $0x2ac] sm:$0xf0]  ;;  %v13893_v61 = vld [vmem:[#allocation14 + $0x3a0] sm:$0xf] }
 0x4bb   : > { %v19762_v58 = vsel %vm3485_vm9, %v5139_v44, %v5142_v50  ;;  %v5159_v60 = vsel %vm5153_vm8, %v5157_v24, %v5158_v40  ;;  %v17233_v35 = vld [vmem:[#allocation14 + $0x3ac] sm:$0xf0]  ;;  %v13766_v38 = vor.u32 %v17201_v59, %v13765_v15  ;;  %v13621_v50 = vld [vmem:[#allocation14 + $0x180] sm:$0xf] }
 0x4bc   : > { %5146 = vst [vmem:[#allocation1 + $0x1] ss:$2 sm:$0xff] %v19762_v58  ;;  %v5161_v19 = vrot.slane %v5159_v60, 1  ;;  %v5184_v16 = vshrl.u32 %v19762_v58, 16  ;;  %v13894_v9 = vor.u32 %v17233_v35, %v13893_v61  ;;  %v17133_v44 = vld [vmem:[#allocation14 + $0x8c] sm:$0xf0]  ;;  %v13446_v61 = vor.u32 %v17121_v23, %v13445_v10 }
 0x4bd   : > { %v17165_v24 = vld [vmem:[#allocation14 + $0x18c] sm:$0xf0]  ;;  %v13749_v40 = vld [vmem:[#allocation14 + $0x280] sm:$0xf]  ;;  %v13494_v3 = vor.u32 %v17133_v44, %v13493_v28 }
 0x4be   : > { %v5189_v25 = vshll.u32 %v5161_v19, 16  ;;  %v17197_v60 = vld [vmem:[#allocation14 + $0x28c] sm:$0xf0]  ;;  %v13877_v19 = vld [vmem:[#allocation14 + $0x380] sm:$0xf]  ;;  %8869 = vmatpush.bf16.msra.mxu3 %v13894_v9 }
 0x4bf   : > { %v5205_v4 = vld [vmem:[#allocation1 + $0x11] ss:$2 sm:$0xff]  ;;  %v13878_v36 = vor.u32 %v17229_v63, %v13877_v19  ;;  %8831 = vmatpush.bf16.msra.mxu0 %v13494_v3  ;;  %v17153_v0 = vld [vmem:[#allocation14 + $0x12c] sm:$0xf0] }
 0x4c0   : > { %v19780_v54 = vld [vmem:[#allocation4 + $0x8] sm:$0xf]  ;;  %v19784_v14 = vsel %vm19773_vm15, %v5184_v16, %v5189_v25  ;;  %v17129_v16 = vld [vmem:[#allocation14 + $0x6c] sm:$0xf0]  ;;  %v13573_v48 = vld [vmem:[#allocation14 + $0x120] sm:$0xf] }
 0x4c1   : > { %5252 = vst [vmem:[#allocation1 + $0x10] sm:$0xff] %v19780_v54  ;;  %v5213_v12 = vrot.slane %v19780_v54, 1  ;;  %v5214_v37 = vrot.slane %v19780_v54, 2  ;;  %v5215_v1 = vrot.slane %v19780_v54, 3  ;;  %v13478_v46 = vor.u32 %v17129_v16, %v13477_v21  ;;  %v13701_v31 = vld [vmem:[#allocation14 + $0x220] sm:$0xf] }
 0x4c2   : > { %8870 = vmatpush.bf16.msra.mxu3 %v13878_v36  ;;  %v17185_v45 = vld [vmem:[#allocation14 + $0x22c] sm:$0xf0]  ;;  %v13829_v56 = vld [vmem:[#allocation14 + $0x320] sm:$0xf]  ;;  %v13574_v9 = vor.u32 %v17153_v0, %v13573_v48 }
 0x4c3   : > { %v5147_v53 = vld [vmem:[#allocation1] sm:$0xff]  ;;  %v5218_v52 = vsel %vm3587_vm14, %v19780_v54, %v5213_v12  ;;  %v5221_v25 = vsel %vm1977_vm5, %v5214_v37, %v5215_v1  ;;  %8832 = vmatpush.bf16.msra.mxu0 %v13478_v46  ;;  %v17217_v30 = vld [vmem:[#allocation14 + $0x32c] sm:$0xf0]  ;;  %v13429_v15 = vld [vmem:[#allocation14] sm:$0xf]  ;;  %v13702_v28 = vor.u32 %v17185_v45, %v13701_v31  ;;  %v5229_v62 = vsel %vm5150_vm10, %v19780_v54, %v5213_v12 }
 0x4c4   : > { %5149 = vst [vmem:[#allocation7] sm:$0xf] %v5147_v53  ;;  %v13750_v53 = vor.u32 %v17197_v60, %v13749_v40  ;;  %v17117_v20 = vld [vmem:[#allocation14 + $0xc] sm:$0xf0]  ;;  %v13557_v35 = vld [vmem:[#allocation14 + $0x100] sm:$0xf] }
 0x4c5   : > { %5193 = vst [vmem:[#allocation1] ss:$2 sm:$0xff] %v5183_v57  ;;  %v13622_v57 = vor.u32 %v17165_v24, %v13621_v50  ;;  %v13685_v44 = vld [vmem:[#allocation14 + $0x200] sm:$0xf]  ;;  %v17181_v50 = vld [vmem:[#allocation14 + $0x20c] sm:$0xf0]  ;;  %v13830_v24 = vor.u32 %v17217_v30, %v13829_v56  ;;  %v13430_v63 = vor.u32 %v17117_v20, %v13429_v15 }
 0x4c6   : > { %5196 = vst [vmem:[#allocation1 + $0x1] ss:$2 sm:$0xff] %v19784_v14  ;;  %v13813_v40 = vld [vmem:[#allocation14 + $0x300] sm:$0xf]  ;;  %v17213_v60 = vld [vmem:[#allocation14 + $0x30c] sm:$0xf0]  ;;  %v13686_v16 = vor.u32 %v17181_v50, %v13685_v44 }
 0x4c7   : > { %8844 = vmatpush.bf16.msrb.mxu1 %v13622_v57  ;;  %v17273_v3 = vld [vmem:[#allocation14 + $0x4ec] sm:$0xf0]  ;;  %v14181_v19 = vld [vmem:[#allocation14 + $0x5e0] sm:$0xf] }
 0x4c8   : > { %v19791_v13 = vld [vmem:[#allocation1 + $0x11] ss:$2 sm:$0xff]  ;;  %v17305_v21 = vld [vmem:[#allocation14 + $0x5ec] sm:$0xf0] }
 0x4c9   : > { %5301 = vst [vmem:[#allocation1 + $0x10] sm:$0xff] %v19789_v7  ;;  %v17337_v57 = vld [vmem:[#allocation14 + $0x6ec] sm:$0xf0]  ;;  %v14037_v36 = vld [vmem:[#allocation14 + $0x4c0] sm:$0xf]  ;;  %v14182_v22 = vor.u32 %v17305_v21, %v14181_v19 }
 0x4ca   : > { %v17301_v46 = vld [vmem:[#allocation14 + $0x5cc] sm:$0xf0]  ;;  %v14421_v2 = vld [vmem:[#allocation14 + $0x7c0] sm:$0xf] }
 0x4cb   : > { %v17265_v12 = vld [vmem:[#allocation14 + $0x4ac] sm:$0xf0]  ;;  %v14149_v10 = vld [vmem:[#allocation14 + $0x5a0] sm:$0xf] }
 0x4cc   : > { %v17329_v23 = vld [vmem:[#allocation14 + $0x6ac] sm:$0xf0]  ;;  %v14405_v48 = vld [vmem:[#allocation14 + $0x7a0] sm:$0xf] }
 0x4cd   : > { %v5197_v49 = vld [vmem:[#allocation1] sm:$0xff]  ;;  %v17361_v0 = vld [vmem:[#allocation14 + $0x7ac] sm:$0xf0]  ;;  %v14005_v30 = vld [vmem:[#allocation14 + $0x480] sm:$0xf] }
 0x4ce   : > { %5200 = vst [vmem:[#allocation1] sm:$0xff] %v19688_v11  ;;  %v17209_v11 = vld [vmem:[#allocation14 + $0x2ec] sm:$0xf0]  ;;  %v14133_v20 = vld [vmem:[#allocation14 + $0x580] sm:$0xf] }
 0x4cf   : > { %5199 = vst [vmem:[#allocation7 + $0x4] sm:$0xf] %v5197_v49  ;;  %v13798_v29 = vor.u32 %v17209_v11, %v13797_v33  ;;  %v17161_v49 = vld [vmem:[#allocation14 + $0x16c] sm:$0xf0]  ;;  %v19807_v11 = vsel %vm3485_vm9, %v5218_v52, %v5221_v25  ;;  %v14053_v52 = vld [vmem:[#allocation14 + $0x4e0] sm:$0xf] }
 0x4d0   : > { %v17225_v33 = vld [vmem:[#allocation14 + $0x36c] sm:$0xf0]  ;;  %v14309_v25 = vld [vmem:[#allocation14 + $0x6e0] sm:$0xf]  ;;  %v5234_v50 = vshrl.u32 %v19807_v11, 16 }
 0x4d1   : > { %8854 = vmatpush.bf16.msrb.mxu2 %v13798_v29  ;;  %v13461_v29 = vld [vmem:[#allocation14 + $0x40] sm:$0xf]  ;;  %v13862_v51 = vor.u32 %v17225_v33, %v13861_v41  ;;  %v14310_v6 = vor.u32 %v17337_v57, %v14309_v25  ;;  %v17269_v41 = vld [vmem:[#allocation14 + $0x4cc] sm:$0xf0] }
 0x4d2   : > { %v14165_v33 = vld [vmem:[#allocation14 + $0x5c0] sm:$0xf]  ;;  %v17261_v15 = vld [vmem:[#allocation14 + $0x48c] sm:$0xf0] }
 0x4d3   : > { %8871 = vmatpush.bf16.msra.mxu3 %v13862_v51  ;;  %v5230_v51 = vsel %vm1980_vm6, %v5214_v37, %v5215_v1  ;;  %v14166_v17 = vor.u32 %v17301_v46, %v14165_v33  ;;  %v17297_v37 = vld [vmem:[#allocation14 + $0x5ac] sm:$0xf0]  ;;  %v14277_v1 = vld [vmem:[#allocation14 + $0x6a0] sm:$0xf]  ;;  %v14006_v44 = vor.u32 %v17261_v15, %v14005_v30 }
 0x4d4   : > { %v14150_v45 = vor.u32 %v17297_v37, %v14149_v10  ;;  %v14278_v56 = vor.u32 %v17329_v23, %v14277_v1  ;;  %v14117_v19 = vld [vmem:[#allocation14 + $0x560] sm:$0xf]  ;;  %v17289_v21 = vld [vmem:[#allocation14 + $0x56c] sm:$0xf0] }
 0x4d5   : > { %v5202_v5 = vld [vmem:[#allocation1 + $0x1] ss:$2 sm:$0xff]  ;;  %8855 = vmatpush.bf16.msrb.mxu2 %v13782_v34  ;;  %v14245_v25 = vld [vmem:[#allocation14 + $0x660] sm:$0xf] }
 0x4d6   : > { %5206 = vst [vmem:[#allocation1] ss:$2 sm:$0xff] %v5202_v5  ;;  %v17189_v5 = vld [vmem:[#allocation14 + $0x24c] sm:$0xf0]  ;;  %v14229_v46 = vld [vmem:[#allocation14 + $0x640] sm:$0xf] }
 0x4d7   : > { %5208 = vst [vmem:[#allocation1 + $0x1] ss:$2 sm:$0xff] %v5205_v4  ;;  %v13605_v4 = vld [vmem:[#allocation14 + $0x160] sm:$0xf]  ;;  %v13718_v34 = vor.u32 %v17189_v5, %v13717_v42  ;;  %8872 = vmatpush.bf16.msra.mxu3 %v13846_v18  ;;  %v17365_v42 = vld [vmem:[#allocation14 + $0x7cc] sm:$0xf0]  ;;  %v14038_v5 = vor.u32 %v17269_v41, %v14037_v36 }
 0x4d8   : > { %v13606_v47 = vor.u32 %v17161_v49, %v13605_v4  ;;  %v14437_v4 = vld [vmem:[#allocation14 + $0x7e0] sm:$0xf]  ;;  %v17369_v49 = vld [vmem:[#allocation14 + $0x7ec] sm:$0xf0] }
 0x4d9   : > { %8856 = vmatpush.bf16.msrb.mxu2 %v13766_v38  ;;  %v17149_v38 = vld [vmem:[#allocation14 + $0x10c] sm:$0xf0]  ;;  %v14341_v10 = vld [vmem:[#allocation14 + $0x720] sm:$0xf] }
 0x4da   : > { %8845 = vmatpush.bf16.msrb.mxu1 %v13606_v47  ;;  %v14438_v47 = vor.u32 %v17369_v49, %v14437_v4  ;;  %v17321_v57 = vld [vmem:[#allocation14 + $0x66c] sm:$0xf0]  ;;  %v13973_v49 = vld [vmem:[#allocation14 + $0x440] sm:$0xf] }
 0x4db   : > { %8873 = vmatpush.bf16.msra.mxu3 %v13830_v24  ;;  %v14246_v36 = vor.u32 %v17321_v57, %v14245_v25  ;;  %v17285_v33 = vld [vmem:[#allocation14 + $0x54c] sm:$0xf0]  ;;  %v13941_v37 = vld [vmem:[#allocation14 + $0x400] sm:$0xf] }
 0x4dc   : > { %v17245_v1 = vld [vmem:[#allocation14 + $0x40c] sm:$0xf0]  ;;  %v14325_v15 = vld [vmem:[#allocation14 + $0x700] sm:$0xf] }
 0x4dd   : > { %8857 = vmatpush.bf16.msrb.mxu2 %v13750_v53  ;;  %v13558_v53 = vor.u32 %v17149_v38, %v13557_v35  ;;  %v14261_v35 = vld [vmem:[#allocation14 + $0x680] sm:$0xf]  ;;  %v17325_v38 = vld [vmem:[#allocation14 + $0x68c] sm:$0xf0] }
 0x4de   : > { %v5209_v55 = vld [vmem:[#allocation1] sm:$0xff]  ;;  %8846 = vmatpush.bf16.msrb.mxu1 %v13590_v26  ;;  %v5231_v26 = vsel %vm5153_vm8, %v5229_v62, %v5230_v51  ;;  %v17309_v30 = vld [vmem:[#allocation14 + $0x60c] sm:$0xf0] }
 0x4df   : > { %5211 = vst [vmem:[#allocation7 + $0x8] sm:$0xf] %v5209_v55  ;;  %v14054_v55 = vor.u32 %v17273_v3, %v14053_v52  ;;  %v5233_v31 = vrot.slane %v5231_v26, 1  ;;  %v13989_v52 = vld [vmem:[#allocation14 + $0x460] sm:$0xf] }
 0x4e0   : > { %5223 = vst [vmem:[#allocation1] ss:$2 sm:$0xff] %v19762_v58  ;;  %v13462_v58 = vor.u32 %v17125_v39, %v13461_v29  ;;  %v17333_v39 = vld [vmem:[#allocation14 + $0x6cc] sm:$0xf0] }
 0x4e1   : > { %5225 = vst [vmem:[#allocation1 + $0x1] ss:$2 sm:$0xff] %v19807_v11  ;;  %8858 = vmatpush.bf16.msrb.mxu2 %v13734_v8  ;;  %v14293_v8 = vld [vmem:[#allocation14 + $0x6c0] sm:$0xf]  ;;  %v5239_v24 = vshll.u32 %v5233_v31, 16 }
 0x4e2   : > { %8833 = vmatpush.bf16.msra.mxu0 %v13462_v58  ;;  %8847 = vmatpush.bf16.msrb.mxu1 %v13574_v9  ;;  %v14294_v43 = vor.u32 %v17333_v39, %v14293_v8  ;;  %v14021_v58 = vld [vmem:[#allocation14 + $0x4a0] sm:$0xf]  ;;  %v17257_v3 = vld [vmem:[#allocation14 + $0x46c] sm:$0xf0] }
 0x4e3   : > { %v14022_v18 = vor.u32 %v17265_v12, %v14021_v58  ;;  %v14389_v9 = vld [vmem:[#allocation14 + $0x780] sm:$0xf]  ;;  %v13990_v4 = vor.u32 %v17257_v3, %v13989_v52  ;;  %v17349_v8 = vld [vmem:[#allocation14 + $0x74c] sm:$0xf0] }
 0x4e4   : > { %v14213_v58 = vld [vmem:[#allocation14 + $0x620] sm:$0xf]  ;;  %v17313_v12 = vld [vmem:[#allocation14 + $0x62c] sm:$0xf0] }
 0x4e5   : > { %8859 = vmatpush.bf16.msrb.mxu2 %v13718_v34  ;;  %v14422_v34 = vor.u32 %v17365_v42, %v14421_v2  ;;  %v13957_v2 = vld [vmem:[#allocation14 + $0x420] sm:$0xf]  ;;  %v17249_v42 = vld [vmem:[#allocation14 + $0x42c] sm:$0xf0] }
 0x4e6   : > { %8834 = vmatpush.bf16.msra.mxu0 %v13446_v61  ;;  %8848 = vmatpush.bf16.msrb.mxu1 %v13558_v53  ;;  %v17293_v61 = vld [vmem:[#allocation14 + $0x58c] sm:$0xf0]  ;;  %v14373_v53 = vld [vmem:[#allocation14 + $0x760] sm:$0xf] }
 0x4e7   : > { %v17345_v26 = vld [vmem:[#allocation14 + $0x72c] sm:$0xf0] }
 0x4e8   : > { %v5226_v59 = vld [vmem:[#allocation1] sm:$0xff]  ;;  %v17277_v31 = vld [vmem:[#allocation14 + $0x50c] sm:$0xf0] }
 0x4e9   : > { %5228 = vst [vmem:[#allocation7 + $0xc] sm:$0xf] %v5226_v59  ;;  %8860 = vmatpush.bf16.msrb.mxu2 %v13702_v28  ;;  %v14406_v59 = vor.u32 %v17361_v0, %v14405_v48  ;;  %v17357_v28 = vld [vmem:[#allocation14 + $0x78c] sm:$0xf0]  ;;  %v14214_v0 = vor.u32 %v17313_v12, %v14213_v58  ;;  %v14933_v58 = vld [vmem:[#allocation14 + $0xbc0] sm:$0xf] }
 0x4ea   : > { %5242 = vst [vmem:[#allocation1] ss:$2 sm:$0xff] %v19784_v14  ;;  %v13814_v14 = vor.u32 %v17213_v60, %v13813_v40  ;;  %8835 = vmatpush.bf16.msra.mxu0 %v13430_v63  ;;  %8893 = vmatpush.bf16.msra.mxu1 %v14182_v22  ;;  %v14134_v40 = vor.u32 %v17293_v61, %v14133_v20  ;;  %v17253_v22 = vld [vmem:[#allocation14 + $0x44c] sm:$0xf0] }
 0x4eb   : > { %v14262_v60 = vor.u32 %v17325_v38, %v14261_v35  ;;  %v14390_v63 = vor.u32 %v17357_v28, %v14389_v9  ;;  %v13974_v39 = vor.u32 %v17253_v22, %v13973_v49  ;;  %v17341_v20 = vld [vmem:[#allocation14 + $0x70c] sm:$0xf0]  ;;  %v5263_v28 = vrot.slane %v19789_v7, 2  ;;  %v14565_v22 = vld [vmem:[#allocation14 + $0x8e0] sm:$0xf] }
 0x4ec   : > { %8874 = vmatpush.bf16.msra.mxu3 %v13814_v14  ;;  %v19825_v14 = vsel %vm19773_vm15, %v5234_v50, %v5239_v24  ;;  %v14326_v38 = vor.u32 %v17341_v20, %v14325_v15  ;;  %v17493_v12 = vld [vmem:[#allocation14 + $0xbcc] sm:$0xf0]  ;;  %v14789_v20 = vld [vmem:[#allocation14 + $0xaa0] sm:$0xf] }
 0x4ed   : > { %8861 = vmatpush.bf16.msrb.mxu2 %v13686_v16  ;;  %v17353_v16 = vld [vmem:[#allocation14 + $0x76c] sm:$0xf0]  ;;  %5245 = vst [vmem:[#allocation1 + $0x1] ss:$2 sm:$0xff] %v19825_v14 }
 0x4ee   : > { %8880 = vmatpush.bf16.msrb.mxu0 %v14054_v55  ;;  %8894 = vmatpush.bf16.msra.mxu1 %v14166_v17  ;;  %v14118_v55 = vor.u32 %v17289_v21, %v14117_v19  ;;  %v14374_v41 = vor.u32 %v17353_v16, %v14373_v53  ;;  %v17425_v15 = vld [vmem:[#allocation14 + $0x9ac] sm:$0xf0] }
 0x4f0   : > { %v5311_v29 = vld [vmem:[#allocation7 + $0x8] sm:$0xff]  ;;  %8919 = vmatpush.bf16.msrb.mxu3 %v14438_v47  ;;  %v14357_v47 = vld [vmem:[#allocation14 + $0x740] sm:$0xf] }
 0x4f1   : > { %5905 = vst [vmem:[#allocation1 + $0x20] ss:$4 sm:$0xff] %v5311_v29  ;;  %8906 = vmatpush.bf16.msra.mxu2 %v14310_v6  ;;  %v14101_v6 = vld [vmem:[#allocation14 + $0x540] sm:$0xf]  ;;  %v17317_v29 = vld [vmem:[#allocation14 + $0x64c] sm:$0xf0]  ;;  %v14358_v17 = vor.u32 %v17349_v8, %v14357_v47 }
 0x4f2   : > { %8881 = vmatpush.bf16.msrb.mxu0 %v14038_v5  ;;  %8895 = vmatpush.bf16.msra.mxu1 %v14150_v45  ;;  %v14102_v62 = vor.u32 %v17285_v33, %v14101_v6  ;;  %v14230_v51 = vor.u32 %v17317_v29, %v14229_v46  ;;  %v14085_v5 = vld [vmem:[#allocation14 + $0x520] sm:$0xf]  ;;  %v14342_v45 = vor.u32 %v17345_v26, %v14341_v10  ;;  %v17465_v46 = vld [vmem:[#allocation14 + $0xaec] sm:$0xf0] }
 0x4f3   : > { %v14693_v6 = vld [vmem:[#allocation14 + $0x9e0] sm:$0xf]  ;;  %v17497_v47 = vld [vmem:[#allocation14 + $0xbec] sm:$0xf0] }
 0x4f4   : > { %8920 = vmatpush.bf16.msrb.mxu3 %v14422_v34  ;;  %v13958_v34 = vor.u32 %v17249_v42, %v13957_v2  ;;  %v5246_v23 = vld [vmem:[#allocation1] sm:$0xff]  ;;  %v14821_v33 = vld [vmem:[#allocation14 + $0xae0] sm:$0xf] }
 0x4f5   : > { %8907 = vmatpush.bf16.msra.mxu2 %v14294_v43  ;;  %v17281_v43 = vld [vmem:[#allocation14 + $0x52c] sm:$0xf0]  ;;  %5249 = vst [vmem:[#allocation1] sm:$0xff] %v19749_v32  ;;  %v5262_v32 = vrot.slane %v19789_v7, 1  ;;  %v14949_v29 = vld [vmem:[#allocation14 + $0xbe0] sm:$0xf] }
 0x4f6   : > { %8882 = vmatpush.bf16.msrb.mxu0 %v14022_v18  ;;  %8896 = vmatpush.bf16.msra.mxu1 %v14134_v40  ;;  %v14086_v48 = vor.u32 %v17281_v43, %v14085_v5  ;;  %v14069_v18 = vld [vmem:[#allocation14 + $0x500] sm:$0xf]  ;;  %5248 = vst [vmem:[#allocation7 + $0x10] sm:$0xf] %v5246_v23  ;;  %v17461_v43 = vld [vmem:[#allocation14 + $0xacc] sm:$0xf0] }
 0x4f7   : > { %v14070_v61 = vor.u32 %v17277_v31, %v14069_v18  ;;  %v5278_v50 = vsel %vm5150_vm10, %v19789_v7, %v5262_v32  ;;  %v5267_v40 = vsel %vm3587_vm14, %v19789_v7, %v5262_v32  ;;  %v14549_v8 = vld [vmem:[#allocation14 + $0x8c0] sm:$0xf]  ;;  %v17393_v31 = vld [vmem:[#allocation14 + $0x8ac] sm:$0xf0]  ;;  %vm12105_vm14 = vcmask 73728  }
 0x4f8   : > { %8921 = vmatpush.bf16.msrb.mxu3 %v14406_v59  ;;  %v13942_v59 = vor.u32 %v17245_v1, %v13941_v37  ;;  %v19846_v53 = vld.sshfl [vmem:[#allocation1 + $0x20] sm:$0xff pattern:$0x73625140]  ;;  %v19848_v16 = vld.sshfl [vmem:[#allocation1 + $0x28] sm:$0xff pattern:$0x73625140]  ;;  %v14950_v37 = vor.u32 %v17497_v47, %v14949_v29 }
 0x4f9   : > { %8908 = vmatpush.bf16.msra.mxu2 %v14278_v56  ;;  %v14197_v56 = vld [vmem:[#allocation14 + $0x600] sm:$0xf] }
 0x4fa   : > { %8883 = vmatpush.bf16.msrb.mxu0 %v14006_v44  ;;  %8897 = vmatpush.bf16.msra.mxu1 %v14118_v55  ;;  %v14198_v35 = vor.u32 %v17309_v30, %v14197_v56  ;;  %v5264_v44 = vrot.slane %v19789_v7, 3  ;;  %v19852_v55 = vld.sshfl [vmem:[#allocation1 + $0x38] sm:$0xff pattern:$0x73625140]  ;;  %v14934_v56 = vor.u32 %v17493_v12, %v14933_v58 }
 0x4fb   : > { %v14533_v18 = vld [vmem:[#allocation14 + $0x8a0] sm:$0xf] }
 0x4fc   : > { %8922 = vmatpush.bf16.msrb.mxu3 %v14390_v63  ;;  %v5251_v9 = vld [vmem:[#allocation1 + $0x1] ss:$2 sm:$0xff]  ;;  %v5279_v24 = vsel %vm1980_vm6, %v5263_v28, %v5264_v44  ;;  %v14661_v30 = vld [vmem:[#allocation14 + $0x9a0] sm:$0xf]  ;;  %vm9781_vm6 = vcmask 1045506  }
 0x4fd   : > { %8909 = vmatpush.bf16.msra.mxu2 %v14262_v60  ;;  %5255 = vst [vmem:[#allocation1] ss:$2 sm:$0xff] %v5251_v9  ;;  %v5270_v60 = vsel %vm1977_vm5, %v5263_v28, %v5264_v44  ;;  %v5280_v52 = vsel %vm5153_vm8, %v5278_v50, %v5279_v24  ;;  %v14662_v9 = vor.u32 %v17425_v15, %v14661_v30  ;;  %v14517_v32 = vld [vmem:[#allocation14 + $0x880] sm:$0xf]  ;;  %v17389_v28 = vld [vmem:[#allocation14 + $0x88c] sm:$0xf0] }
 0x4fe   : > { %8884 = vmatpush.bf16.msrb.mxu0 %v13990_v4  ;;  %8898 = vmatpush.bf16.msra.mxu1 %v14102_v62  ;;  %5257 = vst [vmem:[#allocation1 + $0x1] ss:$2 sm:$0xff] %v19791_v13  ;;  %v5271_v3 = vsel %vm3485_vm9, %v5267_v40, %v5270_v60  ;;  %v5282_v63 = vrot.slane %v5280_v52, 1  ;;  %v5303_v4 = vld [vmem:[#allocation1 + $0x11] ss:$2 sm:$0xff]  ;;  %vm9777_vm5 = vcmask 1043456  }
 0x4ff   : > { %v5283_v13 = vshrl.u32 %v5271_v3, 16  ;;  %v14677_v62 = vld [vmem:[#allocation14 + $0x9c0] sm:$0xf]  ;;  %v17421_v40 = vld [vmem:[#allocation14 + $0x98c] sm:$0xf0] }
 0x500   : > { %8923 = vmatpush.bf16.msrb.mxu3 %v14374_v41  ;;  %v5288_v21 = vshll.u32 %v5282_v63, 16  ;;  %v17433_v41 = vld [vmem:[#allocation14 + $0x9ec] sm:$0xf0]  ;;  %v14645_v24 = vld [vmem:[#allocation14 + $0x980] sm:$0xf]  ;;  %v14518_v63 = vor.u32 %v17389_v28, %v14517_v32 }
 0x501   : > { %8910 = vmatpush.bf16.msra.mxu2 %v14246_v36  ;;  %v5310_v36 = vld [vmem:[#allocation7] sm:$0xff]  ;;  %v14694_v5 = vor.u32 %v17433_v41, %v14693_v6  ;;  %v14773_v60 = vld [vmem:[#allocation14 + $0xa80] sm:$0xf] }
 0x502   : > { %8885 = vmatpush.bf16.msrb.mxu0 %v13974_v39  ;;  %8899 = vmatpush.bf16.msra.mxu1 %v14086_v48  ;;  %v5290_v25 = vsel %vm19773_vm15, %v5283_v13, %v5288_v21  ;;  %v17397_v39 = vld [vmem:[#allocation14 + $0x8cc] sm:$0xf0]  ;;  %v14646_v13 = vor.u32 %v17421_v40, %v14645_v24  ;;  %v14501_v21 = vld [vmem:[#allocation14 + $0x860] sm:$0xf] }
 0x503   : > { %v14550_v48 = vor.u32 %v17397_v39, %v14549_v8  ;;  %v17453_v52 = vld [vmem:[#allocation14 + $0xa8c] sm:$0xf0]  ;;  %v14613_v41 = vld [vmem:[#allocation14 + $0x940] sm:$0xf] }
 0x504   : > { %8924 = vmatpush.bf16.msrb.mxu3 %v14358_v17  ;;  %v14805_v17 = vld [vmem:[#allocation14 + $0xac0] sm:$0xf]  ;;  %v17381_v6 = vld [vmem:[#allocation14 + $0x84c] sm:$0xf0] }
 0x505   : > { %8911 = vmatpush.bf16.msra.mxu2 %v14230_v51  ;;  %v5258_v19 = vld [vmem:[#allocation1] sm:$0xff]  ;;  %v17429_v51 = vld [vmem:[#allocation14 + $0x9cc] sm:$0xf0]  ;;  %v14741_v47 = vld [vmem:[#allocation14 + $0xa40] sm:$0xf] }
 0x506   : > { %8886 = vmatpush.bf16.msrb.mxu0 %v13958_v34  ;;  %8900 = vmatpush.bf16.msra.mxu1 %v14070_v61  ;;  %5260 = vst [vmem:[#allocation7 + $0x14] sm:$0xf] %v5258_v19  ;;  %v14822_v34 = vor.u32 %v17465_v46, %v14821_v33  ;;  %v14917_v61 = vld [vmem:[#allocation14 + $0xba0] sm:$0xf]  ;;  %v17485_v19 = vld [vmem:[#allocation14 + $0xb8c] sm:$0xf0] }
 0x507   : > { %5272 = vst [vmem:[#allocation1] ss:$2 sm:$0xff] %v19807_v11  ;;  %v19850_v11 = vld.sshfl [vmem:[#allocation1 + $0x30] sm:$0xff pattern:$0x73625140] }
 0x508   : > { %8925 = vmatpush.bf16.msrb.mxu3 %v14342_v45  ;;  %5274 = vst [vmem:[#allocation1 + $0x1] ss:$2 sm:$0xff] %v5271_v3  ;;  %v14806_v45 = vor.u32 %v17461_v43, %v14805_v17  ;;  %v14901_v3 = vld [vmem:[#allocation14 + $0xb80] sm:$0xf]  ;;  %v17413_v33 = vld [vmem:[#allocation14 + $0x94c] sm:$0xf0] }
 0x509   : > { %8912 = vmatpush.bf16.msra.mxu2 %v14214_v0  ;;  %v14678_v0 = vor.u32 %v17429_v51, %v14677_v62  ;;  %v14869_v17 = vld [vmem:[#allocation14 + $0xb40] sm:$0xf]  ;;  %v17477_v43 = vld [vmem:[#allocation14 + $0xb4c] sm:$0xf0] }
 0x50a   : > { %8887 = vmatpush.bf16.msrb.mxu0 %v13942_v59  ;;  %v17457_v59 = vld [vmem:[#allocation14 + $0xaac] sm:$0xf0]  ;;  %v14853_v15 = vld [vmem:[#allocation14 + $0xb20] sm:$0xf] }
 0x50b   : > { %v14790_v44 = vor.u32 %v17457_v59, %v14789_v20  ;;  %v17441_v30 = vld [vmem:[#allocation14 + $0xa2c] sm:$0xf0]  ;;  %v14453_v59 = vld [vmem:[#allocation14 + $0x800] sm:$0xf] }
 0x50c   : > { %8926 = vmatpush.bf16.msrb.mxu3 %v14326_v38  ;;  %v14534_v38 = vor.u32 %v17393_v31, %v14533_v18  ;;  %v14870_v18 = vor.u32 %v17477_v43, %v14869_v17  ;;  %v14597_v31 = vld [vmem:[#allocation14 + $0x920] sm:$0xf]  ;;  %v17473_v20 = vld [vmem:[#allocation14 + $0xb2c] sm:$0xf0] }
 0x50d   : > { %8913 = vmatpush.bf16.msra.mxu2 %v14198_v35  ;;  %v5312_v2 = vld [vmem:[#allocation7 + $0x10] sm:$0xff]  ;;  %v17489_v35 = vld [vmem:[#allocation14 + $0xbac] sm:$0xf0] }
 0x50e   : > { %v14918_v50 = vor.u32 %v17489_v35, %v14917_v61  ;;  %v17405_v32 = vld [vmem:[#allocation14 + $0x90c] sm:$0xf0]  ;;  %v14837_v40 = vld [vmem:[#allocation14 + $0xb00] sm:$0xf] }
 0x50f   : > { %v5275_v57 = vld [vmem:[#allocation1] sm:$0xff]  ;;  %v17437_v24 = vld [vmem:[#allocation14 + $0xa0c] sm:$0xf0]  ;;  %v15045_v43 = vld [vmem:[#allocation14 + $0xca0] sm:$0xf] }
 0x510   : > { %5277 = vst [vmem:[#allocation7 + $0x18] sm:$0xf] %v5275_v57  ;;  %v14774_v57 = vor.u32 %v17453_v52, %v14773_v60  ;;  %v17469_v60 = vld [vmem:[#allocation14 + $0xb0c] sm:$0xf0]  ;;  %v15077_v52 = vld [vmem:[#allocation14 + $0xce0] sm:$0xf] }
 0x511   : > { %5291 = vst [vmem:[#allocation1] ss:$2 sm:$0xff] %v19825_v14 }
 0x512   : > { %5294 = vst [vmem:[#allocation1 + $0x1] ss:$2 sm:$0xff] %v5290_v25  ;;  %v17385_v25 = vld [vmem:[#allocation14 + $0x86c] sm:$0xf0] }
 0x513   : > { %v14502_v46 = vor.u32 %v17385_v25, %v14501_v21 }
 0x519   : > { %v5295_v7 = vld [vmem:[#allocation1] sm:$0xff] }
 0x51a   : > { %5297 = vst [vmem:[#allocation7 + $0x1c] sm:$0xf] %v5295_v7  ;;  %v14902_v7 = vor.u32 %v17485_v19, %v14901_v3  ;;  %v17529_v3 = vld [vmem:[#allocation14 + $0xcec] sm:$0xf0]  ;;  %v15205_v19 = vld [vmem:[#allocation14 + $0xde0] sm:$0xf] }
 0x51b   : > { %5298 = vst [vmem:[#allocation1] sm:$0xff] %v19780_v54  ;;  %v17401_v54 = vld [vmem:[#allocation14 + $0x8ec] sm:$0xf0] }
 0x51c   : > { %v14566_v42 = vor.u32 %v17401_v54, %v14565_v22  ;;  %v17481_v22 = vld [vmem:[#allocation14 + $0xb6c] sm:$0xf0]  ;;  %v14485_v54 = vld [vmem:[#allocation14 + $0x840] sm:$0xf] }
 0x51d   : > { %v14486_v12 = vor.u32 %v17381_v6, %v14485_v54  ;;  %v17525_v54 = vld [vmem:[#allocation14 + $0xccc] sm:$0xf0] }
 0x521   : > { %v5313_v49 = vld [vmem:[#allocation7 + $0x18] sm:$0xff] }
 0x522   : > { %v5300_v27 = vld [vmem:[#allocation1 + $0x1] ss:$2 sm:$0xff]  ;;  %5917 = vst [vmem:[#allocation1 + $0x20] ss:$4 sm:$0xff] %v5313_v49 }
 0x523   : > { %5304 = vst [vmem:[#allocation1] ss:$2 sm:$0xff] %v5300_v27  ;;  %v17417_v49 = vld [vmem:[#allocation14 + $0x96c] sm:$0xf0]  ;;  %v14757_v27 = vld [vmem:[#allocation14 + $0xa60] sm:$0xf] }
 0x524   : > { %5306 = vst [vmem:[#allocation1 + $0x1] ss:$2 sm:$0xff] %v5303_v4  ;;  %v14629_v4 = vld [vmem:[#allocation14 + $0x960] sm:$0xf] }
 0x525   : > { %v14630_v29 = vor.u32 %v17417_v49, %v14629_v4  ;;  %v17625_v4 = vld [vmem:[#allocation14 + $0xfec] sm:$0xf0] }
 0x52b   : > { %v5307_v14 = vld [vmem:[#allocation1] sm:$0xff] }
 0x52c   : > { %5309 = vst [vmem:[#allocation7 + $0x20] sm:$0xf] %v5307_v14  ;;  %v17449_v14 = vld [vmem:[#allocation14 + $0xa6c] sm:$0xf0] }
 0x52d   : > { %5902 = vst [vmem:[#allocation1] ss:$4 sm:$0xff] %v5310_v36  ;;  %v14885_v36 = vld [vmem:[#allocation14 + $0xb60] sm:$0xf]  ;;  %v14758_v62 = vor.u32 %v17449_v14, %v14757_v27  ;;  %v14838_v27 = vor.u32 %v17469_v60, %v14837_v40  ;;  %v15078_v14 = vor.u32 %v17529_v3, %v15077_v52  ;;  %v17513_v60 = vld [vmem:[#allocation14 + $0xc6c] sm:$0xf0] }
 0x52e   : > { %v14886_v51 = vor.u32 %v17481_v22, %v14885_v36  ;;  %v15061_v22 = vld [vmem:[#allocation14 + $0xcc0] sm:$0xf] }
 0x52f   : > { %v15013_v40 = vld [vmem:[#allocation14 + $0xc60] sm:$0xf] }
 0x533   : > { %v5314_v58 = vld [vmem:[#allocation7 + $0x20] sm:$0xf] }
 0x534   : > { %v19854_v10 = vld.sshfl [vmem:[#allocation1] sm:$0xff pattern:$0x73625140]  ;;  %v19856_v26 = vld.sshfl [vmem:[#allocation1 + $0x8] sm:$0xff pattern:$0x73625140] }
 0x535   : > { %8836 = vmatmul.bf16.vlgmr.msra.gmra.mxu0 %v19854_v10  ;;  %8849 = vmatmul.bf16.vlgmr.msrb.gmra.mxu1 %v19856_v26  ;;  %v19860_v1 = vld.sshfl [vmem:[#allocation1 + $0x10] sm:$0xff pattern:$0x73625140]  ;;  %v19862_v23 = vld.sshfl [vmem:[#allocation1 + $0x18] sm:$0xff pattern:$0x73625140] }
 0x536   : > { %8862 = vmatmul.bf16.vlgmr.msrb.gmra.mxu2 %v19860_v1  ;;  %5915 = vst [vmem:[#allocation1] ss:$4 sm:$0xff] %v5312_v2  ;;  %8875 = vmatmul.bf16.vlgmr.msra.gmra.mxu3 %v19862_v23 }
 0x537   : > { %8932 = vmatpush.bf16.msra.mxu0 %v14566_v42  ;;  %8945 = vmatpush.bf16.msrb.mxu1 %v14694_v5  ;;  %v17445_v5 = vld [vmem:[#allocation14 + $0xa4c] sm:$0xf0] }
 0x538   : > { %8958 = vmatpush.bf16.msrb.mxu2 %v14822_v34  ;;  %8971 = vmatpush.bf16.msra.mxu3 %v14950_v37  ;;  %v14614_v34 = vor.u32 %v17413_v33, %v14613_v41  ;;  %v14469_v37 = vld [vmem:[#allocation14 + $0x820] sm:$0xf] }
 0x539   : > { %v15189_v33 = vld [vmem:[#allocation14 + $0xdc0] sm:$0xf] }
 0x53b   : > { %8933 = vmatpush.bf16.msra.mxu0 %v14550_v48  ;;  %8946 = vmatpush.bf16.msrb.mxu1 %v14678_v0  ;;  %v17377_v48 = vld [vmem:[#allocation14 + $0x82c] sm:$0xf0]  ;;  %v14742_v0 = vor.u32 %v17445_v5, %v14741_v47  ;;  %v15062_v5 = vor.u32 %v17525_v54, %v15061_v22  ;;  %v15125_v22 = vld [vmem:[#allocation14 + $0xd40] sm:$0xf] }
 0x53c   : > { %8959 = vmatpush.bf16.msrb.mxu2 %v14806_v45  ;;  %8972 = vmatpush.bf16.msra.mxu3 %v14934_v56  ;;  %v17409_v45 = vld [vmem:[#allocation14 + $0x92c] sm:$0xf0]  ;;  %v14725_v56 = vld [vmem:[#allocation14 + $0xa20] sm:$0xf]  ;;  %v14470_v61 = vor.u32 %v17377_v48, %v14469_v37 }
 0x53d   : > { %v19866_v8 = vld.sshfl [vmem:[#allocation1] sm:$0xff pattern:$0x73625140]  ;;  %v19868_v39 = vld.sshfl [vmem:[#allocation1 + $0x8] sm:$0xff pattern:$0x73625140]  ;;  %v14598_v35 = vor.u32 %v17409_v45, %v14597_v31  ;;  %v14726_v28 = vor.u32 %v17441_v30, %v14725_v56 }
 0x53e   : > { %v19870_v2 = vld.sshfl [vmem:[#allocation1 + $0x10] sm:$0xff pattern:$0x73625140]  ;;  %v19872_v42 = vld.sshfl [vmem:[#allocation1 + $0x18] sm:$0xff pattern:$0x73625140] }
 0x53f   : > { %8934 = vmatpush.bf16.msra.mxu0 %v14534_v38  ;;  %8947 = vmatpush.bf16.msrb.mxu1 %v14662_v9  ;;  %5927 = vst [vmem:[#allocation1] ss:$4 sm:$0xff] %v5314_v58  ;;  %v17373_v38 = vld [vmem:[#allocation14 + $0x80c] sm:$0xf0]  ;;  %v14581_v9 = vld [vmem:[#allocation14 + $0x900] sm:$0xf] }
 0x540   : > { %8960 = vmatpush.bf16.msrb.mxu2 %v14790_v44  ;;  %8973 = vmatpush.bf16.msra.mxu3 %v14918_v50  ;;  %v14854_v44 = vor.u32 %v17473_v20, %v14853_v15  ;;  %v14709_v50 = vld [vmem:[#allocation14 + $0xa00] sm:$0xf]  ;;  %v14454_v21 = vor.u32 %v17373_v38, %v14453_v59  ;;  %v14582_v25 = vor.u32 %v17405_v32, %v14581_v9  ;;  %v17589_v47 = vld [vmem:[#allocation14 + $0xecc] sm:$0xf0] }
 0x541   : > { %v14710_v49 = vor.u32 %v17437_v24, %v14709_v50  ;;  %v17521_v58 = vld [vmem:[#allocation14 + $0xcac] sm:$0xf0]  ;;  %v15173_v37 = vld [vmem:[#allocation14 + $0xda0] sm:$0xf] }
 0x542   : > { %v17553_v48 = vld [vmem:[#allocation14 + $0xdac] sm:$0xf0]  ;;  %v15429_v31 = vld [vmem:[#allocation14 + $0xfa0] sm:$0xf]  ;;  %v15046_v56 = vor.u32 %v17521_v58, %v15045_v43 }
 0x543   : > { %8935 = vmatpush.bf16.msra.mxu0 %v14518_v63  ;;  %8948 = vmatpush.bf16.msrb.mxu1 %v14646_v13  ;;  %v17561_v63 = vld [vmem:[#allocation14 + $0xdec] sm:$0xf0]  ;;  %v15333_v13 = vld [vmem:[#allocation14 + $0xee0] sm:$0xf]  ;;  %v15174_v30 = vor.u32 %v17553_v48, %v15173_v37 }
 0x544   : > { %8961 = vmatpush.bf16.msrb.mxu2 %v14774_v57  ;;  %8974 = vmatpush.bf16.msra.mxu3 %v14902_v7  ;;  %v17593_v57 = vld [vmem:[#allocation14 + $0xeec] sm:$0xf0]  ;;  %v15461_v7 = vld [vmem:[#allocation14 + $0xfe0] sm:$0xf]  ;;  %v15206_v36 = vor.u32 %v17561_v63, %v15205_v19 }
 0x545   : > { %8888 = vmatmul.bf16.vlgmr.msrb.gmra.mxu0 %v19846_v53  ;;  %8901 = vmatmul.bf16.vlgmr.msra.gmra.mxu1 %v19848_v16  ;;  %v15334_v6 = vor.u32 %v17593_v57, %v15333_v13  ;;  %v15462_v41 = vor.u32 %v17625_v4, %v15461_v7  ;;  %v17617_v45 = vld [vmem:[#allocation14 + $0xfac] sm:$0xf0]  ;;  %v15029_v15 = vld [vmem:[#allocation14 + $0xc80] sm:$0xf]  ;;  %v15014_v7 = vor.u32 %v17513_v60, %v15013_v40  ;;  %v13543_v60 = vld [vmem:[#allocation14 + $0xf0] sm:$0xf0] }
 0x546   : > { %8914 = vmatmul.bf16.vlgmr.msra.gmra.mxu2 %v19850_v11  ;;  %8927 = vmatmul.bf16.vlgmr.msrb.gmra.mxu3 %v19852_v55  ;;  %v17517_v20 = vld [vmem:[#allocation14 + $0xc8c] sm:$0xf0]  ;;  %v15285_v9 = vld [vmem:[#allocation14 + $0xe80] sm:$0xf] }
 0x547   : > { %8936 = vmatpush.bf16.msra.mxu0 %v14502_v46  ;;  %8949 = vmatpush.bf16.msrb.mxu1 %v14630_v29  ;;  %v17557_v46 = vld [vmem:[#allocation14 + $0xdcc] sm:$0xf0]  ;;  %v15317_v29 = vld [vmem:[#allocation14 + $0xec0] sm:$0xf]  ;;  %v15030_v50 = vor.u32 %v17517_v20, %v15029_v15 }
 0x548   : > { %8962 = vmatpush.bf16.msrb.mxu2 %v14758_v62  ;;  %8975 = vmatpush.bf16.msra.mxu3 %v14886_v51  ;;  %v15445_v62 = vld [vmem:[#allocation14 + $0xfc0] sm:$0xf]  ;;  %v17621_v51 = vld [vmem:[#allocation14 + $0xfcc] sm:$0xf0]  ;;  %v15190_v17 = vor.u32 %v17557_v46, %v15189_v33 }
 0x549   : > { %v17549_v38 = vld [vmem:[#allocation14 + $0xd8c] sm:$0xf0]  ;;  %v15141_v19 = vld [vmem:[#allocation14 + $0xd60] sm:$0xf] }
 0x54a   : > { %v17581_v32 = vld [vmem:[#allocation14 + $0xe8c] sm:$0xf0]  ;;  %v15269_v13 = vld [vmem:[#allocation14 + $0xe60] sm:$0xf] }
 0x54b   : > { %8937 = vmatpush.bf16.msra.mxu0 %v14486_v12  ;;  %8950 = vmatpush.bf16.msrb.mxu1 %v14614_v34  ;;  %v15318_v12 = vor.u32 %v17589_v47, %v15317_v29  ;;  %v15446_v34 = vor.u32 %v17621_v51, %v15445_v62  ;;  %v15286_v52 = vor.u32 %v17581_v32, %v15285_v9  ;;  %v17545_v63 = vld [vmem:[#allocation14 + $0xd6c] sm:$0xf0]  ;;  %v15381_v33 = vld [vmem:[#allocation14 + $0xf40] sm:$0xf] }
 0x54c   : > { %8963 = vmatpush.bf16.msrb.mxu2 %v14742_v0  ;;  %8976 = vmatpush.bf16.msra.mxu3 %v14870_v18  ;;  %v15301_v0 = vld [vmem:[#allocation14 + $0xea0] sm:$0xf]  ;;  %v17585_v18 = vld [vmem:[#allocation14 + $0xeac] sm:$0xf0]  ;;  %v15142_v4 = vor.u32 %v17545_v63, %v15141_v19 }
 0x54d   : > { %v15302_v59 = vor.u32 %v17585_v18, %v15301_v0  ;;  %v17609_v57 = vld [vmem:[#allocation14 + $0xf6c] sm:$0xf0]  ;;  %v14981_v62 = vld [vmem:[#allocation14 + $0xc20] sm:$0xf] }
 0x54e   : > { %v17541_v54 = vld [vmem:[#allocation14 + $0xd4c] sm:$0xf0]  ;;  %v15109_v43 = vld [vmem:[#allocation14 + $0xd20] sm:$0xf] }
 0x54f   : > { %8938 = vmatpush.bf16.msra.mxu0 %v14470_v61  ;;  %8951 = vmatpush.bf16.msrb.mxu1 %v14598_v35  ;;  %v15430_v61 = vor.u32 %v17617_v45, %v15429_v31  ;;  %v15157_v35 = vld [vmem:[#allocation14 + $0xd80] sm:$0xf]  ;;  %v17605_v46 = vld [vmem:[#allocation14 + $0xf4c] sm:$0xf0]  ;;  %v15126_v47 = vor.u32 %v17541_v54, %v15125_v22  ;;  %v17171_v22 = vld [vmem:[#allocation14 + $0x1c4] sm:$0xf] }
 0x550   : > { %8964 = vmatpush.bf16.msrb.mxu2 %v14726_v28  ;;  %8977 = vmatpush.bf16.msra.mxu3 %v14854_v44  ;;  %v15413_v28 = vld [vmem:[#allocation14 + $0xf80] sm:$0xf]  ;;  %v17613_v44 = vld [vmem:[#allocation14 + $0xf8c] sm:$0xf0]  ;;  %v15158_v24 = vor.u32 %v17549_v38, %v15157_v35  ;;  %v13655_v54 = vld [vmem:[#allocation14 + $0x1d0] sm:$0xf0] }
 0x551   : > { %v15414_v3 = vor.u32 %v17613_v44, %v15413_v28  ;;  %v17505_v51 = vld [vmem:[#allocation14 + $0xc2c] sm:$0xf0]  ;;  %v15365_v37 = vld [vmem:[#allocation14 + $0xf20] sm:$0xf] }
 0x552   : > { %v17537_v58 = vld [vmem:[#allocation14 + $0xd2c] sm:$0xf0]  ;;  %v14965_v0 = vld [vmem:[#allocation14 + $0xc00] sm:$0xf]  ;;  %v14982_v18 = vor.u32 %v17505_v51, %v14981_v62 }
 0x553   : > { %8939 = vmatpush.bf16.msra.mxu0 %v14454_v21  ;;  %8952 = vmatpush.bf16.msrb.mxu1 %v14582_v25  ;;  %v17577_v21 = vld [vmem:[#allocation14 + $0xe6c] sm:$0xf0]  ;;  %v15397_v25 = vld [vmem:[#allocation14 + $0xf60] sm:$0xf]  ;;  %v15110_v31 = vor.u32 %v17537_v58, %v15109_v43 }
 0x554   : > { %8965 = vmatpush.bf16.msrb.mxu2 %v14710_v49  ;;  %8978 = vmatpush.bf16.msra.mxu3 %v14838_v27  ;;  %v14997_v49 = vld [vmem:[#allocation14 + $0xc40] sm:$0xf]  ;;  %v17509_v27 = vld [vmem:[#allocation14 + $0xc4c] sm:$0xf0] }
 0x555   : > { %v14998_v29 = vor.u32 %v17509_v27, %v14997_v49  ;;  %v17601_v48 = vld [vmem:[#allocation14 + $0xf2c] sm:$0xf0]  ;;  %v15349_v35 = vld [vmem:[#allocation14 + $0xf00] sm:$0xf] }
 0x556   : > { %8940 = vmatmul.bf16.vlgmr.msra.gmra.mxu0 %v19866_v8  ;;  %8953 = vmatmul.bf16.vlgmr.msrb.gmra.mxu1 %v19868_v39  ;;  %v17501_v45 = vld [vmem:[#allocation14 + $0xc0c] sm:$0xf0]  ;;  %v15366_v20 = vor.u32 %v17601_v48, %v15365_v37  ;;  %v15589_v9 = vld [vmem:[#allocation14 + $0x10e0] sm:$0xf]  ;;  %v17167_v37 = vld [vmem:[#allocation14 + $0x1a4] sm:$0xf] }
 0x557   : > { %8984 = vmatpush.bf16.msrb.mxu0 %v15078_v14  ;;  %8997 = vmatpush.bf16.msra.mxu1 %v15206_v36  ;;  %v15270_v14 = vor.u32 %v17577_v21, %v15269_v13  ;;  %v15398_v36 = vor.u32 %v17609_v57, %v15397_v25  ;;  %v17597_v38 = vld [vmem:[#allocation14 + $0xf0c] sm:$0xf0]  ;;  %v15717_v28 = vld [vmem:[#allocation14 + $0x11e0] sm:$0xf]  ;;  %v13639_v48 = vld [vmem:[#allocation14 + $0x1b0] sm:$0xf0] }
 0x558   : > { %9010 = vmatpush.bf16.msra.mxu2 %v15334_v6  ;;  %9023 = vmatpush.bf16.msrb.mxu3 %v15462_v41  ;;  %v15253_v6 = vld [vmem:[#allocation14 + $0xe40] sm:$0xf]  ;;  %v17573_v41 = vld [vmem:[#allocation14 + $0xe4c] sm:$0xf0]  ;;  %v15350_v63 = vor.u32 %v17597_v38, %v15349_v35  ;;  %v17163_v35 = vld [vmem:[#allocation14 + $0x184] sm:$0xf] }
 0x559   : > { %8966 = vmatmul.bf16.vlgmr.msrb.gmra.mxu2 %v19870_v2  ;;  %8979 = vmatmul.bf16.vlgmr.msra.gmra.mxu3 %v19872_v42  ;;  %v17657_v32 = vld [vmem:[#allocation14 + $0x10ec] sm:$0xf0]  ;;  %v15573_v25 = vld [vmem:[#allocation14 + $0x10c0] sm:$0xf]  ;;  %v13623_v38 = vld [vmem:[#allocation14 + $0x190] sm:$0xf0] }
 0x55a   : > { %v17689_v44 = vld [vmem:[#allocation14 + $0x11ec] sm:$0xf0]  ;;  %v15590_v13 = vor.u32 %v17657_v32, %v15589_v9  ;;  %v15701_v49 = vld [vmem:[#allocation14 + $0x11c0] sm:$0xf] }
 0x55b   : > { %8985 = vmatpush.bf16.msrb.mxu0 %v15062_v5  ;;  %8998 = vmatpush.bf16.msra.mxu1 %v15190_v17  ;;  %v15254_v5 = vor.u32 %v17573_v41, %v15253_v6  ;;  %v15382_v17 = vor.u32 %v17605_v46, %v15381_v33  ;;  %v15718_v21 = vor.u32 %v17689_v44, %v15717_v28  ;;  %v17653_v57 = vld [vmem:[#allocation14 + $0x10cc] sm:$0xf0]  ;;  %v5922_v6 = vld.sshfl [vmem:[#allocation1 + $0x20] sm:$0xff pattern:$0x73625140] }
 0x55c   : > { %9011 = vmatpush.bf16.msra.mxu2 %v15318_v12  ;;  %9024 = vmatpush.bf16.msrb.mxu3 %v15446_v34  ;;  %v15237_v12 = vld [vmem:[#allocation14 + $0xe20] sm:$0xf]  ;;  %v17569_v34 = vld [vmem:[#allocation14 + $0xe2c] sm:$0xf0] }
 0x55d   : > { %v15238_v15 = vor.u32 %v17569_v34, %v15237_v12  ;;  %v17685_v27 = vld [vmem:[#allocation14 + $0x11cc] sm:$0xf0]  ;;  %v5924_v33 = vld.sshfl [vmem:[#allocation1 + $0x30] sm:$0xff pattern:$0x73625140] }
 0x55e   : > { %v5923_v41 = vld.sshfl [vmem:[#allocation1 + $0x28] sm:$0xff pattern:$0x73625140]  ;;  %v5925_v46 = vld.sshfl [vmem:[#allocation1 + $0x38] sm:$0xff pattern:$0x73625140] }
 0x55f   : > { %8986 = vmatpush.bf16.msrb.mxu0 %v15046_v56  ;;  %8999 = vmatpush.bf16.msra.mxu1 %v15174_v30  ;;  %v15093_v56 = vld [vmem:[#allocation14 + $0xd00] sm:$0xf]  ;;  %v17533_v30 = vld [vmem:[#allocation14 + $0xd0c] sm:$0xf0]  ;;  %v17135_v12 = vld [vmem:[#allocation14 + $0xa4] sm:$0xf] }
 0x560   : > { %9012 = vmatpush.bf16.msra.mxu2 %v15302_v59  ;;  %9025 = vmatpush.bf16.msrb.mxu3 %v15430_v61  ;;  %v15221_v59 = vld [vmem:[#allocation14 + $0xe00] sm:$0xf]  ;;  %v17565_v61 = vld [vmem:[#allocation14 + $0xe0c] sm:$0xf0]  ;;  %v15094_v40 = vor.u32 %v17533_v30, %v15093_v56  ;;  %v13511_v34 = vld [vmem:[#allocation14 + $0xb0] sm:$0xf0]  ;;  %v13642_v30 = vor.u32 %v17167_v37, %v13639_v48 }
 0x561   : > { %v15222_v19 = vor.u32 %v17565_v61, %v15221_v59  ;;  %v15557_v62 = vld [vmem:[#allocation14 + $0x10a0] sm:$0xf]  ;;  %v17649_v51 = vld [vmem:[#allocation14 + $0x10ac] sm:$0xf0]  ;;  %v13514_v56 = vor.u32 %v17135_v12, %v13511_v34  ;;  %v17131_v59 = vld [vmem:[#allocation14 + $0x84] sm:$0xf] }
 0x562   : > { %v15685_v43 = vld [vmem:[#allocation14 + $0x11a0] sm:$0xf]  ;;  %v17681_v58 = vld [vmem:[#allocation14 + $0x11ac] sm:$0xf0]  ;;  %v13495_v61 = vld [vmem:[#allocation14 + $0x90] sm:$0xf0] }
 0x563   : > { %8987 = vmatpush.bf16.msrb.mxu0 %v15030_v50  ;;  %9000 = vmatpush.bf16.msra.mxu1 %v15158_v24  ;;  %v17143_v50 = vld [vmem:[#allocation14 + $0xe4] sm:$0xf]  ;;  %v14966_v24 = vor.u32 %v17501_v45, %v14965_v0  ;;  %v15558_v0 = vor.u32 %v17649_v51, %v15557_v62  ;;  %v17645_v45 = vld [vmem:[#allocation14 + $0x108c] sm:$0xf0]  ;;  %v15525_v28 = vld [vmem:[#allocation14 + $0x1060] sm:$0xf] }
 0x564   : > { %9013 = vmatpush.bf16.msra.mxu2 %v15286_v52  ;;  %9026 = vmatpush.bf16.msrb.mxu3 %v15414_v3  ;;  %v17175_v52 = vld [vmem:[#allocation14 + $0x1e4] sm:$0xf]  ;;  %v13671_v3 = vld [vmem:[#allocation14 + $0x1f0] sm:$0xf0]  ;;  %v17641_v44 = vld [vmem:[#allocation14 + $0x106c] sm:$0xf0] }
 0x565   : > { %v15621_v62 = vld [vmem:[#allocation14 + $0x1120] sm:$0xf]  ;;  %v17665_v51 = vld [vmem:[#allocation14 + $0x112c] sm:$0xf0] }
 0x566   : > { %v15477_v12 = vld [vmem:[#allocation14 + $0x1000] sm:$0xf]  ;;  %v15622_v37 = vor.u32 %v17665_v51, %v15621_v62  ;;  %v17629_v48 = vld [vmem:[#allocation14 + $0x100c] sm:$0xf0]  ;;  %v17263_v62 = vld [vmem:[#allocation14 + $0x4a4] sm:$0xf] }
 0x567   : > { %8988 = vmatpush.bf16.msrb.mxu0 %v15014_v7  ;;  %9001 = vmatpush.bf16.msra.mxu1 %v15142_v4  ;;  %v13546_v7 = vor.u32 %v17143_v50, %v13543_v60  ;;  %v13674_v4 = vor.u32 %v17175_v52, %v13671_v3  ;;  %v13498_v50 = vor.u32 %v17131_v59, %v13495_v61  ;;  %v17673_v60 = vld [vmem:[#allocation14 + $0x116c] sm:$0xf0]  ;;  %v17127_v52 = vld [vmem:[#allocation14 + $0x64] sm:$0xf]  ;;  %v13479_v3 = vld [vmem:[#allocation14 + $0x70] sm:$0xf0] }
 0x568   : > { %9014 = vmatpush.bf16.msra.mxu2 %v15270_v14  ;;  %9027 = vmatpush.bf16.msrb.mxu3 %v15398_v36  ;;  %v17139_v14 = vld [vmem:[#allocation14 + $0xc4] sm:$0xf]  ;;  %v13527_v36 = vld [vmem:[#allocation14 + $0xd0] sm:$0xf0] }
 0x569   : > { %v17207_v59 = vld [vmem:[#allocation14 + $0x2e4] sm:$0xf]  ;;  %v13799_v61 = vld [vmem:[#allocation14 + $0x2f0] sm:$0xf0] }
 0x56a   : > { %v14023_v51 = vld [vmem:[#allocation14 + $0x4b0] sm:$0xf0] }
 0x56b   : > { %8989 = vmatpush.bf16.msrb.mxu0 %v14998_v29  ;;  %9002 = vmatpush.bf16.msra.mxu1 %v15126_v47  ;;  %v15574_v29 = vor.u32 %v17653_v57, %v15573_v25  ;;  %v15702_v47 = vor.u32 %v17685_v27, %v15701_v49  ;;  %v15509_v25 = vld [vmem:[#allocation14 + $0x1040] sm:$0xf]  ;;  %v17637_v57 = vld [vmem:[#allocation14 + $0x104c] sm:$0xf0] }
 0x56c   : > { %9015 = vmatpush.bf16.msra.mxu2 %v15254_v5  ;;  %9028 = vmatpush.bf16.msrb.mxu3 %v15382_v17  ;;  %v13530_v5 = vor.u32 %v17139_v14, %v13527_v36  ;;  %v13658_v17 = vor.u32 %v17171_v22, %v13655_v54  ;;  %v15637_v49 = vld [vmem:[#allocation14 + $0x1140] sm:$0xf]  ;;  %v17669_v27 = vld [vmem:[#allocation14 + $0x114c] sm:$0xf0]  ;;  %v17123_v14 = vld [vmem:[#allocation14 + $0x44] sm:$0xf] }
 0x56d   : > { %v13463_v36 = vld [vmem:[#allocation14 + $0x50] sm:$0xf0]  ;;  %v17155_v22 = vld [vmem:[#allocation14 + $0x144] sm:$0xf] }
 0x56e   : > { %v13591_v54 = vld [vmem:[#allocation14 + $0x150] sm:$0xf0] }
 0x56f   : > { %8990 = vmatpush.bf16.msrb.mxu0 %v14982_v18  ;;  %9003 = vmatpush.bf16.msra.mxu1 %v15110_v31  ;;  %v15686_v18 = vor.u32 %v17681_v58, %v15685_v43  ;;  %v15541_v31 = vld [vmem:[#allocation14 + $0x1080] sm:$0xf]  ;;  %v17151_v43 = vld [vmem:[#allocation14 + $0x124] sm:$0xf]  ;;  %v13575_v58 = vld [vmem:[#allocation14 + $0x130] sm:$0xf0] }
 0x570   : > { %9016 = vmatpush.bf16.msra.mxu2 %v15238_v15  ;;  %9029 = vmatpush.bf16.msrb.mxu3 %v15366_v20  ;;  %v15669_v15 = vld [vmem:[#allocation14 + $0x1180] sm:$0xf]  ;;  %v17677_v20 = vld [vmem:[#allocation14 + $0x118c] sm:$0xf0]  ;;  %v15542_v9 = vor.u32 %v17645_v45, %v15541_v31  ;;  %v13578_v45 = vor.u32 %v17151_v43, %v13575_v58 }
 0x571   : > { %v15670_v32 = vor.u32 %v17677_v20, %v15669_v15  ;;  %v17147_v15 = vld [vmem:[#allocation14 + $0x104] sm:$0xf]  ;;  %v13559_v20 = vld [vmem:[#allocation14 + $0x110] sm:$0xf0] }
 0x573   : > { %8991 = vmatpush.bf16.msrb.mxu0 %v14966_v24  ;;  %9004 = vmatpush.bf16.msra.mxu1 %v15094_v40  ;;  %v13626_v24 = vor.u32 %v17163_v35, %v13623_v38  ;;  %v15653_v40 = vld [vmem:[#allocation14 + $0x1160] sm:$0xf]  ;;  %v17239_v35 = vld [vmem:[#allocation14 + $0x3e4] sm:$0xf]  ;;  %v13927_v38 = vld [vmem:[#allocation14 + $0x3f0] sm:$0xf0] }
 0x574   : > { %9017 = vmatpush.bf16.msra.mxu2 %v15222_v19  ;;  %9030 = vmatpush.bf16.msrb.mxu3 %v15350_v63  ;;  %v17159_v19 = vld [vmem:[#allocation14 + $0x164] sm:$0xf]  ;;  %v13607_v63 = vld [vmem:[#allocation14 + $0x170] sm:$0xf0] }
 0x576   : > { %8992 = vmatmul.bf16.vlgmr.msrb.gmra.mxu0 %v5922_v6  ;;  %9005 = vmatmul.bf16.vlgmr.msra.gmra.mxu1 %v5923_v41  ;;  %v15510_v6 = vor.u32 %v17637_v57, %v15509_v25  ;;  %v15638_v41 = vor.u32 %v17669_v27, %v15637_v49  ;;  %v17235_v25 = vld [vmem:[#allocation14 + $0x3c4] sm:$0xf]  ;;  %v13911_v57 = vld [vmem:[#allocation14 + $0x3d0] sm:$0xf0] }
 0x577   : > { %9036 = vmatpush.bf16.msra.mxu0 %v15590_v13  ;;  %9049 = vmatpush.bf16.msrb.mxu1 %v15718_v21  ;;  %v15526_v13 = vor.u32 %v17641_v44, %v15525_v28  ;;  %v15654_v21 = vor.u32 %v17673_v60, %v15653_v40  ;;  %v14055_v44 = vld [vmem:[#allocation14 + $0x4f0] sm:$0xf0]  ;;  %v13562_v60 = vor.u32 %v17147_v15, %v13559_v20  ;;  %v17299_v49 = vld [vmem:[#allocation14 + $0x5c4] sm:$0xf] }
 0x578   : > { %9062 = vmatpush.bf16.msrb.mxu2 %v13546_v7  ;;  %9075 = vmatpush.bf16.msra.mxu3 %v13674_v4  ;;  %v13482_v7 = vor.u32 %v17127_v52, %v13479_v3  ;;  %v13610_v4 = vor.u32 %v17159_v19, %v13607_v63  ;;  %v13802_v52 = vor.u32 %v17207_v59, %v13799_v61  ;;  %v17203_v19 = vld [vmem:[#allocation14 + $0x2c4] sm:$0xf]  ;;  %v13783_v63 = vld [vmem:[#allocation14 + $0x2d0] sm:$0xf0] }
 0x579   : > { %9018 = vmatmul.bf16.vlgmr.msra.gmra.mxu2 %v5924_v33  ;;  %9031 = vmatmul.bf16.vlgmr.msrb.gmra.mxu3 %v5925_v46  ;;  %v15493_v33 = vld [vmem:[#allocation14 + $0x1020] sm:$0xf]  ;;  %v17633_v46 = vld [vmem:[#allocation14 + $0x102c] sm:$0xf0]  ;;  %v13930_v3 = vor.u32 %v17239_v35, %v13927_v38  ;;  %v14167_v27 = vld [vmem:[#allocation14 + $0x5d0] sm:$0xf0] }
 0x57a   : > { %v15494_v34 = vor.u32 %v17633_v46, %v15493_v33  ;;  %v14170_v46 = vor.u32 %v17299_v49, %v14167_v27  ;;  %v17191_v59 = vld [vmem:[#allocation14 + $0x264] sm:$0xf]  ;;  %v13735_v61 = vld [vmem:[#allocation14 + $0x270] sm:$0xf0] }
 0x57b   : > { %9037 = vmatpush.bf16.msra.mxu0 %v15574_v29  ;;  %9050 = vmatpush.bf16.msrb.mxu1 %v15702_v47  ;;  %v13466_v29 = vor.u32 %v17123_v14, %v13463_v36  ;;  %v13594_v47 = vor.u32 %v17155_v22, %v13591_v54  ;;  %v5928_v14 = vld.sshfl [vmem:[#allocation1] sm:$0xff pattern:$0x73625140]  ;;  %v5929_v36 = vld.sshfl [vmem:[#allocation1 + $0x8] sm:$0xff pattern:$0x73625140]  ;;  %v13786_v22 = vor.u32 %v17203_v19, %v13783_v63 }
 0x57c   : > { %9063 = vmatpush.bf16.msrb.mxu2 %v13530_v5  ;;  %9076 = vmatpush.bf16.msra.mxu3 %v13658_v17  ;;  %v17119_v5 = vld [vmem:[#allocation14 + $0x24] sm:$0xf]  ;;  %v13447_v17 = vld [vmem:[#allocation14 + $0x30] sm:$0xf0]  ;;  %v13914_v54 = vor.u32 %v17235_v25, %v13911_v57 }
 0x57d   : > { %v13450_v31 = vor.u32 %v17119_v5, %v13447_v17  ;;  %v17295_v5 = vld [vmem:[#allocation14 + $0x5a4] sm:$0xf]  ;;  %v14151_v17 = vld [vmem:[#allocation14 + $0x5b0] sm:$0xf0] }
 0x57e   : > { %v17251_v25 = vld [vmem:[#allocation14 + $0x444] sm:$0xf]  ;;  %v13975_v57 = vld [vmem:[#allocation14 + $0x450] sm:$0xf0] }
 0x57f   : > { %9038 = vmatpush.bf16.msra.mxu0 %v15558_v0  ;;  %9051 = vmatpush.bf16.msrb.mxu1 %v15686_v18  ;;  %v15605_v0 = vld [vmem:[#allocation14 + $0x1100] sm:$0xf]  ;;  %v17661_v18 = vld [vmem:[#allocation14 + $0x110c] sm:$0xf0] }
 0x580   : > { %9064 = vmatpush.bf16.msrb.mxu2 %v13514_v56  ;;  %9077 = vmatpush.bf16.msra.mxu3 %v13642_v30  ;;  %v17115_v56 = vld [vmem:[#allocation14 + $0x4] sm:$0xf]  ;;  %v13431_v30 = vld [vmem:[#allocation14 + $0x10] sm:$0xf0]  ;;  %v15606_v28 = vor.u32 %v17661_v18, %v15605_v0 }
 0x581   : > { %v13434_v40 = vor.u32 %v17115_v56, %v13431_v30  ;;  %v17227_v0 = vld [vmem:[#allocation14 + $0x384] sm:$0xf]  ;;  %v13879_v18 = vld [vmem:[#allocation14 + $0x390] sm:$0xf0] }
 0x582   : > { %v17291_v56 = vld [vmem:[#allocation14 + $0x584] sm:$0xf]  ;;  %v14135_v30 = vld [vmem:[#allocation14 + $0x590] sm:$0xf0]  ;;  %v13882_v20 = vor.u32 %v17227_v0, %v13879_v18 }
 0x583   : > { %9039 = vmatpush.bf16.msra.mxu0 %v15542_v9  ;;  %9052 = vmatpush.bf16.msrb.mxu1 %v15670_v32  ;;  %v17271_v9 = vld [vmem:[#allocation14 + $0x4e4] sm:$0xf]  ;;  %v15478_v32 = vor.u32 %v17629_v48, %v15477_v12  ;;  %v14154_v48 = vor.u32 %v17295_v5, %v14151_v17  ;;  %v14138_v38 = vor.u32 %v17291_v56, %v14135_v30  ;;  %v13687_v17 = vld [vmem:[#allocation14 + $0x210] sm:$0xf0] }
 0x584   : > { %9065 = vmatpush.bf16.msrb.mxu2 %v13498_v50  ;;  %9078 = vmatpush.bf16.msra.mxu3 %v13626_v24  ;;  %v17303_v50 = vld [vmem:[#allocation14 + $0x5e4] sm:$0xf]  ;;  %v14183_v24 = vld [vmem:[#allocation14 + $0x5f0] sm:$0xf0] }
 0x585   : > { %v17195_v12 = vld [vmem:[#allocation14 + $0x284] sm:$0xf]  ;;  %v14071_v18 = vld [vmem:[#allocation14 + $0x510] sm:$0xf0] }
 0x586   : > { %v17275_v0 = vld [vmem:[#allocation14 + $0x504] sm:$0xf]  ;;  %v14439_v30 = vld [vmem:[#allocation14 + $0x7f0] sm:$0xf0] }
 0x587   : > { %9040 = vmatpush.bf16.msra.mxu0 %v15526_v13  ;;  %9053 = vmatpush.bf16.msrb.mxu1 %v15654_v21  ;;  %v14058_v13 = vor.u32 %v17271_v9, %v14055_v44  ;;  %v14186_v21 = vor.u32 %v17303_v50, %v14183_v24  ;;  %v17223_v9 = vld [vmem:[#allocation14 + $0x364] sm:$0xf]  ;;  %v13991_v44 = vld [vmem:[#allocation14 + $0x470] sm:$0xf0] }
 0x588   : > { %9066 = vmatpush.bf16.msrb.mxu2 %v13482_v7  ;;  %9079 = vmatpush.bf16.msra.mxu3 %v13610_v4  ;;  %v17267_v7 = vld [vmem:[#allocation14 + $0x4c4] sm:$0xf]  ;;  %v14039_v4 = vld [vmem:[#allocation14 + $0x4d0] sm:$0xf0] }
 0x589   : > { %v14042_v33 = vor.u32 %v17267_v7, %v14039_v4  ;;  %v17287_v50 = vld [vmem:[#allocation14 + $0x564] sm:$0xf]  ;;  %v14119_v24 = vld [vmem:[#allocation14 + $0x570] sm:$0xf0] }
 0x58a   : > { %v14122_v63 = vor.u32 %v17287_v50, %v14119_v24  ;;  %v17283_v7 = vld [vmem:[#allocation14 + $0x544] sm:$0xf]  ;;  %v14103_v4 = vld [vmem:[#allocation14 + $0x550] sm:$0xf0] }
 0x58b   : > { %9041 = vmatpush.bf16.msra.mxu0 %v15510_v6  ;;  %9054 = vmatpush.bf16.msrb.mxu1 %v15638_v41  ;;  %v17199_v6 = vld [vmem:[#allocation14 + $0x2a4] sm:$0xf]  ;;  %v13767_v41 = vld [vmem:[#allocation14 + $0x2b0] sm:$0xf0] }
 0x58c   : > { %9067 = vmatpush.bf16.msrb.mxu2 %v13466_v29  ;;  %9080 = vmatpush.bf16.msra.mxu3 %v13594_v47  ;;  %v17231_v29 = vld [vmem:[#allocation14 + $0x3a4] sm:$0xf]  ;;  %v13895_v47 = vld [vmem:[#allocation14 + $0x3b0] sm:$0xf0]  ;;  %v13770_v43 = vor.u32 %v17199_v6, %v13767_v41 }
 0x58d   : > { %v13898_v58 = vor.u32 %v17231_v29, %v13895_v47  ;;  %v17215_v6 = vld [vmem:[#allocation14 + $0x324] sm:$0xf]  ;;  %v13831_v41 = vld [vmem:[#allocation14 + $0x330] sm:$0xf0] }
 0x58e   : > { %v17279_v29 = vld [vmem:[#allocation14 + $0x524] sm:$0xf]  ;;  %v14087_v47 = vld [vmem:[#allocation14 + $0x530] sm:$0xf0]  ;;  %v13834_v5 = vor.u32 %v17215_v6, %v13831_v41 }
 0x58f   : > { %9042 = vmatpush.bf16.msra.mxu0 %v15494_v34  ;;  %9055 = vmatpush.bf16.msrb.mxu1 %v15622_v37  ;;  %v13751_v34 = vld [vmem:[#allocation14 + $0x290] sm:$0xf0]  ;;  %v14026_v37 = vor.u32 %v17263_v62, %v14023_v51  ;;  %v17179_v62 = vld [vmem:[#allocation14 + $0x204] sm:$0xf] }
 0x590   : > { %9068 = vmatpush.bf16.msrb.mxu2 %v13450_v31  ;;  %9081 = vmatpush.bf16.msra.mxu3 %v13578_v45  ;;  %v17259_v31 = vld [vmem:[#allocation14 + $0x484] sm:$0xf]  ;;  %v14007_v45 = vld [vmem:[#allocation14 + $0x490] sm:$0xf0]  ;;  %v13754_v15 = vor.u32 %v17195_v12, %v13751_v34  ;;  %v14090_v34 = vor.u32 %v17279_v29, %v14087_v47 }
 0x591   : > { %v14010_v35 = vor.u32 %v17259_v31, %v14007_v45  ;;  %v17335_v31 = vld [vmem:[#allocation14 + $0x6e4] sm:$0xf]  ;;  %v14311_v45 = vld [vmem:[#allocation14 + $0x6f0] sm:$0xf0] }
 0x592   : > { %v17367_v56 = vld [vmem:[#allocation14 + $0x7e4] sm:$0xf]  ;;  %v14295_v24 = vld [vmem:[#allocation14 + $0x6d0] sm:$0xf0] }
 0x593   : > { %9043 = vmatpush.bf16.msra.mxu0 %v15478_v32  ;;  %9056 = vmatpush.bf16.msrb.mxu1 %v15606_v28  ;;  %v13863_v32 = vld [vmem:[#allocation14 + $0x370] sm:$0xf0]  ;;  %v17255_v28 = vld [vmem:[#allocation14 + $0x464] sm:$0xf] }
 0x594   : > { %9069 = vmatpush.bf16.msrb.mxu2 %v13434_v40  ;;  %9082 = vmatpush.bf16.msra.mxu3 %v13562_v60  ;;  %v13738_v40 = vor.u32 %v17191_v59, %v13735_v61  ;;  %v13866_v60 = vor.u32 %v17223_v9, %v13863_v32  ;;  %v13994_v19 = vor.u32 %v17255_v28, %v13991_v44  ;;  %v14567_v61 = vld [vmem:[#allocation14 + $0x8f0] sm:$0xf0]  ;;  %v17331_v50 = vld [vmem:[#allocation14 + $0x6c4] sm:$0xf] }
 0x595   : > { %v14074_v32 = vor.u32 %v17275_v0, %v14071_v18  ;;  %v14314_v28 = vor.u32 %v17335_v31, %v14311_v45  ;;  %v14442_v44 = vor.u32 %v17367_v56, %v14439_v30  ;;  %v17391_v6 = vld [vmem:[#allocation14 + $0x8a4] sm:$0xf]  ;;  %v14535_v41 = vld [vmem:[#allocation14 + $0x8b0] sm:$0xf0] }
 0x596   : > { %9044 = vmatmul.bf16.vlgmr.msra.gmra.mxu0 %v5928_v14  ;;  %9057 = vmatmul.bf16.vlgmr.msrb.gmra.mxu1 %v5929_v36  ;;  %v17183_v14 = vld [vmem:[#allocation14 + $0x224] sm:$0xf]  ;;  %v13703_v36 = vld [vmem:[#allocation14 + $0x230] sm:$0xf0] }
 0x597   : > { %9088 = vmatpush.bf16.msrb.mxu0 %v13802_v52  ;;  %9101 = vmatpush.bf16.msra.mxu1 %v13930_v3  ;;  %v17187_v52 = vld [vmem:[#allocation14 + $0x244] sm:$0xf]  ;;  %v13719_v3 = vld [vmem:[#allocation14 + $0x250] sm:$0xf0]  ;;  %v13706_v51 = vor.u32 %v17183_v14, %v13703_v36 }
 0x598   : > { %9114 = vmatpush.bf16.msra.mxu2 %v14058_v13  ;;  %9127 = vmatpush.bf16.msrb.mxu3 %v14186_v21  ;;  %v17219_v13 = vld [vmem:[#allocation14 + $0x344] sm:$0xf]  ;;  %v13847_v21 = vld [vmem:[#allocation14 + $0x350] sm:$0xf0]  ;;  %v13722_v49 = vor.u32 %v17187_v52, %v13719_v3 }
 0x599   : > { %9070 = vmatmul.bf16.vlgmr.msrb.gmra.mxu2 %v19854_v10  ;;  %9083 = vmatmul.bf16.vlgmr.msra.gmra.mxu3 %v19856_v26  ;;  %v13850_v27 = vor.u32 %v17219_v13, %v13847_v21  ;;  %v14423_v3 = vld [vmem:[#allocation14 + $0x7d0] sm:$0xf0]  ;;  %v17427_v21 = vld [vmem:[#allocation14 + $0x9c4] sm:$0xf] }
 0x59a   : > { %v14551_v13 = vld [vmem:[#allocation14 + $0x8d0] sm:$0xf0]  ;;  %v17419_v31 = vld [vmem:[#allocation14 + $0x984] sm:$0xf] }
 0x59b   : > { %9089 = vmatpush.bf16.msrb.mxu0 %v13786_v22  ;;  %9102 = vmatpush.bf16.msra.mxu1 %v13914_v54  ;;  %v13978_v22 = vor.u32 %v17251_v25, %v13975_v57  ;;  %v14106_v54 = vor.u32 %v17283_v7, %v14103_v4  ;;  %v14679_v25 = vld [vmem:[#allocation14 + $0x9d0] sm:$0xf0]  ;;  %v14298_v57 = vor.u32 %v17331_v50, %v14295_v24  ;;  %v17327_v4 = vld [vmem:[#allocation14 + $0x6a4] sm:$0xf] }
 0x59c   : > { %9115 = vmatpush.bf16.msra.mxu2 %v14042_v33  ;;  %9128 = vmatpush.bf16.msrb.mxu3 %v14170_v46  ;;  %v17247_v33 = vld [vmem:[#allocation14 + $0x424] sm:$0xf]  ;;  %v13959_v46 = vld [vmem:[#allocation14 + $0x430] sm:$0xf0]  ;;  %v14682_v36 = vor.u32 %v17427_v21, %v14679_v25 }
 0x59d   : > { %v13962_v12 = vor.u32 %v17247_v33, %v13959_v46  ;;  %v17423_v33 = vld [vmem:[#allocation14 + $0x9a4] sm:$0xf]  ;;  %v14663_v46 = vld [vmem:[#allocation14 + $0x9b0] sm:$0xf0] }
 0x59e   : > { %v14519_v18 = vld [vmem:[#allocation14 + $0x890] sm:$0xf0]  ;;  %v17415_v50 = vld [vmem:[#allocation14 + $0x964] sm:$0xf] }
 0x59f   : > { %9090 = vmatpush.bf16.msrb.mxu0 %v13770_v43  ;;  %9103 = vmatpush.bf16.msra.mxu1 %v13898_v58  ;;  %v17211_v43 = vld [vmem:[#allocation14 + $0x304] sm:$0xf]  ;;  %v13815_v58 = vld [vmem:[#allocation14 + $0x310] sm:$0xf0] }
 0x5a0   : > { %9116 = vmatpush.bf16.msra.mxu2 %v14026_v37  ;;  %9129 = vmatpush.bf16.msrb.mxu3 %v14154_v48  ;;  %v17243_v37 = vld [vmem:[#allocation14 + $0x404] sm:$0xf]  ;;  %v13943_v48 = vld [vmem:[#allocation14 + $0x410] sm:$0xf0]  ;;  %v13818_v59 = vor.u32 %v17211_v43, %v13815_v58  ;;  %v14538_v58 = vor.u32 %v17391_v6, %v14535_v41 }
 0x5a1   : > { %v13946_v9 = vor.u32 %v17243_v37, %v13943_v48  ;;  %v14263_v43 = vld [vmem:[#allocation14 + $0x690] sm:$0xf0]  ;;  %v17387_v48 = vld [vmem:[#allocation14 + $0x884] sm:$0xf] }
 0x5a2   : > { %v14391_v37 = vld [vmem:[#allocation14 + $0x790] sm:$0xf0]  ;;  %v17311_v41 = vld [vmem:[#allocation14 + $0x624] sm:$0xf] }
 0x5a3   : > { %9091 = vmatpush.bf16.msrb.mxu0 %v13754_v15  ;;  %9104 = vmatpush.bf16.msra.mxu1 %v13882_v20  ;;  %v17399_v15 = vld [vmem:[#allocation14 + $0x8e4] sm:$0xf]  ;;  %v13690_v20 = vor.u32 %v17179_v62, %v13687_v17  ;;  %v14647_v45 = vld [vmem:[#allocation14 + $0x990] sm:$0xf0] }
 0x5a4   : > { %9117 = vmatpush.bf16.msra.mxu2 %v14010_v35  ;;  %9130 = vmatpush.bf16.msrb.mxu3 %v14138_v38  ;;  %v17431_v35 = vld [vmem:[#allocation14 + $0x9e4] sm:$0xf]  ;;  %v14695_v38 = vld [vmem:[#allocation14 + $0x9f0] sm:$0xf0] }
 0x5a5   : > { %v14698_v52 = vor.u32 %v17431_v35, %v14695_v38  ;;  %v17323_v17 = vld [vmem:[#allocation14 + $0x684] sm:$0xf]  ;;  %v14375_v38 = vld [vmem:[#allocation14 + $0x770] sm:$0xf0] }
 0x5a6   : > { %v14266_v56 = vor.u32 %v17323_v17, %v14263_v43  ;;  %v17351_v35 = vld [vmem:[#allocation14 + $0x764] sm:$0xf]  ;;  %v14631_v24 = vld [vmem:[#allocation14 + $0x970] sm:$0xf0] }
 0x5a7   : > { %9092 = vmatpush.bf16.msrb.mxu0 %v13738_v40  ;;  %9105 = vmatpush.bf16.msra.mxu1 %v13866_v60  ;;  %v17363_v40 = vld [vmem:[#allocation14 + $0x7c4] sm:$0xf]  ;;  %v14570_v60 = vor.u32 %v17399_v15, %v14567_v61  ;;  %v14650_v61 = vor.u32 %v17419_v31, %v14647_v45  ;;  %v14231_v21 = vld [vmem:[#allocation14 + $0x650] sm:$0xf0] }
 0x5a8   : > { %9118 = vmatpush.bf16.msra.mxu2 %v13994_v19  ;;  %9131 = vmatpush.bf16.msrb.mxu3 %v14122_v63  ;;  %v17395_v19 = vld [vmem:[#allocation14 + $0x8c4] sm:$0xf]  ;;  %v14426_v7 = vor.u32 %v17363_v40, %v14423_v3  ;;  %v14471_v43 = vld [vmem:[#allocation14 + $0x830] sm:$0xf0] }
 0x5a9   : > { %v19887_v63 = vld [vmem:[%s20116_s8] sm:$0xf]  ;;  %v14554_v14 = vor.u32 %v17395_v19, %v14551_v13  ;;  %v14378_v19 = vor.u32 %v17351_v35, %v14375_v38  ;;  %v14199_v45 = vld [vmem:[#allocation14 + $0x610] sm:$0xf0] }
 0x5aa   : > { %v17319_v15 = vld [vmem:[#allocation14 + $0x664] sm:$0xf] }
 0x5ab   : > { %9093 = vmatpush.bf16.msrb.mxu0 %v13722_v49  ;;  %9106 = vmatpush.bf16.msra.mxu1 %v13850_v27  ;;  %v14279_v49 = vld [vmem:[#allocation14 + $0x6b0] sm:$0xf0]  ;;  %v5893_v27 = vperm.slane %v19887_v63, 0  ;;  %v17315_v13 = vld [vmem:[#allocation14 + $0x644] sm:$0xf] }
 0x5ac   : > { %9119 = vmatpush.bf16.msra.mxu2 %v13978_v22  ;;  %9132 = vmatpush.bf16.msrb.mxu3 %v14106_v54  ;;  %v17359_v22 = vld [vmem:[#allocation14 + $0x7a4] sm:$0xf]  ;;  %v14407_v54 = vld [vmem:[#allocation14 + $0x7b0] sm:$0xf0]  ;;  %v14282_v62 = vor.u32 %v17327_v4, %v14279_v49 }
 0x5ad   : > { %v17347_v4 = vld [vmem:[#allocation14 + $0x744] sm:$0xf]  ;;  %v14359_v49 = vld [vmem:[#allocation14 + $0x750] sm:$0xf0] }
 0x5ae   : > { %v14362_v6 = vor.u32 %v17347_v4, %v14359_v49  ;;  %v17403_v35 = vld [vmem:[#allocation14 + $0x904] sm:$0xf] }
 0x5af   : > { %9094 = vmatpush.bf16.msrb.mxu0 %v13706_v51  ;;  %9107 = vmatpush.bf16.msra.mxu1 %v13834_v5  ;;  %v14410_v51 = vor.u32 %v17359_v22, %v14407_v54  ;;  %v14615_v22 = vld [vmem:[#allocation14 + $0x950] sm:$0xf0]  ;;  %v14234_v54 = vor.u32 %v17315_v13, %v14231_v21  ;;  %v17459_v49 = vld [vmem:[#allocation14 + $0xac4] sm:$0xf] }
 0x5b0   : > { %9120 = vmatpush.bf16.msra.mxu2 %v13962_v12  ;;  %9133 = vmatpush.bf16.msrb.mxu3 %v14090_v34  ;;  %v14666_v12 = vor.u32 %v17423_v33, %v14663_v46  ;;  %v17355_v34 = vld [vmem:[#allocation14 + $0x784] sm:$0xf]  ;;  %v14215_v33 = vld [vmem:[#allocation14 + $0x630] sm:$0xf0] }
 0x5b1   : > { %v14394_v30 = vor.u32 %v17355_v34, %v14391_v37 }
 0x5b2   : > { %v8837_v29 = vpop.f32.mrf.mxu0  ;;  %v8850_v47 = vpop.f32.mrf.mxu1 }
 0x5b3   : > { %9095 = vmatpush.bf16.msrb.mxu0 %v13690_v20  ;;  %9108 = vmatpush.bf16.msra.mxu1 %v13818_v59  ;;  %v8838_v5 = vadd.f32 %v8837_v29, %v5893_v27  ;;  %v14247_v20 = vld [vmem:[#allocation14 + $0x670] sm:$0xf0]  ;;  %v14522_v59 = vor.u32 %v17387_v48, %v14519_v18  ;;  %v17379_v27 = vld [vmem:[#allocation14 + $0x844] sm:$0xf] }
 0x5b4   : > { %9121 = vmatpush.bf16.msra.mxu2 %v13946_v9  ;;  %9134 = vmatpush.bf16.msrb.mxu3 %v14074_v32  ;;  %v17383_v9 = vld [vmem:[#allocation14 + $0x864] sm:$0xf]  ;;  %v14250_v3 = vor.u32 %v17319_v15, %v14247_v20 }
 0x5b5   : > { %v8851_v0 = vadd.f32 %v8850_v47, %v8838_v5  ;;  %v17343_v47 = vld [vmem:[#allocation14 + $0x724] sm:$0xf] }
 0x5b6   : > { %9096 = vmatmul.bf16.vlgmr.msrb.gmra.mxu0 %v19860_v1  ;;  %9109 = vmatmul.bf16.vlgmr.msra.gmra.mxu1 %v19862_v23  ;;  %v17307_v48 = vld [vmem:[#allocation14 + $0x604] sm:$0xf] }
 0x5b7   : > { %9140 = vmatpush.bf16.msra.mxu0 %v14314_v28  ;;  %9153 = vmatpush.bf16.msrb.mxu1 %v14442_v44  ;;  %v14503_v44 = vld [vmem:[#allocation14 + $0x870] sm:$0xf0] }
 0x5b8   : > { %9166 = vmatpush.bf16.msrb.mxu2 %v14570_v60  ;;  %9179 = vmatpush.bf16.msra.mxu3 %v14698_v52 }
 0x5b9   : > { %9122 = vmatmul.bf16.vlgmr.msra.gmra.mxu2 %v19846_v53  ;;  %9135 = vmatmul.bf16.vlgmr.msrb.gmra.mxu3 %v19848_v16  ;;  %v8863_v32 = vpop.f32.mrf.mxu2  ;;  %v8876_v28 = vpop.f32.mrf.mxu3 }
 0x5ba   : > { %v8864_v40 = vadd.f32 %v8863_v32, %v8851_v0  ;;  %v8839_v60 = vpop.f32.mrf.mxu0  ;;  %v8852_v52 = vpop.f32.mrf.mxu1  ;;  %v14218_v0 = vor.u32 %v17311_v41, %v14215_v33  ;;  %v17463_v32 = vld [vmem:[#allocation14 + $0xae4] sm:$0xf]  ;;  %v14935_v33 = vld [vmem:[#allocation14 + $0xbd0] sm:$0xf0] }
 0x5bb   : > { %9141 = vmatpush.bf16.msra.mxu0 %v14298_v57  ;;  %9154 = vmatpush.bf16.msrb.mxu1 %v14426_v7  ;;  %v14506_v57 = vor.u32 %v17383_v9, %v14503_v44  ;;  %v14634_v7 = vor.u32 %v17415_v50, %v14631_v24  ;;  %v14583_v9 = vld [vmem:[#allocation14 + $0x910] sm:$0xf0]  ;;  %v17495_v44 = vld [vmem:[#allocation14 + $0xbe4] sm:$0xf] }
 0x5bc   : > { %9167 = vmatpush.bf16.msrb.mxu2 %v14554_v14  ;;  %9180 = vmatpush.bf16.msra.mxu3 %v14682_v36  ;;  %v8877_v25 = vadd.f32 %v8876_v28, %v8864_v40  ;;  %v14487_v14 = vld [vmem:[#allocation14 + $0x850] sm:$0xf0]  ;;  %v17411_v36 = vld [vmem:[#allocation14 + $0x944] sm:$0xf]  ;;  %v14202_v40 = vor.u32 %v17307_v48, %v14199_v45  ;;  %v14586_v21 = vor.u32 %v17403_v35, %v14583_v9 }
 0x5bd   : > { %v14490_v46 = vor.u32 %v17379_v27, %v14487_v14  ;;  %v14618_v29 = vor.u32 %v17411_v36, %v14615_v22  ;;  %v14823_v28 = vld [vmem:[#allocation14 + $0xaf0] sm:$0xf0]  ;;  %v17527_v24 = vld [vmem:[#allocation14 + $0xce4] sm:$0xf] }
 0x5be   : > { %v14951_v50 = vld [vmem:[#allocation14 + $0xbf0] sm:$0xf0]  ;;  %v17491_v41 = vld [vmem:[#allocation14 + $0xbc4] sm:$0xf] }
 0x5bf   : > { %9142 = vmatpush.bf16.msra.mxu0 %v14282_v62  ;;  %9155 = vmatpush.bf16.msrb.mxu1 %v14410_v51  ;;  %v14343_v62 = vld [vmem:[#allocation14 + $0x730] sm:$0xf0]  ;;  %v17375_v51 = vld [vmem:[#allocation14 + $0x824] sm:$0xf] }
 0x5c0   : > { %9168 = vmatpush.bf16.msrb.mxu2 %v14538_v58  ;;  %9181 = vmatpush.bf16.msra.mxu3 %v14666_v12  ;;  %v17407_v58 = vld [vmem:[#allocation14 + $0x924] sm:$0xf]  ;;  %v14599_v12 = vld [vmem:[#allocation14 + $0x930] sm:$0xf0]  ;;  %v14346_v18 = vor.u32 %v17343_v47, %v14343_v62  ;;  %v14474_v15 = vor.u32 %v17375_v51, %v14471_v43 }
 0x5c1   : > { %v8865_v5 = vpop.f32.mrf.mxu2  ;;  %v8878_v17 = vpop.f32.mrf.mxu3  ;;  %v14602_v20 = vor.u32 %v17407_v58, %v14599_v12  ;;  %v15079_v52 = vld [vmem:[#allocation14 + $0xcf0] sm:$0xf0]  ;;  %v17555_v47 = vld [vmem:[#allocation14 + $0xdc4] sm:$0xf] }
 0x5c2   : > { %v8889_v34 = vpop.f32.mrf.mxu0  ;;  %v8902_v37 = vpop.f32.mrf.mxu1  ;;  %v14807_v27 = vld [vmem:[#allocation14 + $0xad0] sm:$0xf0]  ;;  %v15082_v14 = vor.u32 %v17527_v24, %v15079_v52  ;;  %v14938_v17 = vor.u32 %v17491_v41, %v14935_v33  ;;  %v17455_v43 = vld [vmem:[#allocation14 + $0xaa4] sm:$0xf] }
 0x5c3   : > { %9143 = vmatpush.bf16.msra.mxu0 %v14266_v56  ;;  %9156 = vmatpush.bf16.msrb.mxu1 %v14394_v30  ;;  %v8890_v31 = vadd.f32 %v8889_v34, %v8877_v25  ;;  %v17339_v56 = vld [vmem:[#allocation14 + $0x704] sm:$0xf]  ;;  %v14327_v30 = vld [vmem:[#allocation14 + $0x710] sm:$0xf0]  ;;  %v14826_v25 = vor.u32 %v17463_v32, %v14823_v28  ;;  %v14810_v5 = vor.u32 %v17459_v49, %v14807_v27 }
 0x5c4   : > { %9169 = vmatpush.bf16.msrb.mxu2 %v14522_v59  ;;  %9182 = vmatpush.bf16.msra.mxu3 %v14650_v61  ;;  %v17371_v59 = vld [vmem:[#allocation14 + $0x804] sm:$0xf]  ;;  %v14455_v61 = vld [vmem:[#allocation14 + $0x810] sm:$0xf0]  ;;  %v14330_v60 = vor.u32 %v17339_v56, %v14327_v30 }
 0x5c5   : > { %v8903_v38 = vadd.f32 %v8902_v37, %v8890_v31  ;;  %v14458_v13 = vor.u32 %v17371_v59, %v14455_v61  ;;  %v15191_v62 = vld [vmem:[#allocation14 + $0xdd0] sm:$0xf0]  ;;  %v17487_v37 = vld [vmem:[#allocation14 + $0xba4] sm:$0xf] }
 0x5c6   : > { %v14791_v58 = vld [vmem:[#allocation14 + $0xab0] sm:$0xf0]  ;;  %v15194_v34 = vor.u32 %v17555_v47, %v15191_v62  ;;  %v17551_v31 = vld [vmem:[#allocation14 + $0xda4] sm:$0xf] }
 0x5c7   : > { %9144 = vmatpush.bf16.msra.mxu0 %v14250_v3  ;;  %9157 = vmatpush.bf16.msrb.mxu1 %v14378_v19  ;;  %v17559_v3 = vld [vmem:[#allocation14 + $0xde4] sm:$0xf]  ;;  %v15207_v19 = vld [vmem:[#allocation14 + $0xdf0] sm:$0xf0]  ;;  %v14794_v56 = vor.u32 %v17455_v43, %v14791_v58 }
 0x5c8   : > { %9170 = vmatpush.bf16.msrb.mxu2 %v14506_v57  ;;  %9183 = vmatpush.bf16.msra.mxu3 %v14634_v7  ;;  %v14954_v57 = vor.u32 %v17495_v44, %v14951_v50  ;;  %v15210_v36 = vor.u32 %v17559_v3, %v15207_v19  ;;  %v14919_v48 = vld [vmem:[#allocation14 + $0xbb0] sm:$0xf0]  ;;  %v17451_v59 = vld [vmem:[#allocation14 + $0xa84] sm:$0xf] }
 0x5c9   : > { %v8915_v7 = vpop.f32.mrf.mxu2  ;;  %v8928_v4 = vpop.f32.mrf.mxu3  ;;  %v15175_v45 = vld [vmem:[#allocation14 + $0xdb0] sm:$0xf0]  ;;  %v14922_v30 = vor.u32 %v17487_v37, %v14919_v48  ;;  %v17483_v9 = vld [vmem:[#allocation14 + $0xb84] sm:$0xf] }
 0x5ca   : > { %v8916_v22 = vadd.f32 %v8915_v7, %v8903_v38  ;;  %v14775_v61 = vld [vmem:[#allocation14 + $0xa90] sm:$0xf0]  ;;  %v15178_v38 = vor.u32 %v17551_v31, %v15175_v45  ;;  %v17515_v28 = vld [vmem:[#allocation14 + $0xc84] sm:$0xf] }
 0x5cb   : > { %9145 = vmatpush.bf16.msra.mxu0 %v14234_v54  ;;  %9158 = vmatpush.bf16.msrb.mxu1 %v14362_v6  ;;  %v8891_v54 = vpop.f32.mrf.mxu0  ;;  %v8904_v6 = vpop.f32.mrf.mxu1  ;;  %v14903_v32 = vld [vmem:[#allocation14 + $0xb90] sm:$0xf0]  ;;  %v17547_v50 = vld [vmem:[#allocation14 + $0xd84] sm:$0xf]  ;;  %v14778_v3 = vor.u32 %v17451_v59, %v14775_v61 }
 0x5cc   : > { %9171 = vmatpush.bf16.msrb.mxu2 %v14490_v46  ;;  %9184 = vmatpush.bf16.msra.mxu3 %v14618_v29  ;;  %v17523_v46 = vld [vmem:[#allocation14 + $0xcc4] sm:$0xf]  ;;  %v15063_v29 = vld [vmem:[#allocation14 + $0xcd0] sm:$0xf0]  ;;  %v8929_v51 = vadd.f32 %v8928_v4, %v8916_v22  ;;  %v14906_v19 = vor.u32 %v17483_v9, %v14903_v32 }
 0x5cd   : > { %v15066_v12 = vor.u32 %v17523_v46, %v15063_v29  ;;  %v15031_v44 = vld [vmem:[#allocation14 + $0xc90] sm:$0xf0]  ;;  %v17479_v7 = vld [vmem:[#allocation14 + $0xb64] sm:$0xf] }
 0x5ce   : > { %v15159_v24 = vld [vmem:[#allocation14 + $0xd90] sm:$0xf0]  ;;  %v17511_v49 = vld [vmem:[#allocation14 + $0xc64] sm:$0xf] }
 0x5cf   : > { %9146 = vmatpush.bf16.msra.mxu0 %v14218_v0  ;;  %9159 = vmatpush.bf16.msrb.mxu1 %v14346_v18  ;;  %v17519_v0 = vld [vmem:[#allocation14 + $0xca4] sm:$0xf]  ;;  %v15047_v18 = vld [vmem:[#allocation14 + $0xcb0] sm:$0xf0] }
 0x5d0   : > { %9172 = vmatpush.bf16.msrb.mxu2 %v14474_v15  ;;  %9185 = vmatpush.bf16.msra.mxu3 %v14602_v20  ;;  %v15050_v35 = vor.u32 %v17519_v0, %v15047_v18  ;;  %v14887_v4 = vld [vmem:[#allocation14 + $0xb70] sm:$0xf0]  ;;  %v17443_v41 = vld [vmem:[#allocation14 + $0xa44] sm:$0xf] }
 0x5d1   : > { %v8917_v15 = vpop.f32.mrf.mxu2  ;;  %v8930_v20 = vpop.f32.mrf.mxu3  ;;  %v15143_v22 = vld [vmem:[#allocation14 + $0xd70] sm:$0xf0]  ;;  %v14890_v6 = vor.u32 %v17479_v7, %v14887_v4  ;;  %v17475_v47 = vld [vmem:[#allocation14 + $0xb44] sm:$0xf] }
 0x5d2   : > { %v14743_v33 = vld [vmem:[#allocation14 + $0xa50] sm:$0xf0]  ;;  %v17539_v58 = vld [vmem:[#allocation14 + $0xd44] sm:$0xf] }
 0x5d3   : > { %9147 = vmatpush.bf16.msra.mxu0 %v14202_v40  ;;  %9160 = vmatpush.bf16.msrb.mxu1 %v14330_v60  ;;  %v8941_v40 = vpop.f32.mrf.mxu0  ;;  %v8954_v60 = vpop.f32.mrf.mxu1  ;;  %v14871_v62 = vld [vmem:[#allocation14 + $0xb50] sm:$0xf0]  ;;  %v14746_v0 = vor.u32 %v17443_v41, %v14743_v33  ;;  %v17439_v31 = vld [vmem:[#allocation14 + $0xa24] sm:$0xf] }
 0x5d4   : > { %9173 = vmatpush.bf16.msrb.mxu2 %v14458_v13  ;;  %9186 = vmatpush.bf16.msra.mxu3 %v14586_v21  ;;  %v8942_v52 = vadd.f32 %v8941_v40, %v8929_v51  ;;  %v17447_v13 = vld [vmem:[#allocation14 + $0xa64] sm:$0xf]  ;;  %v14759_v21 = vld [vmem:[#allocation14 + $0xa70] sm:$0xf0]  ;;  %v14874_v18 = vor.u32 %v17475_v47, %v14871_v62 }
 0x5d5   : > { %v14762_v54 = vor.u32 %v17447_v13, %v14759_v21  ;;  %v17507_v51 = vld [vmem:[#allocation14 + $0xc44] sm:$0xf]  ;;  %v14999_v43 = vld [vmem:[#allocation14 + $0xc50] sm:$0xf0] }
 0x5d6   : > { %9148 = vmatmul.bf16.vlgmr.msra.gmra.mxu0 %v19850_v11  ;;  %9161 = vmatmul.bf16.vlgmr.msrb.gmra.mxu1 %v19852_v55  ;;  %v8955_v27 = vadd.f32 %v8954_v60, %v8942_v52  ;;  %v14727_v45 = vld [vmem:[#allocation14 + $0xa30] sm:$0xf0]  ;;  %v17471_v20 = vld [vmem:[#allocation14 + $0xb24] sm:$0xf] }
 0x5d7   : > { %9192 = vmatpush.bf16.msrb.mxu0 %v14826_v25  ;;  %9205 = vmatpush.bf16.msra.mxu1 %v14954_v57  ;;  %v15034_v25 = vor.u32 %v17515_v28, %v15031_v44  ;;  %v15162_v57 = vor.u32 %v17547_v50, %v15159_v24  ;;  %v14855_v59 = vld [vmem:[#allocation14 + $0xb30] sm:$0xf0]  ;;  %v17503_v61 = vld [vmem:[#allocation14 + $0xc24] sm:$0xf]  ;;  %v14730_v28 = vor.u32 %v17439_v31, %v14727_v45 }
 0x5d8   : > { %9218 = vmatpush.bf16.msra.mxu2 %v15082_v14  ;;  %9231 = vmatpush.bf16.msrb.mxu3 %v15210_v36  ;;  %v15015_v14 = vld [vmem:[#allocation14 + $0xc70] sm:$0xf0]  ;;  %v17543_v36 = vld [vmem:[#allocation14 + $0xd64] sm:$0xf]  ;;  %v14858_v44 = vor.u32 %v17471_v20, %v14855_v59 }
 0x5d9   : > { %9174 = vmatmul.bf16.vlgmr.msrb.gmra.mxu2 %v19866_v8  ;;  %9187 = vmatmul.bf16.vlgmr.msra.gmra.mxu3 %v19868_v39  ;;  %v15018_v46 = vor.u32 %v17511_v49, %v15015_v14  ;;  %v15146_v29 = vor.u32 %v17543_v36, %v15143_v22  ;;  %v15111_v9 = vld [vmem:[#allocation14 + $0xd30] sm:$0xf0]  ;;  %v17435_v32 = vld [vmem:[#allocation14 + $0xa04] sm:$0xf] }
 0x5da   : > { %v14711_v50 = vld [vmem:[#allocation14 + $0xa10] sm:$0xf0]  ;;  %v17467_v24 = vld [vmem:[#allocation14 + $0xb04] sm:$0xf] }
 0x5db   : > { %9193 = vmatpush.bf16.msrb.mxu0 %v14810_v5  ;;  %9206 = vmatpush.bf16.msra.mxu1 %v14938_v17  ;;  %v8943_v37 = vpop.f32.mrf.mxu0  ;;  %v8956_v48 = vpop.f32.mrf.mxu1  ;;  %v14839_v40 = vld [vmem:[#allocation14 + $0xb10] sm:$0xf0]  ;;  %v17531_v13 = vld [vmem:[#allocation14 + $0xd04] sm:$0xf]  ;;  %v14714_v36 = vor.u32 %v17435_v32, %v14711_v50 }
 0x5dc   : > { %9219 = vmatpush.bf16.msra.mxu2 %v15066_v12  ;;  %9232 = vmatpush.bf16.msrb.mxu3 %v15194_v34  ;;  %v8967_v5 = vpop.f32.mrf.mxu2  ;;  %v8980_v17 = vpop.f32.mrf.mxu3  ;;  %v15127_v12 = vld [vmem:[#allocation14 + $0xd50] sm:$0xf0]  ;;  %v17591_v7 = vld [vmem:[#allocation14 + $0xee4] sm:$0xf]  ;;  %v14842_v22 = vor.u32 %v17467_v24, %v14839_v40 }
 0x5dd   : > { %v8968_v34 = vadd.f32 %v8967_v5, %v8955_v27  ;;  %v15130_v15 = vor.u32 %v17539_v58, %v15127_v12  ;;  %v15335_v4 = vld [vmem:[#allocation14 + $0xef0] sm:$0xf0]  ;;  %v17623_v49 = vld [vmem:[#allocation14 + $0xfe4] sm:$0xf] }
 0x5de   : > { %v15463_v27 = vld [vmem:[#allocation14 + $0xff0] sm:$0xf0]  ;;  %v17655_v14 = vld [vmem:[#allocation14 + $0x10e4] sm:$0xf] }
 0x5df   : > { %9194 = vmatpush.bf16.msrb.mxu0 %v14794_v56  ;;  %9207 = vmatpush.bf16.msra.mxu1 %v14922_v30  ;;  %v19898_v56 = vadd.f32 %v8980_v17, %v8968_v34  ;;  %v15002_v30 = vor.u32 %v17507_v51, %v14999_v43  ;;  %v15719_v41 = vld [vmem:[#allocation14 + $0x11f0] sm:$0xf0]  ;;  %v15466_v47 = vor.u32 %v17623_v49, %v15463_v27  ;;  %v17587_v62 = vld [vmem:[#allocation14 + $0xec4] sm:$0xf] }
 0x5e0   : > { %9220 = vmatpush.bf16.msra.mxu2 %v15050_v35  ;;  %9233 = vmatpush.bf16.msrb.mxu3 %v15178_v38  ;;  %v14983_v35 = vld [vmem:[#allocation14 + $0xc30] sm:$0xf0]  ;;  %v17535_v38 = vld [vmem:[#allocation14 + $0xd24] sm:$0xf] }
 0x5e1   : > { %v14986_v60 = vor.u32 %v17503_v61, %v14983_v35  ;;  %v15114_v52 = vor.u32 %v17535_v38, %v15111_v9  ;;  %v15319_v51 = vld [vmem:[#allocation14 + $0xed0] sm:$0xf0]  ;;  %v17619_v43 = vld [vmem:[#allocation14 + $0xfc4] sm:$0xf] }
 0x5e2   : > { %v15447_v58 = vld [vmem:[#allocation14 + $0xfd0] sm:$0xf0]  ;;  %v17651_v12 = vld [vmem:[#allocation14 + $0x10c4] sm:$0xf] }
 0x5e3   : > { %9195 = vmatpush.bf16.msrb.mxu0 %v14778_v3  ;;  %9208 = vmatpush.bf16.msra.mxu1 %v14906_v19  ;;  %v17499_v3 = vld [vmem:[#allocation14 + $0xc04] sm:$0xf]  ;;  %v14967_v19 = vld [vmem:[#allocation14 + $0xc10] sm:$0xf0] }
 0x5e4   : > { %9221 = vmatpush.bf16.msra.mxu2 %v15034_v25  ;;  %9234 = vmatpush.bf16.msrb.mxu3 %v15162_v57  ;;  %v8969_v21 = vpop.f32.mrf.mxu2  ;;  %v8982_v25 = vpop.f32.mrf.mxu3  ;;  %v15095_v57 = vld [vmem:[#allocation14 + $0xd10] sm:$0xf0]  ;;  %v14970_v33 = vor.u32 %v17499_v3, %v14967_v19  ;;  %v17683_v37 = vld [vmem:[#allocation14 + $0x11c4] sm:$0xf] }
 0x5e5   : > { %v15575_v34 = vld [vmem:[#allocation14 + $0x10d0] sm:$0xf0]  ;;  %v17583_v31 = vld [vmem:[#allocation14 + $0xea4] sm:$0xf] }
 0x5e6   : > { %v15703_v48 = vld [vmem:[#allocation14 + $0x11d0] sm:$0xf0]  ;;  %v17615_v20 = vld [vmem:[#allocation14 + $0xfa4] sm:$0xf] }
 0x5e7   : > { %9196 = vmatpush.bf16.msrb.mxu0 %v14762_v54  ;;  %9209 = vmatpush.bf16.msra.mxu1 %v14890_v6  ;;  %v15591_v54 = vld [vmem:[#allocation14 + $0x10f0] sm:$0xf0]  ;;  %v17687_v6 = vld [vmem:[#allocation14 + $0x11e4] sm:$0xf] }
 0x5e8   : > { %9222 = vmatpush.bf16.msra.mxu2 %v15018_v46  ;;  %9235 = vmatpush.bf16.msrb.mxu3 %v15146_v29  ;;  %v15098_v46 = vor.u32 %v17531_v13, %v15095_v57  ;;  %v15338_v29 = vor.u32 %v17591_v7, %v15335_v4  ;;  %v15594_v5 = vor.u32 %v17655_v14, %v15591_v54  ;;  %v15303_v45 = vld [vmem:[#allocation14 + $0xeb0] sm:$0xf0]  ;;  %v17647_v61 = vld [vmem:[#allocation14 + $0x10a4] sm:$0xf] }
 0x5e9   : > { %v15722_v17 = vor.u32 %v17687_v6, %v15719_v41  ;;  %v15431_v59 = vld [vmem:[#allocation14 + $0xfb0] sm:$0xf0]  ;;  %v17679_v38 = vld [vmem:[#allocation14 + $0x11a4] sm:$0xf] }
 0x5ea   : > { %v15559_v35 = vld [vmem:[#allocation14 + $0x10b0] sm:$0xf0]  ;;  %v18135_v32 = vld.sshfl [vmem:[#allocation1 + $0x20] sm:$0xff pattern:$0x73625140]  ;;  %v15434_v50 = vor.u32 %v17615_v20, %v15431_v59 }
 0x5eb   : > { %9197 = vmatpush.bf16.msrb.mxu0 %v14746_v0  ;;  %9210 = vmatpush.bf16.msra.mxu1 %v14874_v18  ;;  %v15322_v0 = vor.u32 %v17587_v62, %v15319_v51  ;;  %v15450_v18 = vor.u32 %v17619_v43, %v15447_v58  ;;  %v15687_v9 = vld [vmem:[#allocation14 + $0x11b0] sm:$0xf0]  ;;  %v17579_v24 = vld [vmem:[#allocation14 + $0xe84] sm:$0xf] }
 0x5ec   : > { %9223 = vmatpush.bf16.msra.mxu2 %v15002_v30  ;;  %9236 = vmatpush.bf16.msrb.mxu3 %v15130_v15  ;;  %v15578_v30 = vor.u32 %v17651_v12, %v15575_v34  ;;  %v15706_v15 = vor.u32 %v17683_v37, %v15703_v48  ;;  %v15287_v40 = vld [vmem:[#allocation14 + $0xe90] sm:$0xf0]  ;;  %v17611_v3 = vld [vmem:[#allocation14 + $0xf84] sm:$0xf] }
 0x5ed   : > { %v15415_v19 = vld [vmem:[#allocation14 + $0xf90] sm:$0xf0]  ;;  %v17643_v13 = vld [vmem:[#allocation14 + $0x1084] sm:$0xf]  ;;  %v15290_v27 = vor.u32 %v17579_v24, %v15287_v40 }
 0x5ee   : > { %v15543_v21 = vld [vmem:[#allocation14 + $0x1090] sm:$0xf0]  ;;  %v17675_v25 = vld [vmem:[#allocation14 + $0x1184] sm:$0xf]  ;;  %v15418_v14 = vor.u32 %v17611_v3, %v15415_v19 }
 0x5ef   : > { %9198 = vmatpush.bf16.msrb.mxu0 %v14730_v28  ;;  %9211 = vmatpush.bf16.msra.mxu1 %v14858_v44  ;;  %v18136_v28 = vld.sshfl [vmem:[#allocation1 + $0x28] sm:$0xff pattern:$0x73625140]  ;;  %v15306_v44 = vor.u32 %v17583_v31, %v15303_v45  ;;  %v15671_v57 = vld [vmem:[#allocation14 + $0x1190] sm:$0xf0]  ;;  %v15546_v54 = vor.u32 %v17643_v13, %v15543_v21 }
 0x5f0   : > { %9224 = vmatpush.bf16.msra.mxu2 %v14986_v60  ;;  %9237 = vmatpush.bf16.msrb.mxu3 %v15114_v52  ;;  %v15562_v60 = vor.u32 %v17647_v61, %v15559_v35  ;;  %v15690_v52 = vor.u32 %v17679_v38, %v15687_v9  ;;  %v15674_v6 = vor.u32 %v17675_v25, %v15671_v57  ;;  %v17607_v41 = vld [vmem:[#allocation14 + $0xf64] sm:$0xf]  ;;  %v15655_v51 = vld [vmem:[#allocation14 + $0x1170] sm:$0xf0] }
 0x5f1   : > { %v17671_v62 = vld [vmem:[#allocation14 + $0x1164] sm:$0xf]  ;;  %v15255_v43 = vld [vmem:[#allocation14 + $0xe50] sm:$0xf0] }
 0x5f2   : > { %v15658_v12 = vor.u32 %v17671_v62, %v15655_v51  ;;  %v17603_v34 = vld [vmem:[#allocation14 + $0xf44] sm:$0xf]  ;;  %v15383_v37 = vld [vmem:[#allocation14 + $0xf50] sm:$0xf0] }
 0x5f3   : > { %9199 = vmatpush.bf16.msrb.mxu0 %v14714_v36  ;;  %9212 = vmatpush.bf16.msra.mxu1 %v14842_v22  ;;  %v8993_v7 = vpop.f32.mrf.mxu0  ;;  %v9006_v4 = vpop.f32.mrf.mxu1  ;;  %v17575_v36 = vld [vmem:[#allocation14 + $0xe64] sm:$0xf]  ;;  %v15271_v22 = vld [vmem:[#allocation14 + $0xe70] sm:$0xf0]  ;;  %v15386_v35 = vor.u32 %v17603_v34, %v15383_v37  ;;  %v13533_v37 = vld [vmem:[#allocation14 + $0xc8] sm:$0xf] }
 0x5f4   : > { %9225 = vmatpush.bf16.msra.mxu2 %v14970_v33  ;;  %9238 = vmatpush.bf16.msrb.mxu3 %v15098_v46  ;;  %v8994_v49 = vadd.f32 %v8993_v7, %v19898_v56  ;;  %v15399_v33 = vld [vmem:[#allocation14 + $0xf70] sm:$0xf0]  ;;  %v17639_v46 = vld [vmem:[#allocation14 + $0x1064] sm:$0xf] }
 0x5f5   : > { %v17571_v56 = vld [vmem:[#allocation14 + $0xe44] sm:$0xf]  ;;  %v15511_v31 = vld [vmem:[#allocation14 + $0x1050] sm:$0xf0] }
 0x5f6   : > { %9200 = vmatmul.bf16.vlgmr.msrb.gmra.mxu0 %v19870_v2  ;;  %9213 = vmatmul.bf16.vlgmr.msra.gmra.mxu1 %v19872_v42  ;;  %v17635_v48 = vld [vmem:[#allocation14 + $0x1044] sm:$0xf]  ;;  %v15258_v61 = vor.u32 %v17571_v56, %v15255_v43  ;;  %v15239_v9 = vld [vmem:[#allocation14 + $0xe30] sm:$0xf0]  ;;  %v17242_v56 = vld [vmem:[#allocation14 + $0x3f4] sm:$0xf0] }
 0x5f7   : > { %9244 = vmatpush.bf16.msra.mxu0 %v15338_v29  ;;  %9257 = vmatpush.bf16.msrb.mxu1 %v15466_v47  ;;  %v9007_v29 = vadd.f32 %v9006_v4, %v8994_v49  ;;  %v15527_v47 = vld [vmem:[#allocation14 + $0x1070] sm:$0xf0]  ;;  %v17667_v45 = vld [vmem:[#allocation14 + $0x1144] sm:$0xf] }
 0x5f8   : > { %9270 = vmatpush.bf16.msrb.mxu2 %v15594_v5  ;;  %9283 = vmatpush.bf16.msra.mxu3 %v15722_v17  ;;  %v15274_v5 = vor.u32 %v17575_v36, %v15271_v22  ;;  %v15402_v17 = vor.u32 %v17607_v41, %v15399_v33  ;;  %v15530_v58 = vor.u32 %v17639_v46, %v15527_v47  ;;  %v17567_v38 = vld [vmem:[#allocation14 + $0xe24] sm:$0xf]  ;;  %v15367_v24 = vld [vmem:[#allocation14 + $0xf30] sm:$0xf0]  ;;  %v13549_v41 = vld [vmem:[#allocation14 + $0xe8] sm:$0xf] }
 0x5f9   : > { %9226 = vmatmul.bf16.vlgmr.msra.gmra.mxu2 %v18135_v32  ;;  %9239 = vmatmul.bf16.vlgmr.msrb.gmra.mxu3 %v18136_v28  ;;  %v15514_v28 = vor.u32 %v17635_v48, %v15511_v31  ;;  %v17631_v40 = vld [vmem:[#allocation14 + $0x1024] sm:$0xf]  ;;  %v15623_v3 = vld [vmem:[#allocation14 + $0x1130] sm:$0xf0]  ;;  %v15242_v13 = vor.u32 %v17567_v38, %v15239_v9  ;;  %v17146_v33 = vld [vmem:[#allocation14 + $0xf4] sm:$0xf0] }
 0x5fa   : > { %v17563_v19 = vld [vmem:[#allocation14 + $0xe04] sm:$0xf]  ;;  %v15223_v25 = vld [vmem:[#allocation14 + $0xe10] sm:$0xf0]  ;;  %v13677_v46 = vld [vmem:[#allocation14 + $0x1e8] sm:$0xf] }
 0x5fb   : > { %9245 = vmatpush.bf16.msra.mxu0 %v15322_v0  ;;  %9258 = vmatpush.bf16.msrb.mxu1 %v15450_v18  ;;  %v8995_v20 = vpop.f32.mrf.mxu0  ;;  %v9008_v59 = vpop.f32.mrf.mxu1  ;;  %v17595_v57 = vld [vmem:[#allocation14 + $0xf04] sm:$0xf]  ;;  %v15351_v7 = vld [vmem:[#allocation14 + $0xf10] sm:$0xf0]  ;;  %v13805_v47 = vld [vmem:[#allocation14 + $0x2e8] sm:$0xf]  ;;  %v15226_v62 = vor.u32 %v17563_v19, %v15223_v25 }
 0x5fc   : > { %9271 = vmatpush.bf16.msrb.mxu2 %v15578_v30  ;;  %9284 = vmatpush.bf16.msra.mxu3 %v15706_v15  ;;  %v9019_v0 = vpop.f32.mrf.mxu2  ;;  %v9032_v18 = vpop.f32.mrf.mxu3  ;;  %v15639_v30 = vld [vmem:[#allocation14 + $0x1150] sm:$0xf0]  ;;  %v17659_v36 = vld [vmem:[#allocation14 + $0x1104] sm:$0xf]  ;;  %v15354_v51 = vor.u32 %v17595_v57, %v15351_v7  ;;  %v17142_v48 = vld [vmem:[#allocation14 + $0xd4] sm:$0xf0] }
 0x5fd   : > { %v9020_v15 = vadd.f32 %v9019_v0, %v9007_v29  ;;  %v17178_v29 = vld [vmem:[#allocation14 + $0x1f4] sm:$0xf0]  ;;  %v13661_v31 = vld [vmem:[#allocation14 + $0x1c8] sm:$0xf] }
 0x5fe   : > { %v13678_v34 = vor.u32 %v17178_v29, %v13677_v46  ;;  %v13917_v20 = vld [vmem:[#allocation14 + $0x3c8] sm:$0xf]  ;;  %v17238_v59 = vld [vmem:[#allocation14 + $0x3d4] sm:$0xf0] }
 0x5ff   : > { %9246 = vmatpush.bf16.msra.mxu0 %v15306_v44  ;;  %9259 = vmatpush.bf16.msrb.mxu1 %v15434_v50  ;;  %v19903_v32 = vadd.f32 %v9032_v18, %v9020_v15  ;;  %v15642_v44 = vor.u32 %v17667_v45, %v15639_v30  ;;  %v17599_v50 = vld [vmem:[#allocation14 + $0xf24] sm:$0xf]  ;;  %v17174_v45 = vld [vmem:[#allocation14 + $0x1d4] sm:$0xf0]  ;;  %v13789_v30 = vld [vmem:[#allocation14 + $0x2c8] sm:$0xf] }
 0x600   : > { %9272 = vmatpush.bf16.msrb.mxu2 %v15562_v60  ;;  %9285 = vmatpush.bf16.msra.mxu3 %v15690_v52  ;;  %v15495_v60 = vld [vmem:[#allocation14 + $0x1030] sm:$0xf0]  ;;  %v17663_v52 = vld [vmem:[#allocation14 + $0x1124] sm:$0xf]  ;;  %v15370_v21 = vor.u32 %v17599_v50, %v15367_v24  ;;  %v17206_v15 = vld [vmem:[#allocation14 + $0x2d4] sm:$0xf0] }
 0x601   : > { %v15498_v4 = vor.u32 %v17631_v40, %v15495_v60  ;;  %v15626_v49 = vor.u32 %v17663_v52, %v15623_v3  ;;  %v13517_v38 = vld [vmem:[#allocation14 + $0xa8] sm:$0xf]  ;;  %v17138_v9 = vld [vmem:[#allocation14 + $0xb4] sm:$0xf0] }
 0x602   : > { %v13645_v50 = vld [vmem:[#allocation14 + $0x1a8] sm:$0xf]  ;;  %v17170_v24 = vld [vmem:[#allocation14 + $0x1b4] sm:$0xf0]  ;;  %v13518_v57 = vor.u32 %v17138_v9, %v13517_v38 }
 0x603   : > { %9247 = vmatpush.bf16.msra.mxu0 %v15290_v27  ;;  %9260 = vmatpush.bf16.msrb.mxu1 %v15418_v14  ;;  %v17627_v27 = vld [vmem:[#allocation14 + $0x1004] sm:$0xf]  ;;  %v15479_v14 = vld [vmem:[#allocation14 + $0x1010] sm:$0xf0]  ;;  %v13773_v40 = vld [vmem:[#allocation14 + $0x2a8] sm:$0xf]  ;;  %v13646_v7 = vor.u32 %v17170_v24, %v13645_v50 }
 0x604   : > { %9273 = vmatpush.bf16.msrb.mxu2 %v15546_v54  ;;  %9286 = vmatpush.bf16.msra.mxu3 %v15674_v6  ;;  %v9021_v22 = vpop.f32.mrf.mxu2  ;;  %v9034_v54 = vpop.f32.mrf.mxu3  ;;  %v15607_v6 = vld [vmem:[#allocation14 + $0x1110] sm:$0xf0]  ;;  %v15482_v43 = vor.u32 %v17627_v27, %v15479_v14  ;;  %v18138_v52 = vld.sshfl [vmem:[#allocation1 + $0x38] sm:$0xff pattern:$0x73625140] }
 0x605   : > { %v18137_v60 = vld.sshfl [vmem:[#allocation1 + $0x30] sm:$0xff pattern:$0x73625140]  ;;  %v13901_v19 = vld [vmem:[#allocation14 + $0x3a8] sm:$0xf] }
 0x606   : > { %v17202_v3 = vld [vmem:[#allocation14 + $0x2b4] sm:$0xf0]  ;;  %v18140_v25 = vld.sshfl [vmem:[#allocation1 + $0x8] sm:$0xff pattern:$0x73625140] }
 0x607   : > { %9248 = vmatpush.bf16.msra.mxu0 %v15274_v5  ;;  %9261 = vmatpush.bf16.msrb.mxu1 %v15402_v17  ;;  %v17210_v5 = vld [vmem:[#allocation14 + $0x2f4] sm:$0xf0]  ;;  %v13933_v17 = vld [vmem:[#allocation14 + $0x3e8] sm:$0xf]  ;;  %v13774_v27 = vor.u32 %v17202_v3, %v13773_v40 }
 0x608   : > { %9274 = vmatpush.bf16.msrb.mxu2 %v15530_v58  ;;  %9287 = vmatpush.bf16.msra.mxu3 %v15658_v12  ;;  %v15610_v58 = vor.u32 %v17659_v36, %v15607_v6  ;;  %v13550_v12 = vor.u32 %v17146_v33, %v13549_v41  ;;  %v13806_v0 = vor.u32 %v17210_v5, %v13805_v47  ;;  %v13629_v36 = vld [vmem:[#allocation14 + $0x188] sm:$0xf]  ;;  %v17166_v22 = vld [vmem:[#allocation14 + $0x194] sm:$0xf0] }
 0x609   : > { %v13934_v18 = vor.u32 %v17242_v56, %v13933_v17  ;;  %v13757_v54 = vld [vmem:[#allocation14 + $0x288] sm:$0xf]  ;;  %v17198_v6 = vld [vmem:[#allocation14 + $0x294] sm:$0xf0] }
 0x60a   : > { %v13885_v41 = vld [vmem:[#allocation14 + $0x388] sm:$0xf]  ;;  %v17230_v33 = vld [vmem:[#allocation14 + $0x394] sm:$0xf0]  ;;  %v13758_v56 = vor.u32 %v17198_v6, %v13757_v54 }
 0x60b   : > { %9249 = vmatpush.bf16.msra.mxu0 %v15258_v61  ;;  %9262 = vmatpush.bf16.msrb.mxu1 %v15386_v35  ;;  %v13534_v61 = vor.u32 %v17142_v48, %v13533_v37  ;;  %v13662_v35 = vor.u32 %v17174_v45, %v13661_v31  ;;  %v13485_v5 = vld [vmem:[#allocation14 + $0x68] sm:$0xf]  ;;  %v17130_v17 = vld [vmem:[#allocation14 + $0x74] sm:$0xf0]  ;;  %v5894_v31 = vperm.slane %v19887_v63, 1 }
 0x60c   : > { %9275 = vmatpush.bf16.msrb.mxu2 %v15514_v28  ;;  %9288 = vmatpush.bf16.msra.mxu3 %v15642_v44  ;;  %v13790_v28 = vor.u32 %v17206_v15, %v13789_v30  ;;  %v13918_v44 = vor.u32 %v17238_v59, %v13917_v20  ;;  %v17194_v48 = vld [vmem:[#allocation14 + $0x274] sm:$0xf0]  ;;  %v13469_v30 = vld [vmem:[#allocation14 + $0x48] sm:$0xf] }
 0x60d   : > { %v17126_v15 = vld [vmem:[#allocation14 + $0x54] sm:$0xf0]  ;;  %v13725_v38 = vld [vmem:[#allocation14 + $0x248] sm:$0xf] }
 0x60e   : > { %v13853_v50 = vld [vmem:[#allocation14 + $0x348] sm:$0xf]  ;;  %v17222_v24 = vld [vmem:[#allocation14 + $0x354] sm:$0xf0] }
 0x60f   : > { %9250 = vmatpush.bf16.msra.mxu0 %v15242_v13  ;;  %9263 = vmatpush.bf16.msrb.mxu1 %v15370_v21  ;;  %v17234_v13 = vld [vmem:[#allocation14 + $0x3b4] sm:$0xf0]  ;;  %v18139_v21 = vld.sshfl [vmem:[#allocation1] sm:$0xff pattern:$0x73625140] }
 0x610   : > { %9276 = vmatpush.bf16.msrb.mxu2 %v15498_v4  ;;  %9289 = vmatpush.bf16.msra.mxu3 %v15626_v49  ;;  %v13501_v4 = vld [vmem:[#allocation14 + $0x88] sm:$0xf]  ;;  %v17134_v49 = vld [vmem:[#allocation14 + $0x94] sm:$0xf0]  ;;  %v13902_v14 = vor.u32 %v17234_v13, %v13901_v19 }
 0x611   : > { %v13453_v19 = vld [vmem:[#allocation14 + $0x28] sm:$0xf]  ;;  %v17122_v13 = vld [vmem:[#allocation14 + $0x34] sm:$0xf0] }
 0x612   : > { %v13454_v54 = vor.u32 %v17122_v13, %v13453_v19  ;;  %v14029_v19 = vld [vmem:[#allocation14 + $0x4a8] sm:$0xf]  ;;  %v17266_v13 = vld [vmem:[#allocation14 + $0x4b4] sm:$0xf0] }
 0x613   : > { %9251 = vmatpush.bf16.msra.mxu0 %v15226_v62  ;;  %9264 = vmatpush.bf16.msrb.mxu1 %v15354_v51  ;;  %v9045_v46 = vpop.f32.mrf.mxu0  ;;  %v9058_v29 = vpop.f32.mrf.mxu1  ;;  %v13502_v62 = vor.u32 %v17134_v49, %v13501_v4  ;;  %v13630_v51 = vor.u32 %v17166_v22, %v13629_v36  ;;  %v17154_v4 = vld [vmem:[#allocation14 + $0x134] sm:$0xf0]  ;;  %v13709_v49 = vld [vmem:[#allocation14 + $0x228] sm:$0xf] }
 0x614   : > { %9277 = vmatpush.bf16.msrb.mxu2 %v15482_v43  ;;  %9290 = vmatpush.bf16.msra.mxu3 %v15610_v58  ;;  %v9046_v47 = vadd.f32 %v9045_v46, %v19903_v32  ;;  %v13886_v43 = vor.u32 %v17230_v33, %v13885_v41  ;;  %v13613_v58 = vld [vmem:[#allocation14 + $0x168] sm:$0xf]  ;;  %v13486_v32 = vor.u32 %v17130_v17, %v13485_v5  ;;  %v17218_v36 = vld [vmem:[#allocation14 + $0x334] sm:$0xf0] }
 0x615   : > { %v13437_v22 = vld [vmem:[#allocation14 + $0x8] sm:$0xf]  ;;  %v17118_v41 = vld [vmem:[#allocation14 + $0x14] sm:$0xf0] }
 0x616   : > { %9252 = vmatmul.bf16.vlgmr.msra.gmra.mxu0 %v18137_v60  ;;  %9265 = vmatmul.bf16.vlgmr.msrb.gmra.mxu1 %v18138_v52  ;;  %v19906_v37 = vadd.f32 %v9058_v29, %v9046_v47  ;;  %v13470_v52 = vor.u32 %v17126_v15, %v13469_v30  ;;  %v13565_v33 = vld [vmem:[#allocation14 + $0x108] sm:$0xf]  ;;  %v17150_v46 = vld [vmem:[#allocation14 + $0x114] sm:$0xf0] }
 0x617   : > { %9296 = vmatpush.bf16.msrb.mxu0 %v13550_v12  ;;  %9309 = vmatpush.bf16.msra.mxu1 %v13678_v34  ;;  %v17162_v12 = vld [vmem:[#allocation14 + $0x174] sm:$0xf0]  ;;  %v13741_v34 = vld [vmem:[#allocation14 + $0x268] sm:$0xf] }
 0x618   : > { %9322 = vmatpush.bf16.msra.mxu2 %v13806_v0  ;;  %9335 = vmatpush.bf16.msrb.mxu3 %v13934_v18  ;;  %v13869_v0 = vld [vmem:[#allocation14 + $0x368] sm:$0xf]  ;;  %v17226_v18 = vld [vmem:[#allocation14 + $0x374] sm:$0xf0]  ;;  %v13614_v45 = vor.u32 %v17162_v12, %v13613_v58  ;;  %v13742_v20 = vor.u32 %v17194_v48, %v13741_v34 }
 0x619   : > { %9278 = vmatmul.bf16.vlgmr.msrb.gmra.mxu2 %v18139_v21  ;;  %9291 = vmatmul.bf16.vlgmr.msra.gmra.mxu3 %v18140_v25  ;;  %v13870_v59 = vor.u32 %v17226_v18, %v13869_v0  ;;  %v13821_v5 = vld [vmem:[#allocation14 + $0x308] sm:$0xf]  ;;  %v17274_v12 = vld [vmem:[#allocation14 + $0x4f4] sm:$0xf0]  ;;  %v13438_v18 = vor.u32 %v17118_v41, %v13437_v22  ;;  %v14030_v22 = vor.u32 %v17266_v13, %v14029_v19 }
 0x61a   : > { %v14061_v58 = vld [vmem:[#allocation14 + $0x4e8] sm:$0xf]  ;;  %v17306_v48 = vld [vmem:[#allocation14 + $0x5f4] sm:$0xf0] }
 0x61b   : > { %9297 = vmatpush.bf16.msrb.mxu0 %v13534_v61  ;;  %9310 = vmatpush.bf16.msra.mxu1 %v13662_v35  ;;  %v13597_v61 = vld [vmem:[#allocation14 + $0x148] sm:$0xf]  ;;  %v17158_v35 = vld [vmem:[#allocation14 + $0x154] sm:$0xf0]  ;;  %v9047_v63 = vpop.f32.mrf.mxu0  ;;  %v9060_v60 = vpop.f32.mrf.mxu1 }
 0x61c   : > { %9323 = vmatpush.bf16.msra.mxu2 %v13790_v28  ;;  %9336 = vmatpush.bf16.msrb.mxu3 %v13918_v44  ;;  %v9071_v9 = vpop.f32.mrf.mxu2  ;;  %v9084_v28 = vpop.f32.mrf.mxu3  ;;  %v17190_v44 = vld [vmem:[#allocation14 + $0x254] sm:$0xf0]  ;;  %v13598_v3 = vor.u32 %v17158_v35, %v13597_v61  ;;  %v14189_v34 = vld [vmem:[#allocation14 + $0x5e8] sm:$0xf] }
 0x61d   : > { %v9072_v40 = vadd.f32 %v9071_v9, %v5894_v31  ;;  %v13726_v25 = vor.u32 %v17190_v44, %v13725_v38  ;;  %v14317_v0 = vld [vmem:[#allocation14 + $0x6e8] sm:$0xf]  ;;  %v13566_v31 = vor.u32 %v17150_v46, %v13565_v33  ;;  %v17370_v30 = vld [vmem:[#allocation14 + $0x7f4] sm:$0xf0]  ;;  %v14190_v61 = vor.u32 %v17306_v48, %v14189_v34 }
 0x61e   : > { %v14045_v35 = vld [vmem:[#allocation14 + $0x4c8] sm:$0xf]  ;;  %v17270_v38 = vld [vmem:[#allocation14 + $0x4d4] sm:$0xf0] }
 0x61f   : > { %9298 = vmatpush.bf16.msrb.mxu0 %v13518_v57  ;;  %9311 = vmatpush.bf16.msra.mxu1 %v13646_v7  ;;  %v19909_v21 = vadd.f32 %v9084_v28, %v9072_v40  ;;  %v13854_v57 = vor.u32 %v17222_v24, %v13853_v50  ;;  %v13581_v7 = vld [vmem:[#allocation14 + $0x128] sm:$0xf]  ;;  %v17302_v50 = vld [vmem:[#allocation14 + $0x5d4] sm:$0xf0] }
 0x620   : > { %9324 = vmatpush.bf16.msra.mxu2 %v13774_v27  ;;  %9337 = vmatpush.bf16.msrb.mxu3 %v13902_v14  ;;  %v17186_v27 = vld [vmem:[#allocation14 + $0x234] sm:$0xf0]  ;;  %v13837_v14 = vld [vmem:[#allocation14 + $0x328] sm:$0xf]  ;;  %v13582_v6 = vor.u32 %v17154_v4, %v13581_v7 }
 0x621   : > { %v13710_v29 = vor.u32 %v17186_v27, %v13709_v49  ;;  %v13838_v47 = vor.u32 %v17218_v36, %v13837_v14  ;;  %v14173_v44 = vld [vmem:[#allocation14 + $0x5c8] sm:$0xf]  ;;  %v17334_v40 = vld [vmem:[#allocation14 + $0x6d4] sm:$0xf0] }
 0x622   : > { %v14301_v24 = vld [vmem:[#allocation14 + $0x6c8] sm:$0xf]  ;;  %v17366_v60 = vld [vmem:[#allocation14 + $0x7d4] sm:$0xf0] }
 0x623   : > { %9299 = vmatpush.bf16.msrb.mxu0 %v13502_v62  ;;  %9312 = vmatpush.bf16.msra.mxu1 %v13630_v51  ;;  %v13693_v62 = vld [vmem:[#allocation14 + $0x208] sm:$0xf]  ;;  %v17182_v51 = vld [vmem:[#allocation14 + $0x214] sm:$0xf0] }
 0x624   : > { %9325 = vmatpush.bf16.msra.mxu2 %v13758_v56  ;;  %9338 = vmatpush.bf16.msrb.mxu3 %v13886_v43  ;;  %v9073_v17 = vpop.f32.mrf.mxu2  ;;  %v9086_v56 = vpop.f32.mrf.mxu3  ;;  %v17214_v43 = vld [vmem:[#allocation14 + $0x314] sm:$0xf0]  ;;  %v13694_v15 = vor.u32 %v17182_v51, %v13693_v62  ;;  %v14429_v63 = vld [vmem:[#allocation14 + $0x7c8] sm:$0xf] }
 0x625   : > { %v14157_v7 = vld [vmem:[#allocation14 + $0x5a8] sm:$0xf]  ;;  %v17298_v4 = vld [vmem:[#allocation14 + $0x5b4] sm:$0xf0] }
 0x626   : > { %v14285_v49 = vld [vmem:[#allocation14 + $0x6a8] sm:$0xf]  ;;  %v17330_v27 = vld [vmem:[#allocation14 + $0x6b4] sm:$0xf0] }
 0x627   : > { %9300 = vmatpush.bf16.msrb.mxu0 %v13486_v32  ;;  %9313 = vmatpush.bf16.msra.mxu1 %v13614_v45  ;;  %v17338_v32 = vld [vmem:[#allocation14 + $0x6f4] sm:$0xf0]  ;;  %v14445_v45 = vld [vmem:[#allocation14 + $0x7e8] sm:$0xf]  ;;  %v14286_v33 = vor.u32 %v17330_v27, %v14285_v49 }
 0x628   : > { %9326 = vmatpush.bf16.msra.mxu2 %v13742_v20  ;;  %9339 = vmatpush.bf16.msrb.mxu3 %v13870_v59  ;;  %v13822_v20 = vor.u32 %v17214_v43, %v13821_v5  ;;  %v14062_v59 = vor.u32 %v17274_v12, %v14061_v58  ;;  %v14318_v9 = vor.u32 %v17338_v32, %v14317_v0  ;;  %v14413_v14 = vld [vmem:[#allocation14 + $0x7a8] sm:$0xf]  ;;  %v17362_v36 = vld [vmem:[#allocation14 + $0x7b4] sm:$0xf0] }
 0x629   : > { %v14446_v28 = vor.u32 %v17370_v30, %v14445_v45  ;;  %v17262_v41 = vld [vmem:[#allocation14 + $0x494] sm:$0xf0]  ;;  %v14414_v46 = vor.u32 %v17362_v36, %v14413_v14  ;;  %v14269_v62 = vld [vmem:[#allocation14 + $0x688] sm:$0xf] }
 0x62a   : > { %v17326_v51 = vld [vmem:[#allocation14 + $0x694] sm:$0xf0]  ;;  %v14397_v5 = vld [vmem:[#allocation14 + $0x788] sm:$0xf] }
 0x62b   : > { %9301 = vmatpush.bf16.msrb.mxu0 %v13470_v52  ;;  %9314 = vmatpush.bf16.msra.mxu1 %v13598_v3  ;;  %v14046_v52 = vor.u32 %v17270_v38, %v14045_v35  ;;  %v14174_v3 = vor.u32 %v17302_v50, %v14173_v44  ;;  %v17358_v17 = vld [vmem:[#allocation14 + $0x794] sm:$0xf0]  ;;  %v13997_v48 = vld [vmem:[#allocation14 + $0x468] sm:$0xf] }
 0x62c   : > { %9327 = vmatpush.bf16.msra.mxu2 %v13726_v25  ;;  %9340 = vmatpush.bf16.msrb.mxu3 %v13854_v57  ;;  %v14302_v25 = vor.u32 %v17334_v40, %v14301_v24  ;;  %v14430_v57 = vor.u32 %v17366_v60, %v14429_v63  ;;  %v17258_v0 = vld [vmem:[#allocation14 + $0x474] sm:$0xf0]  ;;  %v14125_v32 = vld [vmem:[#allocation14 + $0x568] sm:$0xf] }
 0x62d   : > { %v17290_v45 = vld [vmem:[#allocation14 + $0x574] sm:$0xf0]  ;;  %v14253_v30 = vld [vmem:[#allocation14 + $0x668] sm:$0xf]  ;;  %v13998_v35 = vor.u32 %v17258_v0, %v13997_v48 }
 0x62e   : > { %v14126_v38 = vor.u32 %v17290_v45, %v14125_v32  ;;  %v14109_v50 = vld [vmem:[#allocation14 + $0x548] sm:$0xf]  ;;  %v17286_v24 = vld [vmem:[#allocation14 + $0x554] sm:$0xf0] }
 0x62f   : > { %9302 = vmatpush.bf16.msrb.mxu0 %v13454_v54  ;;  %9315 = vmatpush.bf16.msra.mxu1 %v13582_v6  ;;  %v14158_v54 = vor.u32 %v17298_v4, %v14157_v7  ;;  %v14013_v6 = vld [vmem:[#allocation14 + $0x488] sm:$0xf]  ;;  %v17350_v19 = vld [vmem:[#allocation14 + $0x754] sm:$0xf0]  ;;  %v14110_v4 = vor.u32 %v17286_v24, %v14109_v50 }
 0x630   : > { %9328 = vmatpush.bf16.msra.mxu2 %v13710_v29  ;;  %9341 = vmatpush.bf16.msrb.mxu3 %v13838_v47  ;;  %v14141_v29 = vld [vmem:[#allocation14 + $0x588] sm:$0xf]  ;;  %v17294_v47 = vld [vmem:[#allocation14 + $0x594] sm:$0xf0]  ;;  %v14014_v12 = vor.u32 %v17262_v41, %v14013_v6 }
 0x631   : > { %v14142_v34 = vor.u32 %v17294_v47, %v14141_v29  ;;  %v14237_v40 = vld [vmem:[#allocation14 + $0x648] sm:$0xf]  ;;  %v17250_v27 = vld [vmem:[#allocation14 + $0x434] sm:$0xf0] }
 0x632   : > { %v13965_v49 = vld [vmem:[#allocation14 + $0x428] sm:$0xf]  ;;  %v17282_v6 = vld [vmem:[#allocation14 + $0x534] sm:$0xf0] }
 0x633   : > { %9303 = vmatpush.bf16.msrb.mxu0 %v13438_v18  ;;  %9316 = vmatpush.bf16.msra.mxu1 %v13566_v31  ;;  %v9097_v56 = vpop.f32.mrf.mxu0  ;;  %v9110_v43 = vpop.f32.mrf.mxu1  ;;  %v14270_v18 = vor.u32 %v17326_v51, %v14269_v62  ;;  %v14398_v31 = vor.u32 %v17358_v17, %v14397_v5  ;;  %v14221_v41 = vld [vmem:[#allocation14 + $0x628] sm:$0xf]  ;;  %v17346_v29 = vld [vmem:[#allocation14 + $0x734] sm:$0xf0]  ;;  %v13966_v62 = vor.u32 %v17250_v27, %v13965_v49 }
 0x634   : > { %9329 = vmatpush.bf16.msra.mxu2 %v13694_v15  ;;  %9342 = vmatpush.bf16.msrb.mxu3 %v13822_v20  ;;  %v9098_v58 = vadd.f32 %v9097_v56, %v19909_v21  ;;  %v17322_v20 = vld [vmem:[#allocation14 + $0x674] sm:$0xf0]  ;;  %v13981_v21 = vld [vmem:[#allocation14 + $0x448] sm:$0xf] }
 0x635   : > { %v13949_v47 = vld [vmem:[#allocation14 + $0x408] sm:$0xf]  ;;  %v17246_v5 = vld [vmem:[#allocation14 + $0x414] sm:$0xf0] }
 0x636   : > { %9304 = vmatmul.bf16.vlgmr.msrb.gmra.mxu0 %v19854_v10  ;;  %9317 = vmatmul.bf16.vlgmr.msra.gmra.mxu1 %v19856_v26  ;;  %v9111_v15 = vadd.f32 %v9110_v43, %v9098_v58  ;;  %v14077_v17 = vld [vmem:[#allocation14 + $0x508] sm:$0xf]  ;;  %v17278_v56 = vld [vmem:[#allocation14 + $0x514] sm:$0xf0] }
 0x637   : > { %9348 = vmatpush.bf16.msra.mxu0 %v14062_v59  ;;  %9361 = vmatpush.bf16.msrb.mxu1 %v14190_v61  ;;  %v14381_v59 = vld [vmem:[#allocation14 + $0x768] sm:$0xf]  ;;  %v17354_v61 = vld [vmem:[#allocation14 + $0x774] sm:$0xf0] }
 0x638   : > { %9374 = vmatpush.bf16.msrb.mxu2 %v14318_v9  ;;  %9387 = vmatpush.bf16.msra.mxu3 %v14446_v28  ;;  %v17254_v9 = vld [vmem:[#allocation14 + $0x454] sm:$0xf0]  ;;  %v14254_v28 = vor.u32 %v17322_v20, %v14253_v30  ;;  %v14382_v44 = vor.u32 %v17354_v61, %v14381_v59  ;;  %v14333_v48 = vld [vmem:[#allocation14 + $0x708] sm:$0xf]  ;;  %v13950_v59 = vor.u32 %v17246_v5, %v13949_v47 }
 0x639   : > { %9330 = vmatmul.bf16.vlgmr.msra.gmra.mxu2 %v19860_v1  ;;  %9343 = vmatmul.bf16.vlgmr.msrb.gmra.mxu3 %v19862_v23  ;;  %v13982_v7 = vor.u32 %v17254_v9, %v13981_v21  ;;  %v14573_v32 = vld [vmem:[#allocation14 + $0x8e8] sm:$0xf]  ;;  %v17402_v45 = vld [vmem:[#allocation14 + $0x8f4] sm:$0xf0]  ;;  %v14078_v61 = vor.u32 %v17278_v56, %v14077_v17 }
 0x63a   : > { %v14701_v30 = vld [vmem:[#allocation14 + $0x9e8] sm:$0xf]  ;;  %v17498_v21 = vld [vmem:[#allocation14 + $0xbf4] sm:$0xf0] }
 0x63b   : > { %9349 = vmatpush.bf16.msra.mxu0 %v14046_v52  ;;  %9362 = vmatpush.bf16.msrb.mxu1 %v14174_v3  ;;  %v17318_v52 = vld [vmem:[#allocation14 + $0x654] sm:$0xf0]  ;;  %v14365_v3 = vld [vmem:[#allocation14 + $0x748] sm:$0xf] }
 0x63c   : > { %9375 = vmatpush.bf16.msrb.mxu2 %v14302_v25  ;;  %9388 = vmatpush.bf16.msra.mxu3 %v14430_v57  ;;  %v9123_v63 = vpop.f32.mrf.mxu2  ;;  %v9136_v60 = vpop.f32.mrf.mxu3  ;;  %v14238_v36 = vor.u32 %v17318_v52, %v14237_v40  ;;  %v14829_v20 = vld [vmem:[#allocation14 + $0xae8] sm:$0xf]  ;;  %v17398_v40 = vld [vmem:[#allocation14 + $0x8d4] sm:$0xf0] }
 0x63d   : > { %v9124_v13 = vadd.f32 %v9123_v63, %v9111_v15  ;;  %v9099_v25 = vpop.f32.mrf.mxu0  ;;  %v9112_v57 = vpop.f32.mrf.mxu1  ;;  %v17434_v15 = vld [vmem:[#allocation14 + $0x9f4] sm:$0xf0]  ;;  %v14557_v24 = vld [vmem:[#allocation14 + $0x8c8] sm:$0xf] }
 0x63e   : > { %v14702_v50 = vor.u32 %v17434_v15, %v14701_v30  ;;  %v14685_v52 = vld [vmem:[#allocation14 + $0x9c8] sm:$0xf]  ;;  %v17494_v57 = vld [vmem:[#allocation14 + $0xbd4] sm:$0xf0] }
 0x63f   : > { %9350 = vmatpush.bf16.msra.mxu0 %v14030_v22  ;;  %9363 = vmatpush.bf16.msrb.mxu1 %v14158_v54  ;;  %v19916_v14 = vadd.f32 %v9136_v60, %v9124_v13  ;;  %v14366_v22 = vor.u32 %v17350_v19, %v14365_v3  ;;  %v14093_v54 = vld [vmem:[#allocation14 + $0x528] sm:$0xf]  ;;  %v17430_v3 = vld [vmem:[#allocation14 + $0x9d4] sm:$0xf0] }
 0x640   : > { %9376 = vmatpush.bf16.msrb.mxu2 %v14286_v33  ;;  %9389 = vmatpush.bf16.msra.mxu3 %v14414_v46  ;;  %v17314_v33 = vld [vmem:[#allocation14 + $0x634] sm:$0xf0]  ;;  %v14349_v46 = vld [vmem:[#allocation14 + $0x728] sm:$0xf]  ;;  %v14094_v51 = vor.u32 %v17282_v6, %v14093_v54 }
 0x641   : > { %v14222_v43 = vor.u32 %v17314_v33, %v14221_v41  ;;  %v14350_v58 = vor.u32 %v17346_v29, %v14349_v46  ;;  %v14813_v19 = vld [vmem:[#allocation14 + $0xac8] sm:$0xf]  ;;  %v17462_v13 = vld [vmem:[#allocation14 + $0xad4] sm:$0xf0] }
 0x642   : > { %v14941_v25 = vld [vmem:[#allocation14 + $0xbc8] sm:$0xf]  ;;  %v17394_v27 = vld [vmem:[#allocation14 + $0x8b4] sm:$0xf0] }
 0x643   : > { %9351 = vmatpush.bf16.msra.mxu0 %v14014_v12  ;;  %9364 = vmatpush.bf16.msrb.mxu1 %v14142_v34  ;;  %v14205_v12 = vld [vmem:[#allocation14 + $0x608] sm:$0xf]  ;;  %v17310_v34 = vld [vmem:[#allocation14 + $0x614] sm:$0xf0] }
 0x644   : > { %9377 = vmatpush.bf16.msrb.mxu2 %v14270_v18  ;;  %9390 = vmatpush.bf16.msra.mxu3 %v14398_v31  ;;  %v9125_v0 = vpop.f32.mrf.mxu2  ;;  %v9138_v18 = vpop.f32.mrf.mxu3  ;;  %v17342_v31 = vld [vmem:[#allocation14 + $0x714] sm:$0xf0]  ;;  %v14206_v9 = vor.u32 %v17310_v34, %v14205_v12  ;;  %v14541_v49 = vld [vmem:[#allocation14 + $0x8a8] sm:$0xf] }
 0x645   : > { %v14669_v54 = vld [vmem:[#allocation14 + $0x9a8] sm:$0xf]  ;;  %v17426_v6 = vld [vmem:[#allocation14 + $0x9b4] sm:$0xf0]  ;;  %v14542_v47 = vor.u32 %v17394_v27, %v14541_v49 }
 0x646   : > { %v14797_v41 = vld [vmem:[#allocation14 + $0xaa8] sm:$0xf]  ;;  %v17458_v33 = vld [vmem:[#allocation14 + $0xab4] sm:$0xf0] }
 0x647   : > { %9352 = vmatpush.bf16.msra.mxu0 %v13998_v35  ;;  %9365 = vmatpush.bf16.msrb.mxu1 %v14126_v38  ;;  %v17466_v35 = vld [vmem:[#allocation14 + $0xaf4] sm:$0xf0]  ;;  %v14957_v38 = vld [vmem:[#allocation14 + $0xbe8] sm:$0xf]  ;;  %v14798_v17 = vor.u32 %v17458_v33, %v14797_v41 }
 0x648   : > { %9378 = vmatpush.bf16.msrb.mxu2 %v14254_v28  ;;  %9391 = vmatpush.bf16.msra.mxu3 %v14382_v44  ;;  %v14334_v28 = vor.u32 %v17342_v31, %v14333_v48  ;;  %v14574_v44 = vor.u32 %v17402_v45, %v14573_v32  ;;  %v14830_v63 = vor.u32 %v17466_v35, %v14829_v20  ;;  %v14925_v46 = vld [vmem:[#allocation14 + $0xba8] sm:$0xf]  ;;  %v17490_v29 = vld [vmem:[#allocation14 + $0xbb4] sm:$0xf0] }
 0x649   : > { %v14958_v60 = vor.u32 %v17498_v21, %v14957_v38  ;;  %v17390_v5 = vld [vmem:[#allocation14 + $0x894] sm:$0xf0]  ;;  %v14926_v56 = vor.u32 %v17490_v29, %v14925_v46  ;;  %v14781_v12 = vld [vmem:[#allocation14 + $0xa88] sm:$0xf] }
 0x64a   : > { %v17454_v34 = vld [vmem:[#allocation14 + $0xa94] sm:$0xf0]  ;;  %v14909_v48 = vld [vmem:[#allocation14 + $0xb88] sm:$0xf] }
 0x64b   : > { %9353 = vmatpush.bf16.msra.mxu0 %v13982_v7  ;;  %9366 = vmatpush.bf16.msrb.mxu1 %v14110_v4  ;;  %v14558_v7 = vor.u32 %v17398_v40, %v14557_v24  ;;  %v14686_v4 = vor.u32 %v17430_v3, %v14685_v52  ;;  %v17486_v0 = vld [vmem:[#allocation14 + $0xb94] sm:$0xf0]  ;;  %v14509_v15 = vld [vmem:[#allocation14 + $0x868] sm:$0xf] }
 0x64c   : > { %9379 = vmatpush.bf16.msrb.mxu2 %v14238_v36  ;;  %9392 = vmatpush.bf16.msra.mxu3 %v14366_v22  ;;  %v14814_v36 = vor.u32 %v17462_v13, %v14813_v19  ;;  %v14942_v22 = vor.u32 %v17494_v57, %v14941_v25  ;;  %v17386_v20 = vld [vmem:[#allocation14 + $0x874] sm:$0xf0]  ;;  %v14637_v35 = vld [vmem:[#allocation14 + $0x968] sm:$0xf] }
 0x64d   : > { %v17418_v38 = vld [vmem:[#allocation14 + $0x974] sm:$0xf0]  ;;  %v14765_v21 = vld [vmem:[#allocation14 + $0xa68] sm:$0xf]  ;;  %v14510_v24 = vor.u32 %v17386_v20, %v14509_v15 }
 0x64e   : > { %v14638_v40 = vor.u32 %v17418_v38, %v14637_v35  ;;  %v14621_v3 = vld [vmem:[#allocation14 + $0x948] sm:$0xf]  ;;  %v17414_v19 = vld [vmem:[#allocation14 + $0x954] sm:$0xf0] }
 0x64f   : > { %9354 = vmatpush.bf16.msra.mxu0 %v13966_v62  ;;  %9367 = vmatpush.bf16.msrb.mxu1 %v14094_v51  ;;  %v14670_v62 = vor.u32 %v17426_v6, %v14669_v54  ;;  %v14525_v51 = vld [vmem:[#allocation14 + $0x888] sm:$0xf]  ;;  %v17478_v49 = vld [vmem:[#allocation14 + $0xb54] sm:$0xf0]  ;;  %v14622_v6 = vor.u32 %v17414_v19, %v14621_v3 }
 0x650   : > { %9380 = vmatpush.bf16.msrb.mxu2 %v14222_v43  ;;  %9393 = vmatpush.bf16.msra.mxu3 %v14350_v58  ;;  %v14653_v43 = vld [vmem:[#allocation14 + $0x988] sm:$0xf]  ;;  %v17422_v58 = vld [vmem:[#allocation14 + $0x994] sm:$0xf0]  ;;  %v14526_v45 = vor.u32 %v17390_v5, %v14525_v51 }
 0x651   : > { %v14654_v30 = vor.u32 %v17422_v58, %v14653_v43  ;;  %v14749_v13 = vld [vmem:[#allocation14 + $0xa48] sm:$0xf]  ;;  %v17378_v33 = vld [vmem:[#allocation14 + $0x834] sm:$0xf0] }
 0x652   : > { %v14477_v41 = vld [vmem:[#allocation14 + $0x828] sm:$0xf]  ;;  %v17410_v51 = vld [vmem:[#allocation14 + $0x934] sm:$0xf0] }
 0x653   : > { %9355 = vmatpush.bf16.msra.mxu0 %v13950_v59  ;;  %9368 = vmatpush.bf16.msrb.mxu1 %v14078_v61  ;;  %v9149_v18 = vpop.f32.mrf.mxu0  ;;  %v9162_v31 = vpop.f32.mrf.mxu1  ;;  %v14782_v59 = vor.u32 %v17454_v34, %v14781_v12  ;;  %v14910_v61 = vor.u32 %v17486_v0, %v14909_v48  ;;  %v14733_v5 = vld [vmem:[#allocation14 + $0xa28] sm:$0xf]  ;;  %v17474_v43 = vld [vmem:[#allocation14 + $0xb34] sm:$0xf0]  ;;  %v14478_v12 = vor.u32 %v17378_v33, %v14477_v41 }
 0x654   : > { %9381 = vmatpush.bf16.msrb.mxu2 %v14206_v9  ;;  %9394 = vmatpush.bf16.msra.mxu3 %v14334_v28  ;;  %v9150_v32 = vadd.f32 %v9149_v18, %v19916_v14  ;;  %v17450_v28 = vld [vmem:[#allocation14 + $0xa74] sm:$0xf0]  ;;  %v14493_v14 = vld [vmem:[#allocation14 + $0x848] sm:$0xf] }
 0x655   : > { %v14461_v58 = vld [vmem:[#allocation14 + $0x808] sm:$0xf]  ;;  %v17374_v48 = vld [vmem:[#allocation14 + $0x814] sm:$0xf0] }
 0x656   : > { %9356 = vmatmul.bf16.vlgmr.msra.gmra.mxu0 %v19846_v53  ;;  %9369 = vmatmul.bf16.vlgmr.msrb.gmra.mxu1 %v19848_v16  ;;  %v9163_v9 = vadd.f32 %v9162_v31, %v9150_v32  ;;  %v14589_v0 = vld [vmem:[#allocation14 + $0x908] sm:$0xf]  ;;  %v17406_v18 = vld [vmem:[#allocation14 + $0x914] sm:$0xf0] }
 0x657   : > { %9400 = vmatpush.bf16.msrb.mxu0 %v14574_v44  ;;  %9413 = vmatpush.bf16.msra.mxu1 %v14702_v50  ;;  %v14893_v44 = vld [vmem:[#allocation14 + $0xb68] sm:$0xf]  ;;  %v17482_v50 = vld [vmem:[#allocation14 + $0xb74] sm:$0xf0] }
 0x658   : > { %9426 = vmatpush.bf16.msra.mxu2 %v14830_v63  ;;  %9439 = vmatpush.bf16.msrb.mxu3 %v14958_v60  ;;  %v17382_v63 = vld [vmem:[#allocation14 + $0x854] sm:$0xf0]  ;;  %v14766_v60 = vor.u32 %v17450_v28, %v14765_v21  ;;  %v14894_v52 = vor.u32 %v17482_v50, %v14893_v44  ;;  %v14845_v15 = vld [vmem:[#allocation14 + $0xb08] sm:$0xf]  ;;  %v14462_v44 = vor.u32 %v17374_v48, %v14461_v58 }
 0x659   : > { %9382 = vmatmul.bf16.vlgmr.msrb.gmra.mxu2 %v19850_v11  ;;  %9395 = vmatmul.bf16.vlgmr.msra.gmra.mxu3 %v19852_v55  ;;  %v14494_v54 = vor.u32 %v17382_v63, %v14493_v14  ;;  %v15085_v35 = vld [vmem:[#allocation14 + $0xce8] sm:$0xf]  ;;  %v17530_v38 = vld [vmem:[#allocation14 + $0xcf4] sm:$0xf0]  ;;  %v14590_v50 = vor.u32 %v17406_v18, %v14589_v0 }
 0x65a   : > { %v15213_v21 = vld [vmem:[#allocation14 + $0xde8] sm:$0xf]  ;;  %v17626_v14 = vld [vmem:[#allocation14 + $0xff4] sm:$0xf0] }
 0x65b   : > { %9401 = vmatpush.bf16.msrb.mxu0 %v14558_v7  ;;  %9414 = vmatpush.bf16.msra.mxu1 %v14686_v4  ;;  %v17446_v7 = vld [vmem:[#allocation14 + $0xa54] sm:$0xf0]  ;;  %v14877_v4 = vld [vmem:[#allocation14 + $0xb48] sm:$0xf] }
 0x65c   : > { %9427 = vmatpush.bf16.msra.mxu2 %v14814_v36  ;;  %9440 = vmatpush.bf16.msrb.mxu3 %v14942_v22  ;;  %v9175_v25 = vpop.f32.mrf.mxu2  ;;  %v9188_v57 = vpop.f32.mrf.mxu3  ;;  %v14750_v29 = vor.u32 %v17446_v7, %v14749_v13  ;;  %v15341_v28 = vld [vmem:[#allocation14 + $0xee8] sm:$0xf]  ;;  %v17526_v13 = vld [vmem:[#allocation14 + $0xcd4] sm:$0xf0] }
 0x65d   : > { %v9176_v27 = vadd.f32 %v9175_v25, %v9163_v9  ;;  %v9151_v36 = vpop.f32.mrf.mxu0  ;;  %v9164_v22 = vpop.f32.mrf.mxu1  ;;  %v17562_v9 = vld [vmem:[#allocation14 + $0xdf4] sm:$0xf0]  ;;  %v15069_v19 = vld [vmem:[#allocation14 + $0xcc8] sm:$0xf] }
 0x65e   : > { %v15214_v3 = vor.u32 %v17562_v9, %v15213_v21  ;;  %v15197_v7 = vld [vmem:[#allocation14 + $0xdc8] sm:$0xf]  ;;  %v17622_v22 = vld [vmem:[#allocation14 + $0xfd4] sm:$0xf0] }
 0x65f   : > { %9402 = vmatpush.bf16.msrb.mxu0 %v14542_v47  ;;  %9415 = vmatpush.bf16.msra.mxu1 %v14670_v62  ;;  %v19923_v46 = vadd.f32 %v9188_v57, %v9176_v27  ;;  %v14878_v47 = vor.u32 %v17478_v49, %v14877_v4  ;;  %v14605_v62 = vld [vmem:[#allocation14 + $0x928] sm:$0xf]  ;;  %v17558_v4 = vld [vmem:[#allocation14 + $0xdd4] sm:$0xf0] }
 0x660   : > { %9428 = vmatpush.bf16.msra.mxu2 %v14798_v17  ;;  %9441 = vmatpush.bf16.msrb.mxu3 %v14926_v56  ;;  %v17442_v17 = vld [vmem:[#allocation14 + $0xa34] sm:$0xf0]  ;;  %v14861_v56 = vld [vmem:[#allocation14 + $0xb28] sm:$0xf]  ;;  %v14606_v34 = vor.u32 %v17410_v51, %v14605_v62 }
 0x661   : > { %v14734_v31 = vor.u32 %v17442_v17, %v14733_v5  ;;  %v14862_v32 = vor.u32 %v17474_v43, %v14861_v56  ;;  %v15325_v49 = vld [vmem:[#allocation14 + $0xec8] sm:$0xf]  ;;  %v17590_v27 = vld [vmem:[#allocation14 + $0xed4] sm:$0xf0] }
 0x662   : > { %v15453_v36 = vld [vmem:[#allocation14 + $0xfc8] sm:$0xf]  ;;  %v17522_v33 = vld [vmem:[#allocation14 + $0xcb4] sm:$0xf0] }
 0x663   : > { %9403 = vmatpush.bf16.msrb.mxu0 %v14526_v45  ;;  %9416 = vmatpush.bf16.msra.mxu1 %v14654_v30  ;;  %v14717_v45 = vld [vmem:[#allocation14 + $0xa08] sm:$0xf]  ;;  %v17438_v30 = vld [vmem:[#allocation14 + $0xa14] sm:$0xf0] }
 0x664   : > { %9429 = vmatpush.bf16.msra.mxu2 %v14782_v59  ;;  %9442 = vmatpush.bf16.msrb.mxu3 %v14910_v61  ;;  %v9177_v20 = vpop.f32.mrf.mxu2  ;;  %v9190_v59 = vpop.f32.mrf.mxu3  ;;  %v17470_v61 = vld [vmem:[#allocation14 + $0xb14] sm:$0xf0]  ;;  %v14718_v63 = vor.u32 %v17438_v30, %v14717_v45  ;;  %v15053_v41 = vld [vmem:[#allocation14 + $0xca8] sm:$0xf] }
 0x665   : > { %v15181_v62 = vld [vmem:[#allocation14 + $0xda8] sm:$0xf]  ;;  %v17554_v51 = vld [vmem:[#allocation14 + $0xdb4] sm:$0xf0]  ;;  %v15054_v58 = vor.u32 %v17522_v33, %v15053_v41 }
 0x666   : > { %v15309_v5 = vld [vmem:[#allocation14 + $0xea8] sm:$0xf]  ;;  %v17586_v17 = vld [vmem:[#allocation14 + $0xeb4] sm:$0xf0] }
 0x667   : > { %9404 = vmatpush.bf16.msrb.mxu0 %v14510_v24  ;;  %9417 = vmatpush.bf16.msra.mxu1 %v14638_v40  ;;  %v17594_v24 = vld [vmem:[#allocation14 + $0xef4] sm:$0xf0]  ;;  %v15469_v40 = vld [vmem:[#allocation14 + $0xfe8] sm:$0xf]  ;;  %v15310_v0 = vor.u32 %v17586_v17, %v15309_v5 }
 0x668   : > { %9430 = vmatpush.bf16.msra.mxu2 %v14766_v60  ;;  %9443 = vmatpush.bf16.msrb.mxu3 %v14894_v52  ;;  %v14846_v60 = vor.u32 %v17470_v61, %v14845_v15  ;;  %v15086_v52 = vor.u32 %v17530_v38, %v15085_v35  ;;  %v15342_v25 = vor.u32 %v17594_v24, %v15341_v28  ;;  %v15437_v56 = vld [vmem:[#allocation14 + $0xfa8] sm:$0xf]  ;;  %v17618_v43 = vld [vmem:[#allocation14 + $0xfb4] sm:$0xf0] }
 0x669   : > { %v15470_v57 = vor.u32 %v17626_v14, %v15469_v40  ;;  %v17518_v48 = vld [vmem:[#allocation14 + $0xc94] sm:$0xf0]  ;;  %v15438_v18 = vor.u32 %v17618_v43, %v15437_v56  ;;  %v15293_v45 = vld [vmem:[#allocation14 + $0xe88] sm:$0xf] }
 0x66a   : > { %v17582_v30 = vld [vmem:[#allocation14 + $0xe94] sm:$0xf0]  ;;  %v15421_v15 = vld [vmem:[#allocation14 + $0xf88] sm:$0xf] }
 0x66b   : > { %9405 = vmatpush.bf16.msrb.mxu0 %v14494_v54  ;;  %9418 = vmatpush.bf16.msra.mxu1 %v14622_v6  ;;  %v15070_v54 = vor.u32 %v17526_v13, %v15069_v19  ;;  %v15198_v6 = vor.u32 %v17558_v4, %v15197_v7  ;;  %v17614_v20 = vld [vmem:[#allocation14 + $0xf94] sm:$0xf0]  ;;  %v15021_v9 = vld [vmem:[#allocation14 + $0xc68] sm:$0xf] }
 0x66c   : > { %9431 = vmatpush.bf16.msra.mxu2 %v14750_v29  ;;  %9444 = vmatpush.bf16.msrb.mxu3 %v14878_v47  ;;  %v15326_v29 = vor.u32 %v17590_v27, %v15325_v49  ;;  %v15454_v47 = vor.u32 %v17622_v22, %v15453_v36  ;;  %v17514_v28 = vld [vmem:[#allocation14 + $0xc74] sm:$0xf0]  ;;  %v15149_v24 = vld [vmem:[#allocation14 + $0xd68] sm:$0xf] }
 0x66d   : > { %v17546_v40 = vld [vmem:[#allocation14 + $0xd74] sm:$0xf0]  ;;  %v15277_v14 = vld [vmem:[#allocation14 + $0xe68] sm:$0xf]  ;;  %v15022_v19 = vor.u32 %v17514_v28, %v15021_v9 }
 0x66e   : > { %v15150_v13 = vor.u32 %v17546_v40, %v15149_v24  ;;  %v15133_v4 = vld [vmem:[#allocation14 + $0xd48] sm:$0xf]  ;;  %v17542_v49 = vld [vmem:[#allocation14 + $0xd54] sm:$0xf0] }
 0x66f   : > { %9406 = vmatpush.bf16.msrb.mxu0 %v14478_v12  ;;  %9419 = vmatpush.bf16.msra.mxu1 %v14606_v34  ;;  %v15182_v12 = vor.u32 %v17554_v51, %v15181_v62  ;;  %v15037_v34 = vld [vmem:[#allocation14 + $0xc88] sm:$0xf]  ;;  %v17606_v41 = vld [vmem:[#allocation14 + $0xf54] sm:$0xf0]  ;;  %v15134_v51 = vor.u32 %v17542_v49, %v15133_v4 }
 0x670   : > { %9432 = vmatpush.bf16.msra.mxu2 %v14734_v31  ;;  %9445 = vmatpush.bf16.msrb.mxu3 %v14862_v32  ;;  %v15165_v31 = vld [vmem:[#allocation14 + $0xd88] sm:$0xf]  ;;  %v17550_v32 = vld [vmem:[#allocation14 + $0xd94] sm:$0xf0]  ;;  %v15038_v38 = vor.u32 %v17518_v48, %v15037_v34 }
 0x671   : > { %v15166_v21 = vor.u32 %v17550_v32, %v15165_v31  ;;  %v15261_v27 = vld [vmem:[#allocation14 + $0xe48] sm:$0xf]  ;;  %v17506_v17 = vld [vmem:[#allocation14 + $0xc34] sm:$0xf0] }
 0x672   : > { %v14989_v5 = vld [vmem:[#allocation14 + $0xc28] sm:$0xf]  ;;  %v17538_v34 = vld [vmem:[#allocation14 + $0xd34] sm:$0xf0] }
 0x673   : > { %9407 = vmatpush.bf16.msrb.mxu0 %v14462_v44  ;;  %9420 = vmatpush.bf16.msra.mxu1 %v14590_v50  ;;  %v9201_v59 = vpop.f32.mrf.mxu0  ;;  %v9214_v61 = vpop.f32.mrf.mxu1  ;;  %v15294_v44 = vor.u32 %v17582_v30, %v15293_v45  ;;  %v15422_v50 = vor.u32 %v17614_v20, %v15421_v15  ;;  %v15245_v48 = vld [vmem:[#allocation14 + $0xe28] sm:$0xf]  ;;  %v17602_v31 = vld [vmem:[#allocation14 + $0xf34] sm:$0xf0]  ;;  %v14990_v45 = vor.u32 %v17506_v17, %v14989_v5 }
 0x674   : > { %9433 = vmatpush.bf16.msra.mxu2 %v14718_v63  ;;  %9446 = vmatpush.bf16.msrb.mxu3 %v14846_v60  ;;  %v9202_v35 = vadd.f32 %v9201_v59, %v19923_v46  ;;  %v17578_v60 = vld [vmem:[#allocation14 + $0xe74] sm:$0xf0]  ;;  %v15005_v46 = vld [vmem:[#allocation14 + $0xc48] sm:$0xf] }
 0x675   : > { %v14973_v32 = vld [vmem:[#allocation14 + $0xc08] sm:$0xf]  ;;  %v17502_v15 = vld [vmem:[#allocation14 + $0xc14] sm:$0xf0] }
 0x676   : > { %9408 = vmatmul.bf16.vlgmr.msrb.gmra.mxu0 %v19866_v8  ;;  %9421 = vmatmul.bf16.vlgmr.msra.gmra.mxu1 %v19868_v39  ;;  %v9215_v63 = vadd.f32 %v9214_v61, %v9202_v35  ;;  %v15101_v20 = vld [vmem:[#allocation14 + $0xd08] sm:$0xf]  ;;  %v17534_v59 = vld [vmem:[#allocation14 + $0xd14] sm:$0xf0] }
 0x677   : > { %9452 = vmatpush.bf16.msra.mxu0 %v15086_v52  ;;  %9465 = vmatpush.bf16.msrb.mxu1 %v15214_v3  ;;  %v15405_v52 = vld [vmem:[#allocation14 + $0xf68] sm:$0xf]  ;;  %v17610_v3 = vld [vmem:[#allocation14 + $0xf74] sm:$0xf0] }
 0x678   : > { %9478 = vmatpush.bf16.msrb.mxu2 %v15342_v25  ;;  %9491 = vmatpush.bf16.msra.mxu3 %v15470_v57  ;;  %v17510_v25 = vld [vmem:[#allocation14 + $0xc54] sm:$0xf0]  ;;  %v15278_v57 = vor.u32 %v17578_v60, %v15277_v14  ;;  %v15406_v7 = vor.u32 %v17610_v3, %v15405_v52  ;;  %v15357_v9 = vld [vmem:[#allocation14 + $0xf08] sm:$0xf]  ;;  %v17144_v60 = vld [vmem:[#allocation14 + $0xec] sm:$0xf]  ;;  %v14974_v52 = vor.u32 %v17502_v15, %v14973_v32 }
 0x679   : > { %9434 = vmatmul.bf16.vlgmr.msra.gmra.mxu2 %v19870_v2  ;;  %9447 = vmatmul.bf16.vlgmr.msrb.gmra.mxu3 %v19872_v42  ;;  %v15006_v62 = vor.u32 %v17510_v25, %v15005_v46  ;;  %v15597_v24 = vld [vmem:[#allocation14 + $0x10e8] sm:$0xf]  ;;  %v17658_v40 = vld [vmem:[#allocation14 + $0x10f4] sm:$0xf0]  ;;  %v15102_v3 = vor.u32 %v17534_v59, %v15101_v20  ;;  %v13679_v46 = vld [vmem:[#allocation14 + $0x1f8] sm:$0xf0] }
 0x67a   : > { %v15725_v14 = vld [vmem:[#allocation14 + $0x11e8] sm:$0xf]  ;;  %v17650_v17 = vld [vmem:[#allocation14 + $0x10b4] sm:$0xf0]  ;;  %v17168_v32 = vld [vmem:[#allocation14 + $0x1ac] sm:$0xf] }
 0x67b   : > { %9453 = vmatpush.bf16.msra.mxu0 %v15070_v54  ;;  %9466 = vmatpush.bf16.msrb.mxu1 %v15198_v6  ;;  %v17574_v54 = vld [vmem:[#allocation14 + $0xe54] sm:$0xf0]  ;;  %v15389_v6 = vld [vmem:[#allocation14 + $0xf48] sm:$0xf] }
 0x67c   : > { %9479 = vmatpush.bf16.msrb.mxu2 %v15326_v29  ;;  %9492 = vmatpush.bf16.msra.mxu3 %v15454_v47  ;;  %v9227_v36 = vpop.f32.mrf.mxu2  ;;  %v9240_v22 = vpop.f32.mrf.mxu3  ;;  %v15262_v43 = vor.u32 %v17574_v54, %v15261_v27  ;;  %v15581_v49 = vld [vmem:[#allocation14 + $0x10c8] sm:$0xf]  ;;  %v17654_v27 = vld [vmem:[#allocation14 + $0x10d4] sm:$0xf0] }
 0x67d   : > { %v9228_v33 = vadd.f32 %v9227_v36, %v9215_v63  ;;  %v9203_v29 = vpop.f32.mrf.mxu0  ;;  %v9216_v47 = vpop.f32.mrf.mxu1  ;;  %v17690_v63 = vld [vmem:[#allocation14 + $0x11f4] sm:$0xf0]  ;;  %v15709_v54 = vld [vmem:[#allocation14 + $0x11c8] sm:$0xf] }
 0x67e   : > { %v15726_v4 = vor.u32 %v17690_v63, %v15725_v14  ;;  %v17172_v29 = vld [vmem:[#allocation14 + $0x1cc] sm:$0xf]  ;;  %v13663_v47 = vld [vmem:[#allocation14 + $0x1d8] sm:$0xf0]  ;;  %v15565_v5 = vld [vmem:[#allocation14 + $0x10a8] sm:$0xf] }
 0x67f   : > { %9454 = vmatpush.bf16.msra.mxu0 %v15054_v58  ;;  %9467 = vmatpush.bf16.msrb.mxu1 %v15182_v12  ;;  %v19930_v56 = vadd.f32 %v9240_v22, %v9228_v33  ;;  %v15390_v58 = vor.u32 %v17606_v41, %v15389_v6  ;;  %v15117_v12 = vld [vmem:[#allocation14 + $0xd28] sm:$0xf]  ;;  %v17686_v6 = vld [vmem:[#allocation14 + $0x11d4] sm:$0xf0]  ;;  %v17140_v41 = vld [vmem:[#allocation14 + $0xcc] sm:$0xf]  ;;  %v15566_v20 = vor.u32 %v17650_v17, %v15565_v5 }
 0x680   : > { %9480 = vmatpush.bf16.msrb.mxu2 %v15310_v0  ;;  %9493 = vmatpush.bf16.msra.mxu3 %v15438_v18  ;;  %v17570_v0 = vld [vmem:[#allocation14 + $0xe34] sm:$0xf0]  ;;  %v15373_v18 = vld [vmem:[#allocation14 + $0xf28] sm:$0xf]  ;;  %v15118_v30 = vor.u32 %v17538_v34, %v15117_v12  ;;  %v13535_v33 = vld [vmem:[#allocation14 + $0xd8] sm:$0xf0] }
 0x681   : > { %v15246_v61 = vor.u32 %v17570_v0, %v15245_v48  ;;  %v15374_v35 = vor.u32 %v17602_v31, %v15373_v18  ;;  %v15693_v12 = vld [vmem:[#allocation14 + $0x11a8] sm:$0xf]  ;;  %v17682_v34 = vld [vmem:[#allocation14 + $0x11b4] sm:$0xf0]  ;;  %v17136_v48 = vld [vmem:[#allocation14 + $0xac] sm:$0xf] }
 0x682   : > { %v18141_v0 = vld.sshfl [vmem:[#allocation1 + $0x20] sm:$0xff pattern:$0x73625140]  ;;  %v18142_v18 = vld.sshfl [vmem:[#allocation1 + $0x28] sm:$0xff pattern:$0x73625140]  ;;  %v15694_v59 = vor.u32 %v17682_v34, %v15693_v12 }
 0x683   : > { %9455 = vmatpush.bf16.msra.mxu0 %v15038_v38  ;;  %9468 = vmatpush.bf16.msrb.mxu1 %v15166_v21  ;;  %v15229_v38 = vld [vmem:[#allocation14 + $0xe08] sm:$0xf]  ;;  %v17566_v21 = vld [vmem:[#allocation14 + $0xe14] sm:$0xf0]  ;;  %v13519_v31 = vld [vmem:[#allocation14 + $0xb8] sm:$0xf0] }
 0x684   : > { %9481 = vmatpush.bf16.msrb.mxu2 %v15294_v44  ;;  %9494 = vmatpush.bf16.msra.mxu3 %v15422_v50  ;;  %v9229_v28 = vpop.f32.mrf.mxu2  ;;  %v9242_v44 = vpop.f32.mrf.mxu3  ;;  %v17598_v50 = vld [vmem:[#allocation14 + $0xf14] sm:$0xf0]  ;;  %v15230_v25 = vor.u32 %v17566_v21, %v15229_v38  ;;  %v18144_v15 = vld.sshfl [vmem:[#allocation1 + $0x38] sm:$0xff pattern:$0x73625140]  ;;  %v13522_v38 = vor.u32 %v17136_v48, %v13519_v31 }
 0x685   : > { %v17678_v28 = vld [vmem:[#allocation14 + $0x1194] sm:$0xf0]  ;;  %v17132_v44 = vld [vmem:[#allocation14 + $0x8c] sm:$0xf]  ;;  %v13599_v12 = vld [vmem:[#allocation14 + $0x158] sm:$0xf0] }
 0x687   : > { %9456 = vmatpush.bf16.msra.mxu0 %v15022_v19  ;;  %9469 = vmatpush.bf16.msrb.mxu1 %v15150_v13  ;;  %v13551_v19 = vld [vmem:[#allocation14 + $0xf8] sm:$0xf0]  ;;  %v17176_v13 = vld [vmem:[#allocation14 + $0x1ec] sm:$0xf] }
 0x688   : > { %9482 = vmatpush.bf16.msrb.mxu2 %v15278_v57  ;;  %9495 = vmatpush.bf16.msra.mxu3 %v15406_v7  ;;  %v15358_v57 = vor.u32 %v17598_v50, %v15357_v9  ;;  %v15598_v7 = vor.u32 %v17658_v40, %v15597_v24  ;;  %v13554_v36 = vor.u32 %v17144_v60, %v13551_v19  ;;  %v15677_v9 = vld [vmem:[#allocation14 + $0x1188] sm:$0xf]  ;;  %v13503_v50 = vld [vmem:[#allocation14 + $0x98] sm:$0xf0]  ;;  %v17164_v24 = vld [vmem:[#allocation14 + $0x18c] sm:$0xf] }
 0x689   : > { %v13682_v22 = vor.u32 %v17176_v13, %v13679_v46  ;;  %v13631_v40 = vld [vmem:[#allocation14 + $0x198] sm:$0xf0]  ;;  %v15533_v19 = vld [vmem:[#allocation14 + $0x1068] sm:$0xf]  ;;  %v17642_v13 = vld [vmem:[#allocation14 + $0x1074] sm:$0xf0]  ;;  %v13506_v46 = vor.u32 %v17132_v44, %v13503_v50 }
 0x68a   : > { %v15485_v44 = vld [vmem:[#allocation14 + $0x1008] sm:$0xf]  ;;  %v17630_v50 = vld [vmem:[#allocation14 + $0x1014] sm:$0xf0] }
 0x68b   : > { %9457 = vmatpush.bf16.msra.mxu0 %v15006_v62  ;;  %9470 = vmatpush.bf16.msrb.mxu1 %v15134_v51  ;;  %v15582_v62 = vor.u32 %v17654_v27, %v15581_v49  ;;  %v15710_v51 = vor.u32 %v17686_v6, %v15709_v54  ;;  %v13487_v27 = vld [vmem:[#allocation14 + $0x78] sm:$0xf0]  ;;  %v15534_v54 = vor.u32 %v17642_v13, %v15533_v19 }
 0x68c   : > { %9483 = vmatpush.bf16.msrb.mxu2 %v15262_v43  ;;  %9496 = vmatpush.bf16.msra.mxu3 %v15390_v58  ;;  %v13538_v43 = vor.u32 %v17140_v41, %v13535_v33  ;;  %v13666_v58 = vor.u32 %v17172_v29, %v13663_v47  ;;  %v17638_v41 = vld [vmem:[#allocation14 + $0x1054] sm:$0xf0]  ;;  %v15645_v47 = vld [vmem:[#allocation14 + $0x1148] sm:$0xf] }
 0x68f   : > { %9458 = vmatpush.bf16.msra.mxu0 %v14990_v45  ;;  %9471 = vmatpush.bf16.msrb.mxu1 %v15118_v30  ;;  %v13647_v45 = vld [vmem:[#allocation14 + $0x1b8] sm:$0xf0]  ;;  %v18143_v30 = vld.sshfl [vmem:[#allocation1 + $0x30] sm:$0xff pattern:$0x73625140] }
 0x690   : > { %9484 = vmatpush.bf16.msrb.mxu2 %v15246_v61  ;;  %9497 = vmatpush.bf16.msra.mxu3 %v15374_v35  ;;  %v15549_v61 = vld [vmem:[#allocation14 + $0x1088] sm:$0xf]  ;;  %v17646_v35 = vld [vmem:[#allocation14 + $0x1094] sm:$0xf0]  ;;  %v13650_v21 = vor.u32 %v17168_v32, %v13647_v45 }
 0x691   : > { %v15501_v32 = vld [vmem:[#allocation14 + $0x1028] sm:$0xf]  ;;  %v17634_v45 = vld [vmem:[#allocation14 + $0x1034] sm:$0xf0] }
 0x693   : > { %9459 = vmatpush.bf16.msra.mxu0 %v14974_v52  ;;  %9472 = vmatpush.bf16.msrb.mxu1 %v15102_v3  ;;  %v9253_v14 = vpop.f32.mrf.mxu0  ;;  %v9266_v63 = vpop.f32.mrf.mxu1  ;;  %v15550_v52 = vor.u32 %v17646_v35, %v15549_v61  ;;  %v15678_v3 = vor.u32 %v17678_v28, %v15677_v9  ;;  %v17666_v61 = vld [vmem:[#allocation14 + $0x1134] sm:$0xf0]  ;;  %v17120_v35 = vld [vmem:[#allocation14 + $0x2c] sm:$0xf]  ;;  %v13583_v9 = vld [vmem:[#allocation14 + $0x138] sm:$0xf0] }
 0x694   : > { %9485 = vmatpush.bf16.msrb.mxu2 %v15230_v25  ;;  %9498 = vmatpush.bf16.msra.mxu3 %v15358_v57  ;;  %v9254_v60 = vadd.f32 %v9253_v14, %v19930_v56  ;;  %v13634_v25 = vor.u32 %v17164_v24, %v13631_v40  ;;  %v15661_v57 = vld [vmem:[#allocation14 + $0x1168] sm:$0xf]  ;;  %v15502_v24 = vor.u32 %v17634_v45, %v15501_v32  ;;  %v17300_v32 = vld [vmem:[#allocation14 + $0x5cc] sm:$0xf]  ;;  %v14175_v45 = vld [vmem:[#allocation14 + $0x5d8] sm:$0xf0] }
 0x695   : > { %v15517_v56 = vld [vmem:[#allocation14 + $0x1048] sm:$0xf] }
 0x696   : > { %9460 = vmatmul.bf16.vlgmr.msra.gmra.mxu0 %v18141_v0  ;;  %9473 = vmatmul.bf16.vlgmr.msrb.gmra.mxu1 %v18142_v18  ;;  %v9267_v49 = vadd.f32 %v9266_v63, %v9254_v60  ;;  %v15518_v18 = vor.u32 %v17638_v41, %v15517_v56  ;;  %v15613_v14 = vld [vmem:[#allocation14 + $0x1108] sm:$0xf]  ;;  %v17662_v63 = vld [vmem:[#allocation14 + $0x1114] sm:$0xf0]  ;;  %v17116_v60 = vld [vmem:[#allocation14 + $0xc] sm:$0xf]  ;;  %v15486_v56 = vor.u32 %v17630_v50, %v15485_v44 }
 0x697   : > { %9504 = vmatpush.bf16.msrb.mxu0 %v15598_v7  ;;  %9517 = vmatpush.bf16.msra.mxu1 %v15726_v4  ;;  %v17674_v7 = vld [vmem:[#allocation14 + $0x1174] sm:$0xf0]  ;;  %v17128_v4 = vld [vmem:[#allocation14 + $0x6c] sm:$0xf]  ;;  %v15614_v41 = vor.u32 %v17662_v63, %v15613_v14  ;;  %v14031_v50 = vld [vmem:[#allocation14 + $0x4b8] sm:$0xf0] }
 0x698   : > { %9530 = vmatpush.bf16.msra.mxu2 %v13554_v36  ;;  %9543 = vmatpush.bf16.msrb.mxu3 %v13682_v22  ;;  %v17160_v36 = vld [vmem:[#allocation14 + $0x16c] sm:$0xf]  ;;  %v13615_v22 = vld [vmem:[#allocation14 + $0x178] sm:$0xf0]  ;;  %v15662_v6 = vor.u32 %v17674_v7, %v15661_v57  ;;  %v13490_v33 = vor.u32 %v17128_v4, %v13487_v27 }
 0x699   : > { %9486 = vmatmul.bf16.vlgmr.msrb.gmra.mxu2 %v18143_v30  ;;  %9499 = vmatmul.bf16.vlgmr.msra.gmra.mxu3 %v18144_v15  ;;  %v13618_v29 = vor.u32 %v17160_v36, %v13615_v22  ;;  %v13567_v4 = vld [vmem:[#allocation14 + $0x118] sm:$0xf0]  ;;  %v18146_v44 = vld.sshfl [vmem:[#allocation1 + $0x8] sm:$0xff pattern:$0x73625140] }
 0x69a   : > { %v13807_v27 = vld [vmem:[#allocation14 + $0x2f8] sm:$0xf0] }
 0x69b   : > { %9505 = vmatpush.bf16.msrb.mxu0 %v15582_v62  ;;  %9518 = vmatpush.bf16.msra.mxu1 %v15710_v51  ;;  %v17670_v62 = vld [vmem:[#allocation14 + $0x1154] sm:$0xf0]  ;;  %v17124_v51 = vld [vmem:[#allocation14 + $0x4c] sm:$0xf]  ;;  %v9255_v48 = vpop.f32.mrf.mxu0  ;;  %v9268_v0 = vpop.f32.mrf.mxu1 }
 0x69c   : > { %9531 = vmatpush.bf16.msra.mxu2 %v13538_v43  ;;  %9544 = vmatpush.bf16.msrb.mxu3 %v13666_v58  ;;  %v9279_v5 = vpop.f32.mrf.mxu2  ;;  %v9292_v17 = vpop.f32.mrf.mxu3  ;;  %v13471_v43 = vld [vmem:[#allocation14 + $0x58] sm:$0xf0]  ;;  %v17156_v58 = vld [vmem:[#allocation14 + $0x14c] sm:$0xf]  ;;  %v15646_v31 = vor.u32 %v17670_v62, %v15645_v47 }
 0x69d   : > { %v9280_v34 = vadd.f32 %v9279_v5, %v9267_v49  ;;  %v13474_v15 = vor.u32 %v17124_v51, %v13471_v43  ;;  %v17208_v49 = vld [vmem:[#allocation14 + $0x2ec] sm:$0xf]  ;;  %v14191_v47 = vld [vmem:[#allocation14 + $0x5f8] sm:$0xf0] }
 0x69e   : > { %v13810_v5 = vor.u32 %v17208_v49, %v13807_v27  ;;  %v17204_v43 = vld [vmem:[#allocation14 + $0x2cc] sm:$0xf]  ;;  %v13919_v0 = vld [vmem:[#allocation14 + $0x3d8] sm:$0xf0] }
 0x69f   : > { %9506 = vmatpush.bf16.msrb.mxu0 %v15566_v20  ;;  %9519 = vmatpush.bf16.msra.mxu1 %v15694_v59  ;;  %v9293_v30 = vadd.f32 %v9292_v17, %v9280_v34  ;;  %v13602_v20 = vor.u32 %v17156_v58, %v13599_v12  ;;  %v15629_v59 = vld [vmem:[#allocation14 + $0x1128] sm:$0xf]  ;;  %v13791_v58 = vld [vmem:[#allocation14 + $0x2d8] sm:$0xf0]  ;;  %v17236_v48 = vld [vmem:[#allocation14 + $0x3cc] sm:$0xf] }
 0x6a0   : > { %9532 = vmatpush.bf16.msra.mxu2 %v13522_v38  ;;  %9545 = vmatpush.bf16.msrb.mxu3 %v13650_v21  ;;  %v13455_v38 = vld [vmem:[#allocation14 + $0x38] sm:$0xf0]  ;;  %v17152_v21 = vld [vmem:[#allocation14 + $0x12c] sm:$0xf]  ;;  %v15630_v40 = vor.u32 %v17666_v61, %v15629_v59 }
 0x6a1   : > { %v9765_v28 = vmax.f32 %v9293_v30, 0.0  ;;  %v13458_v19 = vor.u32 %v17120_v35, %v13455_v38  ;;  %v13586_v13 = vor.u32 %v17152_v21, %v13583_v9  ;;  %v13794_v30 = vor.u32 %v17204_v43, %v13791_v58  ;;  %v13775_v59 = vld [vmem:[#allocation14 + $0x2b8] sm:$0xf0]  ;;  %v17232_v38 = vld [vmem:[#allocation14 + $0x3ac] sm:$0xf] }
 0x6a2   : > { %v14178_v35 = vor.u32 %v17300_v32, %v14175_v45  ;;  %v13903_v21 = vld [vmem:[#allocation14 + $0x3b8] sm:$0xf0]  ;;  %v17264_v9 = vld [vmem:[#allocation14 + $0x4ac] sm:$0xf] }
 0x6a3   : > { %9507 = vmatpush.bf16.msrb.mxu0 %v15550_v52  ;;  %9520 = vmatpush.bf16.msra.mxu1 %v15678_v3  ;;  %v9764_v52 = vmax.f32 %v19906_v37, 0.0  ;;  %v9772_v3 = vrot.slane %v9765_v28, 6  ;;  %v13935_v37 = vld [vmem:[#allocation14 + $0x3f8] sm:$0xf0]  ;;  %v13906_v63 = vor.u32 %v17232_v38, %v13903_v21  ;;  %v17288_v43 = vld [vmem:[#allocation14 + $0x56c] sm:$0xf] }
 0x6a4   : > { %9533 = vmatpush.bf16.msra.mxu2 %v13506_v46  ;;  %9546 = vmatpush.bf16.msrb.mxu3 %v13634_v25  ;;  %v13439_v46 = vld [vmem:[#allocation14 + $0x18] sm:$0xf0]  ;;  %v17148_v25 = vld [vmem:[#allocation14 + $0x10c] sm:$0xf]  ;;  %v9281_v57 = vpop.f32.mrf.mxu2  ;;  %v9294_v7 = vpop.f32.mrf.mxu3 }
 0x6a5   : > { %v19935_v36 = vsel %vm3485_vm9, %v9764_v52, %v9772_v3  ;;  %v19938_v22 = vsel %vm3488_vm11, %v9764_v52, %v9772_v3  ;;  %v13442_v62 = vor.u32 %v17116_v60, %v13439_v46  ;;  %v13570_v51 = vor.u32 %v17148_v25, %v13567_v4  ;;  %v18145_v28 = vld.sshfl [vmem:[#allocation1] sm:$0xff pattern:$0x73625140]  ;;  %v17196_v3 = vld [vmem:[#allocation14 + $0x28c] sm:$0xf] }
 0x6a6   : > { %v18147_v60 = vld [vmem:[%s20116_s8] sm:$0xf]  ;;  %v17228_v25 = vld [vmem:[#allocation14 + $0x38c] sm:$0xf]  ;;  %v13887_v57 = vld [vmem:[#allocation14 + $0x398] sm:$0xf0] }
 0x6a7   : > { %9508 = vmatpush.bf16.msrb.mxu0 %v15534_v54  ;;  %9521 = vmatpush.bf16.msra.mxu1 %v15662_v6  ;;  %v17240_v54 = vld [vmem:[#allocation14 + $0x3ec] sm:$0xf]  ;;  %v5895_v52 = vperm.slane %v18147_v60, 2  ;;  %v14015_v7 = vld [vmem:[#allocation14 + $0x498] sm:$0xf0]  ;;  %vm20193_vm9 = vcmask 1045508  }
 0x6a8   : > { %9534 = vmatpush.bf16.msra.mxu2 %v13490_v33  ;;  %9547 = vmatpush.bf16.msrb.mxu3 %v13618_v29  ;;  %v17272_v6 = vld [vmem:[#allocation14 + $0x4ec] sm:$0xf]  ;;  %v14063_v33 = vld [vmem:[#allocation14 + $0x4f8] sm:$0xf0]  ;;  %v13938_v17 = vor.u32 %v17240_v54, %v13935_v37  ;;  %vm20194_vm11 = vcmask 1045504  }
 0x6a9   : > { %v17304_v29 = vld [vmem:[#allocation14 + $0x5ec] sm:$0xf]  ;;  %v14066_v12 = vor.u32 %v17272_v6, %v14063_v33  ;;  %v14143_v4 = vld [vmem:[#allocation14 + $0x598] sm:$0xf0]  ;;  %v13890_v6 = vor.u32 %v17228_v25, %v13887_v57 }
 0x6aa   : > { %v14194_v34 = vor.u32 %v17304_v29, %v14191_v47  ;;  %v17224_v47 = vld [vmem:[#allocation14 + $0x36c] sm:$0xf]  ;;  %v14127_v58 = vld [vmem:[#allocation14 + $0x578] sm:$0xf0] }
 0x6ab   : > { %9509 = vmatpush.bf16.msrb.mxu0 %v15518_v18  ;;  %9522 = vmatpush.bf16.msra.mxu1 %v15646_v31  ;;  %v17268_v18 = vld [vmem:[#allocation14 + $0x4cc] sm:$0xf]  ;;  %v14047_v31 = vld [vmem:[#allocation14 + $0x4d8] sm:$0xf0] }
 0x6ac   : > { %9535 = vmatpush.bf16.msra.mxu2 %v13474_v15  ;;  %9548 = vmatpush.bf16.msrb.mxu3 %v13602_v20  ;;  %v13922_v15 = vor.u32 %v17236_v48, %v13919_v0  ;;  %v17200_v20 = vld [vmem:[#allocation14 + $0x2ac] sm:$0xf]  ;;  %v14050_v61 = vor.u32 %v17268_v18, %v14047_v31  ;;  %v13727_v0 = vld [vmem:[#allocation14 + $0x258] sm:$0xf0]  ;;  %v14130_v31 = vor.u32 %v17288_v43, %v14127_v58 }
 0x6ad   : > { %v13778_v14 = vor.u32 %v17200_v20, %v13775_v59  ;;  %v17188_v48 = vld [vmem:[#allocation14 + $0x24c] sm:$0xf]  ;;  %v13855_v45 = vld [vmem:[#allocation14 + $0x358] sm:$0xf0] }
 0x6ae   : > { %v17220_v32 = vld [vmem:[#allocation14 + $0x34c] sm:$0xf]  ;;  %v13983_v59 = vld [vmem:[#allocation14 + $0x458] sm:$0xf0] }
 0x6af   : > { %9510 = vmatpush.bf16.msrb.mxu0 %v15502_v24  ;;  %9523 = vmatpush.bf16.msra.mxu1 %v15630_v40  ;;  %v17296_v24 = vld [vmem:[#allocation14 + $0x5ac] sm:$0xf]  ;;  %v14159_v40 = vld [vmem:[#allocation14 + $0x5b8] sm:$0xf0] }
 0x6b0   : > { %9536 = vmatpush.bf16.msra.mxu2 %v13458_v19  ;;  %9549 = vmatpush.bf16.msrb.mxu3 %v13586_v13  ;;  %v13759_v19 = vld [vmem:[#allocation14 + $0x298] sm:$0xf0]  ;;  %v14034_v13 = vor.u32 %v17264_v9, %v14031_v50  ;;  %v14162_v46 = vor.u32 %v17296_v24, %v14159_v40  ;;  %v17184_v50 = vld [vmem:[#allocation14 + $0x22c] sm:$0xf] }
 0x6b1   : > { %v13762_v37 = vor.u32 %v17196_v3, %v13759_v19  ;;  %v13711_v24 = vld [vmem:[#allocation14 + $0x238] sm:$0xf0]  ;;  %v17216_v60 = vld [vmem:[#allocation14 + $0x32c] sm:$0xf] }
 0x6b2   : > { %v17248_v3 = vld [vmem:[#allocation14 + $0x42c] sm:$0xf]  ;;  %v13967_v19 = vld [vmem:[#allocation14 + $0x438] sm:$0xf0]  ;;  %v13714_v57 = vor.u32 %v17184_v50, %v13711_v24 }
 0x6b3   : > { %9511 = vmatpush.bf16.msrb.mxu0 %v15486_v56  ;;  %9524 = vmatpush.bf16.msra.mxu1 %v15614_v41  ;;  %v9305_v49 = vpop.f32.mrf.mxu0  ;;  %v9318_v27 = vpop.f32.mrf.mxu1  ;;  %v17192_v56 = vld [vmem:[#allocation14 + $0x26c] sm:$0xf]  ;;  %v13743_v41 = vld [vmem:[#allocation14 + $0x278] sm:$0xf0] }
 0x6b4   : > { %9537 = vmatpush.bf16.msra.mxu2 %v13442_v62  ;;  %9550 = vmatpush.bf16.msrb.mxu3 %v13570_v51  ;;  %v9306_v54 = vadd.f32 %v9305_v49, %v5895_v52  ;;  %v13871_v62 = vld [vmem:[#allocation14 + $0x378] sm:$0xf0]  ;;  %v17256_v51 = vld [vmem:[#allocation14 + $0x46c] sm:$0xf]  ;;  %v13970_v49 = vor.u32 %v17248_v3, %v13967_v19 }
 0x6b5   : > { %v13839_v52 = vld [vmem:[#allocation14 + $0x338] sm:$0xf0]  ;;  %v17180_v25 = vld [vmem:[#allocation14 + $0x20c] sm:$0xf] }
 0x6b6   : > { %9512 = vmatmul.bf16.vlgmr.msrb.gmra.mxu0 %v18145_v28  ;;  %9525 = vmatmul.bf16.vlgmr.msra.gmra.mxu1 %v18146_v44  ;;  %v13730_v28 = vor.u32 %v17188_v48, %v13727_v0  ;;  %v13858_v44 = vor.u32 %v17220_v32, %v13855_v45  ;;  %v14575_v58 = vld [vmem:[#allocation14 + $0x8f8] sm:$0xf0]  ;;  %v17332_v32 = vld [vmem:[#allocation14 + $0x6cc] sm:$0xf] }
 0x6b7   : > { %9556 = vmatpush.bf16.msra.mxu0 %v13810_v5  ;;  %9569 = vmatpush.bf16.msrb.mxu1 %v13938_v17  ;;  %v9319_v5 = vadd.f32 %v9318_v27, %v9306_v54  ;;  %v13999_v17 = vld [vmem:[#allocation14 + $0x478] sm:$0xf0]  ;;  %v17244_v54 = vld [vmem:[#allocation14 + $0x40c] sm:$0xf] }
 0x6b8   : > { %9582 = vmatpush.bf16.msrb.mxu2 %v14066_v12  ;;  %9595 = vmatpush.bf16.msra.mxu3 %v14194_v34  ;;  %v13746_v12 = vor.u32 %v17192_v56, %v13743_v41  ;;  %v13874_v34 = vor.u32 %v17224_v47, %v13871_v62  ;;  %v14002_v18 = vor.u32 %v17256_v51, %v13999_v17  ;;  %v14319_v47 = vld [vmem:[#allocation14 + $0x6f8] sm:$0xf0]  ;;  %v17368_v62 = vld [vmem:[#allocation14 + $0x7ec] sm:$0xf] }
 0x6b9   : > { %9538 = vmatmul.bf16.vlgmr.msra.gmra.mxu2 %v19854_v10  ;;  %9551 = vmatmul.bf16.vlgmr.msrb.gmra.mxu3 %v19856_v26  ;;  %v17260_v10 = vld [vmem:[#allocation14 + $0x48c] sm:$0xf]  ;;  %v14447_v51 = vld [vmem:[#allocation14 + $0x7f8] sm:$0xf0] }
 0x6ba   : > { %v17292_v26 = vld [vmem:[#allocation14 + $0x58c] sm:$0xf]  ;;  %v14018_v33 = vor.u32 %v17260_v10, %v14015_v7  ;;  %v13842_v10 = vor.u32 %v17216_v60, %v13839_v52  ;;  %v13695_v7 = vld [vmem:[#allocation14 + $0x218] sm:$0xf0] }
 0x6bb   : > { %9557 = vmatpush.bf16.msra.mxu0 %v13794_v30  ;;  %9570 = vmatpush.bf16.msrb.mxu1 %v13922_v15  ;;  %v14146_v29 = vor.u32 %v17292_v26, %v14143_v4  ;;  %v17252_v30 = vld [vmem:[#allocation14 + $0x44c] sm:$0xf]  ;;  %v9307_v21 = vpop.f32.mrf.mxu0  ;;  %v9320_v9 = vpop.f32.mrf.mxu1  ;;  %v13823_v4 = vld [vmem:[#allocation14 + $0x318] sm:$0xf0]  ;;  %v13698_v17 = vor.u32 %v17180_v25, %v13695_v7 }
 0x6bc   : > { %9583 = vmatpush.bf16.msrb.mxu2 %v14050_v61  ;;  %9596 = vmatpush.bf16.msra.mxu3 %v14178_v35  ;;  %v9331_v15 = vpop.f32.mrf.mxu2  ;;  %v9344_v20 = vpop.f32.mrf.mxu3  ;;  %v17284_v61 = vld [vmem:[#allocation14 + $0x54c] sm:$0xf]  ;;  %v14111_v35 = vld [vmem:[#allocation14 + $0x558] sm:$0xf0] }
 0x6bd   : > { %v9332_v38 = vadd.f32 %v9331_v15, %v9319_v5  ;;  %v17212_v26 = vld [vmem:[#allocation14 + $0x30c] sm:$0xf]  ;;  %v14303_v45 = vld [vmem:[#allocation14 + $0x6d8] sm:$0xf0] }
 0x6be   : > { %v17400_v5 = vld [vmem:[#allocation14 + $0x8ec] sm:$0xf]  ;;  %v13826_v43 = vor.u32 %v17212_v26, %v13823_v4  ;;  %v14687_v21 = vld [vmem:[#allocation14 + $0x9d8] sm:$0xf0]  ;;  %v14306_v9 = vor.u32 %v17332_v32, %v14303_v45 }
 0x6bf   : > { %9558 = vmatpush.bf16.msra.mxu0 %v13778_v14  ;;  %9571 = vmatpush.bf16.msrb.mxu1 %v13906_v63  ;;  %v19945_v40 = vadd.f32 %v9344_v20, %v9332_v38  ;;  %v13986_v14 = vor.u32 %v17252_v30, %v13983_v59  ;;  %v14114_v63 = vor.u32 %v17284_v61, %v14111_v35  ;;  %v17364_v20 = vld [vmem:[#allocation14 + $0x7cc] sm:$0xf]  ;;  %v14431_v59 = vld [vmem:[#allocation14 + $0x7d8] sm:$0xf0] }
 0x6c0   : > { %9584 = vmatpush.bf16.msrb.mxu2 %v14034_v13  ;;  %9597 = vmatpush.bf16.msra.mxu3 %v14162_v46  ;;  %v17280_v13 = vld [vmem:[#allocation14 + $0x52c] sm:$0xf]  ;;  %v14095_v46 = vld [vmem:[#allocation14 + $0x538] sm:$0xf0]  ;;  %v14578_v30 = vor.u32 %v17400_v5, %v14575_v58 }
 0x6c1   : > { %v14098_v27 = vor.u32 %v17280_v13, %v14095_v46  ;;  %v17396_v61 = vld [vmem:[#allocation14 + $0x8cc] sm:$0xf]  ;;  %v14559_v35 = vld [vmem:[#allocation14 + $0x8d8] sm:$0xf0] }
 0x6c2   : > { %v17428_v38 = vld [vmem:[#allocation14 + $0x9cc] sm:$0xf]  ;;  %v14287_v50 = vld [vmem:[#allocation14 + $0x6b8] sm:$0xf0]  ;;  %v14562_v24 = vor.u32 %v17396_v61, %v14559_v35 }
 0x6c3   : > { %9559 = vmatpush.bf16.msra.mxu0 %v13762_v37  ;;  %9572 = vmatpush.bf16.msrb.mxu1 %v13890_v6  ;;  %v13951_v37 = vld [vmem:[#allocation14 + $0x418] sm:$0xf0]  ;;  %v17276_v6 = vld [vmem:[#allocation14 + $0x50c] sm:$0xf] }
 0x6c4   : > { %9585 = vmatpush.bf16.msrb.mxu2 %v14018_v33  ;;  %9598 = vmatpush.bf16.msra.mxu3 %v14146_v29  ;;  %v9333_v56 = vpop.f32.mrf.mxu2  ;;  %v9346_v41 = vpop.f32.mrf.mxu3  ;;  %v14079_v33 = vld [vmem:[#allocation14 + $0x518] sm:$0xf0]  ;;  %v17336_v29 = vld [vmem:[#allocation14 + $0x6ec] sm:$0xf]  ;;  %v13954_v48 = vor.u32 %v17244_v54, %v13951_v37 }
 0x6c5   : > { %v14082_v0 = vor.u32 %v17276_v6, %v14079_v33  ;;  %v14415_v60 = vld [vmem:[#allocation14 + $0x7b8] sm:$0xf0]  ;;  %v17392_v52 = vld [vmem:[#allocation14 + $0x8ac] sm:$0xf] }
 0x6c6   : > { %v14543_v3 = vld [vmem:[#allocation14 + $0x8b8] sm:$0xf0]  ;;  %v17424_v19 = vld [vmem:[#allocation14 + $0x9ac] sm:$0xf] }
 0x6c7   : > { %9560 = vmatpush.bf16.msra.mxu0 %v13746_v12  ;;  %9573 = vmatpush.bf16.msrb.mxu1 %v13874_v34  ;;  %v17432_v12 = vld [vmem:[#allocation14 + $0x9ec] sm:$0xf]  ;;  %v14703_v34 = vld [vmem:[#allocation14 + $0x9f8] sm:$0xf0]  ;;  %v14546_v7 = vor.u32 %v17392_v52, %v14543_v3 }
 0x6c8   : > { %9586 = vmatpush.bf16.msrb.mxu2 %v14002_v18  ;;  %9599 = vmatpush.bf16.msra.mxu3 %v14130_v31  ;;  %v14322_v18 = vor.u32 %v17336_v29, %v14319_v47  ;;  %v14450_v31 = vor.u32 %v17368_v62, %v14447_v51  ;;  %v14706_v15 = vor.u32 %v17432_v12, %v14703_v34  ;;  %v14671_v13 = vld [vmem:[#allocation14 + $0x9b8] sm:$0xf0]  ;;  %v17320_v41 = vld [vmem:[#allocation14 + $0x66c] sm:$0xf] }
 0x6c9   : > { %v14674_v26 = vor.u32 %v17424_v19, %v14671_v13  ;;  %v14399_v4 = vld [vmem:[#allocation14 + $0x798] sm:$0xf0]  ;;  %v17352_v62 = vld [vmem:[#allocation14 + $0x76c] sm:$0xf] }
 0x6ca   : > { %v14655_v54 = vld [vmem:[#allocation14 + $0x998] sm:$0xf0]  ;;  %v17384_v5 = vld [vmem:[#allocation14 + $0x86c] sm:$0xf] }
 0x6cb   : > { %9561 = vmatpush.bf16.msra.mxu0 %v13730_v28  ;;  %9574 = vmatpush.bf16.msrb.mxu1 %v13858_v44  ;;  %v14434_v28 = vor.u32 %v17364_v20, %v14431_v59  ;;  %v17328_v44 = vld [vmem:[#allocation14 + $0x6ac] sm:$0xf]  ;;  %v14255_v33 = vld [vmem:[#allocation14 + $0x678] sm:$0xf0] }
 0x6cc   : > { %9587 = vmatpush.bf16.msrb.mxu2 %v13986_v14  ;;  %9600 = vmatpush.bf16.msra.mxu3 %v14114_v63  ;;  %v14690_v14 = vor.u32 %v17428_v38, %v14687_v21  ;;  %v17360_v63 = vld [vmem:[#allocation14 + $0x7ac] sm:$0xf]  ;;  %v14290_v46 = vor.u32 %v17328_v44, %v14287_v50  ;;  %v14383_v51 = vld [vmem:[#allocation14 + $0x778] sm:$0xf0]  ;;  %v14258_v34 = vor.u32 %v17320_v41, %v14255_v33 }
 0x6cd   : > { %v14418_v25 = vor.u32 %v17360_v63, %v14415_v60  ;;  %v17416_v58 = vld [vmem:[#allocation14 + $0x96c] sm:$0xf]  ;;  %v14639_v12 = vld [vmem:[#allocation14 + $0x978] sm:$0xf0] }
 0x6ce   : > { %v17348_v32 = vld [vmem:[#allocation14 + $0x74c] sm:$0xf]  ;;  %v14367_v45 = vld [vmem:[#allocation14 + $0x758] sm:$0xf0] }
 0x6cf   : > { %9562 = vmatpush.bf16.msra.mxu0 %v13714_v57  ;;  %9575 = vmatpush.bf16.msrb.mxu1 %v13842_v10  ;;  %v17324_v57 = vld [vmem:[#allocation14 + $0x68c] sm:$0xf]  ;;  %v14271_v10 = vld [vmem:[#allocation14 + $0x698] sm:$0xf0]  ;;  %v14370_v44 = vor.u32 %v17348_v32, %v14367_v45 }
 0x6d0   : > { %9588 = vmatpush.bf16.msrb.mxu2 %v13970_v49  ;;  %9601 = vmatpush.bf16.msra.mxu3 %v14098_v27  ;;  %v14527_v49 = vld [vmem:[#allocation14 + $0x898] sm:$0xf0]  ;;  %v17420_v27 = vld [vmem:[#allocation14 + $0x98c] sm:$0xf]  ;;  %v14274_v6 = vor.u32 %v17324_v57, %v14271_v10 }
 0x6d1   : > { %v14658_v47 = vor.u32 %v17420_v27, %v14655_v54  ;;  %v14495_v59 = vld [vmem:[#allocation14 + $0x858] sm:$0xf0]  ;;  %v17412_v61 = vld [vmem:[#allocation14 + $0x94c] sm:$0xf] }
 0x6d2   : > { %v14623_v35 = vld [vmem:[#allocation14 + $0x958] sm:$0xf0]  ;;  %v17312_v50 = vld [vmem:[#allocation14 + $0x62c] sm:$0xf] }
 0x6d3   : > { %9563 = vmatpush.bf16.msra.mxu0 %v13698_v17  ;;  %9576 = vmatpush.bf16.msrb.mxu1 %v13826_v43  ;;  %v9357_v37 = vpop.f32.mrf.mxu0  ;;  %v14511_v43 = vld [vmem:[#allocation14 + $0x878] sm:$0xf0]  ;;  %v14626_v60 = vor.u32 %v17412_v61, %v14623_v35  ;;  %v17344_v52 = vld [vmem:[#allocation14 + $0x72c] sm:$0xf] }
 0x6d4   : > { %9589 = vmatpush.bf16.msrb.mxu2 %v13954_v48  ;;  %9602 = vmatpush.bf16.msra.mxu3 %v14082_v0  ;;  %v14386_v48 = vor.u32 %v17352_v62, %v14383_v51  ;;  %v14239_v0 = vld [vmem:[#allocation14 + $0x658] sm:$0xf0]  ;;  %v17376_v19 = vld [vmem:[#allocation14 + $0x82c] sm:$0xf] }
 0x6d5   : > { %v14351_v3 = vld [vmem:[#allocation14 + $0x738] sm:$0xf0]  ;;  %v17308_v57 = vld [vmem:[#allocation14 + $0x60c] sm:$0xf] }
 0x6d6   : > { %9564 = vmatmul.bf16.vlgmr.msra.gmra.mxu0 %v19860_v1  ;;  %9577 = vmatmul.bf16.vlgmr.msrb.gmra.mxu1 %v19862_v23  ;;  %v17356_v1 = vld [vmem:[#allocation14 + $0x78c] sm:$0xf]  ;;  %v14479_v13 = vld [vmem:[#allocation14 + $0x838] sm:$0xf0] }
 0x6d7   : > { %9608 = vmatpush.bf16.msrb.mxu0 %v14322_v18  ;;  %9621 = vmatpush.bf16.msra.mxu1 %v14450_v31  ;;  %v17388_v23 = vld [vmem:[#allocation14 + $0x88c] sm:$0xf]  ;;  %v14402_v56 = vor.u32 %v17356_v1, %v14399_v4  ;;  %v14514_v18 = vor.u32 %v17384_v5, %v14511_v43  ;;  %v14642_v31 = vor.u32 %v17416_v58, %v14639_v12  ;;  %v14335_v4 = vld [vmem:[#allocation14 + $0x718] sm:$0xf0] }
 0x6d8   : > { %9634 = vmatpush.bf16.msra.mxu2 %v14578_v30  ;;  %9647 = vmatpush.bf16.msrb.mxu3 %v14706_v15  ;;  %v14530_v29 = vor.u32 %v17388_v23, %v14527_v49  ;;  %v17380_v30 = vld [vmem:[#allocation14 + $0x84c] sm:$0xf]  ;;  %v14482_v23 = vor.u32 %v17376_v19, %v14479_v13  ;;  %v14463_v54 = vld [vmem:[#allocation14 + $0x818] sm:$0xf0] }
 0x6d9   : > { %9590 = vmatmul.bf16.vlgmr.msrb.gmra.mxu2 %v19846_v53  ;;  %9603 = vmatmul.bf16.vlgmr.msra.gmra.mxu3 %v19848_v16  ;;  %v9370_v53 = vpop.f32.mrf.mxu1  ;;  %v9358_v16 = vadd.f32 %v9357_v37, %v19945_v40  ;;  %v17316_v40 = vld [vmem:[#allocation14 + $0x64c] sm:$0xf]  ;;  %v14498_v63 = vor.u32 %v17380_v30, %v14495_v59  ;;  %v14831_v41 = vld [vmem:[#allocation14 + $0xaf8] sm:$0xf0] }
 0x6da   : > { %v17340_v1 = vld [vmem:[#allocation14 + $0x70c] sm:$0xf]  ;;  %v15087_v5 = vld [vmem:[#allocation14 + $0xcf8] sm:$0xf0] }
 0x6db   : > { %9609 = vmatpush.bf16.msrb.mxu0 %v14306_v9  ;;  %9622 = vmatpush.bf16.msra.mxu1 %v14434_v28  ;;  %v9371_v17 = vadd.f32 %v9370_v53, %v9358_v16  ;;  %v9359_v21 = vpop.f32.mrf.mxu0  ;;  %v14242_v28 = vor.u32 %v17316_v40, %v14239_v0  ;;  %v17372_v27 = vld [vmem:[#allocation14 + $0x80c] sm:$0xf]  ;;  %v14338_v51 = vor.u32 %v17340_v1, %v14335_v4  ;;  %v15215_v43 = vld [vmem:[#allocation14 + $0xdf8] sm:$0xf0] }
 0x6dc   : > { %9635 = vmatpush.bf16.msra.mxu2 %v14562_v24  ;;  %9648 = vmatpush.bf16.msrb.mxu3 %v14690_v14  ;;  %v9383_v15 = vpop.f32.mrf.mxu2  ;;  %v9396_v20 = vpop.f32.mrf.mxu3  ;;  %v14223_v24 = vld [vmem:[#allocation14 + $0x638] sm:$0xf0]  ;;  %v17404_v37 = vld [vmem:[#allocation14 + $0x90c] sm:$0xf]  ;;  %v14466_v58 = vor.u32 %v17372_v27, %v14463_v54 }
 0x6dd   : > { %v9384_v38 = vadd.f32 %v9383_v15, %v9371_v17  ;;  %v14226_v10 = vor.u32 %v17312_v50, %v14223_v24  ;;  %v17496_v33 = vld [vmem:[#allocation14 + $0xbec] sm:$0xf]  ;;  %v14815_v0 = vld [vmem:[#allocation14 + $0xad8] sm:$0xf0] }
 0x6de   : > { %v17560_v17 = vld [vmem:[#allocation14 + $0xdec] sm:$0xf]  ;;  %v14943_v45 = vld [vmem:[#allocation14 + $0xbd8] sm:$0xf0] }
 0x6df   : > { %9610 = vmatpush.bf16.msrb.mxu0 %v14290_v46  ;;  %9623 = vmatpush.bf16.msra.mxu1 %v14418_v25  ;;  %v19952_v14 = vadd.f32 %v9396_v20, %v9384_v38  ;;  %v17408_v46 = vld [vmem:[#allocation14 + $0x92c] sm:$0xf]  ;;  %v14607_v25 = vld [vmem:[#allocation14 + $0x938] sm:$0xf0] }
 0x6e0   : > { %9636 = vmatpush.bf16.msra.mxu2 %v14546_v7  ;;  %9649 = vmatpush.bf16.msrb.mxu3 %v14674_v26  ;;  %v14354_v7 = vor.u32 %v17344_v52, %v14351_v3  ;;  %v14207_v26 = vld [vmem:[#allocation14 + $0x618] sm:$0xf0]  ;;  %v14610_v49 = vor.u32 %v17408_v46, %v14607_v25  ;;  %v17460_v40 = vld [vmem:[#allocation14 + $0xacc] sm:$0xf] }
 0x6e1   : > { %v9372_v9 = vpop.f32.mrf.mxu1  ;;  %v14210_v62 = vor.u32 %v17308_v57, %v14207_v26  ;;  %v17492_v32 = vld [vmem:[#allocation14 + $0xbcc] sm:$0xf]  ;;  %v15071_v15 = vld [vmem:[#allocation14 + $0xcd8] sm:$0xf0]  ;;  %v14818_v61 = vor.u32 %v17460_v40, %v14815_v0 }
 0x6e2   : > { %v17524_v30 = vld [vmem:[#allocation14 + $0xccc] sm:$0xf]  ;;  %v15199_v59 = vld [vmem:[#allocation14 + $0xdd8] sm:$0xf0]  ;;  %v14946_v35 = vor.u32 %v17492_v32, %v14943_v45 }
 0x6e3   : > { %9611 = vmatpush.bf16.msrb.mxu0 %v14274_v6  ;;  %9624 = vmatpush.bf16.msra.mxu1 %v14402_v56  ;;  %v14591_v6 = vld [vmem:[#allocation14 + $0x918] sm:$0xf0]  ;;  %v17464_v56 = vld [vmem:[#allocation14 + $0xaec] sm:$0xf]  ;;  %v15074_v9 = vor.u32 %v17524_v30, %v15071_v15 }
 0x6e4   : > { %9637 = vmatpush.bf16.msra.mxu2 %v14530_v29  ;;  %9650 = vmatpush.bf16.msrb.mxu3 %v14658_v47  ;;  %v9385_v53 = vpop.f32.mrf.mxu2  ;;  %v9398_v16 = vpop.f32.mrf.mxu3  ;;  %v14959_v29 = vld [vmem:[#allocation14 + $0xbf8] sm:$0xf0]  ;;  %v17528_v47 = vld [vmem:[#allocation14 + $0xcec] sm:$0xf]  ;;  %v14594_v12 = vor.u32 %v17404_v37, %v14591_v6 }
 0x6e5   : > { %v17556_v20 = vld [vmem:[#allocation14 + $0xdcc] sm:$0xf]  ;;  %v14799_v21 = vld [vmem:[#allocation14 + $0xab8] sm:$0xf0] }
 0x6e6   : > { %v17456_v38 = vld [vmem:[#allocation14 + $0xaac] sm:$0xf]  ;;  %v14927_v50 = vld [vmem:[#allocation14 + $0xbb8] sm:$0xf0] }
 0x6e7   : > { %9612 = vmatpush.bf16.msrb.mxu0 %v14258_v34  ;;  %9625 = vmatpush.bf16.msra.mxu1 %v14386_v48  ;;  %v14834_v34 = vor.u32 %v17464_v56, %v14831_v41  ;;  %v14962_v48 = vor.u32 %v17496_v33, %v14959_v29  ;;  %v17520_v24 = vld [vmem:[#allocation14 + $0xcac] sm:$0xf]  ;;  %v15183_v52 = vld [vmem:[#allocation14 + $0xdb8] sm:$0xf0]  ;;  %v14802_v3 = vor.u32 %v17456_v38, %v14799_v21 }
 0x6e8   : > { %9638 = vmatpush.bf16.msra.mxu2 %v14514_v18  ;;  %9651 = vmatpush.bf16.msrb.mxu3 %v14642_v31  ;;  %v15090_v18 = vor.u32 %v17528_v47, %v15087_v5  ;;  %v15218_v31 = vor.u32 %v17560_v17, %v15215_v43  ;;  %v17452_v13 = vld [vmem:[#allocation14 + $0xa8c] sm:$0xf]  ;;  %v14783_v46 = vld [vmem:[#allocation14 + $0xa98] sm:$0xf0] }
 0x6e9   : > { %v17548_v26 = vld [vmem:[#allocation14 + $0xd8c] sm:$0xf]  ;;  %v15167_v1 = vld [vmem:[#allocation14 + $0xd98] sm:$0xf0] }
 0x6ea   : > { %v17448_v27 = vld [vmem:[#allocation14 + $0xa6c] sm:$0xf]  ;;  %v14767_v54 = vld [vmem:[#allocation14 + $0xa78] sm:$0xf0]  ;;  %v15170_v53 = vor.u32 %v17548_v26, %v15167_v1 }
 0x6eb   : > { %9613 = vmatpush.bf16.msrb.mxu0 %v14242_v28  ;;  %9626 = vmatpush.bf16.msra.mxu1 %v14370_v44  ;;  %v15202_v28 = vor.u32 %v17556_v20, %v15199_v59  ;;  %v17488_v44 = vld [vmem:[#allocation14 + $0xbac] sm:$0xf]  ;;  %v14895_v6 = vld [vmem:[#allocation14 + $0xb78] sm:$0xf0] }
 0x6ec   : > { %9639 = vmatpush.bf16.msra.mxu2 %v14498_v63  ;;  %9652 = vmatpush.bf16.msrb.mxu3 %v14626_v60  ;;  %v15055_v63 = vld [vmem:[#allocation14 + $0xcb8] sm:$0xf0]  ;;  %v17552_v60 = vld [vmem:[#allocation14 + $0xdac] sm:$0xf]  ;;  %v14930_v19 = vor.u32 %v17488_v44, %v14927_v50 }
 0x6ed   : > { %v15058_v25 = vor.u32 %v17520_v24, %v15055_v63  ;;  %v15186_v57 = vor.u32 %v17552_v60, %v15183_v52  ;;  %v17480_v16 = vld [vmem:[#allocation14 + $0xb6c] sm:$0xf]  ;;  %v15023_v33 = vld [vmem:[#allocation14 + $0xc78] sm:$0xf0] }
 0x6ee   : > { %v17512_v56 = vld [vmem:[#allocation14 + $0xc6c] sm:$0xf]  ;;  %v15151_v47 = vld [vmem:[#allocation14 + $0xd78] sm:$0xf0] }
 0x6ef   : > { %9614 = vmatpush.bf16.msrb.mxu0 %v14226_v10  ;;  %9627 = vmatpush.bf16.msra.mxu1 %v14354_v7  ;;  %v14911_v10 = vld [vmem:[#allocation14 + $0xb98] sm:$0xf0]  ;;  %v17544_v29 = vld [vmem:[#allocation14 + $0xd6c] sm:$0xf]  ;;  %v15026_v17 = vor.u32 %v17512_v56, %v15023_v33 }
 0x6f0   : > { %9640 = vmatpush.bf16.msra.mxu2 %v14482_v23  ;;  %9653 = vmatpush.bf16.msrb.mxu3 %v14610_v49  ;;  %v15039_v7 = vld [vmem:[#allocation14 + $0xc98] sm:$0xf0]  ;;  %v14786_v23 = vor.u32 %v17452_v13, %v14783_v46  ;;  %v15154_v43 = vor.u32 %v17544_v29, %v15151_v47  ;;  %v17440_v59 = vld [vmem:[#allocation14 + $0xa2c] sm:$0xf] }
 0x6f1   : > { %v14751_v5 = vld [vmem:[#allocation14 + $0xa58] sm:$0xf0]  ;;  %v17504_v44 = vld [vmem:[#allocation14 + $0xc2c] sm:$0xf] }
 0x6f2   : > { %v15007_v0 = vld [vmem:[#allocation14 + $0xc58] sm:$0xf0]  ;;  %v17536_v24 = vld [vmem:[#allocation14 + $0xd2c] sm:$0xf] }
 0x6f3   : > { %9615 = vmatpush.bf16.msrb.mxu0 %v14210_v62  ;;  %9628 = vmatpush.bf16.msra.mxu1 %v14338_v51  ;;  %v9409_v4 = vpop.f32.mrf.mxu0  ;;  %v14770_v62 = vor.u32 %v17448_v27, %v14767_v54  ;;  %v14898_v51 = vor.u32 %v17480_v16, %v14895_v6  ;;  %v14991_v50 = vld [vmem:[#allocation14 + $0xc38] sm:$0xf0]  ;;  %v17436_v60 = vld [vmem:[#allocation14 + $0xa0c] sm:$0xf] }
 0x6f4   : > { %9641 = vmatpush.bf16.msra.mxu2 %v14466_v58  ;;  %9654 = vmatpush.bf16.msrb.mxu3 %v14594_v12  ;;  %v17476_v58 = vld [vmem:[#allocation14 + $0xb4c] sm:$0xf]  ;;  %v14879_v12 = vld [vmem:[#allocation14 + $0xb58] sm:$0xf0] }
 0x6f5   : > { %v14882_v20 = vor.u32 %v17476_v58, %v14879_v12  ;;  %v15119_v63 = vld [vmem:[#allocation14 + $0xd38] sm:$0xf0]  ;;  %v17468_v13 = vld [vmem:[#allocation14 + $0xb0c] sm:$0xf] }
 0x6f6   : > { %9616 = vmatmul.bf16.vlgmr.msrb.gmra.mxu0 %v19850_v11  ;;  %9629 = vmatmul.bf16.vlgmr.msra.gmra.mxu1 %v19852_v55  ;;  %v17484_v11 = vld [vmem:[#allocation14 + $0xb8c] sm:$0xf]  ;;  %v14847_v46 = vld [vmem:[#allocation14 + $0xb18] sm:$0xf0] }
 0x6f7   : > { %9660 = vmatpush.bf16.msra.mxu0 %v14834_v34  ;;  %9673 = vmatpush.bf16.msrb.mxu1 %v14962_v48  ;;  %v17516_v55 = vld [vmem:[#allocation14 + $0xc8c] sm:$0xf]  ;;  %v14914_v49 = vor.u32 %v17484_v11, %v14911_v10  ;;  %v14975_v10 = vld [vmem:[#allocation14 + $0xc18] sm:$0xf0]  ;;  %v14850_v54 = vor.u32 %v17468_v13, %v14847_v46 }
 0x6f8   : > { %9686 = vmatpush.bf16.msrb.mxu2 %v15090_v18  ;;  %9699 = vmatpush.bf16.msra.mxu3 %v15218_v31  ;;  %v15042_v37 = vor.u32 %v17516_v55, %v15039_v7  ;;  %v17508_v34 = vld [vmem:[#allocation14 + $0xc4c] sm:$0xf]  ;;  %v15135_v31 = vld [vmem:[#allocation14 + $0xd58] sm:$0xf0] }
 0x6f9   : > { %9642 = vmatmul.bf16.vlgmr.msra.gmra.mxu2 %v19866_v8  ;;  %9655 = vmatmul.bf16.vlgmr.msrb.gmra.mxu3 %v19868_v39  ;;  %v9422_v8 = vpop.f32.mrf.mxu1  ;;  %v9410_v39 = vadd.f32 %v9409_v4, %v19952_v14  ;;  %v17444_v14 = vld [vmem:[#allocation14 + $0xa4c] sm:$0xf]  ;;  %v15010_v38 = vor.u32 %v17508_v34, %v15007_v0  ;;  %v15103_v1 = vld [vmem:[#allocation14 + $0xd18] sm:$0xf0] }
 0x6fa   : > { %v17540_v18 = vld [vmem:[#allocation14 + $0xd4c] sm:$0xf]  ;;  %v14754_v15 = vor.u32 %v17444_v14, %v14751_v5  ;;  %v15727_v16 = vld [vmem:[#allocation14 + $0x11f8] sm:$0xf0] }
 0x6fb   : > { %9661 = vmatpush.bf16.msra.mxu0 %v14818_v61  ;;  %9674 = vmatpush.bf16.msrb.mxu1 %v14946_v35  ;;  %v9423_v41 = vadd.f32 %v9422_v8, %v9410_v39  ;;  %v9411_v45 = vpop.f32.mrf.mxu0  ;;  %v14735_v61 = vld [vmem:[#allocation14 + $0xa38] sm:$0xf0]  ;;  %v15138_v21 = vor.u32 %v17540_v18, %v15135_v31  ;;  %v17500_v11 = vld [vmem:[#allocation14 + $0xc0c] sm:$0xf] }
 0x6fc   : > { %9687 = vmatpush.bf16.msrb.mxu2 %v15074_v9  ;;  %9700 = vmatpush.bf16.msra.mxu3 %v15202_v28  ;;  %v9435_v48 = vpop.f32.mrf.mxu2  ;;  %v9448_v40 = vpop.f32.mrf.mxu3  ;;  %v17472_v9 = vld [vmem:[#allocation14 + $0xb2c] sm:$0xf]  ;;  %v14863_v28 = vld [vmem:[#allocation14 + $0xb38] sm:$0xf0]  ;;  %v14738_v52 = vor.u32 %v17440_v59, %v14735_v61  ;;  %v14978_v6 = vor.u32 %v17500_v11, %v14975_v10 }
 0x6fd   : > { %v9436_v32 = vadd.f32 %v9435_v48, %v9423_v41  ;;  %v17532_v55 = vld [vmem:[#allocation14 + $0xd0c] sm:$0xf]  ;;  %v15343_v8 = vld [vmem:[#allocation14 + $0xef8] sm:$0xf0] }
 0x6fe   : > { %v17592_v4 = vld [vmem:[#allocation14 + $0xeec] sm:$0xf]  ;;  %v15106_v56 = vor.u32 %v17532_v55, %v15103_v1  ;;  %v15327_v47 = vld [vmem:[#allocation14 + $0xed8] sm:$0xf0] }
 0x6ff   : > { %9662 = vmatpush.bf16.msra.mxu0 %v14802_v3  ;;  %9675 = vmatpush.bf16.msrb.mxu1 %v14930_v19  ;;  %v19959_v35 = vadd.f32 %v9448_v40, %v9436_v32  ;;  %v14866_v3 = vor.u32 %v17472_v9, %v14863_v28  ;;  %v14719_v19 = vld [vmem:[#allocation14 + $0xa18] sm:$0xf0]  ;;  %v17624_v39 = vld [vmem:[#allocation14 + $0xfec] sm:$0xf]  ;;  %v15346_v41 = vor.u32 %v17592_v4, %v15343_v8 }
 0x700   : > { %9688 = vmatpush.bf16.msrb.mxu2 %v15058_v25  ;;  %9701 = vmatpush.bf16.msra.mxu3 %v15186_v57  ;;  %v14994_v25 = vor.u32 %v17504_v44, %v14991_v50  ;;  %v15122_v57 = vor.u32 %v17536_v24, %v15119_v63  ;;  %v14722_v27 = vor.u32 %v17436_v60, %v14719_v19  ;;  %v17588_v29 = vld [vmem:[#allocation14 + $0xecc] sm:$0xf]  ;;  %v15455_v5 = vld [vmem:[#allocation14 + $0xfd8] sm:$0xf0] }
 0x701   : > { %v9424_v30 = vpop.f32.mrf.mxu1  ;;  %v17620_v14 = vld [vmem:[#allocation14 + $0xfcc] sm:$0xf]  ;;  %v15711_v12 = vld [vmem:[#allocation14 + $0x11d8] sm:$0xf0]  ;;  %v15330_v34 = vor.u32 %v17588_v29, %v15327_v47 }
 0x702   : > { %v17684_v58 = vld [vmem:[#allocation14 + $0x11cc] sm:$0xf]  ;;  %v15458_v48 = vor.u32 %v17620_v14, %v15455_v5  ;;  %v15311_v0 = vld [vmem:[#allocation14 + $0xeb8] sm:$0xf0] }
 0x703   : > { %9663 = vmatpush.bf16.msra.mxu0 %v14786_v23  ;;  %9676 = vmatpush.bf16.msrb.mxu1 %v14914_v49  ;;  %v15471_v23 = vld [vmem:[#allocation14 + $0xff8] sm:$0xf0]  ;;  %v17656_v49 = vld [vmem:[#allocation14 + $0x10ec] sm:$0xf]  ;;  %v15714_v31 = vor.u32 %v17684_v58, %v15711_v12 }
 0x704   : > { %9689 = vmatpush.bf16.msrb.mxu2 %v15042_v37  ;;  %9702 = vmatpush.bf16.msra.mxu3 %v15170_v53  ;;  %v9437_v7 = vpop.f32.mrf.mxu2  ;;  %v9450_v26 = vpop.f32.mrf.mxu3  ;;  %v15599_v37 = vld [vmem:[#allocation14 + $0x10f8] sm:$0xf0]  ;;  %v17688_v53 = vld [vmem:[#allocation14 + $0x11ec] sm:$0xf]  ;;  %v15474_v33 = vor.u32 %v17624_v39, %v15471_v23 }
 0x705   : > { %v17584_v40 = vld [vmem:[#allocation14 + $0xeac] sm:$0xf]  ;;  %v15439_v45 = vld [vmem:[#allocation14 + $0xfb8] sm:$0xf0] }
 0x706   : > { %v17616_v32 = vld [vmem:[#allocation14 + $0xfac] sm:$0xf]  ;;  %v15695_v59 = vld [vmem:[#allocation14 + $0x11b8] sm:$0xf0] }
 0x707   : > { %9664 = vmatpush.bf16.msra.mxu0 %v14770_v62  ;;  %9677 = vmatpush.bf16.msrb.mxu1 %v14898_v51  ;;  %v15602_v62 = vor.u32 %v17656_v49, %v15599_v37  ;;  %v15730_v51 = vor.u32 %v17688_v53, %v15727_v16  ;;  %v17648_v30 = vld [vmem:[#allocation14 + $0x10ac] sm:$0xf]  ;;  %v18148_v61 = vld.sshfl [vmem:[#allocation1 + $0x20] sm:$0xff pattern:$0x73625140]  ;;  %v15442_v9 = vor.u32 %v17616_v32, %v15439_v45 }
 0x708   : > { %9690 = vmatpush.bf16.msrb.mxu2 %v15026_v17  ;;  %9703 = vmatpush.bf16.msra.mxu3 %v15154_v43  ;;  %v17652_v17 = vld [vmem:[#allocation14 + $0x10cc] sm:$0xf]  ;;  %v15583_v43 = vld [vmem:[#allocation14 + $0x10d8] sm:$0xf0] }
 0x709   : > { %v15586_v18 = vor.u32 %v17652_v17, %v15583_v43  ;;  %v17580_v28 = vld [vmem:[#allocation14 + $0xe8c] sm:$0xf]  ;;  %v15295_v44 = vld [vmem:[#allocation14 + $0xe98] sm:$0xf0] }
 0x70a   : > { %v15423_v63 = vld [vmem:[#allocation14 + $0xf98] sm:$0xf0]  ;;  %v17576_v11 = vld [vmem:[#allocation14 + $0xe6c] sm:$0xf] }
 0x70b   : > { %9665 = vmatpush.bf16.msra.mxu0 %v14754_v15  ;;  %9678 = vmatpush.bf16.msrb.mxu1 %v14882_v20  ;;  %v15567_v15 = vld [vmem:[#allocation14 + $0x10b8] sm:$0xf0]  ;;  %v17680_v20 = vld [vmem:[#allocation14 + $0x11ac] sm:$0xf] }
 0x70c   : > { %9691 = vmatpush.bf16.msrb.mxu2 %v15010_v38  ;;  %9704 = vmatpush.bf16.msra.mxu3 %v15138_v21  ;;  %v18149_v38 = vld.sshfl [vmem:[#allocation1 + $0x28] sm:$0xff pattern:$0x73625140]  ;;  %v15314_v21 = vor.u32 %v17584_v40, %v15311_v0  ;;  %v15570_v50 = vor.u32 %v17648_v30, %v15567_v15  ;;  %v15698_v24 = vor.u32 %v17680_v20, %v15695_v59  ;;  %v15551_v60 = vld [vmem:[#allocation14 + $0x1098] sm:$0xf0] }
 0x70d   : > { %v15279_v10 = vld [vmem:[#allocation14 + $0xe78] sm:$0xf0]  ;;  %v17608_v26 = vld [vmem:[#allocation14 + $0xf6c] sm:$0xf] }
 0x70e   : > { %v15407_v1 = vld [vmem:[#allocation14 + $0xf78] sm:$0xf0]  ;;  %v17640_v4 = vld [vmem:[#allocation14 + $0x106c] sm:$0xf] }
 0x70f   : > { %9666 = vmatpush.bf16.msra.mxu0 %v14738_v52  ;;  %9679 = vmatpush.bf16.msrb.mxu1 %v14866_v3  ;;  %v17676_v52 = vld [vmem:[#allocation14 + $0x118c] sm:$0xf]  ;;  %v15679_v3 = vld [vmem:[#allocation14 + $0x1198] sm:$0xf0] }
 0x710   : > { %9692 = vmatpush.bf16.msrb.mxu2 %v14994_v25  ;;  %9705 = vmatpush.bf16.msra.mxu3 %v15122_v57  ;;  %v15298_v25 = vor.u32 %v17580_v28, %v15295_v44  ;;  %v15682_v7 = vor.u32 %v17676_v52, %v15679_v3  ;;  %v15535_v39 = vld [vmem:[#allocation14 + $0x1078] sm:$0xf0]  ;;  %v17672_v23 = vld [vmem:[#allocation14 + $0x116c] sm:$0xf] }
 0x711   : > { %v15663_v49 = vld [vmem:[#allocation14 + $0x1178] sm:$0xf0]  ;;  %v15538_v53 = vor.u32 %v17640_v4, %v15535_v39  ;;  %v17568_v12 = vld [vmem:[#allocation14 + $0xe2c] sm:$0xf] }
 0x712   : > { %v15263_v37 = vld [vmem:[#allocation14 + $0xe58] sm:$0xf0]  ;;  %v15666_v16 = vor.u32 %v17672_v23, %v15663_v49  ;;  %v17632_v32 = vld [vmem:[#allocation14 + $0x102c] sm:$0xf] }
 0x713   : > { %9667 = vmatpush.bf16.msra.mxu0 %v14722_v27  ;;  %9680 = vmatpush.bf16.msrb.mxu1 %v14850_v54  ;;  %v9461_v19 = vpop.f32.mrf.mxu0  ;;  %v9474_v13 = vpop.f32.mrf.mxu1  ;;  %v15282_v27 = vor.u32 %v17576_v11, %v15279_v10  ;;  %v15410_v54 = vor.u32 %v17608_v26, %v15407_v1  ;;  %v15519_v47 = vld [vmem:[#allocation14 + $0x1058] sm:$0xf0]  ;;  %v17664_v30 = vld [vmem:[#allocation14 + $0x112c] sm:$0xf]  ;;  %v18154_v1 = vld [vmem:[%s20116_s8] sm:$0xf] }
 0x714   : > { %9693 = vmatpush.bf16.msrb.mxu2 %v14978_v6  ;;  %9706 = vmatpush.bf16.msra.mxu3 %v15106_v56  ;;  %v9462_v46 = vadd.f32 %v9461_v19, %v19959_v35  ;;  %v17572_v35 = vld [vmem:[#allocation14 + $0xe4c] sm:$0xf]  ;;  %v15391_v56 = vld [vmem:[#allocation14 + $0xf58] sm:$0xf0]  ;;  %v5896_v4 = vperm.slane %v18154_v1, 3 }
 0x715   : > { %v17604_v6 = vld [vmem:[#allocation14 + $0xf4c] sm:$0xf]  ;;  %v15266_v43 = vor.u32 %v17572_v35, %v15263_v37  ;;  %v15503_v45 = vld [vmem:[#allocation14 + $0x1038] sm:$0xf0] }
 0x716   : > { %9668 = vmatmul.bf16.vlgmr.msra.gmra.mxu0 %v19870_v2  ;;  %9681 = vmatmul.bf16.vlgmr.msrb.gmra.mxu1 %v19872_v42  ;;  %v17612_v2 = vld [vmem:[#allocation14 + $0xf8c] sm:$0xf]  ;;  %v9475_v8 = vadd.f32 %v9474_v13, %v9462_v46  ;;  %v15394_v58 = vor.u32 %v17604_v6, %v15391_v56  ;;  %v15631_v15 = vld [vmem:[#allocation14 + $0x1138] sm:$0xf0] }
 0x717   : > { %9712 = vmatpush.bf16.msrb.mxu0 %v15346_v41  ;;  %9725 = vmatpush.bf16.msra.mxu1 %v15474_v33  ;;  %v17644_v42 = vld [vmem:[#allocation14 + $0x108c] sm:$0xf]  ;;  %v15426_v57 = vor.u32 %v17612_v2, %v15423_v63  ;;  %v15359_v44 = vld [vmem:[#allocation14 + $0xf18] sm:$0xf0] }
 0x718   : > { %9738 = vmatpush.bf16.msra.mxu2 %v15602_v62  ;;  %9751 = vmatpush.bf16.msrb.mxu3 %v15730_v51  ;;  %v15554_v55 = vor.u32 %v17644_v42, %v15551_v60  ;;  %v17636_v41 = vld [vmem:[#allocation14 + $0x104c] sm:$0xf]  ;;  %v15647_v51 = vld [vmem:[#allocation14 + $0x1158] sm:$0xf0] }
 0x719   : > { %9694 = vmatmul.bf16.vlgmr.msrb.gmra.mxu2 %v18148_v61  ;;  %9707 = vmatmul.bf16.vlgmr.msra.gmra.mxu3 %v18149_v38  ;;  %v17668_v62 = vld [vmem:[#allocation14 + $0x114c] sm:$0xf]  ;;  %v15522_v40 = vor.u32 %v17636_v41, %v15519_v47  ;;  %v15231_v38 = vld [vmem:[#allocation14 + $0xe18] sm:$0xf0] }
 0x71a   : > { %v15650_v0 = vor.u32 %v17668_v62, %v15647_v51  ;;  %v17564_v61 = vld [vmem:[#allocation14 + $0xe0c] sm:$0xf]  ;;  %v15487_v63 = vld [vmem:[#allocation14 + $0x1018] sm:$0xf0] }
 0x71b   : > { %9713 = vmatpush.bf16.msrb.mxu0 %v15330_v34  ;;  %9726 = vmatpush.bf16.msra.mxu1 %v15458_v48  ;;  %v9463_v5 = vpop.f32.mrf.mxu0  ;;  %v9476_v17 = vpop.f32.mrf.mxu1  ;;  %v15247_v34 = vld [vmem:[#allocation14 + $0xe38] sm:$0xf0]  ;;  %v17596_v28 = vld [vmem:[#allocation14 + $0xf0c] sm:$0xf]  ;;  %v15234_v52 = vor.u32 %v17564_v61, %v15231_v38  ;;  %v15959_v61 = vld [vmem:[#allocation16 + $0x1c0] sm:$0xf] }
 0x71c   : > { %9739 = vmatpush.bf16.msra.mxu2 %v15586_v18  ;;  %9752 = vmatpush.bf16.msrb.mxu3 %v15714_v31  ;;  %v9487_v33 = vpop.f32.mrf.mxu2  ;;  %v9500_v29 = vpop.f32.mrf.mxu3  ;;  %v17600_v18 = vld [vmem:[#allocation14 + $0xf2c] sm:$0xf]  ;;  %v15375_v31 = vld [vmem:[#allocation14 + $0xf38] sm:$0xf0]  ;;  %v15250_v20 = vor.u32 %v17568_v12, %v15247_v34  ;;  %v15362_v3 = vor.u32 %v17596_v28, %v15359_v44  ;;  %v15847_v17 = vld [vmem:[#allocation16 + $0xe0] sm:$0xf] }
 0x71d   : > { %v9488_v14 = vadd.f32 %v9487_v33, %v9475_v8  ;;  %v15378_v59 = vor.u32 %v17600_v18, %v15375_v31  ;;  %v17660_v42 = vld [vmem:[#allocation14 + $0x110c] sm:$0xf]  ;;  %v15615_v60 = vld [vmem:[#allocation14 + $0x1118] sm:$0xf0]  ;;  %v17753_v34 = vld [vmem:[#allocation16 + $0x1ec] sm:$0xf0] }
 0x71e   : > { %v15618_v13 = vor.u32 %v17660_v42, %v15615_v60  ;;  %v18150_v46 = vld.sshfl [vmem:[#allocation1 + $0x30] sm:$0xff pattern:$0x73625140]  ;;  %v18153_v11 = vld.sshfl [vmem:[#allocation1 + $0x8] sm:$0xff pattern:$0x73625140] }
 0x71f   : > { %9714 = vmatpush.bf16.msrb.mxu0 %v15314_v21  ;;  %9727 = vmatpush.bf16.msra.mxu1 %v15442_v9  ;;  %v9501_v48 = vadd.f32 %v9500_v29, %v9488_v14  ;;  %v15506_v21 = vor.u32 %v17632_v32, %v15503_v45  ;;  %v15634_v9 = vor.u32 %v17664_v30, %v15631_v15  ;;  %v16231_v31 = vld [vmem:[#allocation16 + $0x3e0] sm:$0xf]  ;;  %v17817_v32 = vld [vmem:[#allocation16 + $0x3ec] sm:$0xf0] }
 0x720   : > { %9740 = vmatpush.bf16.msra.mxu2 %v15570_v50  ;;  %9753 = vmatpush.bf16.msrb.mxu3 %v15698_v24  ;;  %v17628_v50 = vld [vmem:[#allocation14 + $0x100c] sm:$0xf]  ;;  %v16232_v45 = vor.u32 %v17817_v32, %v16231_v31  ;;  %v17781_v28 = vld [vmem:[#allocation16 + $0x2cc] sm:$0xf0]  ;;  %v15815_v42 = vld [vmem:[#allocation16 + $0xa0] sm:$0xf] }
 0x721   : > { %v15490_v19 = vor.u32 %v17628_v50, %v15487_v63  ;;  %v17713_v60 = vld [vmem:[#allocation16 + $0xac] sm:$0xf0]  ;;  %v15895_v32 = vld [vmem:[#allocation16 + $0x140] sm:$0xf] }
 0x722   : > { %v17701_v31 = vld [vmem:[#allocation16 + $0x4c] sm:$0xf0] }
 0x723   : > { %9715 = vmatpush.bf16.msrb.mxu0 %v15298_v25  ;;  %9728 = vmatpush.bf16.msra.mxu1 %v15426_v57  ;;  %v18151_v25 = vld.sshfl [vmem:[#allocation1 + $0x38] sm:$0xff pattern:$0x73625140]  ;;  %v18152_v57 = vld.sshfl [vmem:[#allocation1] sm:$0xff pattern:$0x73625140] }
 0x724   : > { %9741 = vmatpush.bf16.msra.mxu2 %v15554_v55  ;;  %9754 = vmatpush.bf16.msrb.mxu3 %v15682_v7  ;;  %v9489_v24 = vpop.f32.mrf.mxu2  ;;  %v9502_v2 = vpop.f32.mrf.mxu3 }
 0x725   : > { %v16215_v24 = vld [vmem:[#allocation16 + $0x3c0] sm:$0xf]  ;;  %v17813_v2 = vld [vmem:[#allocation16 + $0x3cc] sm:$0xf0] }
 0x726   : > { %v16216_v63 = vor.u32 %v17813_v2, %v16215_v24  ;;  %v15879_v2 = vld [vmem:[#allocation16 + $0x120] sm:$0xf] }
 0x727   : > { %9716 = vmatpush.bf16.msrb.mxu0 %v15282_v27  ;;  %9729 = vmatpush.bf16.msra.mxu1 %v15410_v54 }
 0x728   : > { %9742 = vmatpush.bf16.msra.mxu2 %v15538_v53  ;;  %9755 = vmatpush.bf16.msrb.mxu3 %v15666_v16 }
 0x72b   : > { %9717 = vmatpush.bf16.msrb.mxu0 %v15266_v43  ;;  %9730 = vmatpush.bf16.msra.mxu1 %v15394_v58  ;;  %v17721_v43 = vld [vmem:[#allocation16 + $0xec] sm:$0xf0]  ;;  %v15975_v58 = vld [vmem:[#allocation16 + $0x1e0] sm:$0xf] }
 0x72c   : > { %9743 = vmatpush.bf16.msra.mxu2 %v15522_v40  ;;  %9756 = vmatpush.bf16.msrb.mxu3 %v15650_v0  ;;  %v15848_v12 = vor.u32 %v17721_v43, %v15847_v17  ;;  %v17785_v40 = vld [vmem:[#allocation16 + $0x2ec] sm:$0xf0]  ;;  %v15976_v0 = vor.u32 %v17753_v34, %v15975_v58 }
 0x72d   : > { %v17769_v17 = vld [vmem:[#allocation16 + $0x26c] sm:$0xf0] }
 0x72e   : > { %v17801_v34 = vld [vmem:[#allocation16 + $0x36c] sm:$0xf0] }
 0x72f   : > { %9718 = vmatpush.bf16.msrb.mxu0 %v15250_v20  ;;  %9731 = vmatpush.bf16.msra.mxu1 %v15378_v59  ;;  %v15831_v20 = vld [vmem:[#allocation16 + $0xc0] sm:$0xf]  ;;  %v17717_v59 = vld [vmem:[#allocation16 + $0xcc] sm:$0xf0] }
 0x730   : > { %9744 = vmatpush.bf16.msra.mxu2 %v15506_v21  ;;  %9757 = vmatpush.bf16.msrb.mxu3 %v15634_v9  ;;  %v15832_v38 = vor.u32 %v17717_v59, %v15831_v20  ;;  %v17749_v21 = vld [vmem:[#allocation16 + $0x1cc] sm:$0xf0]  ;;  %v16087_v9 = vld [vmem:[#allocation16 + $0x2c0] sm:$0xf] }
 0x731   : > { %v15960_v44 = vor.u32 %v17749_v21, %v15959_v61  ;;  %v16088_v50 = vor.u32 %v17781_v28, %v16087_v9  ;;  %v16023_v61 = vld [vmem:[#allocation16 + $0x240] sm:$0xf]  ;;  %v17797_v28 = vld [vmem:[#allocation16 + $0x34c] sm:$0xf0] }
 0x732   : > { %v16151_v21 = vld [vmem:[#allocation16 + $0x340] sm:$0xf] }
 0x733   : > { %9719 = vmatpush.bf16.msrb.mxu0 %v15234_v52  ;;  %9732 = vmatpush.bf16.msra.mxu1 %v15362_v3  ;;  %v9513_v10 = vpop.f32.mrf.mxu0  ;;  %v9526_v55 = vpop.f32.mrf.mxu1  ;;  %v15943_v52 = vld [vmem:[#allocation16 + $0x1a0] sm:$0xf]  ;;  %v15816_v3 = vor.u32 %v17713_v60, %v15815_v42  ;;  %v16152_v24 = vor.u32 %v17797_v28, %v16151_v21  ;;  %v17743_v21 = vld [vmem:[#allocation16 + $0x1a4] sm:$0xf]  ;;  %v15945_v28 = vld [vmem:[#allocation16 + $0x1b0] sm:$0xf0] }
 0x734   : > { %9745 = vmatpush.bf16.msra.mxu2 %v15490_v19  ;;  %9758 = vmatpush.bf16.msrb.mxu3 %v15618_v13  ;;  %v9514_v7 = vadd.f32 %v9513_v10, %v9501_v48  ;;  %v16103_v48 = vld [vmem:[#allocation16 + $0x2e0] sm:$0xf]  ;;  %v17745_v19 = vld [vmem:[#allocation16 + $0x1ac] sm:$0xf0] }
 0x735   : > { %v16104_v18 = vor.u32 %v17785_v40, %v16103_v48  ;;  %v16071_v13 = vld [vmem:[#allocation16 + $0x2a0] sm:$0xf]  ;;  %v17809_v10 = vld [vmem:[#allocation16 + $0x3ac] sm:$0xf0] }
 0x736   : > { %9720 = vmatmul.bf16.vlgmr.msrb.gmra.mxu0 %v18150_v46  ;;  %9733 = vmatmul.bf16.vlgmr.msra.gmra.mxu1 %v18151_v25  ;;  %v19964_v26 = vadd.f32 %v9526_v55, %v9514_v7  ;;  %v17777_v46 = vld [vmem:[#allocation16 + $0x2ac] sm:$0xf0]  ;;  %v15944_v25 = vor.u32 %v17745_v19, %v15943_v52  ;;  %v15767_v48 = vld [vmem:[#allocation16 + $0x40] sm:$0xf] }
 0x737   : > { %9746 = vmatmul.bf16.vlgmr.msra.gmra.mxu2 %v18152_v57  ;;  %9759 = vmatmul.bf16.vlgmr.msrb.gmra.mxu3 %v18153_v11  ;;  %v16072_v57 = vor.u32 %v17777_v46, %v16071_v13  ;;  %v16199_v11 = vld [vmem:[#allocation16 + $0x3a0] sm:$0xf]  ;;  %v15768_v20 = vor.u32 %v17701_v31, %v15767_v48  ;;  %v17761_v52 = vld [vmem:[#allocation16 + $0x22c] sm:$0xf0] }
 0x738   : > { %10586 = vmatpush.bf16.msra.mxu0 %v15848_v12  ;;  %10599 = vmatpush.bf16.msrb.mxu1 %v15976_v0  ;;  %v16200_v1 = vor.u32 %v17809_v10, %v16199_v11  ;;  %v16167_v12 = vld [vmem:[#allocation16 + $0x360] sm:$0xf]  ;;  %v17793_v19 = vld [vmem:[#allocation16 + $0x32c] sm:$0xf0] }
 0x739   : > { %10612 = vmatpush.bf16.msrb.mxu2 %v16104_v18  ;;  %10625 = vmatpush.bf16.msra.mxu3 %v16232_v45  ;;  %v16168_v18 = vor.u32 %v17801_v34, %v16167_v12  ;;  %v17733_v45 = vld [vmem:[#allocation16 + $0x14c] sm:$0xf0]  ;;  %v16007_v42 = vld [vmem:[#allocation16 + $0x220] sm:$0xf] }
 0x73a   : > { %v15896_v59 = vor.u32 %v17733_v45, %v15895_v32  ;;  %v16008_v46 = vor.u32 %v17761_v52, %v16007_v42  ;;  %v15863_v11 = vld [vmem:[#allocation16 + $0x100] sm:$0xf]  ;;  %v17811_v45 = vld [vmem:[#allocation16 + $0x3c4] sm:$0xf]  ;;  %v16201_v42 = vld [vmem:[#allocation16 + $0x3b0] sm:$0xf0] }
 0x73b   : > { %v9515_v49 = vpop.f32.mrf.mxu0  ;;  %v9528_v27 = vpop.f32.mrf.mxu1 }
 0x73c   : > { %v9539_v8 = vpop.f32.mrf.mxu2  ;;  %v9552_v39 = vpop.f32.mrf.mxu3  ;;  %10587 = vmatpush.bf16.msra.mxu0 %v15832_v38  ;;  %10600 = vmatpush.bf16.msrb.mxu1 %v15960_v44  ;;  %v15927_v49 = vld [vmem:[#allocation16 + $0x180] sm:$0xf]  ;;  %v17765_v38 = vld [vmem:[#allocation16 + $0x24c] sm:$0xf0] }
 0x73d   : > { %v9540_v23 = vadd.f32 %v9539_v8, %v5896_v4  ;;  %10613 = vmatpush.bf16.msrb.mxu2 %v16088_v50  ;;  %10626 = vmatpush.bf16.msra.mxu3 %v16216_v63  ;;  %v16024_v9 = vor.u32 %v17765_v38, %v16023_v61  ;;  %v15751_v44 = vld [vmem:[#allocation16 + $0x20] sm:$0xf]  ;;  %v17697_v50 = vld [vmem:[#allocation16 + $0x2c] sm:$0xf0]  ;;  %v17711_v61 = vld [vmem:[#allocation16 + $0xa4] sm:$0xf] }
 0x73e   : > { %v17729_v63 = vld [vmem:[#allocation16 + $0x12c] sm:$0xf0]  ;;  %v15752_v60 = vor.u32 %v17697_v50, %v15751_v44  ;;  %v15817_v38 = vld [vmem:[#allocation16 + $0xb0] sm:$0xf0]  ;;  %v17775_v44 = vld [vmem:[#allocation16 + $0x2a4] sm:$0xf] }
 0x73f   : > { %v9553_v54 = vadd.f32 %v9552_v39, %v9540_v23  ;;  %v15799_v39 = vld [vmem:[#allocation16 + $0x80] sm:$0xf]  ;;  %v17709_v23 = vld [vmem:[#allocation16 + $0x8c] sm:$0xf0]  ;;  %v15880_v13 = vor.u32 %v17729_v63, %v15879_v2  ;;  %v16073_v50 = vld [vmem:[#allocation16 + $0x2b0] sm:$0xf0] }
 0x740   : > { %10588 = vmatpush.bf16.msra.mxu0 %v15816_v3  ;;  %10601 = vmatpush.bf16.msrb.mxu1 %v15944_v25  ;;  %v15800_v27 = vor.u32 %v17709_v23, %v15799_v39  ;;  %v16135_v3 = vld [vmem:[#allocation16 + $0x320] sm:$0xf]  ;;  %v17789_v23 = vld [vmem:[#allocation16 + $0x30c] sm:$0xf0]  ;;  %v16076_v2 = vor.u32 %v17775_v44, %v16073_v50  ;;  %v17807_v63 = vld [vmem:[#allocation16 + $0x3a4] sm:$0xf] }
 0x741   : > { %10614 = vmatpush.bf16.msrb.mxu2 %v16072_v57  ;;  %10627 = vmatpush.bf16.msra.mxu3 %v16200_v1  ;;  %v15735_v25 = vld [vmem:[#allocation16] sm:$0xf]  ;;  %v17693_v57 = vld [vmem:[#allocation16 + $0xc] sm:$0xf0]  ;;  %v16136_v10 = vor.u32 %v17793_v19, %v16135_v3  ;;  %v15881_v44 = vld [vmem:[#allocation16 + $0x130] sm:$0xf0] }
 0x742   : > { %v17725_v1 = vld [vmem:[#allocation16 + $0x10c] sm:$0xf0]  ;;  %v16119_v39 = vld [vmem:[#allocation16 + $0x300] sm:$0xf]  ;;  %v17759_v50 = vld [vmem:[#allocation16 + $0x224] sm:$0xf] }
 0x744   : > { %v9541_v35 = vpop.f32.mrf.mxu2  ;;  %v9554_v37 = vpop.f32.mrf.mxu3  ;;  %10589 = vmatpush.bf16.msra.mxu0 %v15800_v27  ;;  %v15864_v27 = vor.u32 %v17725_v1, %v15863_v11  ;;  %v15929_v1 = vld [vmem:[#allocation16 + $0x190] sm:$0xf0] }
 0x745   : > { %v16055_v35 = vld [vmem:[#allocation16 + $0x280] sm:$0xf]  ;;  %v17773_v37 = vld [vmem:[#allocation16 + $0x28c] sm:$0xf0] }
 0x753   : > { %v9565_v53 = vpop.f32.mrf.mxu0  ;;  %v9578_v16 = vpop.f32.mrf.mxu1 }
 0x754   : > { %v9566_v6 = vadd.f32 %v9565_v53, %v9553_v54  ;;  %v17741_v54 = vld [vmem:[#allocation16 + $0x18c] sm:$0xf0] }
 0x755   : > { %v15928_v53 = vor.u32 %v17741_v54, %v15927_v49  ;;  %v15736_v49 = vor.u32 %v17693_v57, %v15735_v25  ;;  %v17739_v25 = vld [vmem:[#allocation16 + $0x184] sm:$0xf] }
 0x756   : > { %v9579_v56 = vadd.f32 %v9578_v16, %v9566_v6  ;;  %v16056_v16 = vor.u32 %v17773_v37, %v16055_v35  ;;  %v16183_v6 = vld [vmem:[#allocation16 + $0x380] sm:$0xf]  ;;  %v16120_v35 = vor.u32 %v17789_v23, %v16119_v39  ;;  %v17719_v37 = vld [vmem:[#allocation16 + $0xe4] sm:$0xf]  ;;  %v15932_v39 = vor.u32 %v17739_v25, %v15929_v1 }
 0x757   : > { %10602 = vmatpush.bf16.msrb.mxu1 %v15928_v53  ;;  %v15849_v53 = vld [vmem:[#allocation16 + $0xf0] sm:$0xf0]  ;;  %v17787_v1 = vld [vmem:[#allocation16 + $0x304] sm:$0xf] }
 0x758   : > { %10615 = vmatpush.bf16.msrb.mxu2 %v16056_v16  ;;  %v17751_v16 = vld [vmem:[#allocation16 + $0x1e4] sm:$0xf] }
 0x75b   : > { %v9567_v47 = vpop.f32.mrf.mxu0  ;;  %v9580_v62 = vpop.f32.mrf.mxu1 }
 0x75c   : > { %v9591_v41 = vpop.f32.mrf.mxu2  ;;  %v9604_v33 = vpop.f32.mrf.mxu3  ;;  %v15911_v47 = vld [vmem:[#allocation16 + $0x160] sm:$0xf] }
 0x75d   : > { %v9592_v29 = vadd.f32 %v9591_v41, %v9579_v56  ;;  %v17805_v56 = vld [vmem:[#allocation16 + $0x38c] sm:$0xf0] }
 0x75e   : > { %v16184_v41 = vor.u32 %v17805_v56, %v16183_v6  ;;  %v15852_v6 = vor.u32 %v17719_v37, %v15849_v53  ;;  %v15977_v56 = vld [vmem:[#allocation16 + $0x1f0] sm:$0xf0]  ;;  %v17735_v37 = vld [vmem:[#allocation16 + $0x164] sm:$0xf] }
 0x75f   : > { %v19969_v51 = vadd.f32 %v9604_v33, %v9592_v29  ;;  %v15783_v33 = vld [vmem:[#allocation16 + $0x60] sm:$0xf]  ;;  %v17705_v29 = vld [vmem:[#allocation16 + $0x6c] sm:$0xf0] }
 0x760   : > { %10628 = vmatpush.bf16.msra.mxu3 %v16184_v41  ;;  %v15784_v62 = vor.u32 %v17705_v29, %v15783_v33  ;;  %v17783_v41 = vld [vmem:[#allocation16 + $0x2e4] sm:$0xf]  ;;  %v16105_v33 = vld [vmem:[#allocation16 + $0x2f0] sm:$0xf0]  ;;  %v15980_v29 = vor.u32 %v17751_v16, %v15977_v56 }
 0x761   : > { %v15913_v16 = vld [vmem:[#allocation16 + $0x170] sm:$0xf0] }
 0x762   : > { %10590 = vmatpush.bf16.msra.mxu0 %v15784_v62  ;;  %v17815_v62 = vld [vmem:[#allocation16 + $0x3e4] sm:$0xf]  ;;  %v16041_v56 = vld [vmem:[#allocation16 + $0x270] sm:$0xf0] }
 0x764   : > { %v9593_v14 = vpop.f32.mrf.mxu2  ;;  %v9606_v5 = vpop.f32.mrf.mxu3  ;;  %10629 = vmatpush.bf16.msra.mxu3 %v16168_v18  ;;  %v16089_v18 = vld [vmem:[#allocation16 + $0x2d0] sm:$0xf0] }
 0x765   : > { %v17737_v14 = vld [vmem:[#allocation16 + $0x16c] sm:$0xf0]  ;;  %v16039_v5 = vld [vmem:[#allocation16 + $0x260] sm:$0xf] }
 0x766   : > { %v15912_v43 = vor.u32 %v17737_v14, %v15911_v47  ;;  %v16040_v58 = vor.u32 %v17769_v17, %v16039_v5  ;;  %10591 = vmatpush.bf16.msra.mxu0 %v15768_v20  ;;  %v16108_v47 = vor.u32 %v17783_v41, %v16105_v33  ;;  %v16233_v14 = vld [vmem:[#allocation16 + $0x3f0] sm:$0xf0]  ;;  %v17715_v17 = vld [vmem:[#allocation16 + $0xc4] sm:$0xf]  ;;  %v15916_v33 = vor.u32 %v17735_v37, %v15913_v16 }
 0x767   : > { %v16236_v5 = vor.u32 %v17815_v62, %v16233_v14  ;;  %v16217_v20 = vld [vmem:[#allocation16 + $0x3d0] sm:$0xf0] }
 0x768   : > { %10603 = vmatpush.bf16.msrb.mxu1 %v15912_v43  ;;  %10616 = vmatpush.bf16.msrb.mxu2 %v16040_v58  ;;  %v15833_v43 = vld [vmem:[#allocation16 + $0xd0] sm:$0xf0]  ;;  %v17747_v58 = vld [vmem:[#allocation16 + $0x1c4] sm:$0xf] }
 0x769   : > { %10630 = vmatpush.bf16.msra.mxu3 %v16152_v24  ;;  %v15836_v48 = vor.u32 %v17715_v17, %v15833_v43  ;;  %v15948_v24 = vor.u32 %v17743_v21, %v15945_v28  ;;  %v16169_v62 = vld [vmem:[#allocation16 + $0x370] sm:$0xf0]  ;;  %v17699_v17 = vld [vmem:[#allocation16 + $0x44] sm:$0xf] }
 0x76a   : > { %10592 = vmatpush.bf16.msra.mxu0 %v15752_v60  ;;  %v16204_v60 = vor.u32 %v17807_v63, %v16201_v42  ;;  %v15769_v43 = vld [vmem:[#allocation16 + $0x50] sm:$0xf0]  ;;  %v17791_v63 = vld [vmem:[#allocation16 + $0x324] sm:$0xf] }
 0x76b   : > { %v15753_v21 = vld [vmem:[#allocation16 + $0x30] sm:$0xf0] }
 0x76c   : > { %10604 = vmatpush.bf16.msrb.mxu1 %v15896_v59  ;;  %10617 = vmatpush.bf16.msrb.mxu2 %v16024_v9  ;;  %v16220_v59 = vor.u32 %v17811_v45, %v16217_v20  ;;  %v15820_v9 = vor.u32 %v17711_v61, %v15817_v38  ;;  %v17795_v45 = vld [vmem:[#allocation16 + $0x344] sm:$0xf]  ;;  %v16153_v20 = vld [vmem:[#allocation16 + $0x350] sm:$0xf0] }
 0x76d   : > { %10631 = vmatpush.bf16.msra.mxu3 %v16136_v10  ;;  %v17695_v38 = vld [vmem:[#allocation16 + $0x24] sm:$0xf]  ;;  %v16137_v42 = vld [vmem:[#allocation16 + $0x330] sm:$0xf0] }
 0x76e   : > { %10593 = vmatpush.bf16.msra.mxu0 %v15736_v49  ;;  %v15756_v28 = vor.u32 %v17695_v38, %v15753_v21 }
 0x770   : > { %10605 = vmatpush.bf16.msrb.mxu1 %v15880_v13  ;;  %10618 = vmatpush.bf16.msrb.mxu2 %v16008_v46  ;;  %v17707_v13 = vld [vmem:[#allocation16 + $0x84] sm:$0xf]  ;;  %v15801_v46 = vld [vmem:[#allocation16 + $0x90] sm:$0xf0] }
 0x771   : > { %10632 = vmatpush.bf16.msra.mxu3 %v16120_v35  ;;  %v15804_v10 = vor.u32 %v17707_v13, %v15801_v46  ;;  %v15785_v35 = vld [vmem:[#allocation16 + $0x70] sm:$0xf0]  ;;  %v17723_v46 = vld [vmem:[#allocation16 + $0x104] sm:$0xf] }
 0x772   : > { %10638 = vmatpush.bf16.msrb.mxu0 %v15852_v6  ;;  %v17767_v6 = vld [vmem:[#allocation16 + $0x264] sm:$0xf]  ;;  %v15737_v13 = vld [vmem:[#allocation16 + $0x10] sm:$0xf0] }
 0x773   : > { %v19971_v30 = vpop.f32.mrf.mxu0  ;;  %v19973_v15 = vpop.f32.mrf.mxu1 }
 0x774   : > { %10606 = vmatpush.bf16.msrb.mxu1 %v15864_v27  ;;  %v9618_v52 = vadd.f32 %v19971_v30, %v19969_v51  ;;  %v17803_v51 = vld [vmem:[#allocation16 + $0x384] sm:$0xf]  ;;  %v16185_v30 = vld [vmem:[#allocation16 + $0x390] sm:$0xf0] }
 0x775   : > { %10677 = vmatpush.bf16.msrb.mxu3 %v16236_v5  ;;  %v16188_v49 = vor.u32 %v17803_v51, %v16185_v30 }
 0x776   : > { %10639 = vmatpush.bf16.msrb.mxu0 %v15836_v48  ;;  %v9631_v27 = vadd.f32 %v19973_v15, %v9618_v52  ;;  %v15772_v48 = vor.u32 %v17699_v17, %v15769_v43  ;;  %v16140_v52 = vor.u32 %v17791_v63, %v16137_v42 }
 0x778   : > { %10651 = vmatpush.bf16.msra.mxu1 %v15980_v29  ;;  %v16044_v29 = vor.u32 %v17767_v6, %v16041_v56  ;;  %v9766_v56 = vmax.f32 %v19964_v26, 0.0 }
 0x779   : > { %10678 = vmatpush.bf16.msrb.mxu3 %v16220_v59  ;;  %v16156_v59 = vor.u32 %v17795_v45, %v16153_v20  ;;  %v17786_v45 = vld [vmem:[#allocation16 + $0x2f4] sm:$0xf0]  ;;  %v16239_v20 = vld [vmem:[#allocation16 + $0x3e8] sm:$0xf] }
 0x77a   : > { %10640 = vmatpush.bf16.msrb.mxu0 %v15820_v9  ;;  %v17727_v9 = vld [vmem:[#allocation16 + $0x124] sm:$0xf] }
 0x77b   : > { %v9619_v4 = vpop.f32.mrf.mxu0  ;;  %v9632_v8 = vpop.f32.mrf.mxu1 }
 0x77c   : > { %v19975_v55 = vpop.f32.mrf.mxu2  ;;  %v19977_v7 = vpop.f32.mrf.mxu3  ;;  %v15991_v4 = vld [vmem:[#allocation16 + $0x200] sm:$0xf]  ;;  %v17757_v8 = vld [vmem:[#allocation16 + $0x20c] sm:$0xf0] }
 0x77d   : > { %v15992_v54 = vor.u32 %v17757_v8, %v15991_v4  ;;  %v17771_v4 = vld [vmem:[#allocation16 + $0x284] sm:$0xf]  ;;  %v16057_v8 = vld [vmem:[#allocation16 + $0x290] sm:$0xf0]  ;;  %10679 = vmatpush.bf16.msrb.mxu3 %v16204_v60  ;;  %v9644_v41 = vadd.f32 %v19975_v55, %v9631_v27 }
 0x77e   : > { %v16060_v23 = vor.u32 %v17771_v4, %v16057_v8  ;;  %10641 = vmatpush.bf16.msrb.mxu0 %v15804_v10  ;;  %v17691_v60 = vld [vmem:[#allocation16 + $0x4] sm:$0xf]  ;;  %v15993_v10 = vld [vmem:[#allocation16 + $0x210] sm:$0xf0] }
 0x77f   : > { %10619 = vmatpush.bf16.msrb.mxu2 %v15992_v54  ;;  %v17703_v54 = vld [vmem:[#allocation16 + $0x64] sm:$0xf]  ;;  %v9657_v55 = vadd.f32 %v19977_v7, %v9644_v41  ;;  %v15884_v7 = vor.u32 %v17727_v9, %v15881_v44 }
 0x780   : > { %v15788_v53 = vor.u32 %v17703_v54, %v15785_v35 }
 0x781   : > { %10680 = vmatpush.bf16.msrb.mxu3 %v16188_v49 }
 0x782   : > { %10642 = vmatpush.bf16.msrb.mxu0 %v15788_v53 }
 0x783   : > { %10664 = vmatpush.bf16.msra.mxu2 %v16108_v47  ;;  %v17799_v47 = vld [vmem:[#allocation16 + $0x364] sm:$0xf] }
 0x784   : > { %v9645_v40 = vpop.f32.mrf.mxu2  ;;  %v9658_v0 = vpop.f32.mrf.mxu3  ;;  %v16172_v14 = vor.u32 %v17799_v47, %v16169_v62 }
 0x785   : > { %v15961_v40 = vld [vmem:[#allocation16 + $0x1d0] sm:$0xf0]  ;;  %v17779_v0 = vld [vmem:[#allocation16 + $0x2c4] sm:$0xf] }
 0x786   : > { %v15964_v31 = vor.u32 %v17747_v58, %v15961_v40  ;;  %v16092_v32 = vor.u32 %v17779_v0, %v16089_v18  ;;  %v17731_v58 = vld [vmem:[#allocation16 + $0x144] sm:$0xf]  ;;  %v15897_v40 = vld [vmem:[#allocation16 + $0x150] sm:$0xf0]  ;;  %10681 = vmatpush.bf16.msrb.mxu3 %v16172_v14  ;;  %10643 = vmatpush.bf16.msrb.mxu0 %v15772_v48 }
 0x787   : > { %v17763_v0 = vld [vmem:[#allocation16 + $0x244] sm:$0xf]  ;;  %v16025_v18 = vld [vmem:[#allocation16 + $0x250] sm:$0xf0] }
 0x788   : > { %10652 = vmatpush.bf16.msra.mxu1 %v15964_v31  ;;  %10665 = vmatpush.bf16.msra.mxu2 %v16092_v32  ;;  %v15900_v31 = vor.u32 %v17731_v58, %v15897_v40  ;;  %v16028_v32 = vor.u32 %v17763_v0, %v16025_v18  ;;  %v15855_v40 = vld [vmem:[#allocation16 + $0xe8] sm:$0xf]  ;;  %v17722_v18 = vld [vmem:[#allocation16 + $0xf4] sm:$0xf0] }
 0x789   : > { %v15856_v9 = vor.u32 %v17722_v18, %v15855_v40  ;;  %v17802_v40 = vld [vmem:[#allocation16 + $0x374] sm:$0xf0] }
 0x78a   : > { %10682 = vmatpush.bf16.msrb.mxu3 %v16156_v59  ;;  %10644 = vmatpush.bf16.msrb.mxu0 %v15756_v28 }
 0x78c   : > { %10653 = vmatpush.bf16.msra.mxu1 %v15948_v24  ;;  %10666 = vmatpush.bf16.msra.mxu2 %v16076_v2  ;;  %v16009_v24 = vld [vmem:[#allocation16 + $0x230] sm:$0xf0] }
 0x78d   : > { %v16012_v2 = vor.u32 %v17759_v50, %v16009_v24 }
 0x78e   : > { %10683 = vmatpush.bf16.msrb.mxu3 %v16140_v52  ;;  %v17750_v52 = vld [vmem:[#allocation16 + $0x1d4] sm:$0xf0] }
 0x790   : > { %10654 = vmatpush.bf16.msra.mxu1 %v15932_v39  ;;  %10667 = vmatpush.bf16.msra.mxu2 %v16060_v23  ;;  %v16121_v39 = vld [vmem:[#allocation16 + $0x310] sm:$0xf0] }
 0x791   : > { %v16124_v51 = vor.u32 %v17787_v1, %v16121_v39  ;;  %v17714_v1 = vld [vmem:[#allocation16 + $0xb4] sm:$0xf0]  ;;  %v15951_v39 = vld [vmem:[#allocation16 + $0x1a8] sm:$0xf] }
 0x793   : > { %v19979_v12 = vpop.f32.mrf.mxu0  ;;  %v19981_v34 = vpop.f32.mrf.mxu1  ;;  %10684 = vmatpush.bf16.msrb.mxu3 %v16124_v51  ;;  %v16079_v51 = vld [vmem:[#allocation16 + $0x2a8] sm:$0xf] }
 0x794   : > { %10655 = vmatpush.bf16.msra.mxu1 %v15916_v33  ;;  %10668 = vmatpush.bf16.msra.mxu2 %v16044_v29  ;;  %v9670_v61 = vadd.f32 %v19979_v12, %v9657_v55  ;;  %v15865_v12 = vld [vmem:[#allocation16 + $0x110] sm:$0xf0]  ;;  %v9773_v33 = vrot.slane %v9766_v56, 4  ;;  %v15983_v55 = vld [vmem:[#allocation16 + $0x1e8] sm:$0xf] }
 0x795   : > { %v15868_v4 = vor.u32 %v17723_v46, %v15865_v12  ;;  %v17782_v46 = vld [vmem:[#allocation16 + $0x2d4] sm:$0xf0]  ;;  %v16223_v12 = vld [vmem:[#allocation16 + $0x3c8] sm:$0xf] }
 0x796   : > { %v9683_v25 = vadd.f32 %v19981_v34, %v9670_v61  ;;  %v17742_v56 = vld [vmem:[#allocation16 + $0x194] sm:$0xf0] }
 0x798   : > { %10656 = vmatpush.bf16.msra.mxu1 %v15900_v31  ;;  %10669 = vmatpush.bf16.msra.mxu2 %v16028_v32  ;;  %v17754_v31 = vld [vmem:[#allocation16 + $0x1f4] sm:$0xf0]  ;;  %v16111_v32 = vld [vmem:[#allocation16 + $0x2e8] sm:$0xf] }
 0x799   : > { %v16112_v63 = vor.u32 %v17786_v45, %v16111_v32 }
 0x79b   : > { %v9671_v57 = vpop.f32.mrf.mxu0  ;;  %v9684_v11 = vpop.f32.mrf.mxu1 }
 0x79c   : > { %v19985_v3 = vpop.f32.mrf.mxu2  ;;  %v19987_v19 = vpop.f32.mrf.mxu3  ;;  %v15740_v57 = vor.u32 %v17691_v60, %v15737_v13  ;;  %v17755_v11 = vld [vmem:[#allocation16 + $0x204] sm:$0xf]  ;;  %10657 = vmatpush.bf16.msra.mxu1 %v15884_v7  ;;  %10670 = vmatpush.bf16.msra.mxu2 %v16012_v2  ;;  %v15839_v7 = vld [vmem:[#allocation16 + $0xc8] sm:$0xf]  ;;  %v17718_v2 = vld [vmem:[#allocation16 + $0xd4] sm:$0xf0] }
 0x79d   : > { %v15996_v8 = vor.u32 %v17755_v11, %v15993_v10  ;;  %v9696_v23 = vadd.f32 %v19985_v3, %v9683_v25  ;;  %v15967_v60 = vld [vmem:[#allocation16 + $0x1c8] sm:$0xf]  ;;  %v17814_v25 = vld [vmem:[#allocation16 + $0x3d4] sm:$0xf0] }
 0x79e   : > { %10645 = vmatpush.bf16.msrb.mxu0 %v15740_v57  ;;  %v16095_v13 = vld [vmem:[#allocation16 + $0x2c8] sm:$0xf]  ;;  %v15840_v57 = vor.u32 %v17718_v2, %v15839_v7  ;;  %v15968_v11 = vor.u32 %v17750_v52, %v15967_v60  ;;  %v17698_v2 = vld [vmem:[#allocation16 + $0x34] sm:$0xf0] }
 0x79f   : > { %v9709_v30 = vadd.f32 %v19987_v19, %v9696_v23  ;;  %v15823_v10 = vld [vmem:[#allocation16 + $0xa8] sm:$0xf]  ;;  %v17746_v23 = vld [vmem:[#allocation16 + $0x1b4] sm:$0xf0] }
 0x7a0   : > { %10658 = vmatpush.bf16.msra.mxu1 %v15868_v4  ;;  %10671 = vmatpush.bf16.msra.mxu2 %v15996_v8  ;;  %v16096_v4 = vor.u32 %v17782_v46, %v16095_v13  ;;  %v16224_v8 = vor.u32 %v17814_v25, %v16223_v12  ;;  %v15759_v7 = vld [vmem:[#allocation16 + $0x28] sm:$0xf]  ;;  %v17730_v52 = vld [vmem:[#allocation16 + $0x134] sm:$0xf0] }
 0x7a1   : > { %v15887_v60 = vld [vmem:[#allocation16 + $0x128] sm:$0xf]  ;;  %v17762_v46 = vld [vmem:[#allocation16 + $0x234] sm:$0xf0] }
 0x7a2   : > { %v16015_v13 = vld [vmem:[#allocation16 + $0x228] sm:$0xf]  ;;  %v17794_v25 = vld [vmem:[#allocation16 + $0x334] sm:$0xf0] }
 0x7a3   : > { %v16143_v12 = vld [vmem:[#allocation16 + $0x328] sm:$0xf] }
 0x7a4   : > { %v9697_v5 = vpop.f32.mrf.mxu2  ;;  %v9710_v15 = vpop.f32.mrf.mxu3 }
 0x7b3   : > { %v9721_v34 = vpop.f32.mrf.mxu0  ;;  %v9734_v49 = vpop.f32.mrf.mxu1 }
 0x7b4   : > { %v9722_v27 = vadd.f32 %v9721_v34, %v9709_v30  ;;  %v17778_v30 = vld [vmem:[#allocation16 + $0x2b4] sm:$0xf0]  ;;  %v16207_v34 = vld [vmem:[#allocation16 + $0x3a8] sm:$0xf] }
 0x7b6   : > { %v9735_v54 = vadd.f32 %v9734_v49, %v9722_v27  ;;  %v17810_v49 = vld [vmem:[#allocation16 + $0x3b4] sm:$0xf0]  ;;  %v15824_v27 = vor.u32 %v17714_v1, %v15823_v10  ;;  %v15888_v10 = vor.u32 %v17730_v52, %v15887_v60  ;;  %v17740_v60 = vld [vmem:[#allocation16 + $0x18c] sm:$0xf]  ;;  %v15937_v52 = vld [vmem:[#allocation16 + $0x198] sm:$0xf0] }
 0x7b7   : > { %v17694_v1 = vld [vmem:[#allocation16 + $0x14] sm:$0xf0] }
 0x7ba   : > { %v9747_v35 = vpop.f32.mrf.mxu2  ;;  %v9760_v37 = vpop.f32.mrf.mxu3 }
 0x7bb   : > { %v9748_v53 = vadd.f32 %v9747_v35, %v9735_v54  ;;  %v9723_v16 = vpop.f32.mrf.mxu0  ;;  %v9736_v6 = vpop.f32.mrf.mxu1  ;;  %v15952_v54 = vor.u32 %v17746_v23, %v15951_v39  ;;  %v15807_v35 = vld [vmem:[#allocation16 + $0x88] sm:$0xf]  ;;  %v16016_v39 = vor.u32 %v17762_v46, %v16015_v13  ;;  %v16144_v23 = vor.u32 %v17794_v25, %v16143_v12  ;;  %v17772_v13 = vld [vmem:[#allocation16 + $0x28c] sm:$0xf]  ;;  %v16065_v46 = vld [vmem:[#allocation16 + $0x298] sm:$0xf0] }
 0x7bc   : > { %v16208_v16 = vor.u32 %v17810_v49, %v16207_v34  ;;  %v15935_v6 = vld [vmem:[#allocation16 + $0x188] sm:$0xf]  ;;  %v17790_v49 = vld [vmem:[#allocation16 + $0x314] sm:$0xf0]  ;;  %v17804_v12 = vld [vmem:[#allocation16 + $0x38c] sm:$0xf] }
 0x7bd   : > { %v9761_v3 = vadd.f32 %v9760_v37, %v9748_v53  ;;  %v17710_v37 = vld [vmem:[#allocation16 + $0x94] sm:$0xf0]  ;;  %v16080_v53 = vor.u32 %v17778_v30, %v16079_v51  ;;  %v15999_v51 = vld [vmem:[#allocation16 + $0x208] sm:$0xf]  ;;  %v16193_v25 = vld [vmem:[#allocation16 + $0x398] sm:$0xf0] }
 0x7be   : > { %v17758_v30 = vld [vmem:[#allocation16 + $0x214] sm:$0xf0]  ;;  %v16127_v34 = vld [vmem:[#allocation16 + $0x308] sm:$0xf] }
 0x7bf   : > { %v9767_v41 = vmax.f32 %v9761_v3, 0.0  ;;  %v16063_v3 = vld [vmem:[#allocation16 + $0x288] sm:$0xf] }
 0x7c1   : > { %v9774_v29 = vrot.slane %v9767_v41, 2  ;;  %v17774_v41 = vld [vmem:[#allocation16 + $0x294] sm:$0xf0] }
 0x7c2   : > { %v9749_v47 = vpop.f32.mrf.mxu2  ;;  %v9762_v19 = vpop.f32.mrf.mxu3 }
 0x7c3   : > { %v9776_v62 = vsel %vm20193_vm9, %v9773_v33, %v9774_v29  ;;  %v9780_v14 = vsel %vm20194_vm11, %v9774_v29, %v9773_v33  ;;  %v16191_v33 = vld [vmem:[#allocation16 + $0x388] sm:$0xf]  ;;  %v17806_v29 = vld [vmem:[#allocation16 + $0x394] sm:$0xf0]  ;;  %v15808_v47 = vor.u32 %v17710_v37, %v15807_v35  ;;  %v15936_v19 = vor.u32 %v17742_v56, %v15935_v6  ;;  %v17752_v35 = vld [vmem:[#allocation16 + $0x1ec] sm:$0xf] }
 0x7c4   : > { %v9778_v5 = vsel %vm9777_vm5, %v19935_v36, %v9776_v62  ;;  %v9782_v15 = vsel %vm9781_vm6, %v19938_v22, %v9780_v14  ;;  %v17818_v36 = vld [vmem:[#allocation16 + $0x3f4] sm:$0xf0]  ;;  %v15984_v22 = vor.u32 %v17754_v31, %v15983_v55  ;;  %v15791_v62 = vld [vmem:[#allocation16 + $0x68] sm:$0xf]  ;;  %v15985_v37 = vld [vmem:[#allocation16 + $0x1f8] sm:$0xf0] }
 0x7c5   : > { %v9783_v17 = vrot.slane %v9782_v15, 2  ;;  %v15731_v43 = vrot.slane %v9778_v5, 9  ;;  %v16240_v42 = vor.u32 %v17818_v36, %v16239_v20  ;;  %v17706_v14 = vld [vmem:[#allocation16 + $0x74] sm:$0xf0]  ;;  %v16192_v15 = vor.u32 %v17806_v29, %v16191_v33  ;;  %v15775_v55 = vld [vmem:[#allocation16 + $0x48] sm:$0xf] }
 0x7c6   : > { %v17702_v31 = vld [vmem:[#allocation16 + $0x54] sm:$0xf0]  ;;  %v15903_v20 = vld [vmem:[#allocation16 + $0x148] sm:$0xf]  ;;  %v16113_v56 = vld [vmem:[#allocation16 + $0x2f8] sm:$0xf0]  ;;  %v16000_v33 = vor.u32 %v17758_v30, %v15999_v51  ;;  %v16128_v29 = vor.u32 %v17790_v49, %v16127_v34 }
 0x7c7   : > { %v15732_v58 = vrot.slane %v9783_v17, 9  ;;  %v9792_v26 = vmax.f32 %v9778_v5, %v15731_v43  ;;  %v16064_v5 = vor.u32 %v17774_v41, %v16063_v3  ;;  %v17738_v43 = vld [vmem:[#allocation16 + $0x174] sm:$0xf0]  ;;  %v17816_v3 = vld [vmem:[#allocation16 + $0x3ec] sm:$0xf] }
 0x7c8   : > { %v17798_v36 = vld [vmem:[#allocation16 + $0x354] sm:$0xf0]  ;;  %v16241_v41 = vld [vmem:[#allocation16 + $0x3f8] sm:$0xf0]  ;;  %v17768_v51 = vld [vmem:[#allocation16 + $0x26c] sm:$0xf] }
 0x7c9   : > { %v9793_v48 = vmax.f32 %v9783_v17, %v15732_v58  ;;  %v15919_v17 = vld [vmem:[#allocation16 + $0x168] sm:$0xf]  ;;  %v16049_v30 = vld [vmem:[#allocation16 + $0x278] sm:$0xf0]  ;;  %v17800_v34 = vld [vmem:[#allocation16 + $0x36c] sm:$0xf] }
 0x7ca   : > { %v16047_v58 = vld [vmem:[#allocation16 + $0x268] sm:$0xf]  ;;  %v15920_v18 = vor.u32 %v17738_v43, %v15919_v17  ;;  %v17748_v17 = vld [vmem:[#allocation16 + $0x1cc] sm:$0xf]  ;;  %v15969_v43 = vld [vmem:[#allocation16 + $0x1d8] sm:$0xf0] }
 0x7cb   : > { %v9794_v0 = vmax.f32 %v9792_v26, %v9793_v48  ;;  %v17770_v26 = vld [vmem:[#allocation16 + $0x274] sm:$0xf0]  ;;  %v16175_v48 = vld [vmem:[#allocation16 + $0x368] sm:$0xf]  ;;  %v16177_v49 = vld [vmem:[#allocation16 + $0x378] sm:$0xf0] }
 0x7cc   : > { %v16048_v32 = vor.u32 %v17770_v26, %v16047_v58  ;;  %v16176_v45 = vor.u32 %v17802_v40, %v16175_v48  ;;  %v17780_v58 = vld [vmem:[#allocation16 + $0x2cc] sm:$0xf]  ;;  %v16097_v26 = vld [vmem:[#allocation16 + $0x2d8] sm:$0xf0] }
 0x7cd   : > { %v9796_v59 = vperm.slane %v9794_v0, 0  ;;  %v9797_v61 = vperm.slane %v9794_v0, 2  ;;  %v9798_v38 = vperm.slane %v9794_v0, 4  ;;  %v9799_v21 = vperm.slane %v9794_v0, 6  ;;  %v17812_v48 = vld [vmem:[#allocation16 + $0x3cc] sm:$0xf] }
 0x7ce   : > { %v15792_v0 = vor.u32 %v17706_v14, %v15791_v62  ;;  %v17716_v62 = vld [vmem:[#allocation16 + $0xcc] sm:$0xf]  ;;  %v15841_v14 = vld [vmem:[#allocation16 + $0xd8] sm:$0xf0] }
 0x7cf   : > { %v20001_v28 = vpack.c.bf16 %v9796_v59, %v9796_v59  ;;  %v20003_v44 = vpack.c.bf16 %v9797_v61, %v9797_v61  ;;  %v20005_v50 = vpack.c.bf16 %v9798_v38, %v9798_v38  ;;  %v20007_v24 = vpack.c.bf16 %v9799_v21, %v9799_v21  ;;  %v17734_v59 = vld [vmem:[#allocation16 + $0x154] sm:$0xf0]  ;;  %v16031_v61 = vld [vmem:[#allocation16 + $0x248] sm:$0xf]  ;;  %v16225_v40 = vld [vmem:[#allocation16 + $0x3d8] sm:$0xf0] }
 0x7d0   : > { %v17766_v38 = vld [vmem:[#allocation16 + $0x254] sm:$0xf0]  ;;  %v16159_v21 = vld [vmem:[#allocation16 + $0x348] sm:$0xf] }
 0x7d1   : > { %10594 = vmatmul.bf16.vlgmr.msra.gmra.mxu0 %v20001_v28  ;;  %10607 = vmatmul.bf16.vlgmr.msrb.gmra.mxu1 %v20003_v44 }
 0x7d2   : > { %10620 = vmatmul.bf16.vlgmr.msrb.gmra.mxu2 %v20005_v50  ;;  %10633 = vmatmul.bf16.vlgmr.msra.gmra.mxu3 %v20007_v24 }
 0x7d3   : > { %10690 = vmatpush.bf16.msra.mxu0 %v15856_v9  ;;  %10703 = vmatpush.bf16.msrb.mxu1 %v15984_v22  ;;  %v15776_v9 = vor.u32 %v17702_v31, %v15775_v55  ;;  %v15904_v22 = vor.u32 %v17734_v59, %v15903_v20  ;;  %v17712_v55 = vld [vmem:[#allocation16 + $0xac] sm:$0xf]  ;;  %v15825_v31 = vld [vmem:[#allocation16 + $0xb8] sm:$0xf0] }
 0x7d4   : > { %10716 = vmatpush.bf16.msrb.mxu2 %v16112_v63  ;;  %10729 = vmatpush.bf16.msra.mxu3 %v16240_v42  ;;  %v16032_v63 = vor.u32 %v17766_v38, %v16031_v61  ;;  %v16160_v42 = vor.u32 %v17798_v36, %v16159_v21  ;;  %v17744_v20 = vld [vmem:[#allocation16 + $0x1ac] sm:$0xf]  ;;  %v15953_v59 = vld [vmem:[#allocation16 + $0x1b8] sm:$0xf0] }
 0x7d5   : > { %v17776_v61 = vld [vmem:[#allocation16 + $0x2ac] sm:$0xf]  ;;  %v16081_v38 = vld [vmem:[#allocation16 + $0x2b8] sm:$0xf0] }
 0x7d6   : > { %v17808_v21 = vld [vmem:[#allocation16 + $0x3ac] sm:$0xf]  ;;  %v16209_v36 = vld [vmem:[#allocation16 + $0x3b8] sm:$0xf0] }
 0x7d7   : > { %10691 = vmatpush.bf16.msra.mxu0 %v15840_v57  ;;  %10704 = vmatpush.bf16.msrb.mxu1 %v15968_v11  ;;  %v15743_v57 = vld [vmem:[#allocation16 + $0x8] sm:$0xf]  ;;  %v15760_v11 = vor.u32 %v17698_v2, %v15759_v7  ;;  %v17708_v7 = vld [vmem:[#allocation16 + $0x8c] sm:$0xf]  ;;  %v15809_v2 = vld [vmem:[#allocation16 + $0x98] sm:$0xf0] }
 0x7d8   : > { %10717 = vmatpush.bf16.msrb.mxu2 %v16096_v4  ;;  %10730 = vmatpush.bf16.msra.mxu3 %v16224_v8  ;;  %v15871_v4 = vld [vmem:[#allocation16 + $0x108] sm:$0xf]  ;;  %v17726_v8 = vld [vmem:[#allocation16 + $0x114] sm:$0xf0] }
 0x7d9   : > { %v15872_v6 = vor.u32 %v17726_v8, %v15871_v4  ;;  %v16068_v4 = vor.u32 %v17772_v13, %v16065_v46  ;;  %v16196_v8 = vor.u32 %v17804_v12, %v16193_v25  ;;  %v16343_v46 = vld [vmem:[#allocation19 + $0xc0] sm:$0xf]  ;;  %v17845_v25 = vld [vmem:[#allocation19 + $0xcc] sm:$0xf0] }
 0x7db   : > { %10692 = vmatpush.bf16.msra.mxu0 %v15824_v27  ;;  %10705 = vmatpush.bf16.msrb.mxu1 %v15952_v54  ;;  %v17720_v27 = vld [vmem:[#allocation16 + $0xec] sm:$0xf]  ;;  %v15857_v54 = vld [vmem:[#allocation16 + $0xf8] sm:$0xf0] }
 0x7dc   : > { %10718 = vmatpush.bf16.msrb.mxu2 %v16080_v53  ;;  %10731 = vmatpush.bf16.msra.mxu3 %v16208_v16  ;;  %v17784_v53 = vld [vmem:[#allocation16 + $0x2ec] sm:$0xf]  ;;  %v15744_v16 = vor.u32 %v17694_v1, %v15743_v57  ;;  %v15812_v57 = vor.u32 %v17708_v7, %v15809_v2  ;;  %v15793_v1 = vld [vmem:[#allocation16 + $0x78] sm:$0xf0]  ;;  %v16487_v7 = vld [vmem:[#allocation19 + $0x1e0] sm:$0xf] }
 0x7dd   : > { %v17881_v2 = vld [vmem:[#allocation19 + $0x1ec] sm:$0xf0] }
 0x7de   : > { %v16488_v12 = vor.u32 %v17881_v2, %v16487_v7  ;;  %v16375_v2 = vld [vmem:[#allocation19 + $0x100] sm:$0xf] }
 0x7df   : > { %10693 = vmatpush.bf16.msra.mxu0 %v15808_v47  ;;  %10706 = vmatpush.bf16.msrb.mxu1 %v15936_v19  ;;  %v15860_v47 = vor.u32 %v17720_v27, %v15857_v54  ;;  %v15988_v19 = vor.u32 %v17752_v35, %v15985_v37  ;;  %v17700_v35 = vld [vmem:[#allocation16 + $0x4c] sm:$0xf]  ;;  %v15777_v37 = vld [vmem:[#allocation16 + $0x58] sm:$0xf0] }
 0x7e0   : > { %10719 = vmatpush.bf16.msrb.mxu2 %v16064_v5  ;;  %10732 = vmatpush.bf16.msra.mxu3 %v16192_v15  ;;  %v16116_v5 = vor.u32 %v17784_v53, %v16113_v56  ;;  %v16244_v15 = vor.u32 %v17816_v3, %v16241_v41  ;;  %v16052_v53 = vor.u32 %v17768_v51, %v16049_v30  ;;  %v15905_v56 = vld [vmem:[#allocation16 + $0x158] sm:$0xf0]  ;;  %v17764_v3 = vld [vmem:[#allocation16 + $0x24c] sm:$0xf]  ;;  %v16455_v30 = vld [vmem:[#allocation19 + $0x1a0] sm:$0xf] }
 0x7e1   : > { %10646 = vmatmul.bf16.vlgmr.msrb.gmra.mxu0 %v20001_v28  ;;  %10659 = vmatmul.bf16.vlgmr.msra.gmra.mxu1 %v20003_v44  ;;  %v16033_v41 = vld [vmem:[#allocation16 + $0x258] sm:$0xf0] }
 0x7e2   : > { %10672 = vmatmul.bf16.vlgmr.msra.gmra.mxu2 %v20005_v50  ;;  %10685 = vmatmul.bf16.vlgmr.msrb.gmra.mxu3 %v20007_v24 }
 0x7e3   : > { %10694 = vmatpush.bf16.msra.mxu0 %v15792_v0  ;;  %10707 = vmatpush.bf16.msrb.mxu1 %v15920_v18  ;;  %v15844_v0 = vor.u32 %v17716_v62, %v15841_v14  ;;  %v15972_v18 = vor.u32 %v17748_v17, %v15969_v43  ;;  %v17696_v62 = vld [vmem:[#allocation16 + $0x2c] sm:$0xf]  ;;  %v15761_v14 = vld [vmem:[#allocation16 + $0x38] sm:$0xf0] }
 0x7e4   : > { %10720 = vmatpush.bf16.msrb.mxu2 %v16048_v32  ;;  %10733 = vmatpush.bf16.msra.mxu3 %v16176_v45  ;;  %v16100_v32 = vor.u32 %v17780_v58, %v16097_v26  ;;  %v16228_v45 = vor.u32 %v17812_v48, %v16225_v40  ;;  %v17728_v17 = vld [vmem:[#allocation16 + $0x12c] sm:$0xf]  ;;  %v15889_v43 = vld [vmem:[#allocation16 + $0x138] sm:$0xf0] }
 0x7e5   : > { %v17760_v58 = vld [vmem:[#allocation16 + $0x22c] sm:$0xf]  ;;  %v16017_v26 = vld [vmem:[#allocation16 + $0x238] sm:$0xf0] }
 0x7e6   : > { %v17792_v48 = vld [vmem:[#allocation16 + $0x32c] sm:$0xf]  ;;  %v16145_v40 = vld [vmem:[#allocation16 + $0x338] sm:$0xf0] }
 0x7e7   : > { %10695 = vmatpush.bf16.msra.mxu0 %v15776_v9  ;;  %10708 = vmatpush.bf16.msrb.mxu1 %v15904_v22  ;;  %v15828_v9 = vor.u32 %v17712_v55, %v15825_v31  ;;  %v15956_v22 = vor.u32 %v17744_v20, %v15953_v59  ;;  %v17692_v55 = vld [vmem:[#allocation16 + $0xc] sm:$0xf]  ;;  %v15745_v31 = vld [vmem:[#allocation16 + $0x18] sm:$0xf0]  ;;  %v16148_v20 = vor.u32 %v17792_v48, %v16145_v40  ;;  %v17825_v48 = vld [vmem:[#allocation19 + $0x2c] sm:$0xf0] }
 0x7e8   : > { %10721 = vmatpush.bf16.msrb.mxu2 %v16032_v63  ;;  %10734 = vmatpush.bf16.msra.mxu3 %v16160_v42  ;;  %v16084_v63 = vor.u32 %v17776_v61, %v16081_v38  ;;  %v16212_v42 = vor.u32 %v17808_v21, %v16209_v36  ;;  %v15873_v59 = vld [vmem:[#allocation16 + $0x118] sm:$0xf0]  ;;  %v17756_v61 = vld [vmem:[#allocation16 + $0x20c] sm:$0xf]  ;;  %v16391_v40 = vld [vmem:[#allocation19 + $0x120] sm:$0xf] }
 0x7e9   : > { %v16001_v38 = vld [vmem:[#allocation16 + $0x218] sm:$0xf0]  ;;  %v17788_v21 = vld [vmem:[#allocation16 + $0x30c] sm:$0xf] }
 0x7ea   : > { %v16129_v36 = vld [vmem:[#allocation16 + $0x318] sm:$0xf0] }
 0x7eb   : > { %10696 = vmatpush.bf16.msra.mxu0 %v15760_v11  ;;  %10709 = vmatpush.bf16.msrb.mxu1 %v15888_v10  ;;  %v15940_v11 = vor.u32 %v17740_v60, %v15937_v52  ;;  %v17704_v10 = vld [vmem:[#allocation16 + $0x6c] sm:$0xf]  ;;  %v16004_v60 = vor.u32 %v17756_v61, %v16001_v38  ;;  %v16132_v52 = vor.u32 %v17788_v21, %v16129_v36  ;;  %v17843_v38 = vld [vmem:[#allocation19 + $0xc4] sm:$0xf]  ;;  %v16345_v21 = vld [vmem:[#allocation19 + $0xd0] sm:$0xf0] }
 0x7ec   : > { %10722 = vmatpush.bf16.msrb.mxu2 %v16016_v39  ;;  %10735 = vmatpush.bf16.msra.mxu3 %v16144_v23  ;;  %v17736_v39 = vld [vmem:[#allocation16 + $0x16c] sm:$0xf]  ;;  %v15921_v23 = vld [vmem:[#allocation16 + $0x178] sm:$0xf0]  ;;  %v15796_v27 = vor.u32 %v17704_v10, %v15793_v1  ;;  %v16615_v10 = vld [vmem:[#allocation19 + $0x2e0] sm:$0xf]  ;;  %v16348_v36 = vor.u32 %v17843_v38, %v16345_v21 }
 0x7ed   : > { %v15924_v54 = vor.u32 %v17736_v39, %v15921_v23  ;;  %v17913_v1 = vld [vmem:[#allocation19 + $0x2ec] sm:$0xf0]  ;;  %v16327_v39 = vld [vmem:[#allocation19 + $0xa0] sm:$0xf]  ;;  %v16409_v38 = vld [vmem:[#allocation19 + $0x150] sm:$0xf0] }
 0x7ee   : > { %v17841_v23 = vld [vmem:[#allocation19 + $0xac] sm:$0xf0]  ;;  %v17907_v21 = vld [vmem:[#allocation19 + $0x2c4] sm:$0xf] }
 0x7ef   : > { %10697 = vmatpush.bf16.msra.mxu0 %v15744_v16  ;;  %10710 = vmatpush.bf16.msrb.mxu1 %v15872_v6  ;;  %v16180_v16 = vor.u32 %v17800_v34, %v16177_v49  ;;  %v17732_v6 = vld [vmem:[#allocation16 + $0x14c] sm:$0xf]  ;;  %v17873_v34 = vld [vmem:[#allocation19 + $0x1ac] sm:$0xf0]  ;;  %v16599_v49 = vld [vmem:[#allocation19 + $0x2c0] sm:$0xf] }
 0x7f0   : > { %10723 = vmatpush.bf16.msrb.mxu2 %v16000_v33  ;;  %10736 = vmatpush.bf16.msra.mxu3 %v16128_v29  ;;  %v17796_v33 = vld [vmem:[#allocation16 + $0x34c] sm:$0xf]  ;;  %v16161_v29 = vld [vmem:[#allocation16 + $0x358] sm:$0xf0] }
 0x7f2   : > { %10698 = vmatmul.bf16.vlgmr.msra.gmra.mxu0 %v20001_v28  ;;  %10711 = vmatmul.bf16.vlgmr.msrb.gmra.mxu1 %v20003_v44 }
 0x7f3   : > { %10742 = vmatpush.bf16.msrb.mxu0 %v15860_v47  ;;  %10755 = vmatpush.bf16.msra.mxu1 %v15988_v19  ;;  %v15780_v47 = vor.u32 %v17700_v35, %v15777_v37  ;;  %v15908_v19 = vor.u32 %v17732_v6, %v15905_v56  ;;  %v16328_v35 = vor.u32 %v17841_v23, %v16327_v39  ;;  %v16311_v37 = vld [vmem:[#allocation19 + $0x80] sm:$0xf]  ;;  %v17831_v39 = vld [vmem:[#allocation19 + $0x64] sm:$0xf]  ;;  %v16297_v23 = vld [vmem:[#allocation19 + $0x70] sm:$0xf0] }
 0x7f4   : > { %10768 = vmatpush.bf16.msra.mxu2 %v16116_v5  ;;  %10781 = vmatpush.bf16.msrb.mxu3 %v16244_v15  ;;  %v16036_v5 = vor.u32 %v17764_v3, %v16033_v41  ;;  %v16164_v15 = vor.u32 %v17796_v33, %v16161_v29  ;;  %v16439_v6 = vld [vmem:[#allocation19 + $0x180] sm:$0xf]  ;;  %v17833_v33 = vld [vmem:[#allocation19 + $0x6c] sm:$0xf0] }
 0x7f5   : > { %10724 = vmatmul.bf16.vlgmr.msrb.gmra.mxu2 %v20005_v50  ;;  %10737 = vmatmul.bf16.vlgmr.msra.gmra.mxu3 %v20007_v24  ;;  %v16583_v56 = vld [vmem:[#allocation19 + $0x2a0] sm:$0xf] }
 0x7f6   : > { %v16423_v29 = vld [vmem:[#allocation19 + $0x160] sm:$0xf] }
 0x7f7   : > { %10743 = vmatpush.bf16.msrb.mxu0 %v15844_v0  ;;  %10756 = vmatpush.bf16.msra.mxu1 %v15972_v18  ;;  %v15764_v0 = vor.u32 %v17696_v62, %v15761_v14  ;;  %v15892_v18 = vor.u32 %v17728_v17, %v15889_v43  ;;  %v16279_v62 = vld [vmem:[#allocation19 + $0x40] sm:$0xf]  ;;  %v17861_v17 = vld [vmem:[#allocation19 + $0x14c] sm:$0xf0] }
 0x7f8   : > { %10769 = vmatpush.bf16.msra.mxu2 %v16100_v32  ;;  %10782 = vmatpush.bf16.msrb.mxu3 %v16228_v45  ;;  %v17724_v32 = vld [vmem:[#allocation16 + $0x10c] sm:$0xf]  ;;  %v16020_v45 = vor.u32 %v17760_v58, %v16017_v26  ;;  %v16263_v58 = vld [vmem:[#allocation19 + $0x20] sm:$0xf] }
 0x7fb   : > { %10744 = vmatpush.bf16.msrb.mxu0 %v15828_v9  ;;  %10757 = vmatpush.bf16.msra.mxu1 %v15956_v22  ;;  %v16359_v9 = vld [vmem:[#allocation19 + $0xe0] sm:$0xf]  ;;  %v17849_v22 = vld [vmem:[#allocation19 + $0xec] sm:$0xf0] }
 0x7fc   : > { %10770 = vmatpush.bf16.msra.mxu2 %v16084_v63  ;;  %10783 = vmatpush.bf16.msrb.mxu3 %v16212_v42  ;;  %v15748_v63 = vor.u32 %v17692_v55, %v15745_v31  ;;  %v15876_v42 = vor.u32 %v17724_v32, %v15873_v59  ;;  %v16360_v13 = vor.u32 %v17849_v22, %v16359_v9  ;;  %v16247_v31 = vld [vmem:[#allocation19] sm:$0xf]  ;;  %v17821_v32 = vld [vmem:[#allocation19 + $0xc] sm:$0xf0]  ;;  %v17839_v9 = vld [vmem:[#allocation19 + $0xa4] sm:$0xf] }
 0x7fd   : > { %v16248_v59 = vor.u32 %v17821_v32, %v16247_v31  ;;  %v16329_v22 = vld [vmem:[#allocation19 + $0xb0] sm:$0xf0]  ;;  %v16727_v32 = vld [vmem:[#allocation19 + $0x3c0] sm:$0xf] }
 0x7fe   : > { %v16332_v7 = vor.u32 %v17839_v9, %v16329_v22  ;;  %v16601_v9 = vld [vmem:[#allocation19 + $0x2d0] sm:$0xf0] }
 0x7ff   : > { %10745 = vmatpush.bf16.msrb.mxu0 %v15812_v57  ;;  %10758 = vmatpush.bf16.msra.mxu1 %v15940_v11  ;;  %v16471_v57 = vld [vmem:[#allocation19 + $0x1c0] sm:$0xf]  ;;  %v17877_v11 = vld [vmem:[#allocation19 + $0x1cc] sm:$0xf0]  ;;  %v16604_v22 = vor.u32 %v17907_v21, %v16601_v9  ;;  %v16505_v9 = vld [vmem:[#allocation19 + $0x210] sm:$0xf0] }
 0x800   : > { %10771 = vmatpush.bf16.msra.mxu2 %v16068_v4  ;;  %10784 = vmatpush.bf16.msrb.mxu3 %v16196_v8  ;;  %v16616_v4 = vor.u32 %v17913_v1, %v16615_v10  ;;  %v16344_v8 = vor.u32 %v17845_v25, %v16343_v46  ;;  %v16472_v51 = vor.u32 %v17877_v11, %v16471_v57  ;;  %v17901_v46 = vld [vmem:[#allocation19 + $0x28c] sm:$0xf0]  ;;  %v17879_v25 = vld [vmem:[#allocation19 + $0x1e4] sm:$0xf]  ;;  %v16489_v57 = vld [vmem:[#allocation19 + $0x1f0] sm:$0xf0] }
 0x801   : > { %v16551_v11 = vld [vmem:[#allocation19 + $0x260] sm:$0xf]  ;;  %v16492_v10 = vor.u32 %v17879_v25, %v16489_v57  ;;  %v17897_v1 = vld [vmem:[#allocation19 + $0x26c] sm:$0xf0] }
 0x803   : > { %10746 = vmatpush.bf16.msrb.mxu0 %v15796_v27  ;;  %10759 = vmatpush.bf16.msra.mxu1 %v15924_v54  ;;  %v17909_v27 = vld [vmem:[#allocation19 + $0x2cc] sm:$0xf0] }
 0x804   : > { %10772 = vmatpush.bf16.msra.mxu2 %v16052_v53  ;;  %10785 = vmatpush.bf16.msrb.mxu3 %v16180_v16  ;;  %v16600_v54 = vor.u32 %v17909_v27, %v16599_v49  ;;  %v17837_v53 = vld [vmem:[#allocation19 + $0x8c] sm:$0xf0]  ;;  %v16456_v16 = vor.u32 %v17873_v34, %v16455_v30  ;;  %v16473_v30 = vld [vmem:[#allocation19 + $0x1d0] sm:$0xf0]  ;;  %v16300_v49 = vor.u32 %v17831_v39, %v16297_v23  ;;  %v16535_v27 = vld [vmem:[#allocation19 + $0x240] sm:$0xf] }
 0x805   : > { %v16312_v41 = vor.u32 %v17837_v53, %v16311_v37  ;;  %v16281_v37 = vld [vmem:[#allocation19 + $0x50] sm:$0xf0]  ;;  %v17899_v39 = vld [vmem:[#allocation19 + $0x284] sm:$0xf] }
 0x807   : > { %10747 = vmatpush.bf16.msrb.mxu0 %v15780_v47  ;;  %10760 = vmatpush.bf16.msra.mxu1 %v15908_v19  ;;  %v17865_v47 = vld [vmem:[#allocation19 + $0x16c] sm:$0xf0] }
 0x808   : > { %10773 = vmatpush.bf16.msra.mxu2 %v16036_v5  ;;  %10786 = vmatpush.bf16.msrb.mxu3 %v16164_v15  ;;  %v16424_v14 = vor.u32 %v17865_v47, %v16423_v29  ;;  %v17829_v5 = vld [vmem:[#allocation19 + $0x4c] sm:$0xf0]  ;;  %v16407_v15 = vld [vmem:[#allocation19 + $0x140] sm:$0xf]  ;;  %v16441_v29 = vld [vmem:[#allocation19 + $0x190] sm:$0xf0] }
 0x809   : > { %v16280_v43 = vor.u32 %v17829_v5, %v16279_v62  ;;  %v16408_v26 = vor.u32 %v17861_v17, %v16407_v15  ;;  %v17819_v47 = vld [vmem:[#allocation19 + $0x4] sm:$0xf]  ;;  %v16503_v5 = vld [vmem:[#allocation19 + $0x200] sm:$0xf]  ;;  %v17885_v15 = vld [vmem:[#allocation19 + $0x20c] sm:$0xf0] }
 0x80a   : > { %v16743_v17 = vld [vmem:[#allocation19 + $0x3e0] sm:$0xf] }
 0x80b   : > { %10748 = vmatpush.bf16.msrb.mxu0 %v15764_v0  ;;  %10761 = vmatpush.bf16.msra.mxu1 %v15892_v18  ;;  %v17857_v0 = vld [vmem:[#allocation19 + $0x12c] sm:$0xf0]  ;;  %v16264_v18 = vor.u32 %v17825_v48, %v16263_v58  ;;  %v16425_v48 = vld [vmem:[#allocation19 + $0x170] sm:$0xf0] }
 0x80c   : > { %10774 = vmatpush.bf16.msra.mxu2 %v16020_v45  ;;  %10787 = vmatpush.bf16.msrb.mxu3 %v16148_v20  ;;  %v16392_v55 = vor.u32 %v17857_v0, %v16391_v40  ;;  %v17847_v45 = vld [vmem:[#allocation19 + $0xe4] sm:$0xf]  ;;  %v16361_v20 = vld [vmem:[#allocation19 + $0xf0] sm:$0xf0]  ;;  %v17945_v58 = vld [vmem:[#allocation19 + $0x3ec] sm:$0xf0] }
 0x80d   : > { %v16364_v61 = vor.u32 %v17847_v45, %v16361_v20  ;;  %v16744_v40 = vor.u32 %v17945_v58, %v16743_v17  ;;  %v17941_v45 = vld [vmem:[#allocation19 + $0x3cc] sm:$0xf0]  ;;  %v16647_v17 = vld [vmem:[#allocation19 + $0x320] sm:$0xf] }
 0x80f   : > { %10749 = vmatpush.bf16.msrb.mxu0 %v15748_v63  ;;  %10762 = vmatpush.bf16.msra.mxu1 %v15876_v42  ;;  %v17853_v63 = vld [vmem:[#allocation19 + $0x10c] sm:$0xf0]  ;;  %v16567_v42 = vld [vmem:[#allocation19 + $0x280] sm:$0xf] }
 0x810   : > { %10775 = vmatpush.bf16.msra.mxu2 %v16004_v60  ;;  %10788 = vmatpush.bf16.msrb.mxu3 %v16132_v52  ;;  %v17835_v60 = vld [vmem:[#allocation19 + $0x84] sm:$0xf]  ;;  %v16313_v52 = vld [vmem:[#allocation19 + $0x90] sm:$0xf0] }
 0x812   : > { %10750 = vmatmul.bf16.vlgmr.msrb.gmra.mxu0 %v20001_v28  ;;  %10763 = vmatmul.bf16.vlgmr.msra.gmra.mxu1 %v20003_v44  ;;  %v17869_v28 = vld [vmem:[#allocation19 + $0x18c] sm:$0xf0] }
 0x813   : > { %11580 = vmatpush.bf16.msra.mxu0 %v16360_v13  ;;  %11593 = vmatpush.bf16.msrb.mxu1 %v16488_v12  ;;  %v17905_v44 = vld [vmem:[#allocation19 + $0x2ac] sm:$0xf0]  ;;  %v16376_v13 = vor.u32 %v17853_v63, %v16375_v2  ;;  %v16568_v12 = vor.u32 %v17901_v46, %v16567_v42  ;;  %v16711_v2 = vld [vmem:[#allocation19 + $0x3a0] sm:$0xf] }
 0x814   : > { %10776 = vmatmul.bf16.vlgmr.msra.gmra.mxu2 %v20005_v50  ;;  %10789 = vmatmul.bf16.vlgmr.msrb.gmra.mxu3 %v20007_v24  ;;  %v16584_v3 = vor.u32 %v17905_v44, %v16583_v56  ;;  %v16295_v50 = vld [vmem:[#allocation19 + $0x60] sm:$0xf]  ;;  %v16440_v24 = vor.u32 %v17869_v28, %v16439_v6  ;;  %v16457_v6 = vld [vmem:[#allocation19 + $0x1b0] sm:$0xf0]  ;;  %v17937_v63 = vld [vmem:[#allocation19 + $0x3ac] sm:$0xf0] }
 0x815   : > { %11606 = vmatpush.bf16.msrb.mxu2 %v16616_v4  ;;  %v16296_v19 = vor.u32 %v17833_v33, %v16295_v50  ;;  %v16316_v4 = vor.u32 %v17835_v60, %v16313_v52  ;;  %v16519_v44 = vld [vmem:[#allocation19 + $0x220] sm:$0xf]  ;;  %v16265_v50 = vld [vmem:[#allocation19 + $0x30] sm:$0xf0]  ;;  %v17867_v33 = vld [vmem:[#allocation19 + $0x184] sm:$0xf]  ;;  %11619 = vmatpush.bf16.msra.mxu3 %v16744_v40  ;;  %v16712_v42 = vor.u32 %v17937_v63, %v16711_v2 }
 0x816   : > { %v16444_v62 = vor.u32 %v17867_v33, %v16441_v29  ;;  %v17855_v60 = vld [vmem:[#allocation19 + $0x124] sm:$0xf]  ;;  %v16393_v52 = vld [vmem:[#allocation19 + $0x130] sm:$0xf0] }
 0x817   : > { %11581 = vmatpush.bf16.msra.mxu0 %v16344_v8  ;;  %11594 = vmatpush.bf16.msrb.mxu1 %v16472_v51  ;;  %v16552_v8 = vor.u32 %v17897_v1, %v16551_v11  ;;  %v17875_v51 = vld [vmem:[#allocation19 + $0x1c4] sm:$0xf]  ;;  %v16396_v46 = vor.u32 %v17855_v60, %v16393_v52  ;;  %v16695_v11 = vld [vmem:[#allocation19 + $0x380] sm:$0xf]  ;;  %v16537_v33 = vld [vmem:[#allocation19 + $0x250] sm:$0xf0] }
 0x818   : > { %v16476_v34 = vor.u32 %v17875_v51, %v16473_v30  ;;  %v16745_v60 = vld [vmem:[#allocation19 + $0x3f0] sm:$0xf0] }
 0x819   : > { %11607 = vmatpush.bf16.msrb.mxu2 %v16600_v54  ;;  %v17893_v54 = vld [vmem:[#allocation19 + $0x24c] sm:$0xf0] }
 0x81a   : > { %v16536_v53 = vor.u32 %v17893_v54, %v16535_v27  ;;  %v16679_v54 = vld [vmem:[#allocation19 + $0x360] sm:$0xf] }
 0x81b   : > { %11582 = vmatpush.bf16.msra.mxu0 %v16328_v35  ;;  %11595 = vmatpush.bf16.msrb.mxu1 %v16456_v16  ;;  %v17827_v35 = vld [vmem:[#allocation19 + $0x44] sm:$0xf] }
 0x81c   : > { %v17871_v16 = vld [vmem:[#allocation19 + $0x1a4] sm:$0xf]  ;;  %v16284_v56 = vor.u32 %v17827_v35, %v16281_v37  ;;  %v17929_v35 = vld [vmem:[#allocation19 + $0x36c] sm:$0xf0] }
 0x81d   : > { %11608 = vmatpush.bf16.msrb.mxu2 %v16584_v3  ;;  %v16460_v28 = vor.u32 %v17871_v16, %v16457_v6  ;;  %v17889_v3 = vld [vmem:[#allocation19 + $0x22c] sm:$0xf0]  ;;  %v16680_v37 = vor.u32 %v17929_v35, %v16679_v54  ;;  %v16553_v16 = vld [vmem:[#allocation19 + $0x270] sm:$0xf0] }
 0x81f   : > { %11583 = vmatpush.bf16.msra.mxu0 %v16312_v41  ;;  %11596 = vmatpush.bf16.msrb.mxu1 %v16440_v24  ;;  %v17823_v41 = vld [vmem:[#allocation19 + $0x24] sm:$0xf]  ;;  %v16520_v24 = vor.u32 %v17889_v3, %v16519_v44 }
 0x821   : > { %11609 = vmatpush.bf16.msrb.mxu2 %v16568_v12  ;;  %v16585_v12 = vld [vmem:[#allocation19 + $0x2b0] sm:$0xf0] }
 0x823   : > { %11584 = vmatpush.bf16.msra.mxu0 %v16296_v19  ;;  %11597 = vmatpush.bf16.msrb.mxu1 %v16424_v14  ;;  %v16249_v19 = vld [vmem:[#allocation19 + $0x10] sm:$0xf0]  ;;  %v16268_v14 = vor.u32 %v17823_v41, %v16265_v50 }
 0x824   : > { %v16252_v20 = vor.u32 %v17819_v47, %v16249_v19 }
 0x825   : > { %11610 = vmatpush.bf16.msrb.mxu2 %v16552_v8  ;;  %v16377_v8 = vld [vmem:[#allocation19 + $0x110] sm:$0xf0] }
 0x827   : > { %11585 = vmatpush.bf16.msra.mxu0 %v16280_v43  ;;  %11598 = vmatpush.bf16.msrb.mxu1 %v16408_v26  ;;  %v16504_v43 = vor.u32 %v17885_v15, %v16503_v5  ;;  %v17863_v26 = vld [vmem:[#allocation19 + $0x164] sm:$0xf]  ;;  %v17850_v15 = vld [vmem:[#allocation19 + $0xf4] sm:$0xf0] }
 0x828   : > { %v16428_v0 = vor.u32 %v17863_v26, %v16425_v48  ;;  %v17887_v26 = vld [vmem:[#allocation19 + $0x224] sm:$0xf]  ;;  %v16521_v48 = vld [vmem:[#allocation19 + $0x230] sm:$0xf0] }
 0x829   : > { %11611 = vmatpush.bf16.msrb.mxu2 %v16536_v53  ;;  %v17895_v53 = vld [vmem:[#allocation19 + $0x264] sm:$0xf] }
 0x82a   : > { %v16556_v6 = vor.u32 %v17895_v53, %v16553_v16  ;;  %v16303_v53 = vld [vmem:[#allocation19 + $0x68] sm:$0xf] }
 0x82b   : > { %11586 = vmatpush.bf16.msra.mxu0 %v16264_v18  ;;  %11599 = vmatpush.bf16.msrb.mxu1 %v16392_v55  ;;  %v17911_v18 = vld [vmem:[#allocation19 + $0x2e4] sm:$0xf]  ;;  %v16617_v55 = vld [vmem:[#allocation19 + $0x2f0] sm:$0xf0] }
 0x82c   : > { %v16620_v31 = vor.u32 %v17911_v18, %v16617_v55 }
 0x82d   : > { %11612 = vmatpush.bf16.msrb.mxu2 %v16520_v24  ;;  %v17891_v24 = vld [vmem:[#allocation19 + $0x244] sm:$0xf] }
 0x82f   : > { %11587 = vmatpush.bf16.msra.mxu0 %v16248_v59  ;;  %11600 = vmatpush.bf16.msrb.mxu1 %v16376_v13  ;;  %v16728_v59 = vor.u32 %v17941_v45, %v16727_v32  ;;  %v17903_v13 = vld [vmem:[#allocation19 + $0x2a4] sm:$0xf]  ;;  %v17846_v45 = vld [vmem:[#allocation19 + $0xd4] sm:$0xf0] }
 0x830   : > { %v16588_v25 = vor.u32 %v17903_v13, %v16585_v12  ;;  %v16335_v12 = vld [vmem:[#allocation19 + $0xa8] sm:$0xf] }
 0x831   : > { %11613 = vmatpush.bf16.msrb.mxu2 %v16504_v43  ;;  %11620 = vmatpush.bf16.msra.mxu3 %v16728_v59  ;;  %v17921_v43 = vld [vmem:[#allocation19 + $0x32c] sm:$0xf0] }
 0x832   : > { %v16648_v58 = vor.u32 %v17921_v43, %v16647_v17  ;;  %v17917_v59 = vld [vmem:[#allocation19 + $0x30c] sm:$0xf0]  ;;  %v17927_v17 = vld [vmem:[#allocation19 + $0x364] sm:$0xf]  ;;  %v16681_v43 = vld [vmem:[#allocation19 + $0x370] sm:$0xf0] }
 0x833   : > { %11632 = vmatpush.bf16.msrb.mxu0 %v16364_v61  ;;  %11645 = vmatpush.bf16.msra.mxu1 %v16492_v10  ;;  %v17859_v61 = vld [vmem:[#allocation19 + $0x144] sm:$0xf]  ;;  %v17933_v10 = vld [vmem:[#allocation19 + $0x38c] sm:$0xf0] }
 0x834   : > { %v16696_v1 = vor.u32 %v17933_v10, %v16695_v11  ;;  %v16729_v11 = vld [vmem:[#allocation19 + $0x3d0] sm:$0xf0] }
 0x835   : > { %11658 = vmatpush.bf16.msra.mxu2 %v16620_v31  ;;  %11621 = vmatpush.bf16.msra.mxu3 %v16712_v42  ;;  %v16351_v31 = vld [vmem:[#allocation19 + $0xc8] sm:$0xf] }
 0x836   : > { %v16352_v52 = vor.u32 %v17846_v45, %v16351_v31  ;;  %v16463_v31 = vld [vmem:[#allocation19 + $0x1a8] sm:$0xf]  ;;  %v17874_v45 = vld [vmem:[#allocation19 + $0x1b4] sm:$0xf0] }
 0x837   : > { %11633 = vmatpush.bf16.msrb.mxu0 %v16348_v36  ;;  %11646 = vmatpush.bf16.msra.mxu1 %v16476_v34  ;;  %v16412_v36 = vor.u32 %v17859_v61, %v16409_v38  ;;  %v16569_v34 = vld [vmem:[#allocation19 + $0x290] sm:$0xf0] }
 0x839   : > { %11659 = vmatpush.bf16.msra.mxu2 %v16604_v22  ;;  %11622 = vmatpush.bf16.msra.mxu3 %v16696_v1  ;;  %v17943_v22 = vld [vmem:[#allocation19 + $0x3e4] sm:$0xf] }
 0x83a   : > { %v16748_v13 = vor.u32 %v17943_v22, %v16745_v60  ;;  %v17822_v22 = vld [vmem:[#allocation19 + $0x14] sm:$0xf0] }
 0x83b   : > { %11634 = vmatpush.bf16.msrb.mxu0 %v16332_v7  ;;  %11647 = vmatpush.bf16.msra.mxu1 %v16460_v28  ;;  %v20025_v7 = vld [vmem:[#allocation17] sm:$0xf]  ;;  %v16663_v28 = vld [vmem:[#allocation19 + $0x340] sm:$0xf] }
 0x83c   : > { %v10578_v57 = vperm.slane %v20025_v7, 0  ;;  %v10579_v55 = vperm.slane %v20025_v7, 1 }
 0x83d   : > { %11660 = vmatpush.bf16.msra.mxu2 %v16588_v25  ;;  %11623 = vmatpush.bf16.msra.mxu3 %v16680_v37  ;;  %v17842_v25 = vld [vmem:[#allocation19 + $0xb4] sm:$0xf0] }
 0x83e   : > { %v16336_v1 = vor.u32 %v17842_v25, %v16335_v12 }
 0x83f   : > { %11635 = vmatpush.bf16.msrb.mxu0 %v16316_v4  ;;  %11648 = vmatpush.bf16.msra.mxu1 %v16444_v62  ;;  %v17851_v4 = vld [vmem:[#allocation19 + $0x104] sm:$0xf]  ;;  %v16540_v62 = vor.u32 %v17891_v24, %v16537_v33  ;;  %v16287_v33 = vld [vmem:[#allocation19 + $0x48] sm:$0xf] }
 0x840   : > { %v16380_v30 = vor.u32 %v17851_v4, %v16377_v8  ;;  %v16319_v8 = vld [vmem:[#allocation19 + $0x88] sm:$0xf] }
 0x843   : > { %11636 = vmatpush.bf16.msrb.mxu0 %v16300_v49  ;;  %11649 = vmatpush.bf16.msra.mxu1 %v16428_v0  ;;  %v16572_v49 = vor.u32 %v17899_v39, %v16569_v34  ;;  %v16524_v0 = vor.u32 %v17887_v26, %v16521_v48  ;;  %v17838_v39 = vld [vmem:[#allocation19 + $0x94] sm:$0xf0]  ;;  %v16713_v34 = vld [vmem:[#allocation19 + $0x3b0] sm:$0xf0] }
 0x844   : > { %v16320_v37 = vor.u32 %v17838_v39, %v16319_v8 }
 0x845   : > { %11661 = vmatpush.bf16.msra.mxu2 %v16572_v49 }
 0x847   : > { %11637 = vmatpush.bf16.msrb.mxu0 %v16284_v56  ;;  %11650 = vmatpush.bf16.msra.mxu1 %v16412_v36  ;;  %v17925_v56 = vld [vmem:[#allocation19 + $0x34c] sm:$0xf0]  ;;  %v17883_v36 = vld [vmem:[#allocation19 + $0x204] sm:$0xf] }
 0x848   : > { %v16664_v50 = vor.u32 %v17925_v56, %v16663_v28  ;;  %v16508_v42 = vor.u32 %v17883_v36, %v16505_v9  ;;  %v16495_v28 = vld [vmem:[#allocation19 + $0x1e8] sm:$0xf]  ;;  %v17882_v56 = vld [vmem:[#allocation19 + $0x1f4] sm:$0xf0]  ;;  %v16464_v36 = vor.u32 %v17874_v45, %v16463_v31 }
 0x849   : > { %11662 = vmatpush.bf16.msra.mxu2 %v16556_v6  ;;  %v17834_v6 = vld [vmem:[#allocation19 + $0x74] sm:$0xf0]  ;;  %v16496_v24 = vor.u32 %v17882_v56, %v16495_v28  ;;  %v16255_v9 = vld [vmem:[#allocation19 + $0x8] sm:$0xf] }
 0x84a   : > { %11624 = vmatpush.bf16.msra.mxu3 %v16664_v50  ;;  %v16304_v50 = vor.u32 %v17834_v6, %v16303_v53  ;;  %v16633_v53 = vld [vmem:[#allocation19 + $0x310] sm:$0xf0]  ;;  %v16415_v56 = vld [vmem:[#allocation19 + $0x148] sm:$0xf]  ;;  %v17854_v45 = vld [vmem:[#allocation19 + $0x114] sm:$0xf0] }
 0x84b   : > { %11638 = vmatpush.bf16.msrb.mxu0 %v16268_v14  ;;  %11651 = vmatpush.bf16.msra.mxu1 %v16396_v46  ;;  %v16367_v14 = vld [vmem:[#allocation19 + $0xe8] sm:$0xf] }
 0x84c   : > { %v16368_v18 = vor.u32 %v17850_v15, %v16367_v14  ;;  %v16383_v31 = vld [vmem:[#allocation19 + $0x108] sm:$0xf] }
 0x84d   : > { %11663 = vmatpush.bf16.msra.mxu2 %v16540_v62  ;;  %v17878_v62 = vld [vmem:[#allocation19 + $0x1d4] sm:$0xf0] }
 0x84e   : > { %v10595_v23 = vpop.f32.mrf.mxu0  ;;  %v10608_v51 = vpop.f32.mrf.mxu1  ;;  %11625 = vmatpush.bf16.msra.mxu3 %v16648_v58  ;;  %v10580_v58 = vperm.slane %v20025_v7, 2 }
 0x84f   : > { %11639 = vmatpush.bf16.msrb.mxu0 %v16252_v20  ;;  %v10596_v27 = vadd.f32 %v10595_v23, %v10578_v57  ;;  %11652 = vmatpush.bf16.msra.mxu1 %v16380_v30  ;;  %v16631_v20 = vld [vmem:[#allocation19 + $0x300] sm:$0xf]  ;;  %v17939_v57 = vld [vmem:[#allocation19 + $0x3c4] sm:$0xf] }
 0x850   : > { %v16632_v21 = vor.u32 %v17917_v59, %v16631_v20  ;;  %v16732_v10 = vor.u32 %v17939_v57, %v16729_v11  ;;  %v17935_v30 = vld [vmem:[#allocation19 + $0x3a4] sm:$0xf]  ;;  %v16684_v20 = vor.u32 %v17927_v17, %v16681_v43  ;;  %v16256_v11 = vor.u32 %v17822_v22, %v16255_v9  ;;  %v16399_v17 = vld [vmem:[#allocation19 + $0x128] sm:$0xf]  ;;  %v17858_v43 = vld [vmem:[#allocation19 + $0x134] sm:$0xf0] }
 0x851   : > { %v10609_v44 = vadd.f32 %v10608_v51, %v10596_v27  ;;  %11664 = vmatpush.bf16.msra.mxu2 %v16524_v0  ;;  %v16716_v35 = vor.u32 %v17935_v30, %v16713_v34  ;;  %v17923_v59 = vld [vmem:[#allocation19 + $0x344] sm:$0xf]  ;;  %v16623_v34 = vld [vmem:[#allocation19 + $0x2e8] sm:$0xf]  ;;  %v17902_v9 = vld [vmem:[#allocation19 + $0x294] sm:$0xf0]  ;;  %v16384_v22 = vor.u32 %v17854_v45, %v16383_v31 }
 0x852   : > { %11626 = vmatpush.bf16.msra.mxu3 %v16632_v21 }
 0x855   : > { %v10621_v3 = vpop.f32.mrf.mxu2  ;;  %v10634_v41 = vpop.f32.mrf.mxu3  ;;  %11665 = vmatpush.bf16.msra.mxu2 %v16508_v42  ;;  %v17848_v42 = vld [vmem:[#allocation19 + $0xec] sm:$0xf] }
 0x856   : > { %v10622_v29 = vadd.f32 %v10621_v3, %v10609_v44  ;;  %v10597_v47 = vpop.f32.mrf.mxu0  ;;  %v10610_v19 = vpop.f32.mrf.mxu1  ;;  %11671 = vmatpush.bf16.msrb.mxu3 %v16748_v13  ;;  %v17931_v44 = vld [vmem:[#allocation19 + $0x384] sm:$0xf]  ;;  %v16697_v3 = vld [vmem:[#allocation19 + $0x390] sm:$0xf0] }
 0x857   : > { %v17830_v47 = vld [vmem:[#allocation19 + $0x54] sm:$0xf0]  ;;  %v16479_v19 = vld [vmem:[#allocation19 + $0x1c8] sm:$0xf]  ;;  %v16700_v14 = vor.u32 %v17931_v44, %v16697_v3  ;;  %v17919_v13 = vld [vmem:[#allocation19 + $0x324] sm:$0xf] }
 0x858   : > { %v10635_v5 = vadd.f32 %v10634_v41, %v10622_v29  ;;  %v16288_v26 = vor.u32 %v17830_v47, %v16287_v33  ;;  %v16480_v48 = vor.u32 %v17878_v62, %v16479_v19  ;;  %v17862_v44 = vld [vmem:[#allocation19 + $0x154] sm:$0xf0]  ;;  %v16607_v47 = vld [vmem:[#allocation19 + $0x2c8] sm:$0xf] }
 0x859   : > { %v17910_v19 = vld [vmem:[#allocation19 + $0x2d4] sm:$0xf0] }
 0x85a   : > { %v10794_v40 = vmax.f32 %v10635_v5, 0.0  ;;  %11672 = vmatpush.bf16.msrb.mxu3 %v16732_v10 }
 0x85c   : > { %v20029_v32 = vpack.c.bf16 %v10794_v40, %v10794_v40  ;;  %v16271_v40 = vld [vmem:[#allocation19 + $0x28] sm:$0xf] }
 0x85d   : > { %v10623_v61 = vpop.f32.mrf.mxu2  ;;  %v10636_v38 = vpop.f32.mrf.mxu3 }
 0x85e   : > { %11588 = vmatmul.bf16.vlgmr.msra.gmra.mxu0 %v20029_v32  ;;  %v10647_v2 = vpop.f32.mrf.mxu0  ;;  %v10660_v63 = vpop.f32.mrf.mxu1  ;;  %11673 = vmatpush.bf16.msrb.mxu3 %v16716_v35  ;;  %v16665_v61 = vld [vmem:[#allocation19 + $0x350] sm:$0xf0]  ;;  %v17914_v35 = vld [vmem:[#allocation19 + $0x2f4] sm:$0xf0] }
 0x85f   : > { %11684 = vmatpush.bf16.msra.mxu0 %v16368_v18  ;;  %v10648_v46 = vadd.f32 %v10647_v2, %v10579_v55  ;;  %v17826_v55 = vld [vmem:[#allocation19 + $0x34] sm:$0xf0]  ;;  %v16447_v2 = vld [vmem:[#allocation19 + $0x188] sm:$0xf]  ;;  %v16668_v60 = vor.u32 %v17923_v59, %v16665_v61  ;;  %v16624_v3 = vor.u32 %v17914_v35, %v16623_v34  ;;  %v16305_v61 = vld [vmem:[#allocation19 + $0x78] sm:$0xf0] }
 0x860   : > { %v16272_v21 = vor.u32 %v17826_v55, %v16271_v40  ;;  %v16591_v40 = vld [vmem:[#allocation19 + $0x2a8] sm:$0xf]  ;;  %v17872_v34 = vld [vmem:[#allocation19 + $0x1ac] sm:$0xf] }
 0x861   : > { %v10661_v4 = vadd.f32 %v10660_v63, %v10648_v46  ;;  %v17870_v63 = vld [vmem:[#allocation19 + $0x194] sm:$0xf0]  ;;  %v16649_v46 = vld [vmem:[#allocation19 + $0x330] sm:$0xf0] }
 0x862   : > { %11674 = vmatpush.bf16.msrb.mxu3 %v16700_v14  ;;  %v16448_v10 = vor.u32 %v17870_v63, %v16447_v2  ;;  %v16652_v30 = vor.u32 %v17919_v13, %v16649_v46  ;;  %v16289_v13 = vld [vmem:[#allocation19 + $0x58] sm:$0xf0]  ;;  %v17898_v46 = vld [vmem:[#allocation19 + $0x274] sm:$0xf0] }
 0x863   : > { %11685 = vmatpush.bf16.msra.mxu0 %v16352_v52  ;;  %v16369_v52 = vld [vmem:[#allocation19 + $0xf8] sm:$0xf0] }
 0x864   : > { %v16372_v39 = vor.u32 %v17848_v42, %v16369_v52  ;;  %v17828_v52 = vld [vmem:[#allocation19 + $0x4c] sm:$0xf] }
 0x865   : > { %v10673_v23 = vpop.f32.mrf.mxu2  ;;  %v10686_v51 = vpop.f32.mrf.mxu3 }
 0x866   : > { %v10674_v49 = vadd.f32 %v10673_v23, %v10661_v4  ;;  %v10649_v27 = vpop.f32.mrf.mxu0  ;;  %v10662_v54 = vpop.f32.mrf.mxu1  ;;  %11675 = vmatpush.bf16.msrb.mxu3 %v16684_v20  ;;  %v16431_v23 = vld [vmem:[#allocation19 + $0x168] sm:$0xf]  ;;  %v17832_v20 = vld [vmem:[#allocation19 + $0x6c] sm:$0xf] }
 0x867   : > { %11686 = vmatpush.bf16.msra.mxu0 %v16336_v1  ;;  %v16353_v27 = vld [vmem:[#allocation19 + $0xd8] sm:$0xf0]  ;;  %v16308_v2 = vor.u32 %v17832_v20, %v16305_v61  ;;  %v16735_v20 = vld [vmem:[#allocation19 + $0x3c8] sm:$0xf] }
 0x868   : > { %v10687_v16 = vadd.f32 %v10686_v51, %v10674_v49  ;;  %v17866_v51 = vld [vmem:[#allocation19 + $0x174] sm:$0xf0]  ;;  %v17844_v49 = vld [vmem:[#allocation19 + $0xcc] sm:$0xf] }
 0x869   : > { %v16356_v28 = vor.u32 %v17844_v49, %v16353_v27  ;;  %v16465_v49 = vld [vmem:[#allocation19 + $0x1b8] sm:$0xf0] }
 0x86a   : > { %v10795_v41 = vmax.f32 %v10687_v16, 0.0  ;;  %11676 = vmatpush.bf16.msrb.mxu3 %v16668_v60  ;;  %v16432_v16 = vor.u32 %v17866_v51, %v16431_v23  ;;  %v16559_v60 = vld [vmem:[#allocation19 + $0x268] sm:$0xf]  ;;  %v17824_v23 = vld [vmem:[#allocation19 + $0x2c] sm:$0xf]  ;;  %v16468_v35 = vor.u32 %v17872_v34, %v16465_v49 }
 0x86b   : > { %11687 = vmatpush.bf16.msra.mxu0 %v16320_v37  ;;  %v17915_v37 = vld [vmem:[#allocation19 + $0x304] sm:$0xf]  ;;  %v16273_v51 = vld [vmem:[#allocation19 + $0x38] sm:$0xf0] }
 0x86c   : > { %v20032_v29 = vpack.c.bf16 %v10795_v41, %v10795_v41  ;;  %v17840_v41 = vld [vmem:[#allocation19 + $0xac] sm:$0xf] }
 0x86d   : > { %v10675_v5 = vpop.f32.mrf.mxu2  ;;  %v10688_v15 = vpop.f32.mrf.mxu3 }
 0x86e   : > { %11601 = vmatmul.bf16.vlgmr.msrb.gmra.mxu1 %v20032_v29  ;;  %11640 = vmatmul.bf16.vlgmr.msrb.gmra.mxu0 %v20029_v32  ;;  %v16416_v5 = vor.u32 %v17862_v44, %v16415_v56  ;;  %v16449_v56 = vld [vmem:[#allocation19 + $0x198] sm:$0xf0] }
 0x86f   : > { %11688 = vmatpush.bf16.msra.mxu0 %v16304_v50  ;;  %11697 = vmatpush.bf16.msrb.mxu1 %v16496_v24  ;;  %v10699_v0 = vpop.f32.mrf.mxu0  ;;  %v10712_v18 = vpop.f32.mrf.mxu1  ;;  %v16337_v50 = vld [vmem:[#allocation19 + $0xb8] sm:$0xf0]  ;;  %v16636_v24 = vor.u32 %v17915_v37, %v16633_v53  ;;  %v16527_v37 = vld [vmem:[#allocation19 + $0x228] sm:$0xf]  ;;  %v17820_v53 = vld [vmem:[#allocation19 + $0xc] sm:$0xf] }
 0x870   : > { %v10700_v38 = vadd.f32 %v10699_v0, %v10580_v58  ;;  %11677 = vmatpush.bf16.msrb.mxu3 %v16652_v30  ;;  %v16340_v15 = vor.u32 %v17840_v41, %v16337_v50  ;;  %v16608_v58 = vor.u32 %v17910_v19, %v16607_v47  ;;  %v17906_v0 = vld [vmem:[#allocation19 + $0x2b4] sm:$0xf0] }
 0x871   : > { %v16592_v59 = vor.u32 %v17906_v0, %v16591_v40  ;;  %v17894_v30 = vld [vmem:[#allocation19 + $0x254] sm:$0xf0]  ;;  %v17912_v40 = vld [vmem:[#allocation19 + $0x2ec] sm:$0xf]  ;;  %v16625_v0 = vld [vmem:[#allocation19 + $0x2f8] sm:$0xf0] }
 0x872   : > { %v10713_v12 = vadd.f32 %v10712_v18, %v10700_v38  ;;  %v16400_v18 = vor.u32 %v17858_v43, %v16399_v17  ;;  %v17880_v38 = vld [vmem:[#allocation19 + $0x1ec] sm:$0xf]  ;;  %v16751_v17 = vld [vmem:[#allocation19 + $0x3e8] sm:$0xf]  ;;  %v16628_v61 = vor.u32 %v17912_v40, %v16625_v0 }
 0x873   : > { %11689 = vmatpush.bf16.msra.mxu0 %v16288_v26  ;;  %11698 = vmatpush.bf16.msrb.mxu1 %v16480_v48  ;;  %v17836_v26 = vld [vmem:[#allocation19 + $0x8c] sm:$0xf]  ;;  %v16321_v48 = vld [vmem:[#allocation19 + $0x98] sm:$0xf0] }
 0x874   : > { %11678 = vmatpush.bf16.msrb.mxu3 %v16636_v24  ;;  %v16324_v55 = vor.u32 %v17836_v26, %v16321_v48  ;;  %v17864_v26 = vld [vmem:[#allocation19 + $0x16c] sm:$0xf]  ;;  %v16433_v48 = vld [vmem:[#allocation19 + $0x178] sm:$0xf0] }
 0x875   : > { %v16436_v45 = vor.u32 %v17864_v26, %v16433_v48  ;;  %v16753_v26 = vld [vmem:[#allocation19 + $0x3f8] sm:$0xf0]  ;;  %v17940_v0 = vld [vmem:[#allocation19 + $0x3cc] sm:$0xf] }
 0x877   : > { %11690 = vmatpush.bf16.msra.mxu0 %v16272_v21  ;;  %11699 = vmatpush.bf16.msrb.mxu1 %v16464_v36  ;;  %v10701_v4 = vpop.f32.mrf.mxu0  ;;  %v10714_v8 = vpop.f32.mrf.mxu1  ;;  %v16497_v21 = vld [vmem:[#allocation19 + $0x1f8] sm:$0xf0]  ;;  %v16575_v36 = vld [vmem:[#allocation19 + $0x288] sm:$0xf] }
 0x878   : > { %v10725_v25 = vpop.f32.mrf.mxu2  ;;  %v10738_v57 = vpop.f32.mrf.mxu3  ;;  %v16500_v63 = vor.u32 %v17880_v38, %v16497_v21  ;;  %v16576_v42 = vor.u32 %v17902_v9, %v16575_v36  ;;  %v16560_v4 = vor.u32 %v17898_v46, %v16559_v60  ;;  %v17942_v38 = vld [vmem:[#allocation19 + $0x3d4] sm:$0xf0]  ;;  %v17860_v21 = vld [vmem:[#allocation19 + $0x14c] sm:$0xf]  ;;  %v16417_v36 = vld [vmem:[#allocation19 + $0x158] sm:$0xf0] }
 0x879   : > { %v10726_v1 = vadd.f32 %v10725_v25, %v10713_v12  ;;  %v17876_v12 = vld [vmem:[#allocation19 + $0x1cc] sm:$0xf]  ;;  %v16481_v25 = vld [vmem:[#allocation19 + $0x1d8] sm:$0xf0]  ;;  %v16420_v60 = vor.u32 %v17860_v21, %v16417_v36  ;;  %v17938_v46 = vld [vmem:[#allocation19 + $0x3b4] sm:$0xf0] }
 0x87a   : > { %v16484_v8 = vor.u32 %v17876_v12, %v16481_v25  ;;  %v16401_v12 = vld [vmem:[#allocation19 + $0x138] sm:$0xf0]  ;;  %v17904_v25 = vld [vmem:[#allocation19 + $0x2ac] sm:$0xf] }
 0x87b   : > { %v10739_v54 = vadd.f32 %v10738_v57, %v10726_v1  ;;  %11691 = vmatpush.bf16.msra.mxu0 %v16256_v11  ;;  %11700 = vmatpush.bf16.msrb.mxu1 %v16448_v10  ;;  %v10581_v57 = vperm.slane %v20025_v7, 3  ;;  %v16292_v11 = vor.u32 %v17828_v52, %v16289_v13  ;;  %v16276_v7 = vor.u32 %v17824_v23, %v16273_v51  ;;  %v16719_v52 = vld [vmem:[#allocation19 + $0x3a8] sm:$0xf]  ;;  %v16385_v23 = vld [vmem:[#allocation19 + $0x118] sm:$0xf0] }
 0x87c   : > { %v17900_v51 = vld [vmem:[#allocation19 + $0x28c] sm:$0xf] }
 0x87d   : > { %v10796_v6 = vmax.f32 %v10739_v54, 0.0  ;;  %v17928_v36 = vld [vmem:[#allocation19 + $0x36c] sm:$0xf] }
 0x87e   : > { %11653 = vmatmul.bf16.vlgmr.msra.gmra.mxu1 %v20032_v29  ;;  %11692 = vmatmul.bf16.vlgmr.msra.gmra.mxu0 %v20029_v32 }
 0x87f   : > { %11736 = vmatpush.bf16.msrb.mxu0 %v16372_v39  ;;  %v20037_v33 = vpack.c.bf16 %v10796_v6, %v10796_v6  ;;  %11701 = vmatpush.bf16.msrb.mxu1 %v16432_v16  ;;  %v16543_v39 = vld [vmem:[#allocation19 + $0x248] sm:$0xf]  ;;  %v16257_v16 = vld [vmem:[#allocation19 + $0x18] sm:$0xf0]  ;;  %v17890_v6 = vld [vmem:[#allocation19 + $0x234] sm:$0xf0] }
 0x880   : > { %v10727_v62 = vpop.f32.mrf.mxu2  ;;  %v10740_v14 = vpop.f32.mrf.mxu3  ;;  %v16544_v54 = vor.u32 %v17894_v30, %v16543_v39  ;;  %v16260_v50 = vor.u32 %v17820_v53, %v16257_v16  ;;  %v17852_v39 = vld [vmem:[#allocation19 + $0x10c] sm:$0xf]  ;;  %v16577_v30 = vld [vmem:[#allocation19 + $0x298] sm:$0xf0] }
 0x881   : > { %11614 = vmatmul.bf16.vlgmr.msrb.gmra.mxu2 %v20037_v33  ;;  %v16528_v62 = vor.u32 %v17890_v6, %v16527_v37  ;;  %v16388_v49 = vor.u32 %v17852_v39, %v16385_v23  ;;  %v16561_v37 = vld [vmem:[#allocation19 + $0x278] sm:$0xf0]  ;;  %v16671_v6 = vld [vmem:[#allocation19 + $0x348] sm:$0xf] }
 0x882   : > { %11710 = vmatpush.bf16.msrb.mxu2 %v16624_v3  ;;  %v17951_v23 = vld [vmem:[#allocation22 + $0x20] sm:$0xff] }
 0x883   : > { %11737 = vmatpush.bf16.msrb.mxu0 %v16356_v28  ;;  %11702 = vmatpush.bf16.msrb.mxu1 %v16416_v5  ;;  %v17868_v28 = vld [vmem:[#allocation19 + $0x18c] sm:$0xf]  ;;  %v16511_v5 = vld [vmem:[#allocation19 + $0x208] sm:$0xf] }
 0x884   : > { %v16452_v14 = vor.u32 %v17868_v28, %v16449_v56  ;;  %v17926_v28 = vld [vmem:[#allocation19 + $0x354] sm:$0xf0]  ;;  %v17892_v56 = vld [vmem:[#allocation19 + $0x24c] sm:$0xf] }
 0x886   : > { %11711 = vmatpush.bf16.msrb.mxu2 %v16608_v58  ;;  %v17946_v58 = vld [vmem:[#allocation19 + $0x3f4] sm:$0xf0] }
 0x887   : > { %11738 = vmatpush.bf16.msrb.mxu0 %v16340_v15  ;;  %11703 = vmatpush.bf16.msrb.mxu1 %v16400_v18  ;;  %v17886_v15 = vld [vmem:[#allocation19 + $0x214] sm:$0xf0]  ;;  %v16752_v31 = vor.u32 %v17946_v58, %v16751_v17  ;;  %v17884_v17 = vld [vmem:[#allocation19 + $0x20c] sm:$0xf] }
 0x888   : > { %v17944_v58 = vld [vmem:[#allocation19 + $0x3ec] sm:$0xf] }
 0x889   : > { %v16756_v40 = vor.u32 %v17944_v58, %v16753_v26  ;;  %v17965_v26 = vld [vmem:[#allocation22 + $0x90] sm:$0xff] }
 0x88a   : > { %11712 = vmatpush.bf16.msrb.mxu2 %v16592_v59 }
 0x88b   : > { %11739 = vmatpush.bf16.msrb.mxu0 %v16324_v55  ;;  %11704 = vmatpush.bf16.msrb.mxu1 %v16384_v22  ;;  %v16512_v55 = vor.u32 %v17886_v15, %v16511_v5  ;;  %v16639_v5 = vld [vmem:[#allocation19 + $0x308] sm:$0xf]  ;;  %v17918_v15 = vld [vmem:[#allocation19 + $0x314] sm:$0xf0] }
 0x88e   : > { %11713 = vmatpush.bf16.msrb.mxu2 %v16576_v42  ;;  %11705 = vmatmul.bf16.vlgmr.msrb.gmra.mxu1 %v20032_v29  ;;  %v16736_v42 = vor.u32 %v17942_v38, %v16735_v20  ;;  %v16705_v38 = vld [vmem:[#allocation19 + $0x398] sm:$0xf0] }
 0x88f   : > { %11740 = vmatpush.bf16.msrb.mxu0 %v16308_v2  ;;  %11749 = vmatpush.bf16.msra.mxu1 %v16500_v63  ;;  %v10751_v10 = vpop.f32.mrf.mxu0  ;;  %v10764_v1 = vpop.f32.mrf.mxu1  ;;  %v17908_v2 = vld [vmem:[#allocation19 + $0x2cc] sm:$0xf]  ;;  %v16609_v63 = vld [vmem:[#allocation19 + $0x2d8] sm:$0xf0] }
 0x890   : > { %v10752_v27 = vadd.f32 %v10751_v10, %v10581_v57  ;;  %v16612_v13 = vor.u32 %v17908_v2, %v16609_v63  ;;  %v16593_v57 = vld [vmem:[#allocation19 + $0x2b8] sm:$0xf0]  ;;  %v17924_v2 = vld [vmem:[#allocation19 + $0x34c] sm:$0xf] }
 0x891   : > { %11666 = vmatmul.bf16.vlgmr.msra.gmra.mxu2 %v20037_v33  ;;  %v16673_v63 = vld [vmem:[#allocation19 + $0x358] sm:$0xf0] }
 0x892   : > { %11714 = vmatpush.bf16.msrb.mxu2 %v16560_v4  ;;  %v10765_v44 = vadd.f32 %v10764_v1, %v10752_v27  ;;  %v16703_v1 = vld [vmem:[#allocation19 + $0x388] sm:$0xf]  ;;  %v16596_v4 = vor.u32 %v17904_v25, %v16593_v57  ;;  %v16580_v27 = vor.u32 %v17900_v51, %v16577_v30  ;;  %v17954_v57 = vld [vmem:[#allocation22 + $0x38] sm:$0xff] }
 0x893   : > { %11741 = vmatpush.bf16.msrb.mxu0 %v16292_v11  ;;  %11750 = vmatpush.bf16.msra.mxu1 %v16484_v8  ;;  %v16720_v11 = vor.u32 %v17938_v46, %v16719_v52  ;;  %v17934_v8 = vld [vmem:[#allocation19 + $0x394] sm:$0xf0]  ;;  %v16657_v52 = vld [vmem:[#allocation19 + $0x338] sm:$0xf0]  ;;  %v17916_v46 = vld [vmem:[#allocation19 + $0x30c] sm:$0xf] }
 0x894   : > { %v16704_v34 = vor.u32 %v17934_v8, %v16703_v1  ;;  %v17953_v1 = vld [vmem:[#allocation22 + $0x30] sm:$0xff]  ;;  %v17962_v51 = vld [vmem:[#allocation22 + $0x78] sm:$0xff] }
 0x895   : > { %v17950_v30 = vld [vmem:[#allocation22 + $0x18] sm:$0xff] }
 0x896   : > { %11715 = vmatpush.bf16.msrb.mxu2 %v16544_v54  ;;  %v17930_v54 = vld [vmem:[#allocation19 + $0x374] sm:$0xf0] }
 0x897   : > { %v10777_v3 = vpop.f32.mrf.mxu2  ;;  %v10790_v41 = vpop.f32.mrf.mxu3  ;;  %11742 = vmatpush.bf16.msrb.mxu0 %v16276_v7  ;;  %11751 = vmatpush.bf16.msra.mxu1 %v16468_v35  ;;  %v16687_v7 = vld [vmem:[#allocation19 + $0x368] sm:$0xf]  ;;  %v17896_v35 = vld [vmem:[#allocation19 + $0x26c] sm:$0xf] }
 0x898   : > { %v10778_v24 = vadd.f32 %v10777_v3, %v10765_v44  ;;  %v10753_v47 = vpop.f32.mrf.mxu0  ;;  %v10766_v19 = vpop.f32.mrf.mxu1  ;;  %v16688_v53 = vor.u32 %v17930_v54, %v16687_v7  ;;  %v16564_v16 = vor.u32 %v17896_v35, %v16561_v37  ;;  %v16545_v44 = vld [vmem:[#allocation19 + $0x258] sm:$0xf0]  ;;  %v16672_v3 = vor.u32 %v17926_v28, %v16671_v6  ;;  %v17948_v7 = vld [vmem:[#allocation22 + $0x8] sm:$0xff] }
 0x899   : > { %v17888_v47 = vld [vmem:[#allocation19 + $0x22c] sm:$0xf]  ;;  %v16529_v19 = vld [vmem:[#allocation19 + $0x238] sm:$0xf0] }
 0x89a   : > { %v10791_v43 = vadd.f32 %v10790_v41, %v10778_v24  ;;  %11716 = vmatpush.bf16.msrb.mxu2 %v16528_v62  ;;  %v16548_v41 = vor.u32 %v17892_v56, %v16545_v44  ;;  %v17922_v24 = vld [vmem:[#allocation19 + $0x334] sm:$0xf0]  ;;  %v17960_v54 = vld [vmem:[#allocation22 + $0x68] sm:$0xff]  ;;  %v17958_v28 = vld [vmem:[#allocation22 + $0x58] sm:$0xff] }
 0x89b   : > { %11743 = vmatpush.bf16.msrb.mxu0 %v16260_v50  ;;  %11752 = vmatpush.bf16.msra.mxu1 %v16452_v14  ;;  %v16655_v50 = vld [vmem:[#allocation19 + $0x328] sm:$0xf]  ;;  %v16532_v14 = vor.u32 %v17888_v47, %v16529_v19  ;;  %v17970_v56 = vld [vmem:[#allocation22 + $0xb8] sm:$0xff]  ;;  %v17968_v47 = vld [vmem:[#allocation22 + $0xa8] sm:$0xff] }
 0x89c   : > { %v10797_v18 = vmax.f32 %v10791_v43, 0.0  ;;  %v16656_v62 = vor.u32 %v17922_v24, %v16655_v50  ;;  %v16513_v43 = vld [vmem:[#allocation19 + $0x218] sm:$0xf0]  ;;  %v17969_v50 = vld [vmem:[#allocation22 + $0xb0] sm:$0xff]  ;;  %v17956_v24 = vld [vmem:[#allocation22 + $0x48] sm:$0xff] }
 0x89d   : > { %v16516_v48 = vor.u32 %v17884_v17, %v16513_v43  ;;  %v17966_v43 = vld [vmem:[#allocation22 + $0x98] sm:$0xff] }
 0x89e   : > { %v20045_v59 = vpack.c.bf16 %v10797_v18, %v10797_v18  ;;  %11744 = vmatmul.bf16.vlgmr.msrb.gmra.mxu0 %v20029_v32  ;;  %11717 = vmatpush.bf16.msrb.mxu2 %v16512_v55  ;;  %v17856_v32 = vld [vmem:[#allocation19 + $0x12c] sm:$0xf]  ;;  %v16737_v18 = vld [vmem:[#allocation19 + $0x3d8] sm:$0xf0] }
 0x89f   : > { %v10779_v9 = vpop.f32.mrf.mxu2  ;;  %v10792_v22 = vpop.f32.mrf.mxu3  ;;  %11753 = vmatpush.bf16.msra.mxu1 %v16436_v45  ;;  %v16404_v10 = vor.u32 %v17856_v32, %v16401_v12  ;;  %v16740_v55 = vor.u32 %v17940_v0, %v16737_v18  ;;  %v16721_v45 = vld [vmem:[#allocation19 + $0x3b8] sm:$0xf0]  ;;  %12053 = vmatpush.bf16.msra.mxu0 %v17954_v57  ;;  %v17964_v18 = vld [vmem:[#allocation22 + $0x88] sm:$0xff] }
 0x8a0   : > { %11627 = vmatmul.bf16.vlgmr.msra.gmra.mxu3 %v20045_v59  ;;  %v16689_v9 = vld [vmem:[#allocation19 + $0x378] sm:$0xf0] }
 0x8a1   : > { %11723 = vmatpush.bf16.msra.mxu3 %v16752_v31  ;;  %11718 = vmatmul.bf16.vlgmr.msrb.gmra.mxu2 %v20037_v33  ;;  %v17936_v31 = vld [vmem:[#allocation19 + $0x3ac] sm:$0xf]  ;;  %v16692_v22 = vor.u32 %v17928_v36, %v16689_v9 }
 0x8a2   : > { %11762 = vmatpush.bf16.msra.mxu2 %v16628_v61  ;;  %v16724_v20 = vor.u32 %v17936_v31, %v16721_v45  ;;  %v17932_v61 = vld [vmem:[#allocation19 + $0x38c] sm:$0xf] }
 0x8a3   : > { %11754 = vmatpush.bf16.msra.mxu1 %v16420_v60  ;;  %v16708_v21 = vor.u32 %v17932_v61, %v16705_v38  ;;  %v17920_v60 = vld [vmem:[#allocation19 + $0x32c] sm:$0xf]  ;;  %12054 = vmatpush.bf16.msra.mxu0 %v17953_v1  ;;  %v17963_v38 = vld [vmem:[#allocation22 + $0x80] sm:$0xff] }
 0x8a5   : > { %11724 = vmatpush.bf16.msra.mxu3 %v16736_v42  ;;  %v16676_v42 = vor.u32 %v17924_v2, %v16673_v63  ;;  %v17976_v63 = vld [vmem:[#allocation22 + $0xe8] sm:$0xff] }
 0x8a6   : > { %11763 = vmatpush.bf16.msra.mxu2 %v16612_v13  ;;  %v16660_v13 = vor.u32 %v17920_v60, %v16657_v52 }
 0x8a7   : > { %11755 = vmatpush.bf16.msra.mxu1 %v16404_v10 }
 0x8a9   : > { %11725 = vmatpush.bf16.msra.mxu3 %v16720_v11 }
 0x8aa   : > { %11764 = vmatpush.bf16.msra.mxu2 %v16596_v4  ;;  %v17952_v4 = vld [vmem:[#allocation22 + $0x28] sm:$0xff] }
 0x8ab   : > { %11756 = vmatpush.bf16.msra.mxu1 %v16388_v49  ;;  %12055 = vmatpush.bf16.msra.mxu0 %v17952_v4  ;;  %v17949_v49 = vld [vmem:[#allocation22 + $0x10] sm:$0xff] }
 0x8ac   : > { %v17973_v4 = vld [vmem:[#allocation22 + $0xd0] sm:$0xff] }
 0x8ad   : > { %11726 = vmatpush.bf16.msra.mxu3 %v16704_v34 }
 0x8ae   : > { %11765 = vmatpush.bf16.msra.mxu2 %v16580_v27  ;;  %11757 = vmatmul.bf16.vlgmr.msra.gmra.mxu1 %v20032_v29  ;;  %v16640_v29 = vor.u32 %v17918_v15, %v16639_v5  ;;  %v17961_v27 = vld [vmem:[#allocation22 + $0x70] sm:$0xff]  ;;  %v17967_v5 = vld [vmem:[#allocation22 + $0xa0] sm:$0xff]  ;;  %v20063_v15 = vld [vmem:[#allocation20] sm:$0xf] }
 0x8af   : > { %12056 = vmatpush.bf16.msra.mxu0 %v17951_v23  ;;  %12066 = vmatpush.bf16.msrb.mxu1 %v17962_v51  ;;  %v11572_v17 = vperm.slane %v20063_v15, 0  ;;  %v11573_v9 = vperm.slane %v20063_v15, 1  ;;  %v17972_v23 = vld [vmem:[#allocation22 + $0xc8] sm:$0xff] }
 0x8b0   : > { %11679 = vmatmul.bf16.vlgmr.msrb.gmra.mxu3 %v20045_v59 }
 0x8b1   : > { %11727 = vmatpush.bf16.msra.mxu3 %v16688_v53  ;;  %v17947_v53 = vld [vmem:[#allocation22] sm:$0xff] }
 0x8b2   : > { %11766 = vmatpush.bf16.msra.mxu2 %v16564_v16  ;;  %v17959_v16 = vld [vmem:[#allocation22 + $0x60] sm:$0xff] }
 0x8b3   : > { %12057 = vmatpush.bf16.msra.mxu0 %v17950_v30  ;;  %12067 = vmatpush.bf16.msrb.mxu1 %v17961_v27 }
 0x8b5   : > { %11728 = vmatpush.bf16.msra.mxu3 %v16672_v3 }
 0x8b6   : > { %11767 = vmatpush.bf16.msra.mxu2 %v16548_v41  ;;  %v17957_v41 = vld [vmem:[#allocation22 + $0x50] sm:$0xff] }
 0x8b7   : > { %12058 = vmatpush.bf16.msra.mxu0 %v17949_v49  ;;  %12068 = vmatpush.bf16.msrb.mxu1 %v17960_v54 }
 0x8b9   : > { %11729 = vmatpush.bf16.msra.mxu3 %v16656_v62 }
 0x8ba   : > { %11768 = vmatpush.bf16.msra.mxu2 %v16532_v14  ;;  %v17955_v14 = vld [vmem:[#allocation22 + $0x40] sm:$0xff] }
 0x8bb   : > { %12059 = vmatpush.bf16.msra.mxu0 %v17948_v7  ;;  %12069 = vmatpush.bf16.msrb.mxu1 %v17959_v16  ;;  %v11575_v16 = vperm.slane %v20063_v15, 3 }
 0x8bd   : > { %11730 = vmatpush.bf16.msra.mxu3 %v16640_v29 }
 0x8be   : > { %11769 = vmatpush.bf16.msra.mxu2 %v16516_v48 }
 0x8bf   : > { %12060 = vmatpush.bf16.msra.mxu0 %v17947_v53  ;;  %12070 = vmatpush.bf16.msrb.mxu1 %v17958_v28 }
 0x8c0   : > { %11731 = vmatmul.bf16.vlgmr.msra.gmra.mxu3 %v20045_v59 }
 0x8c1   : > { %11775 = vmatpush.bf16.msrb.mxu3 %v16756_v40  ;;  %11770 = vmatmul.bf16.vlgmr.msra.gmra.mxu2 %v20037_v33  ;;  %v16641_v33 = vld [vmem:[#allocation19 + $0x318] sm:$0xf0] }
 0x8c2   : > { %v16644_v32 = vor.u32 %v17916_v46, %v16641_v33  ;;  %12079 = vmatpush.bf16.msrb.mxu2 %v17970_v56  ;;  %v17975_v46 = vld [vmem:[#allocation22 + $0xe0] sm:$0xff] }
 0x8c3   : > { %12071 = vmatpush.bf16.msrb.mxu1 %v17957_v41 }
 0x8c5   : > { %11776 = vmatpush.bf16.msrb.mxu3 %v16740_v55 }
 0x8c6   : > { %12080 = vmatpush.bf16.msrb.mxu2 %v17969_v50 }
 0x8c7   : > { %12072 = vmatpush.bf16.msrb.mxu1 %v17956_v24 }
 0x8c9   : > { %11777 = vmatpush.bf16.msrb.mxu3 %v16724_v20 }
 0x8ca   : > { %12081 = vmatpush.bf16.msrb.mxu2 %v17968_v47 }
 0x8cb   : > { %12073 = vmatpush.bf16.msrb.mxu1 %v17955_v14 }
 0x8cd   : > { %11778 = vmatpush.bf16.msrb.mxu3 %v16708_v21  ;;  %v17978_v21 = vld [vmem:[#allocation22 + $0xf8] sm:$0xff] }
 0x8ce   : > { %12082 = vmatpush.bf16.msrb.mxu2 %v17967_v5 }
 0x8d1   : > { %11779 = vmatpush.bf16.msrb.mxu3 %v16692_v22  ;;  %v17977_v22 = vld [vmem:[#allocation22 + $0xf0] sm:$0xff] }
 0x8d2   : > { %12083 = vmatpush.bf16.msrb.mxu2 %v17966_v43 }
 0x8d5   : > { %11780 = vmatpush.bf16.msrb.mxu3 %v16676_v42 }
 0x8d6   : > { %12084 = vmatpush.bf16.msrb.mxu2 %v17965_v26 }
 0x8d9   : > { %11781 = vmatpush.bf16.msrb.mxu3 %v16660_v13 }
 0x8da   : > { %12085 = vmatpush.bf16.msrb.mxu2 %v17964_v18 }
 0x8db   : > { %v11589_v12 = vpop.f32.mrf.mxu0 }
 0x8dc   : > { %v11590_v29 = vadd.f32 %v11589_v12, %v11572_v17  ;;  %v11860_v17 = vld [vmem:[#allocation23] sm:$0x1] }
 0x8dd   : > { %11782 = vmatpush.bf16.msrb.mxu3 %v16644_v32 }
 0x8de   : > { %12086 = vmatpush.bf16.msrb.mxu2 %v17963_v38 }
 0x8e0   : > { %11783 = vmatmul.bf16.vlgmr.msrb.gmra.mxu3 %v20045_v59 }
 0x8e1   : > { %12092 = vmatpush.bf16.msra.mxu3 %v17978_v21 }
 0x8e3   : > { %v11591_v25 = vpop.f32.mrf.mxu0 }
 0x8e4   : > { %v17974_v25 = vld [vmem:[#allocation22 + $0xd8] sm:$0xff] }
 0x8e5   : > { %12093 = vmatpush.bf16.msra.mxu3 %v17977_v22 }
 0x8e9   : > { %12094 = vmatpush.bf16.msra.mxu3 %v17976_v63 }
 0x8eb   : > { %v11602_v11 = vpop.f32.mrf.mxu1  ;;  %v20055_v10 = vpop.f32.mrf.mxu0 }
 0x8ec   : > { %v11603_v40 = vadd.f32 %v11602_v11, %v11590_v29  ;;  %v11642_v60 = vadd.f32 %v20055_v10, %v11573_v9 }
 0x8ed   : > { %12095 = vmatpush.bf16.msra.mxu3 %v17975_v46 }
 0x8f1   : > { %12096 = vmatpush.bf16.msra.mxu3 %v17974_v25 }
 0x8f3   : > { %v11604_v8 = vpop.f32.mrf.mxu1  ;;  %v11643_v39 = vpop.f32.mrf.mxu0 }
 0x8f4   : > { %v11574_v8 = vperm.slane %v20063_v15, 2 }
 0x8f5   : > { %12097 = vmatpush.bf16.msra.mxu3 %v17973_v4 }
 0x8f9   : > { %12098 = vmatpush.bf16.msra.mxu3 %v17972_v23 }
 0x8fb   : > { %v20057_v59 = vpop.f32.mrf.mxu1  ;;  %v20059_v34 = vpop.f32.mrf.mxu0 }
 0x8fc   : > { %v11655_v13 = vadd.f32 %v20057_v59, %v11642_v60  ;;  %v11694_v10 = vadd.f32 %v20059_v34, %v11574_v8  ;;  %v17971_v59 = vld [vmem:[#allocation22 + $0xc0] sm:$0xff] }
 0x8fd   : > { %12099 = vmatpush.bf16.msra.mxu3 %v17971_v59 }
 0x903   : > { %v11656_v37 = vpop.f32.mrf.mxu1  ;;  %v11695_v6 = vpop.f32.mrf.mxu0 }
 0x904   : > { %v11615_v35 = vpop.f32.mrf.mxu2 }
 0x905   : > { %v11616_v0 = vadd.f32 %v11615_v35, %v11603_v40 }
 0x90b   : > { %v20061_v3 = vpop.f32.mrf.mxu1 }
 0x90c   : > { %v11617_v44 = vpop.f32.mrf.mxu2  ;;  %v11707_v51 = vadd.f32 %v20061_v3, %v11694_v10 }
 0x913   : > { %v11708_v62 = vpop.f32.mrf.mxu1 }
 0x914   : > { %v11667_v19 = vpop.f32.mrf.mxu2 }
 0x915   : > { %v11668_v33 = vadd.f32 %v11667_v19, %v11655_v13 }
 0x91b   : > { %v11745_v58 = vpop.f32.mrf.mxu0 }
 0x91c   : > { %v11669_v48 = vpop.f32.mrf.mxu2  ;;  %v11746_v6 = vadd.f32 %v11745_v58, %v11575_v16 }
 0x923   : > { %v11628_v55 = vpop.f32.mrf.mxu3  ;;  %v11747_v31 = vpop.f32.mrf.mxu0 }
 0x924   : > { %v11629_v45 = vadd.f32 %v11628_v55, %v11616_v0  ;;  %v11719_v61 = vpop.f32.mrf.mxu2 }
 0x925   : > { %v11720_v30 = vadd.f32 %v11719_v61, %v11707_v51 }
 0x926   : > { %v11788_v20 = vmax.f32 %v11629_v45, 0.0 }
 0x928   : > { %v11792_v36 = vpack.c.bf16 %v11788_v20, %v11788_v20 }
 0x92a   : > { %12061 = vmatmul.bf16.vlgmr.msra.gmra.mxu0 %v11792_v36 }
 0x92b   : > { %v11630_v2 = vpop.f32.mrf.mxu3  ;;  %v11758_v42 = vpop.f32.mrf.mxu1 }
 0x92c   : > { %v11721_v52 = vpop.f32.mrf.mxu2  ;;  %v11759_v28 = vadd.f32 %v11758_v42, %v11746_v6 }
 0x933   : > { %v11680_v32 = vpop.f32.mrf.mxu3  ;;  %v11760_v57 = vpop.f32.mrf.mxu1 }
 0x934   : > { %v11681_v12 = vadd.f32 %v11680_v32, %v11668_v33 }
 0x936   : > { %v11789_v11 = vmax.f32 %v11681_v12, 0.0 }
 0x938   : > { %v11793_v1 = vpack.c.bf16 %v11789_v11, %v11789_v11 }
 0x93a   : > { %12074 = vmatmul.bf16.vlgmr.msrb.gmra.mxu1 %v11793_v1 }
 0x93b   : > { %v11682_v39 = vpop.f32.mrf.mxu3 }
 0x943   : > { %v11732_v49 = vpop.f32.mrf.mxu3 }
 0x944   : > { %v11733_v27 = vadd.f32 %v11732_v49, %v11720_v30  ;;  %v11771_v7 = vpop.f32.mrf.mxu2 }
 0x945   : > { %v11772_v34 = vadd.f32 %v11771_v7, %v11759_v28 }
 0x946   : > { %v11790_v54 = vmax.f32 %v11733_v27, 0.0 }
 0x948   : > { %v11794_v35 = vpack.c.bf16 %v11790_v54, %v11790_v54 }
 0x94a   : > { %12087 = vmatmul.bf16.vlgmr.msrb.gmra.mxu2 %v11794_v35 }
 0x94b   : > { %v11734_v37 = vpop.f32.mrf.mxu3 }
 0x94c   : > { %v11773_v53 = vpop.f32.mrf.mxu2 }
 0x963   : > { %v11784_v56 = vpop.f32.mrf.mxu3 }
 0x964   : > { %v11785_v44 = vadd.f32 %v11784_v56, %v11772_v34 }
 0x966   : > { %v11791_v3 = vmax.f32 %v11785_v44, 0.0 }
 0x968   : > { %v11795_v41 = vpack.c.bf16 %v11791_v3, %v11791_v3 }
 0x96a   : > { %12100 = vmatmul.bf16.vlgmr.msra.gmra.mxu3 %v11795_v41 }
 0x96b   : > { %v11786_v50 = vpop.f32.mrf.mxu3 }
 0x9a7   : > { %v12062_v24 = vpop.f32.mrf.mxu0 }
 0x9a8   : > { %v12063_v43 = vadd.f32 %v12062_v24, %v11860_v17 }
 0x9af   : > { %v12064_v47 = vpop.f32.mrf.mxu0 }
 0x9b7   : > { %v12075_v19 = vpop.f32.mrf.mxu1 }
 0x9b8   : > { %v12076_v26 = vadd.f32 %v12075_v19, %v12063_v43 }
 0x9bf   : > { %v12077_v62 = vpop.f32.mrf.mxu1 }
 0x9cd   : > { %v12088_v14 = vpop.f32.mrf.mxu2 }
 0x9ce   : > { %v12089_v29 = vadd.f32 %v12088_v14, %v12076_v26 }
 0x9d5   : > { %v12090_v5 = vpop.f32.mrf.mxu2 }
 0x9ed   : > { %v12101_v15 = vpop.f32.mrf.mxu3 }
 0x9ee   : > { %v12102_v58 = vadd.f32 %v12101_v15, %v12089_v29 }
 0x9f0   : > { %v12106_v48 = vsel %vm12105_vm14, %v12102_v58, -inf }
 0x9f1   : > { %12107 = vmax.xlane.f32.xlu2 %v12106_v48 }
 0x9f5   : > { %v12103_v40 = vpop.f32.mrf.mxu3 }
 0xa64   : > { %v12108_v0 = vpop.xlane.xlu2 %12107 }
 0xa65   : > { %v12109_v18 = vsub.f32 %v12102_v58, %v12108_v0 }
 0xa67   : > { %v12110_v55 = vmul.f32 1.442695, %v12109_v18 }
 0xa69   : > { %18130 = vpow2.f32 %v12110_v55 }
 0xa6f   : > { %v18131_v31 = vpop.eup %18130 }
 0xa70   : > { %v12112_v45 = vsel %vm12105_vm14, %v18131_v31, 0.0 }
 0xa71   : > { %12113 = vadd.xlane.f32.xlu0 %v12112_v45 }
 0xae4   : > { %v12114_v20 = vpop.xlane.xlu0 %12113 }
 0xae5   : > { %18132 = vlog2.f32 %v12114_v20 }
 0xaeb   : > { %v18133_v61 = vpop.eup %18132 }
 0xaec   : > { %v12116_v38 = vmul.f32 0.6931472, %v18133_v61 }
 0xaee   : > { %v12117_v21 = vsub.f32 %v12109_v18, %v12116_v38 }
 0xaf0   : > { %12118 = vst.msk [vmem:[%s646_s25] sm:$0x1] %vm12105_vm14, %v12117_v21 }
 0xaf1   : > { %18482 = shalt.err (!%p18479_p8)
}
 0xaf2   : > { %18019 = dma.vmem_to_hbm [thread:$0]  (%p18680_p5), %s12131_s1, 16, %s12133_s7, %s12120_s28  }
 0xaf3 PF: > { %s20199_s15 = sld [smem:[#allocation36_spill]] }
 0xaf4   : > { %s20200_s21 = sld [smem:[#allocation33_spill]] }
 0xaf9   : > { %p18076_p9 = scmp.ge.s32.totalorder %s20199_s15, 2 }
 0xafa   : > { %s12144_s23 = sand.u32 1, %s20200_s21  }
 0xafb   : > { %p18053_p10 = pnand %p18076_p9, %p18684_p6  ;;  %s12145_s19 = scalar_lea.sflag [#allocation10], %s12144_s23 }
 0xafd   : > { %p18054_p11 = pneg %p18053_p10 }
 0xaff   : > { %18524 = dma.done.wait (%p18054_p11), %s12145_s19, 16  }
 0xb00   : > { %18526 = vsyncadd (%p18054_p11), %s12145_s19, 4294967280  ;;  %s20202_s21 = sld [smem:[#allocation37_spill]] }
 0xb01   : > { %s20203_s18 = sld [smem:[#allocation34_spill]] }
 0xb02   : > { %s20204_s19 = sld [smem:[#allocation35_spill]] }
 0xb03   : > { %s20205_s20 = sld [smem:[#allocation38_spill]] }
 0xb06   : > { %p31_p12 = scmp.ge.s32.totalorder %s20202_s21, 4  }
 0xb08   :  { %33 = sbr.rel (!%p31_p12) target bundleno = 14 (0xe), region = 205 }
 0xb0d   :  { %12150 = vsyncpa [#allocation9], 1 }
 0xb0e   :  { %12152 = vsyncpa [#allocation9 + $0x1], 1 }
 0xb0f   :  { %12153 = vsyncpa [#allocation12], 1 }
 0xb10   :  { %12154 = vsyncpa [#allocation15], 1 }
 0xb11   :  { %12155 = vsyncpa [#allocation18], 1 }
 0xb12   :  { %12156 = vsyncpa [#allocation21], 1 }
 0xb13   :  { %12157 = vsyncpa [#allocation24], 1 }
 0xb14   :  { %12158 = vsyncpa [#allocation10], 1 }
 0xb15   :  { %12160 = vsyncpa [#allocation10 + $0x1], 1 }

</bundles_post_ra>
